<compile_context>
chip_gen: v6e
topology: v6e:2x2x1
jax: 0.10.0
libtpu: 0.0.40
codegen_flags: <defaults>
</compile_context>

<pallas_src>
import functools

import numpy as np
import jax
import jax.numpy as jnp
from jax.experimental import pallas as pl
from jax.experimental.pallas import tpu as pltpu


_N_RDB = 3                      # dense blocks per RRDB
_N_CONV = 5                     # convs per dense block
_MXU_DTYPE = jnp.float32        # matmul operand dtype (bf16 option, see TODO)


# ----------------------------------------------------------------------------
# The single fused kernel
# ----------------------------------------------------------------------------
def _rrdb_kernel(x_ref, m_ref, w_ref, b_ref, o_ref, bank_ref, *, nf, gc, W):
    """Whole RRDB on a (nf, lanes) channel-major activation, VMEM resident.

    bank_ref: persistent growing im2col bank, rows laid out as
      [9*nf taps of block-input | 9*gc taps of x1 | ... | 9*gc taps of x4],
    each segment tap-major (k = 3*(dy+1)+(dx+1)) with channels minor.
    """
    lanes = x_ref.shape[-1]
    masks = [m_ref[pl.ds(k, 1), :] for k in range(9)]     # 9 x (1, lanes)
    rows_per_block = 4 * gc + nf

    def write_im2col(a, row_base):
        """Write the 9-tap im2col of activation a (C, lanes) into the bank."""
        C = a.shape[0]
        k = 0
        for dy in (-1, 0, 1):
            for dx in (-1, 0, 1):
                off = dy * W + dx
                if off == 0:
                    tap = a                                       # centre tap
                else:
                    # tap[:, p] = a[:, p+off]; out-of-image positions zeroed by
                    # the precomputed 0/1 mask (inputs assumed finite: 0*x==0).
                    tap = pltpu.roll(a, shift=(-off) % lanes, axis=1) * masks[k]
                bank_ref[pl.ds(row_base + k * C, C), :] = tap.astype(bank_ref.dtype)
                k += 1

    def conv(K, wrow, cout, lrelu):
        """One matmul per conv against the first K bank rows."""
        w = w_ref[pl.ds(wrow, cout), pl.ds(0, K)]
        acc = jnp.dot(w, bank_ref[pl.ds(0, K), :],
                      preferred_element_type=jnp.float32)
        acc = acc + b_ref[pl.ds(wrow, cout), :]           # (cout,1) over lanes
        if lrelu:
            acc = jnp.maximum(acc, 0.2 * acc)             # LeakyReLU(0.2)
        return acc

    x = x_ref[...].astype(jnp.float32)                    # (nf, lanes)
    out = x
    for r in range(_N_RDB):
        wrow0 = r * rows_per_block
        blk_in = out
        act = blk_in
        base = 0
        for j in range(_N_CONV):
            write_im2col(act, base)
            base += 9 * act.shape[0]                      # K grows per conv
            cout = nf if j == _N_CONV - 1 else gc
            act = conv(base, wrow0 + j * gc, cout, lrelu=(j < _N_CONV - 1))
        out = act * 0.2 + blk_in                          # dense-block residual
    out = out * 0.2 + x                                   # outer RRDB residual
    o_ref[...] = out.astype(o_ref.dtype)                  # lane-dense store


# ----------------------------------------------------------------------------
# Host-side packing + the public forward
# ----------------------------------------------------------------------------
def _tap_masks(H, W):
    """(9, H*W) 0/1 validity masks, tap order matching the kernel (dy, dx)."""
    r = np.arange(H).reshape(H, 1)
    c = np.arange(W).reshape(1, W)
    rows = []
    for dy in (-1, 0, 1):
        for dx in (-1, 0, 1):
            valid = ((r + dy >= 0) & (r + dy < H) & (c + dx >= 0) & (c + dx < W))
            rows.append(valid.reshape(H * W))
    return jnp.asarray(np.stack(rows).astype(np.float32))


def _pack_params(rdb_params, nf, gc):
    """Pack all 15 convs into one K-padded weight slab and one bias slab.

    Weight slab rows: block-major, then [conv1..conv5]; K layout per conv is
    segment-major (x, x1, ...) with tap-major / channel-minor inside each
    segment — exactly the bank row layout used in the kernel.
    """
    seg_schedule = [[nf],
                    [nf, gc],
                    [nf, gc, gc],
                    [nf, gc, gc, gc],
                    [nf, gc, gc, gc, gc]]
    k_max = 9 * (nf + 4 * gc)
    w_rows, b_rows = [], []
    for block in rdb_params:
        for (w_hwio, b), segs in zip(block, seg_schedule):
            cout = w_hwio.shape[-1]
            parts, off = [], 0
            for cs in segs:
                wseg = w_hwio[:, :, off:off + cs, :]              # (3,3,cs,cout)
                off += cs
                parts.append(jnp.transpose(wseg, (3, 0, 1, 2)).reshape(cout, 9 * cs))
            wmat = jnp.concatenate(parts, axis=1)                 # (cout, 9*cin)
            wmat = jnp.pad(wmat, ((0, 0), (0, k_max - wmat.shape[1])))
            w_rows.append(wmat)
            b_rows.append(b.reshape(cout, 1))
    w_slab = jnp.concatenate(w_rows, axis=0).astype(_MXU_DTYPE)   # (3*(4gc+nf), k_max)
    b_slab = jnp.concatenate(b_rows, axis=0).astype(jnp.float32)  # (3*(4gc+nf), 1)
    return w_slab, b_slab


@jax.jit
def rrdb_forward(x_nchw, rdb_params):
    """RRDB.forward. x_nchw: (N, nf, H, W), matching the PyTorch interface."""
    N, nf, H, W = x_nchw.shape
    HW = H * W
    lanes = N * HW
    gc = rdb_params[0][0][0].shape[-1]

    # Fold batch into lanes: (nf, N*H*W); tile boundary masks per image.
    x_cm = jnp.transpose(x_nchw.reshape(N, nf, HW), (1, 0, 2)).reshape(nf, lanes)
    masks = jnp.tile(_tap_masks(H, W), (1, N))                    # (9, lanes)
    w_slab, b_slab = _pack_params(rdb_params, nf, gc)

    rows_pb = 4 * gc + nf
    k_max = 9 * (nf + 4 * gc)

    cins = [nf + i * gc for i in range(_N_CONV)]
    couts = [gc] * 4 + [nf]
    flops = _N_RDB * sum(2 * lanes * 9 * ci * co for ci, co in zip(cins, couts))
    bytes_accessed = 4 * (2 * x_cm.size + masks.size) \
        + w_slab.dtype.itemsize * w_slab.size + 4 * b_slab.size

    out_cm = pl.pallas_call(
        functools.partial(_rrdb_kernel, nf=nf, gc=gc, W=W),
        out_shape=jax.ShapeDtypeStruct((nf, lanes), x_nchw.dtype),
        grid=(1,),
        in_specs=[
            pl.BlockSpec((nf, lanes), lambda i: (0, 0)),
            pl.BlockSpec((9, lanes), lambda i: (0, 0)),
            pl.BlockSpec((_N_RDB * rows_pb, k_max), lambda i: (0, 0)),
            pl.BlockSpec((_N_RDB * rows_pb, 1), lambda i: (0, 0)),
        ],
        out_specs=pl.BlockSpec((nf, lanes), lambda i: (0, 0)),
        scratch_shapes=[pltpu.VMEM((k_max, lanes), _MXU_DTYPE)],   # growing bank
        compiler_params=pltpu.CompilerParams(
            dimension_semantics=("arbitrary",),
            vmem_limit_bytes=32 * 1024 * 1024),
        cost_estimate=pl.CostEstimate(flops=flops, transcendentals=0,
                                      bytes_accessed=int(bytes_accessed)),
    )(x_cm, masks, w_slab, b_slab)

    return jnp.transpose(out_cm.reshape(nf, N, H, W), (1, 0, 2, 3))


# ----------------------------------------------------------------------------
# Deterministic parameter init (kaiming-like normal scaled by 0.1, as in
# arch_util.initialize_weights; synthetic -- no checkpoint loading).
# ----------------------------------------------------------------------------
def init_rrdb_params(key, nf, gc):
    in_channels = [nf, nf + gc, nf + 2 * gc, nf + 3 * gc, nf + 4 * gc]
    out_channels = [gc, gc, gc, gc, nf]
    params = []
    for _ in range(_N_RDB):
        block = []
        for cin, cout in zip(in_channels, out_channels):
            key, kw, kb = jax.random.split(key, 3)
            fan_in = 3 * 3 * cin
            std = 0.1 * (2.0 / fan_in) ** 0.5
            w = std * jax.random.normal(kw, (3, 3, cin, cout), jnp.float32)
            b = 0.01 * jax.random.normal(kb, (cout,), jnp.float32)
            block.append((w, b))
        params.append(block)
    return params


# ----------------------------------------------------------------------------
# Pure-JAX reference (for the correctness check)
# ----------------------------------------------------------------------------
def _ref_conv3x3(x, w, b, apply_lrelu):
    y = jax.lax.conv_general_dilated(
        x, w, window_strides=(1, 1), padding="SAME",
        dimension_numbers=("NHWC", "HWIO", "NHWC"))
    y = y + b
    if apply_lrelu:
        y = jnp.where(y >= 0, y, 0.2 * y)
    return y


def _ref_rdb(x, params):
    (w1, b1), (w2, b2), (w3, b3), (w4, b4), (w5, b5) = params
    x1 = _ref_conv3x3(x, w1, b1, True)
    x2 = _ref_conv3x3(jnp.concatenate((x, x1), -1), w2, b2, True)
    x3 = _ref_conv3x3(jnp.concatenate((x, x1, x2), -1), w3, b3, True)
    x4 = _ref_conv3x3(jnp.concatenate((x, x1, x2, x3), -1), w4, b4, True)
    x5 = _ref_conv3x3(jnp.concatenate((x, x1, x2, x3, x4), -1), w5, b5, False)
    return x5 * 0.2 + x


def _ref_rrdb(x_nchw, rdb_params):
    x = jnp.transpose(x_nchw, (0, 2, 3, 1))
    out = _ref_rdb(x, rdb_params[0])
    out = _ref_rdb(out, rdb_params[1])
    out = _ref_rdb(out, rdb_params[2])
    out = out * 0.2 + x
    return jnp.transpose(out, (0, 3, 1, 2))


# ----------------------------------------------------------------------------
if __name__ == "__main__":
    # Small RRDB(nf=8, gc=8): every channel segment is sublane-aligned (8).
    N, nf, gc, H, W = 2, 8, 8, 16, 16

    key = jax.random.PRNGKey(0)
    key, kx = jax.random.split(key)
    x = jax.random.normal(kx, (N, nf, H, W), jnp.float32)   # NCHW, PyTorch layout
    params = init_rrdb_params(key, nf, gc)

    out = jax.block_until_ready(rrdb_forward(x, params))
    assert out.shape == (N, nf, H, W), out.shape

    ref = jax.block_until_ready(_ref_rrdb(x, params))
    assert jnp.allclose(out, ref, atol=1e-4, rtol=1e-4), (
        float(jnp.max(jnp.abs(out - ref))))

    print("KERNEL_OK")
</pallas_src>

<mosaic_0001>
module attributes {stable_mosaic.version = 11 : i64} {
  func.func @_rrdb_kernel(%arg0: i32, %arg1: memref<8x512xf32, #tpu.memory_space<vmem>>, %arg2: memref<9x512xf32, #tpu.memory_space<vmem>>, %arg3: memref<120x360xf32, #tpu.memory_space<vmem>>, %arg4: memref<120x1xf32, #tpu.memory_space<vmem>>, %arg5: memref<8x512xf32, #tpu.memory_space<vmem>>, %arg6: memref<360x512xf32, #tpu.memory_space<vmem>>) attributes {dimension_semantics = [#tpu.dimension_semantics<arbitrary>], iteration_bounds = array<i64: 1>, scalar_prefetch = 0 : i64, scratch_operands = 1 : i64, tpu.core_type = #tpu.core_type<tc>, window_params = [{pipeline_mode = #tpu.pipeline_mode<synchronous>, transform_indices = @transform_0, window_bounds = array<i64: 8, 512>}, {pipeline_mode = #tpu.pipeline_mode<synchronous>, transform_indices = @transform_1, window_bounds = array<i64: 9, 512>}, {pipeline_mode = #tpu.pipeline_mode<synchronous>, transform_indices = @transform_2, window_bounds = array<i64: 120, 360>}, {pipeline_mode = #tpu.pipeline_mode<synchronous>, transform_indices = @transform_3, window_bounds = array<i64: 120, 1>}, {pipeline_mode = #tpu.pipeline_mode<synchronous>, transform_indices = @transform_4, window_bounds = array<i64: 8, 512>}]} {
    %c0 = arith.constant 0 : index
    %c0_0 = arith.constant 0 : index
    %0 = vector.load %arg2[%c0, %c0_0] : memref<9x512xf32, #tpu.memory_space<vmem>>, vector<1x512xf32>
    %c1 = arith.constant 1 : index
    %c0_1 = arith.constant 0 : index
    %1 = vector.load %arg2[%c1, %c0_1] : memref<9x512xf32, #tpu.memory_space<vmem>>, vector<1x512xf32>
    %c2 = arith.constant 2 : index
    %c0_2 = arith.constant 0 : index
    %2 = vector.load %arg2[%c2, %c0_2] : memref<9x512xf32, #tpu.memory_space<vmem>>, vector<1x512xf32>
    %c3 = arith.constant 3 : index
    %c0_3 = arith.constant 0 : index
    %3 = vector.load %arg2[%c3, %c0_3] : memref<9x512xf32, #tpu.memory_space<vmem>>, vector<1x512xf32>
    %c5 = arith.constant 5 : index
    %c0_4 = arith.constant 0 : index
    %4 = vector.load %arg2[%c5, %c0_4] : memref<9x512xf32, #tpu.memory_space<vmem>>, vector<1x512xf32>
    %c6 = arith.constant 6 : index
    %c0_5 = arith.constant 0 : index
    %5 = vector.load %arg2[%c6, %c0_5] : memref<9x512xf32, #tpu.memory_space<vmem>>, vector<1x512xf32>
    %c7 = arith.constant 7 : index
    %c0_6 = arith.constant 0 : index
    %6 = vector.load %arg2[%c7, %c0_6] : memref<9x512xf32, #tpu.memory_space<vmem>>, vector<1x512xf32>
    %c8 = arith.constant 8 : index
    %c0_7 = arith.constant 0 : index
    %7 = vector.load %arg2[%c8, %c0_7] : memref<9x512xf32, #tpu.memory_space<vmem>>, vector<1x512xf32>
    %c0_8 = arith.constant 0 : index
    %c0_9 = arith.constant 0 : index
    %8 = vector.load %arg1[%c0_8, %c0_9] : memref<8x512xf32, #tpu.memory_space<vmem>>, vector<8x512xf32>
    %c17_i32 = arith.constant 17 : i32
    %9 = tpu.dynamic_rotate %8 by %c17_i32 dim 1 : vector<8x512xf32>, i32 -> vector<8x512xf32>
    %10 = vector.broadcast %0 : vector<1x512xf32> to vector<8x512xf32>
    %11 = arith.mulf %9, %10 : vector<8x512xf32>
    %c0_10 = arith.constant 0 : index
    %c0_11 = arith.constant 0 : index
    %12 = vector.load %arg6[%c0_10, %c0_11] : memref<360x512xf32, #tpu.memory_space<vmem>>, vector<8x512xf32>
    tpu.vector_store %arg6[%c0_10, %c0_11], %11 {strides = array<i32>} : memref<360x512xf32, #tpu.memory_space<vmem>>, vector<8x512xf32>,
    %c16_i32 = arith.constant 16 : i32
    %13 = tpu.dynamic_rotate %8 by %c16_i32 dim 1 : vector<8x512xf32>, i32 -> vector<8x512xf32>
    %14 = vector.broadcast %1 : vector<1x512xf32> to vector<8x512xf32>
    %15 = arith.mulf %13, %14 : vector<8x512xf32>
    %c8_12 = arith.constant 8 : index
    %c0_13 = arith.constant 0 : index
    %16 = vector.load %arg6[%c8_12, %c0_13] : memref<360x512xf32, #tpu.memory_space<vmem>>, vector<8x512xf32>
    tpu.vector_store %arg6[%c8_12, %c0_13], %15 {strides = array<i32>} : memref<360x512xf32, #tpu.memory_space<vmem>>, vector<8x512xf32>,
    %c15_i32 = arith.constant 15 : i32
    %17 = tpu.dynamic_rotate %8 by %c15_i32 dim 1 : vector<8x512xf32>, i32 -> vector<8x512xf32>
    %18 = vector.broadcast %2 : vector<1x512xf32> to vector<8x512xf32>
    %19 = arith.mulf %17, %18 : vector<8x512xf32>
    %c16 = arith.constant 16 : index
    %c0_14 = arith.constant 0 : index
    %20 = vector.load %arg6[%c16, %c0_14] : memref<360x512xf32, #tpu.memory_space<vmem>>, vector<8x512xf32>
    tpu.vector_store %arg6[%c16, %c0_14], %19 {strides = array<i32>} : memref<360x512xf32, #tpu.memory_space<vmem>>, vector<8x512xf32>,
    %c1_i32 = arith.constant 1 : i32
    %21 = tpu.dynamic_rotate %8 by %c1_i32 dim 1 : vector<8x512xf32>, i32 -> vector<8x512xf32>
    %22 = vector.broadcast %3 : vector<1x512xf32> to vector<8x512xf32>
    %23 = arith.mulf %21, %22 : vector<8x512xf32>
    %c24 = arith.constant 24 : index
    %c0_15 = arith.constant 0 : index
    %24 = vector.load %arg6[%c24, %c0_15] : memref<360x512xf32, #tpu.memory_space<vmem>>, vector<8x512xf32>
    tpu.vector_store %arg6[%c24, %c0_15], %23 {strides = array<i32>} : memref<360x512xf32, #tpu.memory_space<vmem>>, vector<8x512xf32>,
    %c32 = arith.constant 32 : index
    %c0_16 = arith.constant 0 : index
    %25 = vector.load %arg6[%c32, %c0_16] : memref<360x512xf32, #tpu.memory_space<vmem>>, vector<8x512xf32>
    tpu.vector_store %arg6[%c32, %c0_16], %8 {strides = array<i32>} : memref<360x512xf32, #tpu.memory_space<vmem>>, vector<8x512xf32>,
    %c511_i32 = arith.constant 511 : i32
    %26 = tpu.dynamic_rotate %8 by %c511_i32 dim 1 : vector<8x512xf32>, i32 -> vector<8x512xf32>
    %27 = vector.broadcast %4 : vector<1x512xf32> to vector<8x512xf32>
    %28 = arith.mulf %26, %27 : vector<8x512xf32>
    %c40 = arith.constant 40 : index
    %c0_17 = arith.constant 0 : index
    %29 = vector.load %arg6[%c40, %c0_17] : memref<360x512xf32, #tpu.memory_space<vmem>>, vector<8x512xf32>
    tpu.vector_store %arg6[%c40, %c0_17], %28 {strides = array<i32>} : memref<360x512xf32, #tpu.memory_space<vmem>>, vector<8x512xf32>,
    %c497_i32 = arith.constant 497 : i32
    %30 = tpu.dynamic_rotate %8 by %c497_i32 dim 1 : vector<8x512xf32>, i32 -> vector<8x512xf32>
    %31 = vector.broadcast %5 : vector<1x512xf32> to vector<8x512xf32>
    %32 = arith.mulf %30, %31 : vector<8x512xf32>
    %c48 = arith.constant 48 : index
    %c0_18 = arith.constant 0 : index
    %33 = vector.load %arg6[%c48, %c0_18] : memref<360x512xf32, #tpu.memory_space<vmem>>, vector<8x512xf32>
    tpu.vector_store %arg6[%c48, %c0_18], %32 {strides = array<i32>} : memref<360x512xf32, #tpu.memory_space<vmem>>, vector<8x512xf32>,
    %c496_i32 = arith.constant 496 : i32
    %34 = tpu.dynamic_rotate %8 by %c496_i32 dim 1 : vector<8x512xf32>, i32 -> vector<8x512xf32>
    %35 = vector.broadcast %6 : vector<1x512xf32> to vector<8x512xf32>
    %36 = arith.mulf %34, %35 : vector<8x512xf32>
    %c56 = arith.constant 56 : index
    %c0_19 = arith.constant 0 : index
    %37 = vector.load %arg6[%c56, %c0_19] : memref<360x512xf32, #tpu.memory_space<vmem>>, vector<8x512xf32>
    tpu.vector_store %arg6[%c56, %c0_19], %36 {strides = array<i32>} : memref<360x512xf32, #tpu.memory_space<vmem>>, vector<8x512xf32>,
    %c495_i32 = arith.constant 495 : i32
    %38 = tpu.dynamic_rotate %8 by %c495_i32 dim 1 : vector<8x512xf32>, i32 -> vector<8x512xf32>
    %39 = vector.broadcast %7 : vector<1x512xf32> to vector<8x512xf32>
    %40 = arith.mulf %38, %39 : vector<8x512xf32>
    %c64 = arith.constant 64 : index
    %c0_20 = arith.constant 0 : index
    %41 = vector.load %arg6[%c64, %c0_20] : memref<360x512xf32, #tpu.memory_space<vmem>>, vector<8x512xf32>
    tpu.vector_store %arg6[%c64, %c0_20], %40 {strides = array<i32>} : memref<360x512xf32, #tpu.memory_space<vmem>>, vector<8x512xf32>,
    %c0_21 = arith.constant 0 : index
    %c0_22 = arith.constant 0 : index
    %42 = vector.load %arg3[%c0_21, %c0_22] : memref<120x360xf32, #tpu.memory_space<vmem>>, vector<8x72xf32>
    %c0_23 = arith.constant 0 : index
    %c0_24 = arith.constant 0 : index
    %43 = vector.load %arg6[%c0_23, %c0_24] : memref<360x512xf32, #tpu.memory_space<vmem>>, vector<72x512xf32>
    %cst = arith.constant dense<0.000000e+00> : vector<8x512xf32>
    %44 = tpu.matmul %42, %43, %cst {dimension_numbers = #tpu.dot_dimension_numbers<[1], [0], [0], [1], [0, 0, 1, 1], [], []>} : vector<8x72xf32>, vector<72x512xf32>, vector<8x512xf32> -> vector<8x512xf32>
    %c0_25 = arith.constant 0 : index
    %c0_26 = arith.constant 0 : index
    %45 = vector.load %arg4[%c0_25, %c0_26] : memref<120x1xf32, #tpu.memory_space<vmem>>, vector<8x1xf32>
    %46 = vector.broadcast %45 : vector<8x1xf32> to vector<8x512xf32>
    %47 = arith.addf %44, %46 : vector<8x512xf32>
    %cst_27 = arith.constant 2.000000e-01 : f32
    %48 = vector.broadcast %cst_27 : f32 to vector<8x512xf32>
    %49 = arith.mulf %48, %47 : vector<8x512xf32>
    %50 = arith.maximumf %47, %49 : vector<8x512xf32>
    %c17_i32_28 = arith.constant 17 : i32
    %51 = tpu.dynamic_rotate %50 by %c17_i32_28 dim 1 : vector<8x512xf32>, i32 -> vector<8x512xf32>
    %52 = vector.broadcast %0 : vector<1x512xf32> to vector<8x512xf32>
    %53 = arith.mulf %51, %52 : vector<8x512xf32>
    %c72 = arith.constant 72 : index
    %c0_29 = arith.constant 0 : index
    %54 = vector.load %arg6[%c72, %c0_29] : memref<360x512xf32, #tpu.memory_space<vmem>>, vector<8x512xf32>
    tpu.vector_store %arg6[%c72, %c0_29], %53 {strides = array<i32>} : memref<360x512xf32, #tpu.memory_space<vmem>>, vector<8x512xf32>,
    %c16_i32_30 = arith.constant 16 : i32
    %55 = tpu.dynamic_rotate %50 by %c16_i32_30 dim 1 : vector<8x512xf32>, i32 -> vector<8x512xf32>
    %56 = vector.broadcast %1 : vector<1x512xf32> to vector<8x512xf32>
    %57 = arith.mulf %55, %56 : vector<8x512xf32>
    %c80 = arith.constant 80 : index
    %c0_31 = arith.constant 0 : index
    %58 = vector.load %arg6[%c80, %c0_31] : memref<360x512xf32, #tpu.memory_space<vmem>>, vector<8x512xf32>
    tpu.vector_store %arg6[%c80, %c0_31], %57 {strides = array<i32>} : memref<360x512xf32, #tpu.memory_space<vmem>>, vector<8x512xf32>,
    %c15_i32_32 = arith.constant 15 : i32
    %59 = tpu.dynamic_rotate %50 by %c15_i32_32 dim 1 : vector<8x512xf32>, i32 -> vector<8x512xf32>
    %60 = vector.broadcast %2 : vector<1x512xf32> to vector<8x512xf32>
    %61 = arith.mulf %59, %60 : vector<8x512xf32>
    %c88 = arith.constant 88 : index
    %c0_33 = arith.constant 0 : index
    %62 = vector.load %arg6[%c88, %c0_33] : memref<360x512xf32, #tpu.memory_space<vmem>>, vector<8x512xf32>
    tpu.vector_store %arg6[%c88, %c0_33], %61 {strides = array<i32>} : memref<360x512xf32, #tpu.memory_space<vmem>>, vector<8x512xf32>,
    %c1_i32_34 = arith.constant 1 : i32
    %63 = tpu.dynamic_rotate %50 by %c1_i32_34 dim 1 : vector<8x512xf32>, i32 -> vector<8x512xf32>
    %64 = vector.broadcast %3 : vector<1x512xf32> to vector<8x512xf32>
    %65 = arith.mulf %63, %64 : vector<8x512xf32>
    %c96 = arith.constant 96 : index
    %c0_35 = arith.constant 0 : index
    %66 = vector.load %arg6[%c96, %c0_35] : memref<360x512xf32, #tpu.memory_space<vmem>>, vector<8x512xf32>
    tpu.vector_store %arg6[%c96, %c0_35], %65 {strides = array<i32>} : memref<360x512xf32, #tpu.memory_space<vmem>>, vector<8x512xf32>,
    %c104 = arith.constant 104 : index
    %c0_36 = arith.constant 0 : index
    %67 = vector.load %arg6[%c104, %c0_36] : memref<360x512xf32, #tpu.memory_space<vmem>>, vector<8x512xf32>
    tpu.vector_store %arg6[%c104, %c0_36], %50 {strides = array<i32>} : memref<360x512xf32, #tpu.memory_space<vmem>>, vector<8x512xf32>,
    %c511_i32_37 = arith.constant 511 : i32
    %68 = tpu.dynamic_rotate %50 by %c511_i32_37 dim 1 : vector<8x512xf32>, i32 -> vector<8x512xf32>
    %69 = vector.broadcast %4 : vector<1x512xf32> to vector<8x512xf32>
    %70 = arith.mulf %68, %69 : vector<8x512xf32>
    %c112 = arith.constant 112 : index
    %c0_38 = arith.constant 0 : index
    %71 = vector.load %arg6[%c112, %c0_38] : memref<360x512xf32, #tpu.memory_space<vmem>>, vector<8x512xf32>
    tpu.vector_store %arg6[%c112, %c0_38], %70 {strides = array<i32>} : memref<360x512xf32, #tpu.memory_space<vmem>>, vector<8x512xf32>,
    %c497_i32_39 = arith.constant 497 : i32
    %72 = tpu.dynamic_rotate %50 by %c497_i32_39 dim 1 : vector<8x512xf32>, i32 -> vector<8x512xf32>
    %73 = vector.broadcast %5 : vector<1x512xf32> to vector<8x512xf32>
    %74 = arith.mulf %72, %73 : vector<8x512xf32>
    %c120 = arith.constant 120 : index
    %c0_40 = arith.constant 0 : index
    %75 = vector.load %arg6[%c120, %c0_40] : memref<360x512xf32, #tpu.memory_space<vmem>>, vector<8x512xf32>
    tpu.vector_store %arg6[%c120, %c0_40], %74 {strides = array<i32>} : memref<360x512xf32, #tpu.memory_space<vmem>>, vector<8x512xf32>,
    %c496_i32_41 = arith.constant 496 : i32
    %76 = tpu.dynamic_rotate %50 by %c496_i32_41 dim 1 : vector<8x512xf32>, i32 -> vector<8x512xf32>
    %77 = vector.broadcast %6 : vector<1x512xf32> to vector<8x512xf32>
    %78 = arith.mulf %76, %77 : vector<8x512xf32>
    %c128 = arith.constant 128 : index
    %c0_42 = arith.constant 0 : index
    %79 = vector.load %arg6[%c128, %c0_42] : memref<360x512xf32, #tpu.memory_space<vmem>>, vector<8x512xf32>
    tpu.vector_store %arg6[%c128, %c0_42], %78 {strides = array<i32>} : memref<360x512xf32, #tpu.memory_space<vmem>>, vector<8x512xf32>,
    %c495_i32_43 = arith.constant 495 : i32
    %80 = tpu.dynamic_rotate %50 by %c495_i32_43 dim 1 : vector<8x512xf32>, i32 -> vector<8x512xf32>
    %81 = vector.broadcast %7 : vector<1x512xf32> to vector<8x512xf32>
    %82 = arith.mulf %80, %81 : vector<8x512xf32>
    %c136 = arith.constant 136 : index
    %c0_44 = arith.constant 0 : index
    %83 = vector.load %arg6[%c136, %c0_44] : memref<360x512xf32, #tpu.memory_space<vmem>>, vector<8x512xf32>
    tpu.vector_store %arg6[%c136, %c0_44], %82 {strides = array<i32>} : memref<360x512xf32, #tpu.memory_space<vmem>>, vector<8x512xf32>,
    %c8_45 = arith.constant 8 : index
    %c0_46 = arith.constant 0 : index
    %84 = vector.load %arg3[%c8_45, %c0_46] : memref<120x360xf32, #tpu.memory_space<vmem>>, vector<8x144xf32>
    %c0_47 = arith.constant 0 : index
    %c0_48 = arith.constant 0 : index
    %85 = vector.load %arg6[%c0_47, %c0_48] : memref<360x512xf32, #tpu.memory_space<vmem>>, vector<144x512xf32>
    %cst_49 = arith.constant dense<0.000000e+00> : vector<8x512xf32>
    %86 = tpu.matmul %84, %85, %cst_49 {dimension_numbers = #tpu.dot_dimension_numbers<[1], [0], [0], [1], [0, 0, 1, 1], [], []>} : vector<8x144xf32>, vector<144x512xf32>, vector<8x512xf32> -> vector<8x512xf32>
    %c8_50 = arith.constant 8 : index
    %c0_51 = arith.constant 0 : index
    %87 = vector.load %arg4[%c8_50, %c0_51] : memref<120x1xf32, #tpu.memory_space<vmem>>, vector<8x1xf32>
    %88 = vector.broadcast %87 : vector<8x1xf32> to vector<8x512xf32>
    %89 = arith.addf %86, %88 : vector<8x512xf32>
    %cst_52 = arith.constant 2.000000e-01 : f32
    %90 = vector.broadcast %cst_52 : f32 to vector<8x512xf32>
    %91 = arith.mulf %90, %89 : vector<8x512xf32>
    %92 = arith.maximumf %89, %91 : vector<8x512xf32>
    %c17_i32_53 = arith.constant 17 : i32
    %93 = tpu.dynamic_rotate %92 by %c17_i32_53 dim 1 : vector<8x512xf32>, i32 -> vector<8x512xf32>
    %94 = vector.broadcast %0 : vector<1x512xf32> to vector<8x512xf32>
    %95 = arith.mulf %93, %94 : vector<8x512xf32>
    %c144 = arith.constant 144 : index
    %c0_54 = arith.constant 0 : index
    %96 = vector.load %arg6[%c144, %c0_54] : memref<360x512xf32, #tpu.memory_space<vmem>>, vector<8x512xf32>
    tpu.vector_store %arg6[%c144, %c0_54], %95 {strides = array<i32>} : memref<360x512xf32, #tpu.memory_space<vmem>>, vector<8x512xf32>,
    %c16_i32_55 = arith.constant 16 : i32
    %97 = tpu.dynamic_rotate %92 by %c16_i32_55 dim 1 : vector<8x512xf32>, i32 -> vector<8x512xf32>
    %98 = vector.broadcast %1 : vector<1x512xf32> to vector<8x512xf32>
    %99 = arith.mulf %97, %98 : vector<8x512xf32>
    %c152 = arith.constant 152 : index
    %c0_56 = arith.constant 0 : index
    %100 = vector.load %arg6[%c152, %c0_56] : memref<360x512xf32, #tpu.memory_space<vmem>>, vector<8x512xf32>
    tpu.vector_store %arg6[%c152, %c0_56], %99 {strides = array<i32>} : memref<360x512xf32, #tpu.memory_space<vmem>>, vector<8x512xf32>,
    %c15_i32_57 = arith.constant 15 : i32
    %101 = tpu.dynamic_rotate %92 by %c15_i32_57 dim 1 : vector<8x512xf32>, i32 -> vector<8x512xf32>
    %102 = vector.broadcast %2 : vector<1x512xf32> to vector<8x512xf32>
    %103 = arith.mulf %101, %102 : vector<8x512xf32>
    %c160 = arith.constant 160 : index
    %c0_58 = arith.constant 0 : index
    %104 = vector.load %arg6[%c160, %c0_58] : memref<360x512xf32, #tpu.memory_space<vmem>>, vector<8x512xf32>
    tpu.vector_store %arg6[%c160, %c0_58], %103 {strides = array<i32>} : memref<360x512xf32, #tpu.memory_space<vmem>>, vector<8x512xf32>,
    %c1_i32_59 = arith.constant 1 : i32
    %105 = tpu.dynamic_rotate %92 by %c1_i32_59 dim 1 : vector<8x512xf32>, i32 -> vector<8x512xf32>
    %106 = vector.broadcast %3 : vector<1x512xf32> to vector<8x512xf32>
    %107 = arith.mulf %105, %106 : vector<8x512xf32>
    %c168 = arith.constant 168 : index
    %c0_60 = arith.constant 0 : index
    %108 = vector.load %arg6[%c168, %c0_60] : memref<360x512xf32, #tpu.memory_space<vmem>>, vector<8x512xf32>
    tpu.vector_store %arg6[%c168, %c0_60], %107 {strides = array<i32>} : memref<360x512xf32, #tpu.memory_space<vmem>>, vector<8x512xf32>,
    %c176 = arith.constant 176 : index
    %c0_61 = arith.constant 0 : index
    %109 = vector.load %arg6[%c176, %c0_61] : memref<360x512xf32, #tpu.memory_space<vmem>>, vector<8x512xf32>
    tpu.vector_store %arg6[%c176, %c0_61], %92 {strides = array<i32>} : memref<360x512xf32, #tpu.memory_space<vmem>>, vector<8x512xf32>,
    %c511_i32_62 = arith.constant 511 : i32
    %110 = tpu.dynamic_rotate %92 by %c511_i32_62 dim 1 : vector<8x512xf32>, i32 -> vector<8x512xf32>
    %111 = vector.broadcast %4 : vector<1x512xf32> to vector<8x512xf32>
    %112 = arith.mulf %110, %111 : vector<8x512xf32>
    %c184 = arith.constant 184 : index
    %c0_63 = arith.constant 0 : index
    %113 = vector.load %arg6[%c184, %c0_63] : memref<360x512xf32, #tpu.memory_space<vmem>>, vector<8x512xf32>
    tpu.vector_store %arg6[%c184, %c0_63], %112 {strides = array<i32>} : memref<360x512xf32, #tpu.memory_space<vmem>>, vector<8x512xf32>,
    %c497_i32_64 = arith.constant 497 : i32
    %114 = tpu.dynamic_rotate %92 by %c497_i32_64 dim 1 : vector<8x512xf32>, i32 -> vector<8x512xf32>
    %115 = vector.broadcast %5 : vector<1x512xf32> to vector<8x512xf32>
    %116 = arith.mulf %114, %115 : vector<8x512xf32>
    %c192 = arith.constant 192 : index
    %c0_65 = arith.constant 0 : index
    %117 = vector.load %arg6[%c192, %c0_65] : memref<360x512xf32, #tpu.memory_space<vmem>>, vector<8x512xf32>
    tpu.vector_store %arg6[%c192, %c0_65], %116 {strides = array<i32>} : memref<360x512xf32, #tpu.memory_space<vmem>>, vector<8x512xf32>,
    %c496_i32_66 = arith.constant 496 : i32
    %118 = tpu.dynamic_rotate %92 by %c496_i32_66 dim 1 : vector<8x512xf32>, i32 -> vector<8x512xf32>
    %119 = vector.broadcast %6 : vector<1x512xf32> to vector<8x512xf32>
    %120 = arith.mulf %118, %119 : vector<8x512xf32>
    %c200 = arith.constant 200 : index
    %c0_67 = arith.constant 0 : index
    %121 = vector.load %arg6[%c200, %c0_67] : memref<360x512xf32, #tpu.memory_space<vmem>>, vector<8x512xf32>
    tpu.vector_store %arg6[%c200, %c0_67], %120 {strides = array<i32>} : memref<360x512xf32, #tpu.memory_space<vmem>>, vector<8x512xf32>,
    %c495_i32_68 = arith.constant 495 : i32
    %122 = tpu.dynamic_rotate %92 by %c495_i32_68 dim 1 : vector<8x512xf32>, i32 -> vector<8x512xf32>
    %123 = vector.broadcast %7 : vector<1x512xf32> to vector<8x512xf32>
    %124 = arith.mulf %122, %123 : vector<8x512xf32>
    %c208 = arith.constant 208 : index
    %c0_69 = arith.constant 0 : index
    %125 = vector.load %arg6[%c208, %c0_69] : memref<360x512xf32, #tpu.memory_space<vmem>>, vector<8x512xf32>
    tpu.vector_store %arg6[%c208, %c0_69], %124 {strides = array<i32>} : memref<360x512xf32, #tpu.memory_space<vmem>>, vector<8x512xf32>,
    %c16_70 = arith.constant 16 : index
    %c0_71 = arith.constant 0 : index
    %126 = vector.load %arg3[%c16_70, %c0_71] : memref<120x360xf32, #tpu.memory_space<vmem>>, vector<8x216xf32>
    %c0_72 = arith.constant 0 : index
    %c0_73 = arith.constant 0 : index
    %127 = vector.load %arg6[%c0_72, %c0_73] : memref<360x512xf32, #tpu.memory_space<vmem>>, vector<216x512xf32>
    %cst_74 = arith.constant dense<0.000000e+00> : vector<8x512xf32>
    %128 = tpu.matmul %126, %127, %cst_74 {dimension_numbers = #tpu.dot_dimension_numbers<[1], [0], [0], [1], [0, 0, 1, 1], [], []>} : vector<8x216xf32>, vector<216x512xf32>, vector<8x512xf32> -> vector<8x512xf32>
    %c16_75 = arith.constant 16 : index
    %c0_76 = arith.constant 0 : index
    %129 = vector.load %arg4[%c16_75, %c0_76] : memref<120x1xf32, #tpu.memory_space<vmem>>, vector<8x1xf32>
    %130 = vector.broadcast %129 : vector<8x1xf32> to vector<8x512xf32>
    %131 = arith.addf %128, %130 : vector<8x512xf32>
    %cst_77 = arith.constant 2.000000e-01 : f32
    %132 = vector.broadcast %cst_77 : f32 to vector<8x512xf32>
    %133 = arith.mulf %132, %131 : vector<8x512xf32>
    %134 = arith.maximumf %131, %133 : vector<8x512xf32>
    %c17_i32_78 = arith.constant 17 : i32
    %135 = tpu.dynamic_rotate %134 by %c17_i32_78 dim 1 : vector<8x512xf32>, i32 -> vector<8x512xf32>
    %136 = vector.broadcast %0 : vector<1x512xf32> to vector<8x512xf32>
    %137 = arith.mulf %135, %136 : vector<8x512xf32>
    %c216 = arith.constant 216 : index
    %c0_79 = arith.constant 0 : index
    %138 = vector.load %arg6[%c216, %c0_79] : memref<360x512xf32, #tpu.memory_space<vmem>>, vector<8x512xf32>
    tpu.vector_store %arg6[%c216, %c0_79], %137 {strides = array<i32>} : memref<360x512xf32, #tpu.memory_space<vmem>>, vector<8x512xf32>,
    %c16_i32_80 = arith.constant 16 : i32
    %139 = tpu.dynamic_rotate %134 by %c16_i32_80 dim 1 : vector<8x512xf32>, i32 -> vector<8x512xf32>
    %140 = vector.broadcast %1 : vector<1x512xf32> to vector<8x512xf32>
    %141 = arith.mulf %139, %140 : vector<8x512xf32>
    %c224 = arith.constant 224 : index
    %c0_81 = arith.constant 0 : index
    %142 = vector.load %arg6[%c224, %c0_81] : memref<360x512xf32, #tpu.memory_space<vmem>>, vector<8x512xf32>
    tpu.vector_store %arg6[%c224, %c0_81], %141 {strides = array<i32>} : memref<360x512xf32, #tpu.memory_space<vmem>>, vector<8x512xf32>,
    %c15_i32_82 = arith.constant 15 : i32
    %143 = tpu.dynamic_rotate %134 by %c15_i32_82 dim 1 : vector<8x512xf32>, i32 -> vector<8x512xf32>
    %144 = vector.broadcast %2 : vector<1x512xf32> to vector<8x512xf32>
    %145 = arith.mulf %143, %144 : vector<8x512xf32>
    %c232 = arith.constant 232 : index
    %c0_83 = arith.constant 0 : index
    %146 = vector.load %arg6[%c232, %c0_83] : memref<360x512xf32, #tpu.memory_space<vmem>>, vector<8x512xf32>
    tpu.vector_store %arg6[%c232, %c0_83], %145 {strides = array<i32>} : memref<360x512xf32, #tpu.memory_space<vmem>>, vector<8x512xf32>,
    %c1_i32_84 = arith.constant 1 : i32
    %147 = tpu.dynamic_rotate %134 by %c1_i32_84 dim 1 : vector<8x512xf32>, i32 -> vector<8x512xf32>
    %148 = vector.broadcast %3 : vector<1x512xf32> to vector<8x512xf32>
    %149 = arith.mulf %147, %148 : vector<8x512xf32>
    %c240 = arith.constant 240 : index
    %c0_85 = arith.constant 0 : index
    %150 = vector.load %arg6[%c240, %c0_85] : memref<360x512xf32, #tpu.memory_space<vmem>>, vector<8x512xf32>
    tpu.vector_store %arg6[%c240, %c0_85], %149 {strides = array<i32>} : memref<360x512xf32, #tpu.memory_space<vmem>>, vector<8x512xf32>,
    %c248 = arith.constant 248 : index
    %c0_86 = arith.constant 0 : index
    %151 = vector.load %arg6[%c248, %c0_86] : memref<360x512xf32, #tpu.memory_space<vmem>>, vector<8x512xf32>
    tpu.vector_store %arg6[%c248, %c0_86], %134 {strides = array<i32>} : memref<360x512xf32, #tpu.memory_space<vmem>>, vector<8x512xf32>,
    %c511_i32_87 = arith.constant 511 : i32
    %152 = tpu.dynamic_rotate %134 by %c511_i32_87 dim 1 : vector<8x512xf32>, i32 -> vector<8x512xf32>
    %153 = vector.broadcast %4 : vector<1x512xf32> to vector<8x512xf32>
    %154 = arith.mulf %152, %153 : vector<8x512xf32>
    %c256 = arith.constant 256 : index
    %c0_88 = arith.constant 0 : index
    %155 = vector.load %arg6[%c256, %c0_88] : memref<360x512xf32, #tpu.memory_space<vmem>>, vector<8x512xf32>
    tpu.vector_store %arg6[%c256, %c0_88], %154 {strides = array<i32>} : memref<360x512xf32, #tpu.memory_space<vmem>>, vector<8x512xf32>,
    %c497_i32_89 = arith.constant 497 : i32
    %156 = tpu.dynamic_rotate %134 by %c497_i32_89 dim 1 : vector<8x512xf32>, i32 -> vector<8x512xf32>
    %157 = vector.broadcast %5 : vector<1x512xf32> to vector<8x512xf32>
    %158 = arith.mulf %156, %157 : vector<8x512xf32>
    %c264 = arith.constant 264 : index
    %c0_90 = arith.constant 0 : index
    %159 = vector.load %arg6[%c264, %c0_90] : memref<360x512xf32, #tpu.memory_space<vmem>>, vector<8x512xf32>
    tpu.vector_store %arg6[%c264, %c0_90], %158 {strides = array<i32>} : memref<360x512xf32, #tpu.memory_space<vmem>>, vector<8x512xf32>,
    %c496_i32_91 = arith.constant 496 : i32
    %160 = tpu.dynamic_rotate %134 by %c496_i32_91 dim 1 : vector<8x512xf32>, i32 -> vector<8x512xf32>
    %161 = vector.broadcast %6 : vector<1x512xf32> to vector<8x512xf32>
    %162 = arith.mulf %160, %161 : vector<8x512xf32>
    %c272 = arith.constant 272 : index
    %c0_92 = arith.constant 0 : index
    %163 = vector.load %arg6[%c272, %c0_92] : memref<360x512xf32, #tpu.memory_space<vmem>>, vector<8x512xf32>
    tpu.vector_store %arg6[%c272, %c0_92], %162 {strides = array<i32>} : memref<360x512xf32, #tpu.memory_space<vmem>>, vector<8x512xf32>,
    %c495_i32_93 = arith.constant 495 : i32
    %164 = tpu.dynamic_rotate %134 by %c495_i32_93 dim 1 : vector<8x512xf32>, i32 -> vector<8x512xf32>
    %165 = vector.broadcast %7 : vector<1x512xf32> to vector<8x512xf32>
    %166 = arith.mulf %164, %165 : vector<8x512xf32>
    %c280 = arith.constant 280 : index
    %c0_94 = arith.constant 0 : index
    %167 = vector.load %arg6[%c280, %c0_94] : memref<360x512xf32, #tpu.memory_space<vmem>>, vector<8x512xf32>
    tpu.vector_store %arg6[%c280, %c0_94], %166 {strides = array<i32>} : memref<360x512xf32, #tpu.memory_space<vmem>>, vector<8x512xf32>,
    %c24_95 = arith.constant 24 : index
    %c0_96 = arith.constant 0 : index
    %168 = vector.load %arg3[%c24_95, %c0_96] : memref<120x360xf32, #tpu.memory_space<vmem>>, vector<8x288xf32>
    %c0_97 = arith.constant 0 : index
    %c0_98 = arith.constant 0 : index
    %169 = vector.load %arg6[%c0_97, %c0_98] : memref<360x512xf32, #tpu.memory_space<vmem>>, vector<288x512xf32>
    %cst_99 = arith.constant dense<0.000000e+00> : vector<8x512xf32>
    %170 = tpu.matmul %168, %169, %cst_99 {dimension_numbers = #tpu.dot_dimension_numbers<[1], [0], [0], [1], [0, 0, 1, 1], [], []>} : vector<8x288xf32>, vector<288x512xf32>, vector<8x512xf32> -> vector<8x512xf32>
    %c24_100 = arith.constant 24 : index
    %c0_101 = arith.constant 0 : index
    %171 = vector.load %arg4[%c24_100, %c0_101] : memref<120x1xf32, #tpu.memory_space<vmem>>, vector<8x1xf32>
    %172 = vector.broadcast %171 : vector<8x1xf32> to vector<8x512xf32>
    %173 = arith.addf %170, %172 : vector<8x512xf32>
    %cst_102 = arith.constant 2.000000e-01 : f32
    %174 = vector.broadcast %cst_102 : f32 to vector<8x512xf32>
    %175 = arith.mulf %174, %173 : vector<8x512xf32>
    %176 = arith.maximumf %173, %175 : vector<8x512xf32>
    %c17_i32_103 = arith.constant 17 : i32
    %177 = tpu.dynamic_rotate %176 by %c17_i32_103 dim 1 : vector<8x512xf32>, i32 -> vector<8x512xf32>
    %178 = vector.broadcast %0 : vector<1x512xf32> to vector<8x512xf32>
    %179 = arith.mulf %177, %178 : vector<8x512xf32>
    %c288 = arith.constant 288 : index
    %c0_104 = arith.constant 0 : index
    %180 = vector.load %arg6[%c288, %c0_104] : memref<360x512xf32, #tpu.memory_space<vmem>>, vector<8x512xf32>
    tpu.vector_store %arg6[%c288, %c0_104], %179 {strides = array<i32>} : memref<360x512xf32, #tpu.memory_space<vmem>>, vector<8x512xf32>,
    %c16_i32_105 = arith.constant 16 : i32
    %181 = tpu.dynamic_rotate %176 by %c16_i32_105 dim 1 : vector<8x512xf32>, i32 -> vector<8x512xf32>
    %182 = vector.broadcast %1 : vector<1x512xf32> to vector<8x512xf32>
    %183 = arith.mulf %181, %182 : vector<8x512xf32>
    %c296 = arith.constant 296 : index
    %c0_106 = arith.constant 0 : index
    %184 = vector.load %arg6[%c296, %c0_106] : memref<360x512xf32, #tpu.memory_space<vmem>>, vector<8x512xf32>
    tpu.vector_store %arg6[%c296, %c0_106], %183 {strides = array<i32>} : memref<360x512xf32, #tpu.memory_space<vmem>>, vector<8x512xf32>,
    %c15_i32_107 = arith.constant 15 : i32
    %185 = tpu.dynamic_rotate %176 by %c15_i32_107 dim 1 : vector<8x512xf32>, i32 -> vector<8x512xf32>
    %186 = vector.broadcast %2 : vector<1x512xf32> to vector<8x512xf32>
    %187 = arith.mulf %185, %186 : vector<8x512xf32>
    %c304 = arith.constant 304 : index
    %c0_108 = arith.constant 0 : index
    %188 = vector.load %arg6[%c304, %c0_108] : memref<360x512xf32, #tpu.memory_space<vmem>>, vector<8x512xf32>
    tpu.vector_store %arg6[%c304, %c0_108], %187 {strides = array<i32>} : memref<360x512xf32, #tpu.memory_space<vmem>>, vector<8x512xf32>,
    %c1_i32_109 = arith.constant 1 : i32
    %189 = tpu.dynamic_rotate %176 by %c1_i32_109 dim 1 : vector<8x512xf32>, i32 -> vector<8x512xf32>
    %190 = vector.broadcast %3 : vector<1x512xf32> to vector<8x512xf32>
    %191 = arith.mulf %189, %190 : vector<8x512xf32>
    %c312 = arith.constant 312 : index
    %c0_110 = arith.constant 0 : index
    %192 = vector.load %arg6[%c312, %c0_110] : memref<360x512xf32, #tpu.memory_space<vmem>>, vector<8x512xf32>
    tpu.vector_store %arg6[%c312, %c0_110], %191 {strides = array<i32>} : memref<360x512xf32, #tpu.memory_space<vmem>>, vector<8x512xf32>,
    %c320 = arith.constant 320 : index
    %c0_111 = arith.constant 0 : index
    %193 = vector.load %arg6[%c320, %c0_111] : memref<360x512xf32, #tpu.memory_space<vmem>>, vector<8x512xf32>
    tpu.vector_store %arg6[%c320, %c0_111], %176 {strides = array<i32>} : memref<360x512xf32, #tpu.memory_space<vmem>>, vector<8x512xf32>,
    %c511_i32_112 = arith.constant 511 : i32
    %194 = tpu.dynamic_rotate %176 by %c511_i32_112 dim 1 : vector<8x512xf32>, i32 -> vector<8x512xf32>
    %195 = vector.broadcast %4 : vector<1x512xf32> to vector<8x512xf32>
    %196 = arith.mulf %194, %195 : vector<8x512xf32>
    %c328 = arith.constant 328 : index
    %c0_113 = arith.constant 0 : index
    %197 = vector.load %arg6[%c328, %c0_113] : memref<360x512xf32, #tpu.memory_space<vmem>>, vector<8x512xf32>
    tpu.vector_store %arg6[%c328, %c0_113], %196 {strides = array<i32>} : memref<360x512xf32, #tpu.memory_space<vmem>>, vector<8x512xf32>,
    %c497_i32_114 = arith.constant 497 : i32
    %198 = tpu.dynamic_rotate %176 by %c497_i32_114 dim 1 : vector<8x512xf32>, i32 -> vector<8x512xf32>
    %199 = vector.broadcast %5 : vector<1x512xf32> to vector<8x512xf32>
    %200 = arith.mulf %198, %199 : vector<8x512xf32>
    %c336 = arith.constant 336 : index
    %c0_115 = arith.constant 0 : index
    %201 = vector.load %arg6[%c336, %c0_115] : memref<360x512xf32, #tpu.memory_space<vmem>>, vector<8x512xf32>
    tpu.vector_store %arg6[%c336, %c0_115], %200 {strides = array<i32>} : memref<360x512xf32, #tpu.memory_space<vmem>>, vector<8x512xf32>,
    %c496_i32_116 = arith.constant 496 : i32
    %202 = tpu.dynamic_rotate %176 by %c496_i32_116 dim 1 : vector<8x512xf32>, i32 -> vector<8x512xf32>
    %203 = vector.broadcast %6 : vector<1x512xf32> to vector<8x512xf32>
    %204 = arith.mulf %202, %203 : vector<8x512xf32>
    %c344 = arith.constant 344 : index
    %c0_117 = arith.constant 0 : index
    %205 = vector.load %arg6[%c344, %c0_117] : memref<360x512xf32, #tpu.memory_space<vmem>>, vector<8x512xf32>
    tpu.vector_store %arg6[%c344, %c0_117], %204 {strides = array<i32>} : memref<360x512xf32, #tpu.memory_space<vmem>>, vector<8x512xf32>,
    %c495_i32_118 = arith.constant 495 : i32
    %206 = tpu.dynamic_rotate %176 by %c495_i32_118 dim 1 : vector<8x512xf32>, i32 -> vector<8x512xf32>
    %207 = vector.broadcast %7 : vector<1x512xf32> to vector<8x512xf32>
    %208 = arith.mulf %206, %207 : vector<8x512xf32>
    %c352 = arith.constant 352 : index
    %c0_119 = arith.constant 0 : index
    %209 = vector.load %arg6[%c352, %c0_119] : memref<360x512xf32, #tpu.memory_space<vmem>>, vector<8x512xf32>
    tpu.vector_store %arg6[%c352, %c0_119], %208 {strides = array<i32>} : memref<360x512xf32, #tpu.memory_space<vmem>>, vector<8x512xf32>,
    %c32_120 = arith.constant 32 : index
    %c0_121 = arith.constant 0 : index
    %210 = vector.load %arg3[%c32_120, %c0_121] : memref<120x360xf32, #tpu.memory_space<vmem>>, vector<8x360xf32>
    %c0_122 = arith.constant 0 : index
    %c0_123 = arith.constant 0 : index
    %211 = vector.load %arg6[%c0_122, %c0_123] : memref<360x512xf32, #tpu.memory_space<vmem>>, vector<360x512xf32>
    %cst_124 = arith.constant dense<0.000000e+00> : vector<8x512xf32>
    %212 = tpu.matmul %210, %211, %cst_124 {dimension_numbers = #tpu.dot_dimension_numbers<[1], [0], [0], [1], [0, 0, 1, 1], [], []>} : vector<8x360xf32>, vector<360x512xf32>, vector<8x512xf32> -> vector<8x512xf32>
    %c32_125 = arith.constant 32 : index
    %c0_126 = arith.constant 0 : index
    %213 = vector.load %arg4[%c32_125, %c0_126] : memref<120x1xf32, #tpu.memory_space<vmem>>, vector<8x1xf32>
    %214 = vector.broadcast %213 : vector<8x1xf32> to vector<8x512xf32>
    %215 = arith.addf %212, %214 : vector<8x512xf32>
    %cst_127 = arith.constant 2.000000e-01 : f32
    %216 = vector.broadcast %cst_127 : f32 to vector<8x512xf32>
    %217 = arith.mulf %215, %216 : vector<8x512xf32>
    %218 = arith.addf %217, %8 : vector<8x512xf32>
    %c17_i32_128 = arith.constant 17 : i32
    %219 = tpu.dynamic_rotate %218 by %c17_i32_128 dim 1 : vector<8x512xf32>, i32 -> vector<8x512xf32>
    %220 = vector.broadcast %0 : vector<1x512xf32> to vector<8x512xf32>
    %221 = arith.mulf %219, %220 : vector<8x512xf32>
    %c0_129 = arith.constant 0 : index
    %c0_130 = arith.constant 0 : index
    %222 = vector.load %arg6[%c0_129, %c0_130] : memref<360x512xf32, #tpu.memory_space<vmem>>, vector<8x512xf32>
    tpu.vector_store %arg6[%c0_129, %c0_130], %221 {strides = array<i32>} : memref<360x512xf32, #tpu.memory_space<vmem>>, vector<8x512xf32>,
    %c16_i32_131 = arith.constant 16 : i32
    %223 = tpu.dynamic_rotate %218 by %c16_i32_131 dim 1 : vector<8x512xf32>, i32 -> vector<8x512xf32>
    %224 = vector.broadcast %1 : vector<1x512xf32> to vector<8x512xf32>
    %225 = arith.mulf %223, %224 : vector<8x512xf32>
    %c8_132 = arith.constant 8 : index
    %c0_133 = arith.constant 0 : index
    %226 = vector.load %arg6[%c8_132, %c0_133] : memref<360x512xf32, #tpu.memory_space<vmem>>, vector<8x512xf32>
    tpu.vector_store %arg6[%c8_132, %c0_133], %225 {strides = array<i32>} : memref<360x512xf32, #tpu.memory_space<vmem>>, vector<8x512xf32>,
    %c15_i32_134 = arith.constant 15 : i32
    %227 = tpu.dynamic_rotate %218 by %c15_i32_134 dim 1 : vector<8x512xf32>, i32 -> vector<8x512xf32>
    %228 = vector.broadcast %2 : vector<1x512xf32> to vector<8x512xf32>
    %229 = arith.mulf %227, %228 : vector<8x512xf32>
    %c16_135 = arith.constant 16 : index
    %c0_136 = arith.constant 0 : index
    %230 = vector.load %arg6[%c16_135, %c0_136] : memref<360x512xf32, #tpu.memory_space<vmem>>, vector<8x512xf32>
    tpu.vector_store %arg6[%c16_135, %c0_136], %229 {strides = array<i32>} : memref<360x512xf32, #tpu.memory_space<vmem>>, vector<8x512xf32>,
    %c1_i32_137 = arith.constant 1 : i32
    %231 = tpu.dynamic_rotate %218 by %c1_i32_137 dim 1 : vector<8x512xf32>, i32 -> vector<8x512xf32>
    %232 = vector.broadcast %3 : vector<1x512xf32> to vector<8x512xf32>
    %233 = arith.mulf %231, %232 : vector<8x512xf32>
    %c24_138 = arith.constant 24 : index
    %c0_139 = arith.constant 0 : index
    %234 = vector.load %arg6[%c24_138, %c0_139] : memref<360x512xf32, #tpu.memory_space<vmem>>, vector<8x512xf32>
    tpu.vector_store %arg6[%c24_138, %c0_139], %233 {strides = array<i32>} : memref<360x512xf32, #tpu.memory_space<vmem>>, vector<8x512xf32>,
    %c32_140 = arith.constant 32 : index
    %c0_141 = arith.constant 0 : index
    %235 = vector.load %arg6[%c32_140, %c0_141] : memref<360x512xf32, #tpu.memory_space<vmem>>, vector<8x512xf32>
    tpu.vector_store %arg6[%c32_140, %c0_141], %218 {strides = array<i32>} : memref<360x512xf32, #tpu.memory_space<vmem>>, vector<8x512xf32>,
    %c511_i32_142 = arith.constant 511 : i32
    %236 = tpu.dynamic_rotate %218 by %c511_i32_142 dim 1 : vector<8x512xf32>, i32 -> vector<8x512xf32>
    %237 = vector.broadcast %4 : vector<1x512xf32> to vector<8x512xf32>
    %238 = arith.mulf %236, %237 : vector<8x512xf32>
    %c40_143 = arith.constant 40 : index
    %c0_144 = arith.constant 0 : index
    %239 = vector.load %arg6[%c40_143, %c0_144] : memref<360x512xf32, #tpu.memory_space<vmem>>, vector<8x512xf32>
    tpu.vector_store %arg6[%c40_143, %c0_144], %238 {strides = array<i32>} : memref<360x512xf32, #tpu.memory_space<vmem>>, vector<8x512xf32>,
    %c497_i32_145 = arith.constant 497 : i32
    %240 = tpu.dynamic_rotate %218 by %c497_i32_145 dim 1 : vector<8x512xf32>, i32 -> vector<8x512xf32>
    %241 = vector.broadcast %5 : vector<1x512xf32> to vector<8x512xf32>
    %242 = arith.mulf %240, %241 : vector<8x512xf32>
    %c48_146 = arith.constant 48 : index
    %c0_147 = arith.constant 0 : index
    %243 = vector.load %arg6[%c48_146, %c0_147] : memref<360x512xf32, #tpu.memory_space<vmem>>, vector<8x512xf32>
    tpu.vector_store %arg6[%c48_146, %c0_147], %242 {strides = array<i32>} : memref<360x512xf32, #tpu.memory_space<vmem>>, vector<8x512xf32>,
    %c496_i32_148 = arith.constant 496 : i32
    %244 = tpu.dynamic_rotate %218 by %c496_i32_148 dim 1 : vector<8x512xf32>, i32 -> vector<8x512xf32>
    %245 = vector.broadcast %6 : vector<1x512xf32> to vector<8x512xf32>
    %246 = arith.mulf %244, %245 : vector<8x512xf32>
    %c56_149 = arith.constant 56 : index
    %c0_150 = arith.constant 0 : index
    %247 = vector.load %arg6[%c56_149, %c0_150] : memref<360x512xf32, #tpu.memory_space<vmem>>, vector<8x512xf32>
    tpu.vector_store %arg6[%c56_149, %c0_150], %246 {strides = array<i32>} : memref<360x512xf32, #tpu.memory_space<vmem>>, vector<8x512xf32>,
    %c495_i32_151 = arith.constant 495 : i32
    %248 = tpu.dynamic_rotate %218 by %c495_i32_151 dim 1 : vector<8x512xf32>, i32 -> vector<8x512xf32>
    %249 = vector.broadcast %7 : vector<1x512xf32> to vector<8x512xf32>
    %250 = arith.mulf %248, %249 : vector<8x512xf32>
    %c64_152 = arith.constant 64 : index
    %c0_153 = arith.constant 0 : index
    %251 = vector.load %arg6[%c64_152, %c0_153] : memref<360x512xf32, #tpu.memory_space<vmem>>, vector<8x512xf32>
    tpu.vector_store %arg6[%c64_152, %c0_153], %250 {strides = array<i32>} : memref<360x512xf32, #tpu.memory_space<vmem>>, vector<8x512xf32>,
    %c40_154 = arith.constant 40 : index
    %c0_155 = arith.constant 0 : index
    %252 = vector.load %arg3[%c40_154, %c0_155] : memref<120x360xf32, #tpu.memory_space<vmem>>, vector<8x72xf32>
    %c0_156 = arith.constant 0 : index
    %c0_157 = arith.constant 0 : index
    %253 = vector.load %arg6[%c0_156, %c0_157] : memref<360x512xf32, #tpu.memory_space<vmem>>, vector<72x512xf32>
    %cst_158 = arith.constant dense<0.000000e+00> : vector<8x512xf32>
    %254 = tpu.matmul %252, %253, %cst_158 {dimension_numbers = #tpu.dot_dimension_numbers<[1], [0], [0], [1], [0, 0, 1, 1], [], []>} : vector<8x72xf32>, vector<72x512xf32>, vector<8x512xf32> -> vector<8x512xf32>
    %c40_159 = arith.constant 40 : index
    %c0_160 = arith.constant 0 : index
    %255 = vector.load %arg4[%c40_159, %c0_160] : memref<120x1xf32, #tpu.memory_space<vmem>>, vector<8x1xf32>
    %256 = vector.broadcast %255 : vector<8x1xf32> to vector<8x512xf32>
    %257 = arith.addf %254, %256 : vector<8x512xf32>
    %cst_161 = arith.constant 2.000000e-01 : f32
    %258 = vector.broadcast %cst_161 : f32 to vector<8x512xf32>
    %259 = arith.mulf %258, %257 : vector<8x512xf32>
    %260 = arith.maximumf %257, %259 : vector<8x512xf32>
    %c17_i32_162 = arith.constant 17 : i32
    %261 = tpu.dynamic_rotate %260 by %c17_i32_162 dim 1 : vector<8x512xf32>, i32 -> vector<8x512xf32>
    %262 = vector.broadcast %0 : vector<1x512xf32> to vector<8x512xf32>
    %263 = arith.mulf %261, %262 : vector<8x512xf32>
    %c72_163 = arith.constant 72 : index
    %c0_164 = arith.constant 0 : index
    %264 = vector.load %arg6[%c72_163, %c0_164] : memref<360x512xf32, #tpu.memory_space<vmem>>, vector<8x512xf32>
    tpu.vector_store %arg6[%c72_163, %c0_164], %263 {strides = array<i32>} : memref<360x512xf32, #tpu.memory_space<vmem>>, vector<8x512xf32>,
    %c16_i32_165 = arith.constant 16 : i32
    %265 = tpu.dynamic_rotate %260 by %c16_i32_165 dim 1 : vector<8x512xf32>, i32 -> vector<8x512xf32>
    %266 = vector.broadcast %1 : vector<1x512xf32> to vector<8x512xf32>
    %267 = arith.mulf %265, %266 : vector<8x512xf32>
    %c80_166 = arith.constant 80 : index
    %c0_167 = arith.constant 0 : index
    %268 = vector.load %arg6[%c80_166, %c0_167] : memref<360x512xf32, #tpu.memory_space<vmem>>, vector<8x512xf32>
    tpu.vector_store %arg6[%c80_166, %c0_167], %267 {strides = array<i32>} : memref<360x512xf32, #tpu.memory_space<vmem>>, vector<8x512xf32>,
    %c15_i32_168 = arith.constant 15 : i32
    %269 = tpu.dynamic_rotate %260 by %c15_i32_168 dim 1 : vector<8x512xf32>, i32 -> vector<8x512xf32>
    %270 = vector.broadcast %2 : vector<1x512xf32> to vector<8x512xf32>
    %271 = arith.mulf %269, %270 : vector<8x512xf32>
    %c88_169 = arith.constant 88 : index
    %c0_170 = arith.constant 0 : index
    %272 = vector.load %arg6[%c88_169, %c0_170] : memref<360x512xf32, #tpu.memory_space<vmem>>, vector<8x512xf32>
    tpu.vector_store %arg6[%c88_169, %c0_170], %271 {strides = array<i32>} : memref<360x512xf32, #tpu.memory_space<vmem>>, vector<8x512xf32>,
    %c1_i32_171 = arith.constant 1 : i32
    %273 = tpu.dynamic_rotate %260 by %c1_i32_171 dim 1 : vector<8x512xf32>, i32 -> vector<8x512xf32>
    %274 = vector.broadcast %3 : vector<1x512xf32> to vector<8x512xf32>
    %275 = arith.mulf %273, %274 : vector<8x512xf32>
    %c96_172 = arith.constant 96 : index
    %c0_173 = arith.constant 0 : index
    %276 = vector.load %arg6[%c96_172, %c0_173] : memref<360x512xf32, #tpu.memory_space<vmem>>, vector<8x512xf32>
    tpu.vector_store %arg6[%c96_172, %c0_173], %275 {strides = array<i32>} : memref<360x512xf32, #tpu.memory_space<vmem>>, vector<8x512xf32>,
    %c104_174 = arith.constant 104 : index
    %c0_175 = arith.constant 0 : index
    %277 = vector.load %arg6[%c104_174, %c0_175] : memref<360x512xf32, #tpu.memory_space<vmem>>, vector<8x512xf32>
    tpu.vector_store %arg6[%c104_174, %c0_175], %260 {strides = array<i32>} : memref<360x512xf32, #tpu.memory_space<vmem>>, vector<8x512xf32>,
    %c511_i32_176 = arith.constant 511 : i32
    %278 = tpu.dynamic_rotate %260 by %c511_i32_176 dim 1 : vector<8x512xf32>, i32 -> vector<8x512xf32>
    %279 = vector.broadcast %4 : vector<1x512xf32> to vector<8x512xf32>
    %280 = arith.mulf %278, %279 : vector<8x512xf32>
    %c112_177 = arith.constant 112 : index
    %c0_178 = arith.constant 0 : index
    %281 = vector.load %arg6[%c112_177, %c0_178] : memref<360x512xf32, #tpu.memory_space<vmem>>, vector<8x512xf32>
    tpu.vector_store %arg6[%c112_177, %c0_178], %280 {strides = array<i32>} : memref<360x512xf32, #tpu.memory_space<vmem>>, vector<8x512xf32>,
    %c497_i32_179 = arith.constant 497 : i32
    %282 = tpu.dynamic_rotate %260 by %c497_i32_179 dim 1 : vector<8x512xf32>, i32 -> vector<8x512xf32>
    %283 = vector.broadcast %5 : vector<1x512xf32> to vector<8x512xf32>
    %284 = arith.mulf %282, %283 : vector<8x512xf32>
    %c120_180 = arith.constant 120 : index
    %c0_181 = arith.constant 0 : index
    %285 = vector.load %arg6[%c120_180, %c0_181] : memref<360x512xf32, #tpu.memory_space<vmem>>, vector<8x512xf32>
    tpu.vector_store %arg6[%c120_180, %c0_181], %284 {strides = array<i32>} : memref<360x512xf32, #tpu.memory_space<vmem>>, vector<8x512xf32>,
    %c496_i32_182 = arith.constant 496 : i32
    %286 = tpu.dynamic_rotate %260 by %c496_i32_182 dim 1 : vector<8x512xf32>, i32 -> vector<8x512xf32>
    %287 = vector.broadcast %6 : vector<1x512xf32> to vector<8x512xf32>
    %288 = arith.mulf %286, %287 : vector<8x512xf32>
    %c128_183 = arith.constant 128 : index
    %c0_184 = arith.constant 0 : index
    %289 = vector.load %arg6[%c128_183, %c0_184] : memref<360x512xf32, #tpu.memory_space<vmem>>, vector<8x512xf32>
    tpu.vector_store %arg6[%c128_183, %c0_184], %288 {strides = array<i32>} : memref<360x512xf32, #tpu.memory_space<vmem>>, vector<8x512xf32>,
    %c495_i32_185 = arith.constant 495 : i32
    %290 = tpu.dynamic_rotate %260 by %c495_i32_185 dim 1 : vector<8x512xf32>, i32 -> vector<8x512xf32>
    %291 = vector.broadcast %7 : vector<1x512xf32> to vector<8x512xf32>
    %292 = arith.mulf %290, %291 : vector<8x512xf32>
    %c136_186 = arith.constant 136 : index
    %c0_187 = arith.constant 0 : index
    %293 = vector.load %arg6[%c136_186, %c0_187] : memref<360x512xf32, #tpu.memory_space<vmem>>, vector<8x512xf32>
    tpu.vector_store %arg6[%c136_186, %c0_187], %292 {strides = array<i32>} : memref<360x512xf32, #tpu.memory_space<vmem>>, vector<8x512xf32>,
    %c48_188 = arith.constant 48 : index
    %c0_189 = arith.constant 0 : index
    %294 = vector.load %arg3[%c48_188, %c0_189] : memref<120x360xf32, #tpu.memory_space<vmem>>, vector<8x144xf32>
    %c0_190 = arith.constant 0 : index
    %c0_191 = arith.constant 0 : index
    %295 = vector.load %arg6[%c0_190, %c0_191] : memref<360x512xf32, #tpu.memory_space<vmem>>, vector<144x512xf32>
    %cst_192 = arith.constant dense<0.000000e+00> : vector<8x512xf32>
    %296 = tpu.matmul %294, %295, %cst_192 {dimension_numbers = #tpu.dot_dimension_numbers<[1], [0], [0], [1], [0, 0, 1, 1], [], []>} : vector<8x144xf32>, vector<144x512xf32>, vector<8x512xf32> -> vector<8x512xf32>
    %c48_193 = arith.constant 48 : index
    %c0_194 = arith.constant 0 : index
    %297 = vector.load %arg4[%c48_193, %c0_194] : memref<120x1xf32, #tpu.memory_space<vmem>>, vector<8x1xf32>
    %298 = vector.broadcast %297 : vector<8x1xf32> to vector<8x512xf32>
    %299 = arith.addf %296, %298 : vector<8x512xf32>
    %cst_195 = arith.constant 2.000000e-01 : f32
    %300 = vector.broadcast %cst_195 : f32 to vector<8x512xf32>
    %301 = arith.mulf %300, %299 : vector<8x512xf32>
    %302 = arith.maximumf %299, %301 : vector<8x512xf32>
    %c17_i32_196 = arith.constant 17 : i32
    %303 = tpu.dynamic_rotate %302 by %c17_i32_196 dim 1 : vector<8x512xf32>, i32 -> vector<8x512xf32>
    %304 = vector.broadcast %0 : vector<1x512xf32> to vector<8x512xf32>
    %305 = arith.mulf %303, %304 : vector<8x512xf32>
    %c144_197 = arith.constant 144 : index
    %c0_198 = arith.constant 0 : index
    %306 = vector.load %arg6[%c144_197, %c0_198] : memref<360x512xf32, #tpu.memory_space<vmem>>, vector<8x512xf32>
    tpu.vector_store %arg6[%c144_197, %c0_198], %305 {strides = array<i32>} : memref<360x512xf32, #tpu.memory_space<vmem>>, vector<8x512xf32>,
    %c16_i32_199 = arith.constant 16 : i32
    %307 = tpu.dynamic_rotate %302 by %c16_i32_199 dim 1 : vector<8x512xf32>, i32 -> vector<8x512xf32>
    %308 = vector.broadcast %1 : vector<1x512xf32> to vector<8x512xf32>
    %309 = arith.mulf %307, %308 : vector<8x512xf32>
    %c152_200 = arith.constant 152 : index
    %c0_201 = arith.constant 0 : index
    %310 = vector.load %arg6[%c152_200, %c0_201] : memref<360x512xf32, #tpu.memory_space<vmem>>, vector<8x512xf32>
    tpu.vector_store %arg6[%c152_200, %c0_201], %309 {strides = array<i32>} : memref<360x512xf32, #tpu.memory_space<vmem>>, vector<8x512xf32>,
    %c15_i32_202 = arith.constant 15 : i32
    %311 = tpu.dynamic_rotate %302 by %c15_i32_202 dim 1 : vector<8x512xf32>, i32 -> vector<8x512xf32>
    %312 = vector.broadcast %2 : vector<1x512xf32> to vector<8x512xf32>
    %313 = arith.mulf %311, %312 : vector<8x512xf32>
    %c160_203 = arith.constant 160 : index
    %c0_204 = arith.constant 0 : index
    %314 = vector.load %arg6[%c160_203, %c0_204] : memref<360x512xf32, #tpu.memory_space<vmem>>, vector<8x512xf32>
    tpu.vector_store %arg6[%c160_203, %c0_204], %313 {strides = array<i32>} : memref<360x512xf32, #tpu.memory_space<vmem>>, vector<8x512xf32>,
    %c1_i32_205 = arith.constant 1 : i32
    %315 = tpu.dynamic_rotate %302 by %c1_i32_205 dim 1 : vector<8x512xf32>, i32 -> vector<8x512xf32>
    %316 = vector.broadcast %3 : vector<1x512xf32> to vector<8x512xf32>
    %317 = arith.mulf %315, %316 : vector<8x512xf32>
    %c168_206 = arith.constant 168 : index
    %c0_207 = arith.constant 0 : index
    %318 = vector.load %arg6[%c168_206, %c0_207] : memref<360x512xf32, #tpu.memory_space<vmem>>, vector<8x512xf32>
    tpu.vector_store %arg6[%c168_206, %c0_207], %317 {strides = array<i32>} : memref<360x512xf32, #tpu.memory_space<vmem>>, vector<8x512xf32>,
    %c176_208 = arith.constant 176 : index
    %c0_209 = arith.constant 0 : index
    %319 = vector.load %arg6[%c176_208, %c0_209] : memref<360x512xf32, #tpu.memory_space<vmem>>, vector<8x512xf32>
    tpu.vector_store %arg6[%c176_208, %c0_209], %302 {strides = array<i32>} : memref<360x512xf32, #tpu.memory_space<vmem>>, vector<8x512xf32>,
    %c511_i32_210 = arith.constant 511 : i32
    %320 = tpu.dynamic_rotate %302 by %c511_i32_210 dim 1 : vector<8x512xf32>, i32 -> vector<8x512xf32>
    %321 = vector.broadcast %4 : vector<1x512xf32> to vector<8x512xf32>
    %322 = arith.mulf %320, %321 : vector<8x512xf32>
    %c184_211 = arith.constant 184 : index
    %c0_212 = arith.constant 0 : index
    %323 = vector.load %arg6[%c184_211, %c0_212] : memref<360x512xf32, #tpu.memory_space<vmem>>, vector<8x512xf32>
    tpu.vector_store %arg6[%c184_211, %c0_212], %322 {strides = array<i32>} : memref<360x512xf32, #tpu.memory_space<vmem>>, vector<8x512xf32>,
    %c497_i32_213 = arith.constant 497 : i32
    %324 = tpu.dynamic_rotate %302 by %c497_i32_213 dim 1 : vector<8x512xf32>, i32 -> vector<8x512xf32>
    %325 = vector.broadcast %5 : vector<1x512xf32> to vector<8x512xf32>
    %326 = arith.mulf %324, %325 : vector<8x512xf32>
    %c192_214 = arith.constant 192 : index
    %c0_215 = arith.constant 0 : index
    %327 = vector.load %arg6[%c192_214, %c0_215] : memref<360x512xf32, #tpu.memory_space<vmem>>, vector<8x512xf32>
    tpu.vector_store %arg6[%c192_214, %c0_215], %326 {strides = array<i32>} : memref<360x512xf32, #tpu.memory_space<vmem>>, vector<8x512xf32>,
    %c496_i32_216 = arith.constant 496 : i32
    %328 = tpu.dynamic_rotate %302 by %c496_i32_216 dim 1 : vector<8x512xf32>, i32 -> vector<8x512xf32>
    %329 = vector.broadcast %6 : vector<1x512xf32> to vector<8x512xf32>
    %330 = arith.mulf %328, %329 : vector<8x512xf32>
    %c200_217 = arith.constant 200 : index
    %c0_218 = arith.constant 0 : index
    %331 = vector.load %arg6[%c200_217, %c0_218] : memref<360x512xf32, #tpu.memory_space<vmem>>, vector<8x512xf32>
    tpu.vector_store %arg6[%c200_217, %c0_218], %330 {strides = array<i32>} : memref<360x512xf32, #tpu.memory_space<vmem>>, vector<8x512xf32>,
    %c495_i32_219 = arith.constant 495 : i32
    %332 = tpu.dynamic_rotate %302 by %c495_i32_219 dim 1 : vector<8x512xf32>, i32 -> vector<8x512xf32>
    %333 = vector.broadcast %7 : vector<1x512xf32> to vector<8x512xf32>
    %334 = arith.mulf %332, %333 : vector<8x512xf32>
    %c208_220 = arith.constant 208 : index
    %c0_221 = arith.constant 0 : index
    %335 = vector.load %arg6[%c208_220, %c0_221] : memref<360x512xf32, #tpu.memory_space<vmem>>, vector<8x512xf32>
    tpu.vector_store %arg6[%c208_220, %c0_221], %334 {strides = array<i32>} : memref<360x512xf32, #tpu.memory_space<vmem>>, vector<8x512xf32>,
    %c56_222 = arith.constant 56 : index
    %c0_223 = arith.constant 0 : index
    %336 = vector.load %arg3[%c56_222, %c0_223] : memref<120x360xf32, #tpu.memory_space<vmem>>, vector<8x216xf32>
    %c0_224 = arith.constant 0 : index
    %c0_225 = arith.constant 0 : index
    %337 = vector.load %arg6[%c0_224, %c0_225] : memref<360x512xf32, #tpu.memory_space<vmem>>, vector<216x512xf32>
    %cst_226 = arith.constant dense<0.000000e+00> : vector<8x512xf32>
    %338 = tpu.matmul %336, %337, %cst_226 {dimension_numbers = #tpu.dot_dimension_numbers<[1], [0], [0], [1], [0, 0, 1, 1], [], []>} : vector<8x216xf32>, vector<216x512xf32>, vector<8x512xf32> -> vector<8x512xf32>
    %c56_227 = arith.constant 56 : index
    %c0_228 = arith.constant 0 : index
    %339 = vector.load %arg4[%c56_227, %c0_228] : memref<120x1xf32, #tpu.memory_space<vmem>>, vector<8x1xf32>
    %340 = vector.broadcast %339 : vector<8x1xf32> to vector<8x512xf32>
    %341 = arith.addf %338, %340 : vector<8x512xf32>
    %cst_229 = arith.constant 2.000000e-01 : f32
    %342 = vector.broadcast %cst_229 : f32 to vector<8x512xf32>
    %343 = arith.mulf %342, %341 : vector<8x512xf32>
    %344 = arith.maximumf %341, %343 : vector<8x512xf32>
    %c17_i32_230 = arith.constant 17 : i32
    %345 = tpu.dynamic_rotate %344 by %c17_i32_230 dim 1 : vector<8x512xf32>, i32 -> vector<8x512xf32>
    %346 = vector.broadcast %0 : vector<1x512xf32> to vector<8x512xf32>
    %347 = arith.mulf %345, %346 : vector<8x512xf32>
    %c216_231 = arith.constant 216 : index
    %c0_232 = arith.constant 0 : index
    %348 = vector.load %arg6[%c216_231, %c0_232] : memref<360x512xf32, #tpu.memory_space<vmem>>, vector<8x512xf32>
    tpu.vector_store %arg6[%c216_231, %c0_232], %347 {strides = array<i32>} : memref<360x512xf32, #tpu.memory_space<vmem>>, vector<8x512xf32>,
    %c16_i32_233 = arith.constant 16 : i32
    %349 = tpu.dynamic_rotate %344 by %c16_i32_233 dim 1 : vector<8x512xf32>, i32 -> vector<8x512xf32>
    %350 = vector.broadcast %1 : vector<1x512xf32> to vector<8x512xf32>
    %351 = arith.mulf %349, %350 : vector<8x512xf32>
    %c224_234 = arith.constant 224 : index
    %c0_235 = arith.constant 0 : index
    %352 = vector.load %arg6[%c224_234, %c0_235] : memref<360x512xf32, #tpu.memory_space<vmem>>, vector<8x512xf32>
    tpu.vector_store %arg6[%c224_234, %c0_235], %351 {strides = array<i32>} : memref<360x512xf32, #tpu.memory_space<vmem>>, vector<8x512xf32>,
    %c15_i32_236 = arith.constant 15 : i32
    %353 = tpu.dynamic_rotate %344 by %c15_i32_236 dim 1 : vector<8x512xf32>, i32 -> vector<8x512xf32>
    %354 = vector.broadcast %2 : vector<1x512xf32> to vector<8x512xf32>
    %355 = arith.mulf %353, %354 : vector<8x512xf32>
    %c232_237 = arith.constant 232 : index
    %c0_238 = arith.constant 0 : index
    %356 = vector.load %arg6[%c232_237, %c0_238] : memref<360x512xf32, #tpu.memory_space<vmem>>, vector<8x512xf32>
    tpu.vector_store %arg6[%c232_237, %c0_238], %355 {strides = array<i32>} : memref<360x512xf32, #tpu.memory_space<vmem>>, vector<8x512xf32>,
    %c1_i32_239 = arith.constant 1 : i32
    %357 = tpu.dynamic_rotate %344 by %c1_i32_239 dim 1 : vector<8x512xf32>, i32 -> vector<8x512xf32>
    %358 = vector.broadcast %3 : vector<1x512xf32> to vector<8x512xf32>
    %359 = arith.mulf %357, %358 : vector<8x512xf32>
    %c240_240 = arith.constant 240 : index
    %c0_241 = arith.constant 0 : index
    %360 = vector.load %arg6[%c240_240, %c0_241] : memref<360x512xf32, #tpu.memory_space<vmem>>, vector<8x512xf32>
    tpu.vector_store %arg6[%c240_240, %c0_241], %359 {strides = array<i32>} : memref<360x512xf32, #tpu.memory_space<vmem>>, vector<8x512xf32>,
    %c248_242 = arith.constant 248 : index
    %c0_243 = arith.constant 0 : index
    %361 = vector.load %arg6[%c248_242, %c0_243] : memref<360x512xf32, #tpu.memory_space<vmem>>, vector<8x512xf32>
    tpu.vector_store %arg6[%c248_242, %c0_243], %344 {strides = array<i32>} : memref<360x512xf32, #tpu.memory_space<vmem>>, vector<8x512xf32>,
    %c511_i32_244 = arith.constant 511 : i32
    %362 = tpu.dynamic_rotate %344 by %c511_i32_244 dim 1 : vector<8x512xf32>, i32 -> vector<8x512xf32>
    %363 = vector.broadcast %4 : vector<1x512xf32> to vector<8x512xf32>
    %364 = arith.mulf %362, %363 : vector<8x512xf32>
    %c256_245 = arith.constant 256 : index
    %c0_246 = arith.constant 0 : index
    %365 = vector.load %arg6[%c256_245, %c0_246] : memref<360x512xf32, #tpu.memory_space<vmem>>, vector<8x512xf32>
    tpu.vector_store %arg6[%c256_245, %c0_246], %364 {strides = array<i32>} : memref<360x512xf32, #tpu.memory_space<vmem>>, vector<8x512xf32>,
    %c497_i32_247 = arith.constant 497 : i32
    %366 = tpu.dynamic_rotate %344 by %c497_i32_247 dim 1 : vector<8x512xf32>, i32 -> vector<8x512xf32>
    %367 = vector.broadcast %5 : vector<1x512xf32> to vector<8x512xf32>
    %368 = arith.mulf %366, %367 : vector<8x512xf32>
    %c264_248 = arith.constant 264 : index
    %c0_249 = arith.constant 0 : index
    %369 = vector.load %arg6[%c264_248, %c0_249] : memref<360x512xf32, #tpu.memory_space<vmem>>, vector<8x512xf32>
    tpu.vector_store %arg6[%c264_248, %c0_249], %368 {strides = array<i32>} : memref<360x512xf32, #tpu.memory_space<vmem>>, vector<8x512xf32>,
    %c496_i32_250 = arith.constant 496 : i32
    %370 = tpu.dynamic_rotate %344 by %c496_i32_250 dim 1 : vector<8x512xf32>, i32 -> vector<8x512xf32>
    %371 = vector.broadcast %6 : vector<1x512xf32> to vector<8x512xf32>
    %372 = arith.mulf %370, %371 : vector<8x512xf32>
    %c272_251 = arith.constant 272 : index
    %c0_252 = arith.constant 0 : index
    %373 = vector.load %arg6[%c272_251, %c0_252] : memref<360x512xf32, #tpu.memory_space<vmem>>, vector<8x512xf32>
    tpu.vector_store %arg6[%c272_251, %c0_252], %372 {strides = array<i32>} : memref<360x512xf32, #tpu.memory_space<vmem>>, vector<8x512xf32>,
    %c495_i32_253 = arith.constant 495 : i32
    %374 = tpu.dynamic_rotate %344 by %c495_i32_253 dim 1 : vector<8x512xf32>, i32 -> vector<8x512xf32>
    %375 = vector.broadcast %7 : vector<1x512xf32> to vector<8x512xf32>
    %376 = arith.mulf %374, %375 : vector<8x512xf32>
    %c280_254 = arith.constant 280 : index
    %c0_255 = arith.constant 0 : index
    %377 = vector.load %arg6[%c280_254, %c0_255] : memref<360x512xf32, #tpu.memory_space<vmem>>, vector<8x512xf32>
    tpu.vector_store %arg6[%c280_254, %c0_255], %376 {strides = array<i32>} : memref<360x512xf32, #tpu.memory_space<vmem>>, vector<8x512xf32>,
    %c64_256 = arith.constant 64 : index
    %c0_257 = arith.constant 0 : index
    %378 = vector.load %arg3[%c64_256, %c0_257] : memref<120x360xf32, #tpu.memory_space<vmem>>, vector<8x288xf32>
    %c0_258 = arith.constant 0 : index
    %c0_259 = arith.constant 0 : index
    %379 = vector.load %arg6[%c0_258, %c0_259] : memref<360x512xf32, #tpu.memory_space<vmem>>, vector<288x512xf32>
    %cst_260 = arith.constant dense<0.000000e+00> : vector<8x512xf32>
    %380 = tpu.matmul %378, %379, %cst_260 {dimension_numbers = #tpu.dot_dimension_numbers<[1], [0], [0], [1], [0, 0, 1, 1], [], []>} : vector<8x288xf32>, vector<288x512xf32>, vector<8x512xf32> -> vector<8x512xf32>
    %c64_261 = arith.constant 64 : index
    %c0_262 = arith.constant 0 : index
    %381 = vector.load %arg4[%c64_261, %c0_262] : memref<120x1xf32, #tpu.memory_space<vmem>>, vector<8x1xf32>
    %382 = vector.broadcast %381 : vector<8x1xf32> to vector<8x512xf32>
    %383 = arith.addf %380, %382 : vector<8x512xf32>
    %cst_263 = arith.constant 2.000000e-01 : f32
    %384 = vector.broadcast %cst_263 : f32 to vector<8x512xf32>
    %385 = arith.mulf %384, %383 : vector<8x512xf32>
    %386 = arith.maximumf %383, %385 : vector<8x512xf32>
    %c17_i32_264 = arith.constant 17 : i32
    %387 = tpu.dynamic_rotate %386 by %c17_i32_264 dim 1 : vector<8x512xf32>, i32 -> vector<8x512xf32>
    %388 = vector.broadcast %0 : vector<1x512xf32> to vector<8x512xf32>
    %389 = arith.mulf %387, %388 : vector<8x512xf32>
    %c288_265 = arith.constant 288 : index
    %c0_266 = arith.constant 0 : index
    %390 = vector.load %arg6[%c288_265, %c0_266] : memref<360x512xf32, #tpu.memory_space<vmem>>, vector<8x512xf32>
    tpu.vector_store %arg6[%c288_265, %c0_266], %389 {strides = array<i32>} : memref<360x512xf32, #tpu.memory_space<vmem>>, vector<8x512xf32>,
    %c16_i32_267 = arith.constant 16 : i32
    %391 = tpu.dynamic_rotate %386 by %c16_i32_267 dim 1 : vector<8x512xf32>, i32 -> vector<8x512xf32>
    %392 = vector.broadcast %1 : vector<1x512xf32> to vector<8x512xf32>
    %393 = arith.mulf %391, %392 : vector<8x512xf32>
    %c296_268 = arith.constant 296 : index
    %c0_269 = arith.constant 0 : index
    %394 = vector.load %arg6[%c296_268, %c0_269] : memref<360x512xf32, #tpu.memory_space<vmem>>, vector<8x512xf32>
    tpu.vector_store %arg6[%c296_268, %c0_269], %393 {strides = array<i32>} : memref<360x512xf32, #tpu.memory_space<vmem>>, vector<8x512xf32>,
    %c15_i32_270 = arith.constant 15 : i32
    %395 = tpu.dynamic_rotate %386 by %c15_i32_270 dim 1 : vector<8x512xf32>, i32 -> vector<8x512xf32>
    %396 = vector.broadcast %2 : vector<1x512xf32> to vector<8x512xf32>
    %397 = arith.mulf %395, %396 : vector<8x512xf32>
    %c304_271 = arith.constant 304 : index
    %c0_272 = arith.constant 0 : index
    %398 = vector.load %arg6[%c304_271, %c0_272] : memref<360x512xf32, #tpu.memory_space<vmem>>, vector<8x512xf32>
    tpu.vector_store %arg6[%c304_271, %c0_272], %397 {strides = array<i32>} : memref<360x512xf32, #tpu.memory_space<vmem>>, vector<8x512xf32>,
    %c1_i32_273 = arith.constant 1 : i32
    %399 = tpu.dynamic_rotate %386 by %c1_i32_273 dim 1 : vector<8x512xf32>, i32 -> vector<8x512xf32>
    %400 = vector.broadcast %3 : vector<1x512xf32> to vector<8x512xf32>
    %401 = arith.mulf %399, %400 : vector<8x512xf32>
    %c312_274 = arith.constant 312 : index
    %c0_275 = arith.constant 0 : index
    %402 = vector.load %arg6[%c312_274, %c0_275] : memref<360x512xf32, #tpu.memory_space<vmem>>, vector<8x512xf32>
    tpu.vector_store %arg6[%c312_274, %c0_275], %401 {strides = array<i32>} : memref<360x512xf32, #tpu.memory_space<vmem>>, vector<8x512xf32>,
    %c320_276 = arith.constant 320 : index
    %c0_277 = arith.constant 0 : index
    %403 = vector.load %arg6[%c320_276, %c0_277] : memref<360x512xf32, #tpu.memory_space<vmem>>, vector<8x512xf32>
    tpu.vector_store %arg6[%c320_276, %c0_277], %386 {strides = array<i32>} : memref<360x512xf32, #tpu.memory_space<vmem>>, vector<8x512xf32>,
    %c511_i32_278 = arith.constant 511 : i32
    %404 = tpu.dynamic_rotate %386 by %c511_i32_278 dim 1 : vector<8x512xf32>, i32 -> vector<8x512xf32>
    %405 = vector.broadcast %4 : vector<1x512xf32> to vector<8x512xf32>
    %406 = arith.mulf %404, %405 : vector<8x512xf32>
    %c328_279 = arith.constant 328 : index
    %c0_280 = arith.constant 0 : index
    %407 = vector.load %arg6[%c328_279, %c0_280] : memref<360x512xf32, #tpu.memory_space<vmem>>, vector<8x512xf32>
    tpu.vector_store %arg6[%c328_279, %c0_280], %406 {strides = array<i32>} : memref<360x512xf32, #tpu.memory_space<vmem>>, vector<8x512xf32>,
    %c497_i32_281 = arith.constant 497 : i32
    %408 = tpu.dynamic_rotate %386 by %c497_i32_281 dim 1 : vector<8x512xf32>, i32 -> vector<8x512xf32>
    %409 = vector.broadcast %5 : vector<1x512xf32> to vector<8x512xf32>
    %410 = arith.mulf %408, %409 : vector<8x512xf32>
    %c336_282 = arith.constant 336 : index
    %c0_283 = arith.constant 0 : index
    %411 = vector.load %arg6[%c336_282, %c0_283] : memref<360x512xf32, #tpu.memory_space<vmem>>, vector<8x512xf32>
    tpu.vector_store %arg6[%c336_282, %c0_283], %410 {strides = array<i32>} : memref<360x512xf32, #tpu.memory_space<vmem>>, vector<8x512xf32>,
    %c496_i32_284 = arith.constant 496 : i32
    %412 = tpu.dynamic_rotate %386 by %c496_i32_284 dim 1 : vector<8x512xf32>, i32 -> vector<8x512xf32>
    %413 = vector.broadcast %6 : vector<1x512xf32> to vector<8x512xf32>
    %414 = arith.mulf %412, %413 : vector<8x512xf32>
    %c344_285 = arith.constant 344 : index
    %c0_286 = arith.constant 0 : index
    %415 = vector.load %arg6[%c344_285, %c0_286] : memref<360x512xf32, #tpu.memory_space<vmem>>, vector<8x512xf32>
    tpu.vector_store %arg6[%c344_285, %c0_286], %414 {strides = array<i32>} : memref<360x512xf32, #tpu.memory_space<vmem>>, vector<8x512xf32>,
    %c495_i32_287 = arith.constant 495 : i32
    %416 = tpu.dynamic_rotate %386 by %c495_i32_287 dim 1 : vector<8x512xf32>, i32 -> vector<8x512xf32>
    %417 = vector.broadcast %7 : vector<1x512xf32> to vector<8x512xf32>
    %418 = arith.mulf %416, %417 : vector<8x512xf32>
    %c352_288 = arith.constant 352 : index
    %c0_289 = arith.constant 0 : index
    %419 = vector.load %arg6[%c352_288, %c0_289] : memref<360x512xf32, #tpu.memory_space<vmem>>, vector<8x512xf32>
    tpu.vector_store %arg6[%c352_288, %c0_289], %418 {strides = array<i32>} : memref<360x512xf32, #tpu.memory_space<vmem>>, vector<8x512xf32>,
    %c72_290 = arith.constant 72 : index
    %c0_291 = arith.constant 0 : index
    %420 = vector.load %arg3[%c72_290, %c0_291] : memref<120x360xf32, #tpu.memory_space<vmem>>, vector<8x360xf32>
    %c0_292 = arith.constant 0 : index
    %c0_293 = arith.constant 0 : index
    %421 = vector.load %arg6[%c0_292, %c0_293] : memref<360x512xf32, #tpu.memory_space<vmem>>, vector<360x512xf32>
    %cst_294 = arith.constant dense<0.000000e+00> : vector<8x512xf32>
    %422 = tpu.matmul %420, %421, %cst_294 {dimension_numbers = #tpu.dot_dimension_numbers<[1], [0], [0], [1], [0, 0, 1, 1], [], []>} : vector<8x360xf32>, vector<360x512xf32>, vector<8x512xf32> -> vector<8x512xf32>
    %c72_295 = arith.constant 72 : index
    %c0_296 = arith.constant 0 : index
    %423 = vector.load %arg4[%c72_295, %c0_296] : memref<120x1xf32, #tpu.memory_space<vmem>>, vector<8x1xf32>
    %424 = vector.broadcast %423 : vector<8x1xf32> to vector<8x512xf32>
    %425 = arith.addf %422, %424 : vector<8x512xf32>
    %cst_297 = arith.constant 2.000000e-01 : f32
    %426 = vector.broadcast %cst_297 : f32 to vector<8x512xf32>
    %427 = arith.mulf %425, %426 : vector<8x512xf32>
    %428 = arith.addf %427, %218 : vector<8x512xf32>
    %c17_i32_298 = arith.constant 17 : i32
    %429 = tpu.dynamic_rotate %428 by %c17_i32_298 dim 1 : vector<8x512xf32>, i32 -> vector<8x512xf32>
    %430 = vector.broadcast %0 : vector<1x512xf32> to vector<8x512xf32>
    %431 = arith.mulf %429, %430 : vector<8x512xf32>
    %c0_299 = arith.constant 0 : index
    %c0_300 = arith.constant 0 : index
    %432 = vector.load %arg6[%c0_299, %c0_300] : memref<360x512xf32, #tpu.memory_space<vmem>>, vector<8x512xf32>
    tpu.vector_store %arg6[%c0_299, %c0_300], %431 {strides = array<i32>} : memref<360x512xf32, #tpu.memory_space<vmem>>, vector<8x512xf32>,
    %c16_i32_301 = arith.constant 16 : i32
    %433 = tpu.dynamic_rotate %428 by %c16_i32_301 dim 1 : vector<8x512xf32>, i32 -> vector<8x512xf32>
    %434 = vector.broadcast %1 : vector<1x512xf32> to vector<8x512xf32>
    %435 = arith.mulf %433, %434 : vector<8x512xf32>
    %c8_302 = arith.constant 8 : index
    %c0_303 = arith.constant 0 : index
    %436 = vector.load %arg6[%c8_302, %c0_303] : memref<360x512xf32, #tpu.memory_space<vmem>>, vector<8x512xf32>
    tpu.vector_store %arg6[%c8_302, %c0_303], %435 {strides = array<i32>} : memref<360x512xf32, #tpu.memory_space<vmem>>, vector<8x512xf32>,
    %c15_i32_304 = arith.constant 15 : i32
    %437 = tpu.dynamic_rotate %428 by %c15_i32_304 dim 1 : vector<8x512xf32>, i32 -> vector<8x512xf32>
    %438 = vector.broadcast %2 : vector<1x512xf32> to vector<8x512xf32>
    %439 = arith.mulf %437, %438 : vector<8x512xf32>
    %c16_305 = arith.constant 16 : index
    %c0_306 = arith.constant 0 : index
    %440 = vector.load %arg6[%c16_305, %c0_306] : memref<360x512xf32, #tpu.memory_space<vmem>>, vector<8x512xf32>
    tpu.vector_store %arg6[%c16_305, %c0_306], %439 {strides = array<i32>} : memref<360x512xf32, #tpu.memory_space<vmem>>, vector<8x512xf32>,
    %c1_i32_307 = arith.constant 1 : i32
    %441 = tpu.dynamic_rotate %428 by %c1_i32_307 dim 1 : vector<8x512xf32>, i32 -> vector<8x512xf32>
    %442 = vector.broadcast %3 : vector<1x512xf32> to vector<8x512xf32>
    %443 = arith.mulf %441, %442 : vector<8x512xf32>
    %c24_308 = arith.constant 24 : index
    %c0_309 = arith.constant 0 : index
    %444 = vector.load %arg6[%c24_308, %c0_309] : memref<360x512xf32, #tpu.memory_space<vmem>>, vector<8x512xf32>
    tpu.vector_store %arg6[%c24_308, %c0_309], %443 {strides = array<i32>} : memref<360x512xf32, #tpu.memory_space<vmem>>, vector<8x512xf32>,
    %c32_310 = arith.constant 32 : index
    %c0_311 = arith.constant 0 : index
    %445 = vector.load %arg6[%c32_310, %c0_311] : memref<360x512xf32, #tpu.memory_space<vmem>>, vector<8x512xf32>
    tpu.vector_store %arg6[%c32_310, %c0_311], %428 {strides = array<i32>} : memref<360x512xf32, #tpu.memory_space<vmem>>, vector<8x512xf32>,
    %c511_i32_312 = arith.constant 511 : i32
    %446 = tpu.dynamic_rotate %428 by %c511_i32_312 dim 1 : vector<8x512xf32>, i32 -> vector<8x512xf32>
    %447 = vector.broadcast %4 : vector<1x512xf32> to vector<8x512xf32>
    %448 = arith.mulf %446, %447 : vector<8x512xf32>
    %c40_313 = arith.constant 40 : index
    %c0_314 = arith.constant 0 : index
    %449 = vector.load %arg6[%c40_313, %c0_314] : memref<360x512xf32, #tpu.memory_space<vmem>>, vector<8x512xf32>
    tpu.vector_store %arg6[%c40_313, %c0_314], %448 {strides = array<i32>} : memref<360x512xf32, #tpu.memory_space<vmem>>, vector<8x512xf32>,
    %c497_i32_315 = arith.constant 497 : i32
    %450 = tpu.dynamic_rotate %428 by %c497_i32_315 dim 1 : vector<8x512xf32>, i32 -> vector<8x512xf32>
    %451 = vector.broadcast %5 : vector<1x512xf32> to vector<8x512xf32>
    %452 = arith.mulf %450, %451 : vector<8x512xf32>
    %c48_316 = arith.constant 48 : index
    %c0_317 = arith.constant 0 : index
    %453 = vector.load %arg6[%c48_316, %c0_317] : memref<360x512xf32, #tpu.memory_space<vmem>>, vector<8x512xf32>
    tpu.vector_store %arg6[%c48_316, %c0_317], %452 {strides = array<i32>} : memref<360x512xf32, #tpu.memory_space<vmem>>, vector<8x512xf32>,
    %c496_i32_318 = arith.constant 496 : i32
    %454 = tpu.dynamic_rotate %428 by %c496_i32_318 dim 1 : vector<8x512xf32>, i32 -> vector<8x512xf32>
    %455 = vector.broadcast %6 : vector<1x512xf32> to vector<8x512xf32>
    %456 = arith.mulf %454, %455 : vector<8x512xf32>
    %c56_319 = arith.constant 56 : index
    %c0_320 = arith.constant 0 : index
    %457 = vector.load %arg6[%c56_319, %c0_320] : memref<360x512xf32, #tpu.memory_space<vmem>>, vector<8x512xf32>
    tpu.vector_store %arg6[%c56_319, %c0_320], %456 {strides = array<i32>} : memref<360x512xf32, #tpu.memory_space<vmem>>, vector<8x512xf32>,
    %c495_i32_321 = arith.constant 495 : i32
    %458 = tpu.dynamic_rotate %428 by %c495_i32_321 dim 1 : vector<8x512xf32>, i32 -> vector<8x512xf32>
    %459 = vector.broadcast %7 : vector<1x512xf32> to vector<8x512xf32>
    %460 = arith.mulf %458, %459 : vector<8x512xf32>
    %c64_322 = arith.constant 64 : index
    %c0_323 = arith.constant 0 : index
    %461 = vector.load %arg6[%c64_322, %c0_323] : memref<360x512xf32, #tpu.memory_space<vmem>>, vector<8x512xf32>
    tpu.vector_store %arg6[%c64_322, %c0_323], %460 {strides = array<i32>} : memref<360x512xf32, #tpu.memory_space<vmem>>, vector<8x512xf32>,
    %c80_324 = arith.constant 80 : index
    %c0_325 = arith.constant 0 : index
    %462 = vector.load %arg3[%c80_324, %c0_325] : memref<120x360xf32, #tpu.memory_space<vmem>>, vector<8x72xf32>
    %c0_326 = arith.constant 0 : index
    %c0_327 = arith.constant 0 : index
    %463 = vector.load %arg6[%c0_326, %c0_327] : memref<360x512xf32, #tpu.memory_space<vmem>>, vector<72x512xf32>
    %cst_328 = arith.constant dense<0.000000e+00> : vector<8x512xf32>
    %464 = tpu.matmul %462, %463, %cst_328 {dimension_numbers = #tpu.dot_dimension_numbers<[1], [0], [0], [1], [0, 0, 1, 1], [], []>} : vector<8x72xf32>, vector<72x512xf32>, vector<8x512xf32> -> vector<8x512xf32>
    %c80_329 = arith.constant 80 : index
    %c0_330 = arith.constant 0 : index
    %465 = vector.load %arg4[%c80_329, %c0_330] : memref<120x1xf32, #tpu.memory_space<vmem>>, vector<8x1xf32>
    %466 = vector.broadcast %465 : vector<8x1xf32> to vector<8x512xf32>
    %467 = arith.addf %464, %466 : vector<8x512xf32>
    %cst_331 = arith.constant 2.000000e-01 : f32
    %468 = vector.broadcast %cst_331 : f32 to vector<8x512xf32>
    %469 = arith.mulf %468, %467 : vector<8x512xf32>
    %470 = arith.maximumf %467, %469 : vector<8x512xf32>
    %c17_i32_332 = arith.constant 17 : i32
    %471 = tpu.dynamic_rotate %470 by %c17_i32_332 dim 1 : vector<8x512xf32>, i32 -> vector<8x512xf32>
    %472 = vector.broadcast %0 : vector<1x512xf32> to vector<8x512xf32>
    %473 = arith.mulf %471, %472 : vector<8x512xf32>
    %c72_333 = arith.constant 72 : index
    %c0_334 = arith.constant 0 : index
    %474 = vector.load %arg6[%c72_333, %c0_334] : memref<360x512xf32, #tpu.memory_space<vmem>>, vector<8x512xf32>
    tpu.vector_store %arg6[%c72_333, %c0_334], %473 {strides = array<i32>} : memref<360x512xf32, #tpu.memory_space<vmem>>, vector<8x512xf32>,
    %c16_i32_335 = arith.constant 16 : i32
    %475 = tpu.dynamic_rotate %470 by %c16_i32_335 dim 1 : vector<8x512xf32>, i32 -> vector<8x512xf32>
    %476 = vector.broadcast %1 : vector<1x512xf32> to vector<8x512xf32>
    %477 = arith.mulf %475, %476 : vector<8x512xf32>
    %c80_336 = arith.constant 80 : index
    %c0_337 = arith.constant 0 : index
    %478 = vector.load %arg6[%c80_336, %c0_337] : memref<360x512xf32, #tpu.memory_space<vmem>>, vector<8x512xf32>
    tpu.vector_store %arg6[%c80_336, %c0_337], %477 {strides = array<i32>} : memref<360x512xf32, #tpu.memory_space<vmem>>, vector<8x512xf32>,
    %c15_i32_338 = arith.constant 15 : i32
    %479 = tpu.dynamic_rotate %470 by %c15_i32_338 dim 1 : vector<8x512xf32>, i32 -> vector<8x512xf32>
    %480 = vector.broadcast %2 : vector<1x512xf32> to vector<8x512xf32>
    %481 = arith.mulf %479, %480 : vector<8x512xf32>
    %c88_339 = arith.constant 88 : index
    %c0_340 = arith.constant 0 : index
    %482 = vector.load %arg6[%c88_339, %c0_340] : memref<360x512xf32, #tpu.memory_space<vmem>>, vector<8x512xf32>
    tpu.vector_store %arg6[%c88_339, %c0_340], %481 {strides = array<i32>} : memref<360x512xf32, #tpu.memory_space<vmem>>, vector<8x512xf32>,
    %c1_i32_341 = arith.constant 1 : i32
    %483 = tpu.dynamic_rotate %470 by %c1_i32_341 dim 1 : vector<8x512xf32>, i32 -> vector<8x512xf32>
    %484 = vector.broadcast %3 : vector<1x512xf32> to vector<8x512xf32>
    %485 = arith.mulf %483, %484 : vector<8x512xf32>
    %c96_342 = arith.constant 96 : index
    %c0_343 = arith.constant 0 : index
    %486 = vector.load %arg6[%c96_342, %c0_343] : memref<360x512xf32, #tpu.memory_space<vmem>>, vector<8x512xf32>
    tpu.vector_store %arg6[%c96_342, %c0_343], %485 {strides = array<i32>} : memref<360x512xf32, #tpu.memory_space<vmem>>, vector<8x512xf32>,
    %c104_344 = arith.constant 104 : index
    %c0_345 = arith.constant 0 : index
    %487 = vector.load %arg6[%c104_344, %c0_345] : memref<360x512xf32, #tpu.memory_space<vmem>>, vector<8x512xf32>
    tpu.vector_store %arg6[%c104_344, %c0_345], %470 {strides = array<i32>} : memref<360x512xf32, #tpu.memory_space<vmem>>, vector<8x512xf32>,
    %c511_i32_346 = arith.constant 511 : i32
    %488 = tpu.dynamic_rotate %470 by %c511_i32_346 dim 1 : vector<8x512xf32>, i32 -> vector<8x512xf32>
    %489 = vector.broadcast %4 : vector<1x512xf32> to vector<8x512xf32>
    %490 = arith.mulf %488, %489 : vector<8x512xf32>
    %c112_347 = arith.constant 112 : index
    %c0_348 = arith.constant 0 : index
    %491 = vector.load %arg6[%c112_347, %c0_348] : memref<360x512xf32, #tpu.memory_space<vmem>>, vector<8x512xf32>
    tpu.vector_store %arg6[%c112_347, %c0_348], %490 {strides = array<i32>} : memref<360x512xf32, #tpu.memory_space<vmem>>, vector<8x512xf32>,
    %c497_i32_349 = arith.constant 497 : i32
    %492 = tpu.dynamic_rotate %470 by %c497_i32_349 dim 1 : vector<8x512xf32>, i32 -> vector<8x512xf32>
    %493 = vector.broadcast %5 : vector<1x512xf32> to vector<8x512xf32>
    %494 = arith.mulf %492, %493 : vector<8x512xf32>
    %c120_350 = arith.constant 120 : index
    %c0_351 = arith.constant 0 : index
    %495 = vector.load %arg6[%c120_350, %c0_351] : memref<360x512xf32, #tpu.memory_space<vmem>>, vector<8x512xf32>
    tpu.vector_store %arg6[%c120_350, %c0_351], %494 {strides = array<i32>} : memref<360x512xf32, #tpu.memory_space<vmem>>, vector<8x512xf32>,
    %c496_i32_352 = arith.constant 496 : i32
    %496 = tpu.dynamic_rotate %470 by %c496_i32_352 dim 1 : vector<8x512xf32>, i32 -> vector<8x512xf32>
    %497 = vector.broadcast %6 : vector<1x512xf32> to vector<8x512xf32>
    %498 = arith.mulf %496, %497 : vector<8x512xf32>
    %c128_353 = arith.constant 128 : index
    %c0_354 = arith.constant 0 : index
    %499 = vector.load %arg6[%c128_353, %c0_354] : memref<360x512xf32, #tpu.memory_space<vmem>>, vector<8x512xf32>
    tpu.vector_store %arg6[%c128_353, %c0_354], %498 {strides = array<i32>} : memref<360x512xf32, #tpu.memory_space<vmem>>, vector<8x512xf32>,
    %c495_i32_355 = arith.constant 495 : i32
    %500 = tpu.dynamic_rotate %470 by %c495_i32_355 dim 1 : vector<8x512xf32>, i32 -> vector<8x512xf32>
    %501 = vector.broadcast %7 : vector<1x512xf32> to vector<8x512xf32>
    %502 = arith.mulf %500, %501 : vector<8x512xf32>
    %c136_356 = arith.constant 136 : index
    %c0_357 = arith.constant 0 : index
    %503 = vector.load %arg6[%c136_356, %c0_357] : memref<360x512xf32, #tpu.memory_space<vmem>>, vector<8x512xf32>
    tpu.vector_store %arg6[%c136_356, %c0_357], %502 {strides = array<i32>} : memref<360x512xf32, #tpu.memory_space<vmem>>, vector<8x512xf32>,
    %c88_358 = arith.constant 88 : index
    %c0_359 = arith.constant 0 : index
    %504 = vector.load %arg3[%c88_358, %c0_359] : memref<120x360xf32, #tpu.memory_space<vmem>>, vector<8x144xf32>
    %c0_360 = arith.constant 0 : index
    %c0_361 = arith.constant 0 : index
    %505 = vector.load %arg6[%c0_360, %c0_361] : memref<360x512xf32, #tpu.memory_space<vmem>>, vector<144x512xf32>
    %cst_362 = arith.constant dense<0.000000e+00> : vector<8x512xf32>
    %506 = tpu.matmul %504, %505, %cst_362 {dimension_numbers = #tpu.dot_dimension_numbers<[1], [0], [0], [1], [0, 0, 1, 1], [], []>} : vector<8x144xf32>, vector<144x512xf32>, vector<8x512xf32> -> vector<8x512xf32>
    %c88_363 = arith.constant 88 : index
    %c0_364 = arith.constant 0 : index
    %507 = vector.load %arg4[%c88_363, %c0_364] : memref<120x1xf32, #tpu.memory_space<vmem>>, vector<8x1xf32>
    %508 = vector.broadcast %507 : vector<8x1xf32> to vector<8x512xf32>
    %509 = arith.addf %506, %508 : vector<8x512xf32>
    %cst_365 = arith.constant 2.000000e-01 : f32
    %510 = vector.broadcast %cst_365 : f32 to vector<8x512xf32>
    %511 = arith.mulf %510, %509 : vector<8x512xf32>
    %512 = arith.maximumf %509, %511 : vector<8x512xf32>
    %c17_i32_366 = arith.constant 17 : i32
    %513 = tpu.dynamic_rotate %512 by %c17_i32_366 dim 1 : vector<8x512xf32>, i32 -> vector<8x512xf32>
    %514 = vector.broadcast %0 : vector<1x512xf32> to vector<8x512xf32>
    %515 = arith.mulf %513, %514 : vector<8x512xf32>
    %c144_367 = arith.constant 144 : index
    %c0_368 = arith.constant 0 : index
    %516 = vector.load %arg6[%c144_367, %c0_368] : memref<360x512xf32, #tpu.memory_space<vmem>>, vector<8x512xf32>
    tpu.vector_store %arg6[%c144_367, %c0_368], %515 {strides = array<i32>} : memref<360x512xf32, #tpu.memory_space<vmem>>, vector<8x512xf32>,
    %c16_i32_369 = arith.constant 16 : i32
    %517 = tpu.dynamic_rotate %512 by %c16_i32_369 dim 1 : vector<8x512xf32>, i32 -> vector<8x512xf32>
    %518 = vector.broadcast %1 : vector<1x512xf32> to vector<8x512xf32>
    %519 = arith.mulf %517, %518 : vector<8x512xf32>
    %c152_370 = arith.constant 152 : index
    %c0_371 = arith.constant 0 : index
    %520 = vector.load %arg6[%c152_370, %c0_371] : memref<360x512xf32, #tpu.memory_space<vmem>>, vector<8x512xf32>
    tpu.vector_store %arg6[%c152_370, %c0_371], %519 {strides = array<i32>} : memref<360x512xf32, #tpu.memory_space<vmem>>, vector<8x512xf32>,
    %c15_i32_372 = arith.constant 15 : i32
    %521 = tpu.dynamic_rotate %512 by %c15_i32_372 dim 1 : vector<8x512xf32>, i32 -> vector<8x512xf32>
    %522 = vector.broadcast %2 : vector<1x512xf32> to vector<8x512xf32>
    %523 = arith.mulf %521, %522 : vector<8x512xf32>
    %c160_373 = arith.constant 160 : index
    %c0_374 = arith.constant 0 : index
    %524 = vector.load %arg6[%c160_373, %c0_374] : memref<360x512xf32, #tpu.memory_space<vmem>>, vector<8x512xf32>
    tpu.vector_store %arg6[%c160_373, %c0_374], %523 {strides = array<i32>} : memref<360x512xf32, #tpu.memory_space<vmem>>, vector<8x512xf32>,
    %c1_i32_375 = arith.constant 1 : i32
    %525 = tpu.dynamic_rotate %512 by %c1_i32_375 dim 1 : vector<8x512xf32>, i32 -> vector<8x512xf32>
    %526 = vector.broadcast %3 : vector<1x512xf32> to vector<8x512xf32>
    %527 = arith.mulf %525, %526 : vector<8x512xf32>
    %c168_376 = arith.constant 168 : index
    %c0_377 = arith.constant 0 : index
    %528 = vector.load %arg6[%c168_376, %c0_377] : memref<360x512xf32, #tpu.memory_space<vmem>>, vector<8x512xf32>
    tpu.vector_store %arg6[%c168_376, %c0_377], %527 {strides = array<i32>} : memref<360x512xf32, #tpu.memory_space<vmem>>, vector<8x512xf32>,
    %c176_378 = arith.constant 176 : index
    %c0_379 = arith.constant 0 : index
    %529 = vector.load %arg6[%c176_378, %c0_379] : memref<360x512xf32, #tpu.memory_space<vmem>>, vector<8x512xf32>
    tpu.vector_store %arg6[%c176_378, %c0_379], %512 {strides = array<i32>} : memref<360x512xf32, #tpu.memory_space<vmem>>, vector<8x512xf32>,
    %c511_i32_380 = arith.constant 511 : i32
    %530 = tpu.dynamic_rotate %512 by %c511_i32_380 dim 1 : vector<8x512xf32>, i32 -> vector<8x512xf32>
    %531 = vector.broadcast %4 : vector<1x512xf32> to vector<8x512xf32>
    %532 = arith.mulf %530, %531 : vector<8x512xf32>
    %c184_381 = arith.constant 184 : index
    %c0_382 = arith.constant 0 : index
    %533 = vector.load %arg6[%c184_381, %c0_382] : memref<360x512xf32, #tpu.memory_space<vmem>>, vector<8x512xf32>
    tpu.vector_store %arg6[%c184_381, %c0_382], %532 {strides = array<i32>} : memref<360x512xf32, #tpu.memory_space<vmem>>, vector<8x512xf32>,
    %c497_i32_383 = arith.constant 497 : i32
    %534 = tpu.dynamic_rotate %512 by %c497_i32_383 dim 1 : vector<8x512xf32>, i32 -> vector<8x512xf32>
    %535 = vector.broadcast %5 : vector<1x512xf32> to vector<8x512xf32>
    %536 = arith.mulf %534, %535 : vector<8x512xf32>
    %c192_384 = arith.constant 192 : index
    %c0_385 = arith.constant 0 : index
    %537 = vector.load %arg6[%c192_384, %c0_385] : memref<360x512xf32, #tpu.memory_space<vmem>>, vector<8x512xf32>
    tpu.vector_store %arg6[%c192_384, %c0_385], %536 {strides = array<i32>} : memref<360x512xf32, #tpu.memory_space<vmem>>, vector<8x512xf32>,
    %c496_i32_386 = arith.constant 496 : i32
    %538 = tpu.dynamic_rotate %512 by %c496_i32_386 dim 1 : vector<8x512xf32>, i32 -> vector<8x512xf32>
    %539 = vector.broadcast %6 : vector<1x512xf32> to vector<8x512xf32>
    %540 = arith.mulf %538, %539 : vector<8x512xf32>
    %c200_387 = arith.constant 200 : index
    %c0_388 = arith.constant 0 : index
    %541 = vector.load %arg6[%c200_387, %c0_388] : memref<360x512xf32, #tpu.memory_space<vmem>>, vector<8x512xf32>
    tpu.vector_store %arg6[%c200_387, %c0_388], %540 {strides = array<i32>} : memref<360x512xf32, #tpu.memory_space<vmem>>, vector<8x512xf32>,
    %c495_i32_389 = arith.constant 495 : i32
    %542 = tpu.dynamic_rotate %512 by %c495_i32_389 dim 1 : vector<8x512xf32>, i32 -> vector<8x512xf32>
    %543 = vector.broadcast %7 : vector<1x512xf32> to vector<8x512xf32>
    %544 = arith.mulf %542, %543 : vector<8x512xf32>
    %c208_390 = arith.constant 208 : index
    %c0_391 = arith.constant 0 : index
    %545 = vector.load %arg6[%c208_390, %c0_391] : memref<360x512xf32, #tpu.memory_space<vmem>>, vector<8x512xf32>
    tpu.vector_store %arg6[%c208_390, %c0_391], %544 {strides = array<i32>} : memref<360x512xf32, #tpu.memory_space<vmem>>, vector<8x512xf32>,
    %c96_392 = arith.constant 96 : index
    %c0_393 = arith.constant 0 : index
    %546 = vector.load %arg3[%c96_392, %c0_393] : memref<120x360xf32, #tpu.memory_space<vmem>>, vector<8x216xf32>
    %c0_394 = arith.constant 0 : index
    %c0_395 = arith.constant 0 : index
    %547 = vector.load %arg6[%c0_394, %c0_395] : memref<360x512xf32, #tpu.memory_space<vmem>>, vector<216x512xf32>
    %cst_396 = arith.constant dense<0.000000e+00> : vector<8x512xf32>
    %548 = tpu.matmul %546, %547, %cst_396 {dimension_numbers = #tpu.dot_dimension_numbers<[1], [0], [0], [1], [0, 0, 1, 1], [], []>} : vector<8x216xf32>, vector<216x512xf32>, vector<8x512xf32> -> vector<8x512xf32>
    %c96_397 = arith.constant 96 : index
    %c0_398 = arith.constant 0 : index
    %549 = vector.load %arg4[%c96_397, %c0_398] : memref<120x1xf32, #tpu.memory_space<vmem>>, vector<8x1xf32>
    %550 = vector.broadcast %549 : vector<8x1xf32> to vector<8x512xf32>
    %551 = arith.addf %548, %550 : vector<8x512xf32>
    %cst_399 = arith.constant 2.000000e-01 : f32
    %552 = vector.broadcast %cst_399 : f32 to vector<8x512xf32>
    %553 = arith.mulf %552, %551 : vector<8x512xf32>
    %554 = arith.maximumf %551, %553 : vector<8x512xf32>
    %c17_i32_400 = arith.constant 17 : i32
    %555 = tpu.dynamic_rotate %554 by %c17_i32_400 dim 1 : vector<8x512xf32>, i32 -> vector<8x512xf32>
    %556 = vector.broadcast %0 : vector<1x512xf32> to vector<8x512xf32>
    %557 = arith.mulf %555, %556 : vector<8x512xf32>
    %c216_401 = arith.constant 216 : index
    %c0_402 = arith.constant 0 : index
    %558 = vector.load %arg6[%c216_401, %c0_402] : memref<360x512xf32, #tpu.memory_space<vmem>>, vector<8x512xf32>
    tpu.vector_store %arg6[%c216_401, %c0_402], %557 {strides = array<i32>} : memref<360x512xf32, #tpu.memory_space<vmem>>, vector<8x512xf32>,
    %c16_i32_403 = arith.constant 16 : i32
    %559 = tpu.dynamic_rotate %554 by %c16_i32_403 dim 1 : vector<8x512xf32>, i32 -> vector<8x512xf32>
    %560 = vector.broadcast %1 : vector<1x512xf32> to vector<8x512xf32>
    %561 = arith.mulf %559, %560 : vector<8x512xf32>
    %c224_404 = arith.constant 224 : index
    %c0_405 = arith.constant 0 : index
    %562 = vector.load %arg6[%c224_404, %c0_405] : memref<360x512xf32, #tpu.memory_space<vmem>>, vector<8x512xf32>
    tpu.vector_store %arg6[%c224_404, %c0_405], %561 {strides = array<i32>} : memref<360x512xf32, #tpu.memory_space<vmem>>, vector<8x512xf32>,
    %c15_i32_406 = arith.constant 15 : i32
    %563 = tpu.dynamic_rotate %554 by %c15_i32_406 dim 1 : vector<8x512xf32>, i32 -> vector<8x512xf32>
    %564 = vector.broadcast %2 : vector<1x512xf32> to vector<8x512xf32>
    %565 = arith.mulf %563, %564 : vector<8x512xf32>
    %c232_407 = arith.constant 232 : index
    %c0_408 = arith.constant 0 : index
    %566 = vector.load %arg6[%c232_407, %c0_408] : memref<360x512xf32, #tpu.memory_space<vmem>>, vector<8x512xf32>
    tpu.vector_store %arg6[%c232_407, %c0_408], %565 {strides = array<i32>} : memref<360x512xf32, #tpu.memory_space<vmem>>, vector<8x512xf32>,
    %c1_i32_409 = arith.constant 1 : i32
    %567 = tpu.dynamic_rotate %554 by %c1_i32_409 dim 1 : vector<8x512xf32>, i32 -> vector<8x512xf32>
    %568 = vector.broadcast %3 : vector<1x512xf32> to vector<8x512xf32>
    %569 = arith.mulf %567, %568 : vector<8x512xf32>
    %c240_410 = arith.constant 240 : index
    %c0_411 = arith.constant 0 : index
    %570 = vector.load %arg6[%c240_410, %c0_411] : memref<360x512xf32, #tpu.memory_space<vmem>>, vector<8x512xf32>
    tpu.vector_store %arg6[%c240_410, %c0_411], %569 {strides = array<i32>} : memref<360x512xf32, #tpu.memory_space<vmem>>, vector<8x512xf32>,
    %c248_412 = arith.constant 248 : index
    %c0_413 = arith.constant 0 : index
    %571 = vector.load %arg6[%c248_412, %c0_413] : memref<360x512xf32, #tpu.memory_space<vmem>>, vector<8x512xf32>
    tpu.vector_store %arg6[%c248_412, %c0_413], %554 {strides = array<i32>} : memref<360x512xf32, #tpu.memory_space<vmem>>, vector<8x512xf32>,
    %c511_i32_414 = arith.constant 511 : i32
    %572 = tpu.dynamic_rotate %554 by %c511_i32_414 dim 1 : vector<8x512xf32>, i32 -> vector<8x512xf32>
    %573 = vector.broadcast %4 : vector<1x512xf32> to vector<8x512xf32>
    %574 = arith.mulf %572, %573 : vector<8x512xf32>
    %c256_415 = arith.constant 256 : index
    %c0_416 = arith.constant 0 : index
    %575 = vector.load %arg6[%c256_415, %c0_416] : memref<360x512xf32, #tpu.memory_space<vmem>>, vector<8x512xf32>
    tpu.vector_store %arg6[%c256_415, %c0_416], %574 {strides = array<i32>} : memref<360x512xf32, #tpu.memory_space<vmem>>, vector<8x512xf32>,
    %c497_i32_417 = arith.constant 497 : i32
    %576 = tpu.dynamic_rotate %554 by %c497_i32_417 dim 1 : vector<8x512xf32>, i32 -> vector<8x512xf32>
    %577 = vector.broadcast %5 : vector<1x512xf32> to vector<8x512xf32>
    %578 = arith.mulf %576, %577 : vector<8x512xf32>
    %c264_418 = arith.constant 264 : index
    %c0_419 = arith.constant 0 : index
    %579 = vector.load %arg6[%c264_418, %c0_419] : memref<360x512xf32, #tpu.memory_space<vmem>>, vector<8x512xf32>
    tpu.vector_store %arg6[%c264_418, %c0_419], %578 {strides = array<i32>} : memref<360x512xf32, #tpu.memory_space<vmem>>, vector<8x512xf32>,
    %c496_i32_420 = arith.constant 496 : i32
    %580 = tpu.dynamic_rotate %554 by %c496_i32_420 dim 1 : vector<8x512xf32>, i32 -> vector<8x512xf32>
    %581 = vector.broadcast %6 : vector<1x512xf32> to vector<8x512xf32>
    %582 = arith.mulf %580, %581 : vector<8x512xf32>
    %c272_421 = arith.constant 272 : index
    %c0_422 = arith.constant 0 : index
    %583 = vector.load %arg6[%c272_421, %c0_422] : memref<360x512xf32, #tpu.memory_space<vmem>>, vector<8x512xf32>
    tpu.vector_store %arg6[%c272_421, %c0_422], %582 {strides = array<i32>} : memref<360x512xf32, #tpu.memory_space<vmem>>, vector<8x512xf32>,
    %c495_i32_423 = arith.constant 495 : i32
    %584 = tpu.dynamic_rotate %554 by %c495_i32_423 dim 1 : vector<8x512xf32>, i32 -> vector<8x512xf32>
    %585 = vector.broadcast %7 : vector<1x512xf32> to vector<8x512xf32>
    %586 = arith.mulf %584, %585 : vector<8x512xf32>
    %c280_424 = arith.constant 280 : index
    %c0_425 = arith.constant 0 : index
    %587 = vector.load %arg6[%c280_424, %c0_425] : memref<360x512xf32, #tpu.memory_space<vmem>>, vector<8x512xf32>
    tpu.vector_store %arg6[%c280_424, %c0_425], %586 {strides = array<i32>} : memref<360x512xf32, #tpu.memory_space<vmem>>, vector<8x512xf32>,
    %c104_426 = arith.constant 104 : index
    %c0_427 = arith.constant 0 : index
    %588 = vector.load %arg3[%c104_426, %c0_427] : memref<120x360xf32, #tpu.memory_space<vmem>>, vector<8x288xf32>
    %c0_428 = arith.constant 0 : index
    %c0_429 = arith.constant 0 : index
    %589 = vector.load %arg6[%c0_428, %c0_429] : memref<360x512xf32, #tpu.memory_space<vmem>>, vector<288x512xf32>
    %cst_430 = arith.constant dense<0.000000e+00> : vector<8x512xf32>
    %590 = tpu.matmul %588, %589, %cst_430 {dimension_numbers = #tpu.dot_dimension_numbers<[1], [0], [0], [1], [0, 0, 1, 1], [], []>} : vector<8x288xf32>, vector<288x512xf32>, vector<8x512xf32> -> vector<8x512xf32>
    %c104_431 = arith.constant 104 : index
    %c0_432 = arith.constant 0 : index
    %591 = vector.load %arg4[%c104_431, %c0_432] : memref<120x1xf32, #tpu.memory_space<vmem>>, vector<8x1xf32>
    %592 = vector.broadcast %591 : vector<8x1xf32> to vector<8x512xf32>
    %593 = arith.addf %590, %592 : vector<8x512xf32>
    %cst_433 = arith.constant 2.000000e-01 : f32
    %594 = vector.broadcast %cst_433 : f32 to vector<8x512xf32>
    %595 = arith.mulf %594, %593 : vector<8x512xf32>
    %596 = arith.maximumf %593, %595 : vector<8x512xf32>
    %c17_i32_434 = arith.constant 17 : i32
    %597 = tpu.dynamic_rotate %596 by %c17_i32_434 dim 1 : vector<8x512xf32>, i32 -> vector<8x512xf32>
    %598 = vector.broadcast %0 : vector<1x512xf32> to vector<8x512xf32>
    %599 = arith.mulf %597, %598 : vector<8x512xf32>
    %c288_435 = arith.constant 288 : index
    %c0_436 = arith.constant 0 : index
    %600 = vector.load %arg6[%c288_435, %c0_436] : memref<360x512xf32, #tpu.memory_space<vmem>>, vector<8x512xf32>
    tpu.vector_store %arg6[%c288_435, %c0_436], %599 {strides = array<i32>} : memref<360x512xf32, #tpu.memory_space<vmem>>, vector<8x512xf32>,
    %c16_i32_437 = arith.constant 16 : i32
    %601 = tpu.dynamic_rotate %596 by %c16_i32_437 dim 1 : vector<8x512xf32>, i32 -> vector<8x512xf32>
    %602 = vector.broadcast %1 : vector<1x512xf32> to vector<8x512xf32>
    %603 = arith.mulf %601, %602 : vector<8x512xf32>
    %c296_438 = arith.constant 296 : index
    %c0_439 = arith.constant 0 : index
    %604 = vector.load %arg6[%c296_438, %c0_439] : memref<360x512xf32, #tpu.memory_space<vmem>>, vector<8x512xf32>
    tpu.vector_store %arg6[%c296_438, %c0_439], %603 {strides = array<i32>} : memref<360x512xf32, #tpu.memory_space<vmem>>, vector<8x512xf32>,
    %c15_i32_440 = arith.constant 15 : i32
    %605 = tpu.dynamic_rotate %596 by %c15_i32_440 dim 1 : vector<8x512xf32>, i32 -> vector<8x512xf32>
    %606 = vector.broadcast %2 : vector<1x512xf32> to vector<8x512xf32>
    %607 = arith.mulf %605, %606 : vector<8x512xf32>
    %c304_441 = arith.constant 304 : index
    %c0_442 = arith.constant 0 : index
    %608 = vector.load %arg6[%c304_441, %c0_442] : memref<360x512xf32, #tpu.memory_space<vmem>>, vector<8x512xf32>
    tpu.vector_store %arg6[%c304_441, %c0_442], %607 {strides = array<i32>} : memref<360x512xf32, #tpu.memory_space<vmem>>, vector<8x512xf32>,
    %c1_i32_443 = arith.constant 1 : i32
    %609 = tpu.dynamic_rotate %596 by %c1_i32_443 dim 1 : vector<8x512xf32>, i32 -> vector<8x512xf32>
    %610 = vector.broadcast %3 : vector<1x512xf32> to vector<8x512xf32>
    %611 = arith.mulf %609, %610 : vector<8x512xf32>
    %c312_444 = arith.constant 312 : index
    %c0_445 = arith.constant 0 : index
    %612 = vector.load %arg6[%c312_444, %c0_445] : memref<360x512xf32, #tpu.memory_space<vmem>>, vector<8x512xf32>
    tpu.vector_store %arg6[%c312_444, %c0_445], %611 {strides = array<i32>} : memref<360x512xf32, #tpu.memory_space<vmem>>, vector<8x512xf32>,
    %c320_446 = arith.constant 320 : index
    %c0_447 = arith.constant 0 : index
    %613 = vector.load %arg6[%c320_446, %c0_447] : memref<360x512xf32, #tpu.memory_space<vmem>>, vector<8x512xf32>
    tpu.vector_store %arg6[%c320_446, %c0_447], %596 {strides = array<i32>} : memref<360x512xf32, #tpu.memory_space<vmem>>, vector<8x512xf32>,
    %c511_i32_448 = arith.constant 511 : i32
    %614 = tpu.dynamic_rotate %596 by %c511_i32_448 dim 1 : vector<8x512xf32>, i32 -> vector<8x512xf32>
    %615 = vector.broadcast %4 : vector<1x512xf32> to vector<8x512xf32>
    %616 = arith.mulf %614, %615 : vector<8x512xf32>
    %c328_449 = arith.constant 328 : index
    %c0_450 = arith.constant 0 : index
    %617 = vector.load %arg6[%c328_449, %c0_450] : memref<360x512xf32, #tpu.memory_space<vmem>>, vector<8x512xf32>
    tpu.vector_store %arg6[%c328_449, %c0_450], %616 {strides = array<i32>} : memref<360x512xf32, #tpu.memory_space<vmem>>, vector<8x512xf32>,
    %c497_i32_451 = arith.constant 497 : i32
    %618 = tpu.dynamic_rotate %596 by %c497_i32_451 dim 1 : vector<8x512xf32>, i32 -> vector<8x512xf32>
    %619 = vector.broadcast %5 : vector<1x512xf32> to vector<8x512xf32>
    %620 = arith.mulf %618, %619 : vector<8x512xf32>
    %c336_452 = arith.constant 336 : index
    %c0_453 = arith.constant 0 : index
    %621 = vector.load %arg6[%c336_452, %c0_453] : memref<360x512xf32, #tpu.memory_space<vmem>>, vector<8x512xf32>
    tpu.vector_store %arg6[%c336_452, %c0_453], %620 {strides = array<i32>} : memref<360x512xf32, #tpu.memory_space<vmem>>, vector<8x512xf32>,
    %c496_i32_454 = arith.constant 496 : i32
    %622 = tpu.dynamic_rotate %596 by %c496_i32_454 dim 1 : vector<8x512xf32>, i32 -> vector<8x512xf32>
    %623 = vector.broadcast %6 : vector<1x512xf32> to vector<8x512xf32>
    %624 = arith.mulf %622, %623 : vector<8x512xf32>
    %c344_455 = arith.constant 344 : index
    %c0_456 = arith.constant 0 : index
    %625 = vector.load %arg6[%c344_455, %c0_456] : memref<360x512xf32, #tpu.memory_space<vmem>>, vector<8x512xf32>
    tpu.vector_store %arg6[%c344_455, %c0_456], %624 {strides = array<i32>} : memref<360x512xf32, #tpu.memory_space<vmem>>, vector<8x512xf32>,
    %c495_i32_457 = arith.constant 495 : i32
    %626 = tpu.dynamic_rotate %596 by %c495_i32_457 dim 1 : vector<8x512xf32>, i32 -> vector<8x512xf32>
    %627 = vector.broadcast %7 : vector<1x512xf32> to vector<8x512xf32>
    %628 = arith.mulf %626, %627 : vector<8x512xf32>
    %c352_458 = arith.constant 352 : index
    %c0_459 = arith.constant 0 : index
    %629 = vector.load %arg6[%c352_458, %c0_459] : memref<360x512xf32, #tpu.memory_space<vmem>>, vector<8x512xf32>
    tpu.vector_store %arg6[%c352_458, %c0_459], %628 {strides = array<i32>} : memref<360x512xf32, #tpu.memory_space<vmem>>, vector<8x512xf32>,
    %c112_460 = arith.constant 112 : index
    %c0_461 = arith.constant 0 : index
    %630 = vector.load %arg3[%c112_460, %c0_461] : memref<120x360xf32, #tpu.memory_space<vmem>>, vector<8x360xf32>
    %c0_462 = arith.constant 0 : index
    %c0_463 = arith.constant 0 : index
    %631 = vector.load %arg6[%c0_462, %c0_463] : memref<360x512xf32, #tpu.memory_space<vmem>>, vector<360x512xf32>
    %cst_464 = arith.constant dense<0.000000e+00> : vector<8x512xf32>
    %632 = tpu.matmul %630, %631, %cst_464 {dimension_numbers = #tpu.dot_dimension_numbers<[1], [0], [0], [1], [0, 0, 1, 1], [], []>} : vector<8x360xf32>, vector<360x512xf32>, vector<8x512xf32> -> vector<8x512xf32>
    %c112_465 = arith.constant 112 : index
    %c0_466 = arith.constant 0 : index
    %633 = vector.load %arg4[%c112_465, %c0_466] : memref<120x1xf32, #tpu.memory_space<vmem>>, vector<8x1xf32>
    %634 = vector.broadcast %633 : vector<8x1xf32> to vector<8x512xf32>
    %635 = arith.addf %632, %634 : vector<8x512xf32>
    %cst_467 = arith.constant 2.000000e-01 : f32
    %636 = vector.broadcast %cst_467 : f32 to vector<8x512xf32>
    %637 = arith.mulf %635, %636 : vector<8x512xf32>
    %638 = arith.addf %637, %428 : vector<8x512xf32>
    %cst_468 = arith.constant 2.000000e-01 : f32
    %639 = vector.broadcast %cst_468 : f32 to vector<8x512xf32>
    %640 = arith.mulf %638, %639 : vector<8x512xf32>
    %641 = arith.addf %640, %8 : vector<8x512xf32>
    %c0_469 = arith.constant 0 : index
    %c0_470 = arith.constant 0 : index
    %642 = vector.load %arg5[%c0_469, %c0_470] : memref<8x512xf32, #tpu.memory_space<vmem>>, vector<8x512xf32>
    tpu.vector_store %arg5[%c0_469, %c0_470], %641 {strides = array<i32>} : memref<8x512xf32, #tpu.memory_space<vmem>>, vector<8x512xf32>,
    return
  }
  func.func @transform_0(%arg0: i32) -> (i32, i32) {
    %c0_i32 = arith.constant 0 : i32
    %c0_i32_0 = arith.constant 0 : i32
    %c0_i32_1 = arith.constant 0 : i32
    return %c0_i32, %c0_i32_0 : i32, i32
  }
  func.func @transform_1(%arg0: i32) -> (i32, i32) {
    %c0_i32 = arith.constant 0 : i32
    %c0_i32_0 = arith.constant 0 : i32
    %c0_i32_1 = arith.constant 0 : i32
    return %c0_i32, %c0_i32_0 : i32, i32
  }
  func.func @transform_2(%arg0: i32) -> (i32, i32) {
    %c0_i32 = arith.constant 0 : i32
    %c0_i32_0 = arith.constant 0 : i32
    %c0_i32_1 = arith.constant 0 : i32
    return %c0_i32, %c0_i32_0 : i32, i32
  }
  func.func @transform_3(%arg0: i32) -> (i32, i32) {
    %c0_i32 = arith.constant 0 : i32
    %c0_i32_0 = arith.constant 0 : i32
    %c0_i32_1 = arith.constant 0 : i32
    return %c0_i32, %c0_i32_0 : i32, i32
  }
  func.func @transform_4(%arg0: i32) -> (i32, i32) {
    %c0_i32 = arith.constant 0 : i32
    %c0_i32_0 = arith.constant 0 : i32
    %c0_i32_1 = arith.constant 0 : i32
    return %c0_i32, %c0_i32_0 : i32, i32
  }
}

</mosaic_0001>

<bundles_post_ra>
// kernel: rrdb_forward.1
= control target key start
LH: loop header
LB: loop body
LE: loop exit
PB: predicated region body
PF: predicated region fallthrough
CT: control target
= control target key end

     0   :  { %s7646_s19 = smov 111   ;;  %s7647_s22 = smov 112   ;;  %v13429_v4 = vmov 0.0   ;;  %v7655_v5 = vmov 0   ;;  %v44_v7 = vlaneseq  ;;  %vm421_vm8 = vcmask 588800   ;;  %s13424_s0 = inlined_call_operand.vmem [shape: f32[8,512], index: 0, kind: input, shape index: {}]   ;;  %s13425_s3 = inlined_call_operand.vmem [shape: f32[120,1], index: 3, kind: input, shape index: {}]   ;;  %s13426_s1 = inlined_call_operand.vmem [shape: f32[9,512], index: 1, kind: input, shape index: {}]   ;;  %s13427_s2 = inlined_call_operand.vmem [shape: f32[120,360], index: 2, kind: input, shape index: {}]   ;;  %s13428_s4 = inlined_call_operand.vmem [shape: f32[8,512], index: 4, kind: output, shape index: {}]  }
   0x1   :  { %v7684_v0 = vld [vmem:[%s13424_s0 + $0x8] sm:$0xff]  ;;  %v7689_v1 = vld [vmem:[%s13424_s0] sm:$0xff]  ;;  %v7698_v2 = vld [vmem:[%s13424_s0 + $0x10] sm:$0xff]  ;;  %s7648_s25 = smov 113   ;;  %s7649_s26 = smov 127   ;;  %489 = vmatprep.mubr.f32.mxu0 %v13429_v4  ;;  %560 = vmatprep.mubr.f32.mxu1 %v13429_v4  ;;  %vm819_vm9 = vcmask 130048  }
   0x2   :  { %14215 = vst [vmem:[#allocation3_spill] sm:$0xff] %v7684_v0  ;;  %14216 = vst [vmem:[#allocation4_spill] sm:$0xff] %v7689_v1  ;;  %338 = vrot.lane.b32.xlu0 %v7684_v0, %s7646_s19  ;;  %336 = vrot.lane.b32.xlu1 %v7689_v1, %s7646_s19  ;;  %v7707_v3 = vld [vmem:[%s13424_s0 + $0x18] sm:$0xff]  ;;  %s7650_s27 = smov 1   ;;  %s7651_s28 = smov 15   ;;  %v415_v6 = vld [vmem:[%s13425_s3] sm:$0xff] }
   0x3   :  { %14217 = vst [vmem:[#allocation5_spill] sm:$0xff] %v7698_v2  ;;  %14218 = vst [vmem:[#allocation6_spill] sm:$0xff] %v7707_v3  ;;  %s7652_s29 = smov 16   ;;  %s7654_s30 = smov 17   ;;  %7632 = vset.pattern.permute.xlu0 %v7655_v5  ;;  %7633 = vset.pattern.permute.xlu1 %v7655_v5  ;;  %v53_v8 = vshrl.u32 %v44_v7, 7  ;;  %v7770_v9 = vand.u32 127, %v44_v7 }
   0x4   :  { %v7591_v13 = vld [vmem:[%s13426_s1 + $0x20] ss:$8 sm:$0xf]  ;;  %v7590_v19 = vld [vmem:[%s13426_s1 + $0x7] ss:$8 sm:$0xf] }
   0x5   :  { %14219 = vst [vmem:[#allocation7_spill] sm:$0xff] %v7770_v9  ;;  %v7772_v10 = vsub.s32 1, %v53_v8  ;;  %v7774_v11 = vsub.s32 0, %v53_v8  ;;  %vm344_vm0 = vcmp.lt.s32.totalorder %v7770_v9, 111  ;;  %v7783_v16 = vsub.s32 2, %v53_v8 }
   0x6   :  { %340 = vrot.lane.b32.xlu0 %v7698_v2, %s7646_s19  ;;  %296 = vrot.lane.b32.xlu1 %v7684_v0, %s7647_s22  ;;  %v7785_v17 = vsub.s32 3, %v53_v8  ;;  %vm302_vm1 = vcmp.lt.s32.totalorder %v7770_v9, 112  ;;  %v7589_v38 = vld [vmem:[%s13426_s1 + $0x6] ss:$8 sm:$0xf]  ;;  %vm260_vm2 = vcmp.lt.s32.totalorder %v7770_v9, 113 }
   0x7   :  { %v7781_v15 = vrot.slane %v7591_v13, %v7772_v10  ;;  %v7788_v18 = vrot.slane %v7591_v13, %v7774_v11  ;;  %v7802_v25 = vrot.slane %v7590_v19, %v7772_v10  ;;  %v7805_v26 = vrot.slane %v7591_v13, %v7783_v16  ;;  %v7588_v55 = vld [vmem:[%s13426_s1 + $0x5] ss:$8 sm:$0xf] }
   0x8   :  { %v7808_v27 = vrot.slane %v7591_v13, %v7785_v17  ;;  %v7831_v37 = vrot.slane %v7590_v19, %v7774_v11  ;;  %v7846_v43 = vrot.slane %v7589_v38, %v7772_v10  ;;  %v7849_v44 = vrot.slane %v7590_v19, %v7783_v16 }
   0x9   :  { %14220 = vst [vmem:[#allocation8_spill] sm:$0xff] %v7781_v15  ;;  %14221 = vst [vmem:[#allocation9_spill] sm:$0xff] %v7788_v18  ;;  %v7852_v45 = vrot.slane %v7590_v19, %v7785_v17  ;;  %v7871_v54 = vrot.slane %v7589_v38, %v7774_v11  ;;  %vm218_vm3 = vcmp.lt.s32.totalorder %v7770_v9, 127  ;;  %v7886_v60 = vrot.slane %v7588_v55, %v7772_v10 }
   0xa   :  { %298 = vrot.lane.b32.xlu0 %v7698_v2, %s7647_s22  ;;  %342 = vrot.lane.b32.xlu1 %v7707_v3, %s7646_s19  ;;  %14223 = vst [vmem:[#allocation11_spill] sm:$0xff] %v7802_v25  ;;  %14224 = vst [vmem:[#allocation12_spill] sm:$0xff] %v7805_v26  ;;  %v7889_v61 = vrot.slane %v7589_v38, %v7783_v16  ;;  %v7892_v62 = vrot.slane %v7589_v38, %v7785_v17  ;;  %vm172_vm4 = vcmp.lt.s32.totalorder %v7770_v9, 1  ;;  %vm1253_vm10 = vcmask 719872  }
   0xb   :  { %14225 = vst [vmem:[#allocation13_spill] sm:$0xff] %v7808_v27  ;;  %14230 = vst [vmem:[#allocation18_spill] sm:$0xff] %v7831_v37  ;;  %v7905_v13 = vrot.slane %v7588_v55, %v7783_v16  ;;  %vm130_vm5 = vcmp.lt.s32.totalorder %v7770_v9, 15  ;;  %vm88_vm6 = vcmp.lt.s32.totalorder %v7770_v9, 16  ;;  %vm46_vm7 = vcmp.lt.s32.totalorder %v7770_v9, 17 }
   0xc   :  { %14232 = vst [vmem:[#allocation20_spill] sm:$0xff] %v7846_v43  ;;  %14233 = vst [vmem:[#allocation21_spill] sm:$0xff] %v7849_v44  ;;  %vm1724_vm11 = vcmask 261120   ;;  %vm2373_vm12 = vcmask 850944  }
   0xd   :  { %14234 = vst [vmem:[#allocation22_spill] sm:$0xff] %v7852_v45  ;;  %14238 = vst [vmem:[#allocation26_spill] sm:$0xff] %v7871_v54 }
   0xe   :  { %294 = vrot.lane.b32.xlu0 %v7689_v1, %s7647_s22  ;;  %254 = vrot.lane.b32.xlu1 %v7684_v0, %s7648_s25  ;;  %14240 = vst [vmem:[#allocation28_spill] sm:$0xff] %v7886_v60  ;;  %14241 = vst [vmem:[#allocation29_spill] sm:$0xff] %v7889_v61 }
   0xf   :  { %14242 = vst [vmem:[#allocation30_spill] sm:$0xff] %v7892_v62  ;;  %14244 = vst [vmem:[#allocation32_spill] sm:$0xff] %v7905_v13 }
  0x12   :  { %256 = vrot.lane.b32.xlu0 %v7698_v2, %s7648_s25  ;;  %300 = vrot.lane.b32.xlu1 %v7707_v3, %s7647_s22 }
  0x16   :  { %252 = vrot.lane.b32.xlu0 %v7689_v1, %s7648_s25  ;;  %212 = vrot.lane.b32.xlu1 %v7684_v0, %s7649_s26 }
  0x1a   :  { %214 = vrot.lane.b32.xlu0 %v7698_v2, %s7649_s26  ;;  %258 = vrot.lane.b32.xlu1 %v7707_v3, %s7648_s25 }
  0x1e   :  { %210 = vrot.lane.b32.xlu0 %v7689_v1, %s7649_s26  ;;  %216 = vrot.lane.b32.xlu1 %v7707_v3, %s7649_s26 }
  0x22   :  { %164 = vrot.lane.b32.xlu0 %v7689_v1, %s7650_s27  ;;  %166 = vrot.lane.b32.xlu1 %v7684_v0, %s7650_s27 }
  0x26   :  { %170 = vrot.lane.b32.xlu0 %v7707_v3, %s7650_s27  ;;  %122 = vrot.lane.b32.xlu1 %v7689_v1, %s7651_s28 }
  0x2a   :  { %124 = vrot.lane.b32.xlu0 %v7684_v0, %s7651_s28  ;;  %168 = vrot.lane.b32.xlu1 %v7698_v2, %s7650_s27 }
  0x2e   :  { %128 = vrot.lane.b32.xlu0 %v7707_v3, %s7651_s28  ;;  %80 = vrot.lane.b32.xlu1 %v7689_v1, %s7652_s29 }
  0x32   :  { %82 = vrot.lane.b32.xlu0 %v7684_v0, %s7652_s29  ;;  %126 = vrot.lane.b32.xlu1 %v7698_v2, %s7651_s28 }
  0x36   :  { %86 = vrot.lane.b32.xlu0 %v7707_v3, %s7652_s29  ;;  %36 = vrot.lane.b32.xlu1 %v7689_v1, %s7654_s30 }
  0x3a   :  { %38 = vrot.lane.b32.xlu0 %v7684_v0, %s7654_s30  ;;  %84 = vrot.lane.b32.xlu1 %v7698_v2, %s7652_s29 }
  0x3e   :  { %42 = vrot.lane.b32.xlu0 %v7707_v3, %s7654_s30  ;;  %40 = vrot.lane.b32.xlu1 %v7698_v2, %s7654_s30 }
  0x42   :  { %418 = vperm.xlu0 %7632, %v415_v6   ;;  %v7896_v6 = vrot.slane %v7588_v55, %v7774_v11 }
  0x44   :  { %14243 = vst [vmem:[#allocation31_spill] sm:$0xff] %v7896_v6 }
  0x74   :  { %v339_v12 = vpop.permute.xlu0 %338  ;;  %v337_v14 = vpop.permute.xlu1 %336 }
  0x75   :  { %v347_v20 = vsel %vm344_vm0, %v337_v14, %v339_v12 }
  0x76   :  { %v7811_v28 = vmul.f32 %v7788_v18, %v347_v20 }
  0x78   :  { %v341_v21 = vpop.permute.xlu0 %340  ;;  %v297_v22 = vpop.permute.xlu1 %296  ;;  %14226 = vst [vmem:[#allocation14_spill] sm:$0xff] %v7811_v28 }
  0x79   :  { %v346_v23 = vsel %vm344_vm0, %v339_v12, %v341_v21 }
  0x7a   :  { %v7799_v24 = vmul.f32 %v7781_v15, %v346_v23 }
  0x7c   :  { %14222 = vst [vmem:[#allocation10_spill] sm:$0xff] %v7799_v24  ;;  %439 = vmatprep.subr.mxu0 %v7799_v24  ;;  %v299_v29 = vpop.permute.xlu0 %298  ;;  %v343_v30 = vpop.permute.xlu1 %342 }
  0x7d   :  { %v304_v31 = vsel %vm302_vm1, %v297_v22, %v299_v29  ;;  %v345_v32 = vsel %vm344_vm0, %v341_v21, %v343_v30  ;;  %v348_v33 = vsel %vm344_vm0, %v343_v30, %v337_v14  ;;  %440 = vmatpush1.msra.mxu0 %v7811_v28  ;;  %v7917_v21 = vrot.slane %v7588_v55, %v7785_v17 }
  0x7e   :  { %v7822_v34 = vmul.f32 %v7802_v25, %v304_v31  ;;  %v7825_v35 = vmul.f32 %v7805_v26, %v345_v32  ;;  %v7828_v36 = vmul.f32 %v7808_v27, %v348_v33  ;;  %v17_v25 = vld [vmem:[%s13426_s1] ss:$8 sm:$0xf] }
  0x7f   :  { %14248 = vst [vmem:[#allocation36_spill] sm:$0xff] %v7917_v21 }
  0x80   :  { %14227 = vst [vmem:[#allocation15_spill] sm:$0xff] %v7822_v34  ;;  %14228 = vst [vmem:[#allocation16_spill] sm:$0xff] %v7825_v35  ;;  %v295_v39 = vpop.permute.xlu0 %294  ;;  %441 = vmatprep.subr.mxu0 %v7822_v34  ;;  %510 = vmatprep.subr.mxu1 %v7828_v36  ;;  %v255_v40 = vpop.permute.xlu1 %254 }
  0x81   :  { %14229 = vst [vmem:[#allocation17_spill] sm:$0xff] %v7828_v36  ;;  %v305_v41 = vsel %vm302_vm1, %v295_v39, %v297_v22  ;;  %511 = vmatpush1.msra.mxu1 %v7825_v35  ;;  %v7587_v22 = vld [vmem:[%s13426_s1 + $0x3] ss:$8 sm:$0xf] }
  0x82   :  { %v7843_v42 = vmul.f32 %v7831_v37, %v305_v41 }
  0x84   :  { %14231 = vst [vmem:[#allocation19_spill] sm:$0xff] %v7843_v42  ;;  %v257_v46 = vpop.permute.xlu0 %256  ;;  %442 = vmatpush1.msra.mxu0 %v7843_v42  ;;  %v301_v47 = vpop.permute.xlu1 %300 }
  0x85   :  { %v262_v48 = vsel %vm260_vm2, %v255_v40, %v257_v46  ;;  %v303_v49 = vsel %vm302_vm1, %v299_v29, %v301_v47  ;;  %v306_v50 = vsel %vm302_vm1, %v301_v47, %v295_v39 }
  0x86   :  { %v7862_v51 = vmul.f32 %v7846_v43, %v262_v48  ;;  %v7865_v52 = vmul.f32 %v7849_v44, %v303_v49  ;;  %v7868_v53 = vmul.f32 %v7852_v45, %v306_v50  ;;  %v7955_v49 = vrot.slane %v7587_v22, %v7774_v11  ;;  %v7586_v50 = vld [vmem:[%s13426_s1 + $0x2] ss:$8 sm:$0xf] }
  0x88   :  { %14235 = vst [vmem:[#allocation23_spill] sm:$0xff] %v7862_v51  ;;  %14236 = vst [vmem:[#allocation24_spill] sm:$0xff] %v7865_v52  ;;  %v253_v56 = vpop.permute.xlu0 %252  ;;  %443 = vmatprep.subr.mxu0 %v7862_v51  ;;  %512 = vmatprep.subr.mxu1 %v7868_v53  ;;  %v213_v57 = vpop.permute.xlu1 %212 }
  0x89   :  { %14237 = vst [vmem:[#allocation25_spill] sm:$0xff] %v7868_v53  ;;  %v263_v58 = vsel %vm260_vm2, %v253_v56, %v255_v40  ;;  %513 = vmatpush1.msra.mxu1 %v7865_v52  ;;  %v7942_v40 = vrot.slane %v7587_v22, %v7772_v10  ;;  %14254 = vst [vmem:[#allocation42_spill] sm:$0xff] %v7955_v49 }
  0x8a   :  { %v7883_v59 = vmul.f32 %v7871_v54, %v263_v58 }
  0x8b   :  { %14252 = vst [vmem:[#allocation40_spill] sm:$0xff] %v7942_v40 }
  0x8c   :  { %14239 = vst [vmem:[#allocation27_spill] sm:$0xff] %v7883_v59  ;;  %v215_v63 = vpop.permute.xlu0 %214  ;;  %444 = vmatpush1.msra.mxu0 %v7883_v59  ;;  %v259_v5 = vpop.permute.xlu1 %258 }
  0x8d   :  { %v220_v7 = vsel %vm218_vm3, %v213_v57, %v215_v63  ;;  %v261_v8 = vsel %vm260_vm2, %v257_v46, %v259_v5  ;;  %v264_v12 = vsel %vm260_vm2, %v259_v5, %v253_v56  ;;  %v7973_v5 = vrot.slane %v7587_v22, %v7783_v16 }
  0x8e   :  { %v7908_v14 = vmul.f32 %v7886_v60, %v220_v7  ;;  %v7911_v19 = vmul.f32 %v7889_v61, %v261_v8  ;;  %v7914_v20 = vmul.f32 %v7892_v62, %v264_v12  ;;  %v7976_v7 = vrot.slane %v7587_v22, %v7785_v17 }
  0x8f   :  { %14257 = vst [vmem:[#allocation45_spill] sm:$0xff] %v7973_v5 }
  0x90   :  { %14245 = vst [vmem:[#allocation33_spill] sm:$0xff] %v7908_v14  ;;  %14246 = vst [vmem:[#allocation34_spill] sm:$0xff] %v7911_v19  ;;  %v211_v23 = vpop.permute.xlu0 %210  ;;  %445 = vmatprep.subr.mxu0 %v7908_v14  ;;  %514 = vmatprep.subr.mxu1 %v7914_v20  ;;  %v217_v29 = vpop.permute.xlu1 %216 }
  0x91   :  { %14247 = vst [vmem:[#allocation35_spill] sm:$0xff] %v7914_v20  ;;  %v221_v30 = vsel %vm218_vm3, %v211_v23, %v213_v57  ;;  %v219_v31 = vsel %vm218_vm3, %v215_v63, %v217_v29  ;;  %v222_v32 = vsel %vm218_vm3, %v217_v29, %v211_v23  ;;  %515 = vmatpush1.msra.mxu1 %v7911_v19  ;;  %14258 = vst [vmem:[#allocation46_spill] sm:$0xff] %v7976_v7 }
  0x92   :  { %v7933_v33 = vmul.f32 %v7896_v6, %v221_v30  ;;  %v7936_v38 = vmul.f32 %v7905_v13, %v219_v31  ;;  %v7939_v39 = vmul.f32 %v7917_v21, %v222_v32  ;;  %v7970_v63 = vrot.slane %v7586_v50, %v7772_v10 }
  0x94   :  { %14249 = vst [vmem:[#allocation37_spill] sm:$0xff] %v7933_v33  ;;  %14250 = vst [vmem:[#allocation38_spill] sm:$0xff] %v7936_v38  ;;  %v165_v41 = vpop.permute.xlu0 %164  ;;  %446 = vmatpush1.msra.mxu0 %v7933_v33  ;;  %516 = vmatprep.subr.mxu1 %v7939_v39  ;;  %v167_v46 = vpop.permute.xlu1 %166 }
  0x95   :  { %14251 = vst [vmem:[#allocation39_spill] sm:$0xff] %v7939_v39  ;;  %v175_v47 = vsel %vm172_vm4, %v165_v41, %v167_v46  ;;  %517 = vmatpush1.msra.mxu1 %v7936_v38  ;;  %447 = vmatprep.subr.mxu0 %v7684_v0  ;;  %14256 = vst [vmem:[#allocation44_spill] sm:$0xff] %v7970_v63 }
  0x96   :  { %v7951_v48 = vmul.f32 %v7942_v40, %v175_v47  ;;  %448 = vmatpush1.msra.mxu0 %v7689_v1  ;;  %518 = vmatprep.subr.mxu1 %v7707_v3  ;;  %v7585_v47 = vld [vmem:[%s13426_s1 + $0x1] ss:$8 sm:$0xf] }
  0x97   :  { %519 = vmatpush1.msra.mxu1 %v7698_v2  ;;  %v8035_v27 = vrot.slane %v7585_v47, %v7774_v11  ;;  %v8056_v18 = vrot.slane %v7585_v47, %v7785_v17 }
  0x98   :  { %14253 = vst [vmem:[#allocation41_spill] sm:$0xff] %v7951_v48  ;;  %v171_v55 = vpop.permute.xlu0 %170  ;;  %449 = vmatprep.subr.mxu0 %v7951_v48  ;;  %v123_v56 = vpop.permute.xlu1 %122 }
  0x99   :  { %v176_v57 = vsel %vm172_vm4, %v171_v55, %v165_v41  ;;  %v7995_v41 = vrot.slane %v7586_v50, %v7774_v11  ;;  %14270 = vst [vmem:[#allocation58_spill] sm:$0xff] %v8035_v27  ;;  %14274 = vst [vmem:[#allocation62_spill] sm:$0xff] %v8056_v18 }
  0x9a   :  { %v7967_v58 = vmul.f32 %v7955_v49, %v176_v57 }
  0x9b   :  { %14262 = vst [vmem:[#allocation50_spill] sm:$0xff] %v7995_v41 }
  0x9c   :  { %14255 = vst [vmem:[#allocation43_spill] sm:$0xff] %v7967_v58  ;;  %v125_v8 = vpop.permute.xlu0 %124  ;;  %450 = vmatpush1.msra.mxu0 %v7967_v58  ;;  %v169_v12 = vpop.permute.xlu1 %168 }
  0x9d   :  { %v133_v23 = vsel %vm130_vm5, %v123_v56, %v125_v8  ;;  %v173_v29 = vsel %vm172_vm4, %v169_v12, %v171_v55  ;;  %v174_v30 = vsel %vm172_vm4, %v167_v46, %v169_v12 }
  0x9e   :  { %v7986_v31 = vmul.f32 %v7970_v63, %v133_v23  ;;  %v7989_v32 = vmul.f32 %v7973_v5, %v174_v30  ;;  %v7992_v22 = vmul.f32 %v7976_v7, %v173_v29  ;;  %v8010_v23 = vrot.slane %v7585_v47, %v7772_v10 }
  0x9f   :  { %v8013_v29 = vrot.slane %v7586_v50, %v7783_v16  ;;  %v8016_v30 = vrot.slane %v7586_v50, %v7785_v17 }
  0xa0   :  { %14259 = vst [vmem:[#allocation47_spill] sm:$0xff] %v7986_v31  ;;  %14260 = vst [vmem:[#allocation48_spill] sm:$0xff] %v7989_v32  ;;  %v129_v55 = vpop.permute.xlu0 %128  ;;  %451 = vmatprep.subr.mxu0 %v7986_v31  ;;  %520 = vmatprep.subr.mxu1 %v7992_v22  ;;  %v81_v46 = vpop.permute.xlu1 %80 }
  0xa1   :  { %14261 = vst [vmem:[#allocation49_spill] sm:$0xff] %v7992_v22  ;;  %v134_v57 = vsel %vm130_vm5, %v129_v55, %v123_v56  ;;  %521 = vmatpush1.msra.mxu1 %v7989_v32  ;;  %14264 = vst [vmem:[#allocation52_spill] sm:$0xff] %v8010_v23  ;;  %v8081_v32 = vrot.slane %v17_v25, %v7785_v17 }
  0xa2   :  { %v8007_v12 = vmul.f32 %v7995_v41, %v134_v57  ;;  %14265 = vst [vmem:[#allocation53_spill] sm:$0xff] %v8013_v29  ;;  %14266 = vst [vmem:[#allocation54_spill] sm:$0xff] %v8016_v30 }
  0xa3   :  { %14280 = vst [vmem:[#allocation68_spill] sm:$0xff] %v8081_v32 }
  0xa4   :  { %14263 = vst [vmem:[#allocation51_spill] sm:$0xff] %v8007_v12  ;;  %v83_v4 = vpop.permute.xlu0 %82  ;;  %452 = vmatpush1.msra.mxu0 %v8007_v12  ;;  %v127_v44 = vpop.permute.xlu1 %126 }
  0xa5   :  { %v91_v56 = vsel %vm88_vm6, %v81_v46, %v83_v4  ;;  %v131_v57 = vsel %vm130_vm5, %v127_v44, %v129_v55  ;;  %v132_v45 = vsel %vm130_vm5, %v125_v8, %v127_v44 }
  0xa6   :  { %v8026_v26 = vmul.f32 %v8010_v23, %v91_v56  ;;  %v8029_v37 = vmul.f32 %v8013_v29, %v132_v45  ;;  %v8032_v50 = vmul.f32 %v8016_v30, %v131_v57  ;;  %v8050_v56 = vrot.slane %v17_v25, %v7772_v10 }
  0xa7   :  { %v8053_v57 = vrot.slane %v7585_v47, %v7783_v16 }
  0xa8   :  { %14267 = vst [vmem:[#allocation55_spill] sm:$0xff] %v8026_v26  ;;  %14268 = vst [vmem:[#allocation56_spill] sm:$0xff] %v8029_v37  ;;  %v87_v55 = vpop.permute.xlu0 %86  ;;  %453 = vmatprep.subr.mxu0 %v8026_v26  ;;  %522 = vmatprep.subr.mxu1 %v8032_v50  ;;  %v37_v44 = vpop.permute.xlu1 %36  ;;  %v8069_v26 = vrot.slane %v17_v25, %v7783_v16 }
  0xa9   :  { %14269 = vst [vmem:[#allocation57_spill] sm:$0xff] %v8032_v50  ;;  %v92_v45 = vsel %vm88_vm6, %v87_v55, %v81_v46  ;;  %523 = vmatpush1.msra.mxu1 %v8029_v37  ;;  %14272 = vst [vmem:[#allocation60_spill] sm:$0xff] %v8050_v56  ;;  %v8060_v46 = vrot.slane %v17_v25, %v7774_v11 }
  0xaa   :  { %v8047_v8 = vmul.f32 %v8035_v27, %v92_v45  ;;  %14273 = vst [vmem:[#allocation61_spill] sm:$0xff] %v8053_v57  ;;  %14276 = vst [vmem:[#allocation64_spill] sm:$0xff] %v8069_v26 }
  0xab   :  { %14275 = vst [vmem:[#allocation63_spill] sm:$0xff] %v8060_v46 }
  0xac   :  { %14271 = vst [vmem:[#allocation59_spill] sm:$0xff] %v8047_v8  ;;  %v39_v15 = vpop.permute.xlu0 %38  ;;  %454 = vmatpush1.msra.mxu0 %v8047_v8  ;;  %v85_v50 = vpop.permute.xlu1 %84 }
  0xad   :  { %v49_v45 = vsel %vm46_vm7, %v37_v44, %v39_v15  ;;  %v89_v10 = vsel %vm88_vm6, %v85_v50, %v87_v55  ;;  %v90_v37 = vsel %vm88_vm6, %v83_v4, %v85_v50 }
  0xae   :  { %v8072_v47 = vmul.f32 %v8050_v56, %v49_v45  ;;  %v8075_v8 = vmul.f32 %v8053_v57, %v90_v37  ;;  %v8078_v11 = vmul.f32 %v8056_v18, %v89_v10 }
  0xb0   :  { %14277 = vst [vmem:[#allocation65_spill] sm:$0xff] %v8072_v47  ;;  %14278 = vst [vmem:[#allocation66_spill] sm:$0xff] %v8075_v8  ;;  %v43_v12 = vpop.permute.xlu0 %42  ;;  %455 = vmatprep.subr.mxu0 %v8072_v47  ;;  %524 = vmatprep.subr.mxu1 %v8078_v11  ;;  %v41_v4 = vpop.permute.xlu1 %40 }
  0xb1   :  { %14279 = vst [vmem:[#allocation67_spill] sm:$0xff] %v8078_v11  ;;  %v50_v16 = vsel %vm46_vm7, %v43_v12, %v37_v44  ;;  %v47_v50 = vsel %vm46_vm7, %v41_v4, %v43_v12  ;;  %v48_v37 = vsel %vm46_vm7, %v39_v15, %v41_v4  ;;  %525 = vmatpush1.msra.mxu1 %v8075_v8  ;;  %v378_v44 = vld [vmem:[%s13427_s2] sm:$0xff] }
  0xb2   :  { %v8093_v17 = vmul.f32 %v8060_v46, %v50_v16  ;;  %v8096_v25 = vmul.f32 %v8069_v26, %v48_v37  ;;  %v8099_v55 = vmul.f32 %v8081_v32, %v47_v50 }
  0xb4   :  { %14281 = vst [vmem:[#allocation69_spill] sm:$0xff] %v8093_v17  ;;  %14282 = vst [vmem:[#allocation70_spill] sm:$0xff] %v8096_v25  ;;  %456 = vmatpush1.msra.mxu0 %v8093_v17  ;;  %526 = vmatprep.subr.mxu1 %v8099_v55 }
  0xb5   :  { %14283 = vst [vmem:[#allocation71_spill] sm:$0xff] %v8099_v55  ;;  %7592 = vmatmul.mubr.msk.f32.vlgmr.msra.gmra.mxu0 %vm421_vm8, %v378_v44  ;;  %527 = vmatpush1.msra.mxu1 %v8096_v25 }
  0xb6   :  { %7593 = vmatmul.mubr.msk.f32.vlgmr.msra.gmra.mxu1 %vm421_vm8, %v378_v44 }
  0xbd   :  { %v419_v15 = vpop.permute.xlu0 %418 }
 0x175   :  { %v491_v12 = vpop.f32.mrf.mxu0 }
 0x176   :  { %v492_v45 = vadd.f32 %v491_v12, %v419_v15  ;;  %v562_v10 = vpop.f32.mrf.mxu1 }
 0x177   :  { %v563_v4 = vadd.f32 %v562_v10, %v419_v15  ;;  %v493_v12 = vpop.f32.mrf.mxu0 }
 0x178   :  { %v567_v16 = vmul.f32 0.2, %v492_v45  ;;  %v564_v25 = vpop.f32.mrf.mxu1 }
 0x179   :  { %v569_v50 = vmul.f32 0.2, %v563_v4  ;;  %v565_v44 = vadd.f32 %v564_v25, %v419_v15 }
 0x17a   :  { %v8109_v37 = vmax.f32 %v492_v45, %v567_v16  ;;  %v494_v45 = vadd.f32 %v493_v12, %v419_v15  ;;  %v813_v15 = vld [vmem:[%s13425_s3 + $0x8] sm:$0xff] }
 0x17b   :  { %v8111_v8 = vmax.f32 %v563_v4, %v569_v50  ;;  %v570_v10 = vmul.f32 0.2, %v565_v44  ;;  %v740_v50 = vld [vmem:[%s13427_s2 + $0x20] sm:$0xff] }
 0x17c   :  { %14284 = vst [vmem:[#allocation72_spill] sm:$0xff] %v8109_v37  ;;  %679 = vrot.lane.b32.xlu0 %v8109_v37, %s7648_s25  ;;  %v568_v4 = vmul.f32 0.2, %v494_v45  ;;  %7594 = vmatprep.mubr.msk.f32.mxu0 %vm819_vm9, %v740_v50 }
 0x17d   :  { %14285 = vst [vmem:[#allocation73_spill] sm:$0xff] %v8111_v8  ;;  %683 = vrot.lane.b32.xlu1 %v8111_v8, %s7648_s25  ;;  %v8129_v16 = vmax.f32 %v565_v44, %v570_v10  ;;  %7595 = vmatprep.mubr.msk.f32.mxu1 %vm819_vm9, %v740_v50 }
 0x17e   :  { %v8135_v25 = vmax.f32 %v494_v45, %v568_v4 }
 0x17f   :  { %14286 = vst [vmem:[#allocation74_spill] sm:$0xff] %v8129_v16 }
 0x180   :  { %663 = vrot.lane.b32.xlu0 %v8111_v8, %s7649_s26  ;;  %14287 = vst [vmem:[#allocation75_spill] sm:$0xff] %v8135_v25 }
 0x181   :  { %615 = vrot.lane.b32.xlu1 %v8109_v37, %s7651_s28 }
 0x184   :  { %659 = vrot.lane.b32.xlu0 %v8109_v37, %s7649_s26 }
 0x185   :  { %639 = vrot.lane.b32.xlu1 %v8111_v8, %s7650_s27 }
 0x188   :  { %635 = vrot.lane.b32.xlu0 %v8109_v37, %s7650_s27 }
 0x189   :  { %595 = vrot.lane.b32.xlu1 %v8109_v37, %s7652_s29 }
 0x18c   :  { %641 = vrot.lane.b32.xlu0 %v8129_v16, %s7650_s27 }
 0x18d   :  { %619 = vrot.lane.b32.xlu1 %v8111_v8, %s7651_s28 }
 0x190   :  { %617 = vrot.lane.b32.xlu0 %v8135_v25, %s7651_s28 }
 0x191   :  { %575 = vrot.lane.b32.xlu1 %v8109_v37, %s7654_s30 }
 0x194   :  { %621 = vrot.lane.b32.xlu0 %v8129_v16, %s7651_s28 }
 0x195   :  { %681 = vrot.lane.b32.xlu1 %v8135_v25, %s7648_s25 }
 0x198   :  { %597 = vrot.lane.b32.xlu0 %v8135_v25, %s7652_s29 }
 0x199   :  { %661 = vrot.lane.b32.xlu1 %v8135_v25, %s7649_s26 }
 0x19c   :  { %601 = vrot.lane.b32.xlu0 %v8129_v16, %s7652_s29 }
 0x19d   :  { %685 = vrot.lane.b32.xlu1 %v8129_v16, %s7648_s25 }
 0x1a0   :  { %577 = vrot.lane.b32.xlu0 %v8135_v25, %s7654_s30 }
 0x1a1   :  { %665 = vrot.lane.b32.xlu1 %v8129_v16, %s7649_s26 }
 0x1a4   :  { %581 = vrot.lane.b32.xlu0 %v8129_v16, %s7654_s30 }
 0x1a5   :  { %637 = vrot.lane.b32.xlu1 %v8135_v25, %s7650_s27 }
 0x1a8   :  { %719 = vrot.lane.b32.xlu0 %v8109_v37, %s7646_s19 }
 0x1a9   :  { %599 = vrot.lane.b32.xlu1 %v8111_v8, %s7652_s29 }
 0x1ac   :  { %703 = vrot.lane.b32.xlu0 %v8111_v8, %s7647_s22 }
 0x1ad   :  { %579 = vrot.lane.b32.xlu1 %v8111_v8, %s7654_s30 }
 0x1b0   :  { %721 = vrot.lane.b32.xlu0 %v8135_v25, %s7646_s19 }
 0x1b1   :  { %723 = vrot.lane.b32.xlu1 %v8111_v8, %s7646_s19 }
 0x1b4   :  { %699 = vrot.lane.b32.xlu0 %v8109_v37, %s7647_s22 }
 0x1b5   :  { %701 = vrot.lane.b32.xlu1 %v8135_v25, %s7647_s22 }
 0x1b8   :  { %816 = vperm.xlu0 %7632, %v813_v15  }
 0x1b9   :  { %725 = vrot.lane.b32.xlu1 %v8129_v16, %s7646_s19 }
 0x1bd   :  { %705 = vrot.lane.b32.xlu1 %v8129_v16, %s7647_s22 }
 0x1ee   :  { %v680_v44 = vpop.permute.xlu0 %679 }
 0x1ef   :  { %v684_v12 = vpop.permute.xlu1 %683 }
 0x1f2   :  { %v664_v45 = vpop.permute.xlu0 %663 }
 0x1f3   :  { %v616_v10 = vpop.permute.xlu1 %615 }
 0x1f6   :  { %v660_v4 = vpop.permute.xlu0 %659 }
 0x1f7   :  { %v640_v55 = vpop.permute.xlu1 %639 }
 0x1fa   :  { %v636_v17 = vpop.permute.xlu0 %635 }
 0x1fb   :  { %v596_v11 = vpop.permute.xlu1 %595 }
 0x1fe   :  { %v642_v47 = vpop.permute.xlu0 %641 }
 0x1ff   :  { %v620_v15 = vpop.permute.xlu1 %619 }
 0x202   :  { %v618_v22 = vpop.permute.xlu0 %617 }
 0x203   :  { %v8189_v31 = vpop.permute.xlu1 %575 }
 0x206   :  { %v622_v2 = vpop.permute.xlu0 %621 }
 0x207   :  { %v682_v58 = vpop.permute.xlu1 %681 }
 0x208   :  { %v688_v50 = vsel %vm260_vm2, %v682_v58, %v684_v12  ;;  %v689_v3 = vsel %vm260_vm2, %v680_v44, %v682_v58 }
 0x209   :  { %v8196_v48 = vmul.f32 %v689_v3, %v7871_v54  ;;  %v8199_v38 = vmul.f32 %v688_v50, %v7846_v43 }
 0x20a   :  { %v598_v1 = vpop.permute.xlu0 %597 }
 0x20b   :  { %14288 = vst [vmem:[#allocation76_spill] sm:$0xff] %v8199_v38  ;;  %823 = vmatprep.subr.mxu0 %v8199_v38  ;;  %v662_v39 = vpop.permute.xlu1 %661 }
 0x20c   :  { %v668_v0 = vsel %vm218_vm3, %v662_v39, %v664_v45  ;;  %v669_v19 = vsel %vm218_vm3, %v660_v4, %v662_v39  ;;  %824 = vmatpush1.msra.mxu0 %v8196_v48 }
 0x20d   :  { %v8208_v58 = vmul.f32 %v669_v19, %v7896_v6  ;;  %v8211_v3 = vmul.f32 %v668_v0, %v7886_v60  ;;  %v14323_v6 = vld [vmem:[#allocation57_spill] sm:$0xff] }
 0x20e   :  { %v602_v50 = vpop.permute.xlu0 %601 }
 0x20f   :  { %825 = vmatprep.subr.mxu0 %v8211_v3  ;;  %v686_v54 = vpop.permute.xlu1 %685 }
 0x210   :  { %v687_v43 = vsel %vm260_vm2, %v684_v12, %v686_v54  ;;  %v690_v38 = vsel %vm260_vm2, %v686_v54, %v680_v44  ;;  %826 = vmatpush1.msra.mxu0 %v8208_v58  ;;  %v643_v44 = vsel %vm172_vm4, %v640_v55, %v642_v47 }
 0x211   :  { %v8220_v39 = vmul.f32 %v687_v43, %v7889_v61  ;;  %v8223_v19 = vmul.f32 %v690_v38, %v7892_v62  ;;  %827 = vmatprep.subr.mxu0 %v8135_v25  ;;  %v646_v62 = vsel %vm172_vm4, %v642_v47, %v636_v17 }
 0x212   :  { %v578_v0 = vpop.permute.xlu0 %577  ;;  %828 = vmatpush1.msra.mxu0 %v8109_v37 }
 0x213   :  { %14289 = vst [vmem:[#allocation77_spill] sm:$0xff] %v8220_v39  ;;  %14290 = vst [vmem:[#allocation78_spill] sm:$0xff] %v8223_v19  ;;  %894 = vmatprep.subr.mxu1 %v8223_v19  ;;  %v666_v60 = vpop.permute.xlu1 %665 }
 0x214   :  { %v667_v12 = vsel %vm218_vm3, %v664_v45, %v666_v60  ;;  %v670_v54 = vsel %vm218_vm3, %v666_v60, %v660_v4  ;;  %895 = vmatpush1.msra.mxu1 %v8220_v39  ;;  %v624_v45 = vsel %vm130_vm5, %v618_v22, %v620_v15  ;;  %v625_v60 = vsel %vm130_vm5, %v616_v10, %v618_v22 }
 0x215   :  { %v8234_v43 = vmul.f32 %v667_v12, %v7905_v13  ;;  %v8237_v38 = vmul.f32 %v670_v54, %v7917_v21  ;;  %v626_v4 = vsel %vm130_vm5, %v622_v2, %v616_v10  ;;  %v623_v54 = vsel %vm130_vm5, %v620_v15, %v622_v2 }
 0x216   :  { %v605_v21 = vsel %vm88_vm6, %v596_v11, %v598_v1  ;;  %v582_v13 = vpop.permute.xlu0 %581  ;;  %v8260_v22 = vmul.f32 %v643_v44, %v7976_v7  ;;  %v8270_v15 = vmul.f32 %v646_v62, %v7955_v49  ;;  %v8279_v44 = vmul.f32 %v626_v4, %v7995_v41  ;;  %v14318_v41 = vld [vmem:[#allocation47_spill] sm:$0xff] }
 0x217   :  { %14291 = vst [vmem:[#allocation79_spill] sm:$0xff] %v8234_v43  ;;  %14292 = vst [vmem:[#allocation80_spill] sm:$0xff] %v8237_v38  ;;  %896 = vmatprep.subr.mxu1 %v8237_v38  ;;  %v638_v12 = vpop.permute.xlu1 %637  ;;  %v606_v62 = vsel %vm88_vm6, %v602_v50, %v596_v11  ;;  %v14320_v49 = vld [vmem:[#allocation51_spill] sm:$0xff] }
 0x218   :  { %v644_v47 = vsel %vm172_vm4, %v638_v12, %v640_v55  ;;  %v645_v61 = vsel %vm172_vm4, %v636_v17, %v638_v12  ;;  %897 = vmatpush1.msra.mxu1 %v8234_v43  ;;  %14293 = vst [vmem:[#allocation81_spill] sm:$0xff] %v8260_v22  ;;  %14296 = vst [vmem:[#allocation84_spill] sm:$0xff] %v8270_v15  ;;  %v8273_v55 = vmul.f32 %v625_v60, %v7970_v63  ;;  %v14319_v63 = vld [vmem:[#allocation49_spill] sm:$0xff] }
 0x219   :  { %v8263_v10 = vmul.f32 %v645_v61, %v7942_v40  ;;  %v8266_v2 = vmul.f32 %v644_v47, %v7973_v5  ;;  %898 = vmatprep.subr.mxu1 %v8129_v16  ;;  %v8276_v17 = vmul.f32 %v624_v45, %v8013_v29  ;;  %14299 = vst [vmem:[#allocation87_spill] sm:$0xff] %v8279_v44  ;;  %v14322_v5 = vld [vmem:[#allocation55_spill] sm:$0xff] }
 0x21a   :  { %14297 = vst [vmem:[#allocation85_spill] sm:$0xff] %v8273_v55  ;;  %899 = vmatpush1.msra.mxu1 %v8111_v8  ;;  %v8283_v61 = vmul.f32 %v623_v54, %v8016_v30  ;;  %v8286_v12 = vmul.f32 %v605_v21, %v8010_v23  ;;  %v585_v60 = vsel %vm46_vm7, %v8189_v31, %v578_v0  ;;  %v14315_v23 = vld [vmem:[#allocation6_spill] sm:$0xff]  ;;  %v14317_v30 = vld [vmem:[#allocation5_spill] sm:$0xff] }
 0x21b   :  { %14294 = vst [vmem:[#allocation82_spill] sm:$0xff] %v8263_v10  ;;  %14295 = vst [vmem:[#allocation83_spill] sm:$0xff] %v8266_v2  ;;  %829 = vmatprep.subr.mxu0 %v8263_v10  ;;  %900 = vmatprep.subr.mxu1 %v8260_v22  ;;  %v600_v45 = vpop.permute.xlu1 %599  ;;  %v586_v21 = vsel %vm46_vm7, %v582_v13, %v8189_v31  ;;  %v8318_v31 = vmul.f32 %v585_v60, %v8050_v56 }
 0x21c   :  { %14298 = vst [vmem:[#allocation86_spill] sm:$0xff] %v8276_v17  ;;  %14300 = vst [vmem:[#allocation88_spill] sm:$0xff] %v8283_v61  ;;  %v603_v4 = vsel %vm88_vm6, %v600_v45, %v602_v50  ;;  %v604_v54 = vsel %vm88_vm6, %v598_v1, %v600_v45  ;;  %830 = vmatpush1.msra.mxu0 %v8270_v15  ;;  %901 = vmatpush1.msra.mxu1 %v8266_v2  ;;  %v720_v50 = vpop.permute.xlu0 %719 }
 0x21d   :  { %14301 = vst [vmem:[#allocation89_spill] sm:$0xff] %v8286_v12  ;;  %v8305_v11 = vmul.f32 %v604_v54, %v8053_v57  ;;  %v8308_v47 = vmul.f32 %v603_v4, %v8056_v18  ;;  %831 = vmatprep.subr.mxu0 %v8273_v55  ;;  %902 = vmatprep.subr.mxu1 %v8283_v61  ;;  %14305 = vst [vmem:[#allocation93_spill] sm:$0xff] %v8318_v31  ;;  %v14314_v18 = vld [vmem:[#allocation41_spill] sm:$0xff]  ;;  %v14316_v57 = vld [vmem:[#allocation43_spill] sm:$0xff] }
 0x21e   :  { %v8313_v1 = vmul.f32 %v606_v62, %v8035_v27  ;;  %832 = vmatpush1.msra.mxu0 %v8279_v44  ;;  %903 = vmatpush1.msra.mxu1 %v8276_v17  ;;  %v8323_v4 = vmul.f32 %v586_v21, %v8060_v46  ;;  %v14312_v46 = vld [vmem:[#allocation4_spill] sm:$0xff]  ;;  %v14313_v27 = vld [vmem:[#allocation38_spill] sm:$0xff] }
 0x21f   :  { %14302 = vst [vmem:[#allocation90_spill] sm:$0xff] %v8305_v11  ;;  %14303 = vst [vmem:[#allocation91_spill] sm:$0xff] %v8308_v47  ;;  %833 = vmatprep.subr.mxu0 %v8286_v12  ;;  %904 = vmatprep.subr.mxu1 %v8308_v47  ;;  %v580_v45 = vpop.permute.xlu1 %579 }
 0x220   :  { %14304 = vst [vmem:[#allocation92_spill] sm:$0xff] %v8313_v1  ;;  %14306 = vst [vmem:[#allocation94_spill] sm:$0xff] %v8323_v4  ;;  %v583_v62 = vsel %vm46_vm7, %v580_v45, %v582_v13  ;;  %v584_v54 = vsel %vm46_vm7, %v578_v0, %v580_v45  ;;  %834 = vmatpush1.msra.mxu0 %v8313_v1  ;;  %905 = vmatpush1.msra.mxu1 %v8305_v11  ;;  %v704_v0 = vpop.permute.xlu0 %703 }
 0x221   :  { %v8332_v60 = vmul.f32 %v584_v54, %v8069_v26  ;;  %v8335_v56 = vmul.f32 %v583_v62, %v8081_v32  ;;  %835 = vmatprep.subr.mxu0 %v8318_v31  ;;  %v14309_v62 = vld [vmem:[#allocation34_spill] sm:$0xff]  ;;  %v14310_v54 = vld [vmem:[#allocation3_spill] sm:$0xff] }
 0x222   :  { %836 = vmatpush1.msra.mxu0 %v8323_v4  ;;  %v14311_v32 = vld [vmem:[#allocation39_spill] sm:$0xff] }
 0x223   :  { %14307 = vst [vmem:[#allocation95_spill] sm:$0xff] %v8332_v60  ;;  %14308 = vst [vmem:[#allocation96_spill] sm:$0xff] %v8335_v56  ;;  %837 = vmatprep.subr.mxu0 %v7799_v24  ;;  %906 = vmatprep.subr.mxu1 %v8335_v56  ;;  %v724_v13 = vpop.permute.xlu1 %723 }
 0x224   :  { %838 = vmatpush1.msra.mxu0 %v7811_v28  ;;  %907 = vmatpush1.msra.mxu1 %v8332_v60  ;;  %v722_v45 = vpop.permute.xlu0 %721 }
 0x225   :  { %839 = vmatprep.subr.mxu0 %v7822_v34  ;;  %908 = vmatprep.subr.mxu1 %v7828_v36  ;;  %v729_v7 = vsel %vm344_vm0, %v720_v50, %v722_v45 }
 0x226   :  { %840 = vmatpush1.msra.mxu0 %v7843_v42  ;;  %909 = vmatpush1.msra.mxu1 %v7825_v35 }
 0x227   :  { %841 = vmatprep.subr.mxu0 %v7862_v51  ;;  %910 = vmatprep.subr.mxu1 %v7868_v53  ;;  %v702_v21 = vpop.permute.xlu1 %701 }
 0x228   :  { %842 = vmatpush1.msra.mxu0 %v7883_v59  ;;  %911 = vmatpush1.msra.mxu1 %v7865_v52  ;;  %v700_v29 = vpop.permute.xlu0 %699 }
 0x229   :  { %843 = vmatprep.subr.mxu0 %v7908_v14  ;;  %912 = vmatprep.subr.mxu1 %v7914_v20 }
 0x22a   :  { %844 = vmatpush1.msra.mxu0 %v7933_v33  ;;  %913 = vmatpush1.msra.mxu1 %v14309_v62 }
 0x22b   :  { %845 = vmatprep.subr.mxu0 %v14310_v54  ;;  %914 = vmatprep.subr.mxu1 %v14311_v32  ;;  %v726_v26 = vpop.permute.xlu1 %725  ;;  %v728_v54 = vsel %vm344_vm0, %v722_v45, %v724_v13  ;;  %v709_v45 = vsel %vm302_vm1, %v700_v29, %v702_v21 }
 0x22c   :  { %846 = vmatpush1.msra.mxu0 %v14312_v46  ;;  %915 = vmatpush1.msra.mxu1 %v14313_v27  ;;  %v14321_v46 = vld [vmem:[#allocation48_spill] sm:$0xff] }
 0x22d   :  { %847 = vmatprep.subr.mxu0 %v14314_v18  ;;  %916 = vmatprep.subr.mxu1 %v14315_v23  ;;  %v14328_v23 = vld [vmem:[#allocation67_spill] sm:$0xff]  ;;  %v14329_v18 = vld [vmem:[#allocation9_spill] sm:$0xff] }
 0x22e   :  { %848 = vmatpush1.msra.mxu0 %v14316_v57  ;;  %917 = vmatpush1.msra.mxu1 %v14317_v30  ;;  %v708_v30 = vsel %vm302_vm1, %v702_v21, %v704_v0  ;;  %v14325_v57 = vld [vmem:[#allocation56_spill] sm:$0xff]  ;;  %v8389_v27 = vmul.f32 %v729_v7, %v14329_v18  ;;  %v14333_v21 = vld [vmem:[#allocation13_spill] sm:$0xff]  ;;  %v14335_v7 = vld [vmem:[#allocation71_spill] sm:$0xff] }
 0x22f   :  { %849 = vmatprep.subr.mxu0 %v14318_v41  ;;  %918 = vmatprep.subr.mxu1 %v14319_v63  ;;  %v706_v40 = vpop.permute.xlu1 %705  ;;  %v730_v63 = vsel %vm344_vm0, %v726_v26, %v720_v50  ;;  %v14324_v41 = vld [vmem:[#allocation59_spill] sm:$0xff] }
 0x230   :  { %850 = vmatpush1.msra.mxu0 %v14320_v49  ;;  %919 = vmatpush1.msra.mxu1 %v14321_v46  ;;  %v14326_v49 = vld [vmem:[#allocation8_spill] sm:$0xff]  ;;  %v710_v50 = vsel %vm302_vm1, %v706_v40, %v700_v29  ;;  %v8399_v32 = vmul.f32 %v730_v63, %v14333_v21  ;;  %v739_v63 = vld [vmem:[%s13427_s2 + $0x18] sm:$0xff] }
 0x231   :  { %851 = vmatprep.subr.mxu0 %v14322_v5  ;;  %920 = vmatprep.subr.mxu1 %v14323_v6  ;;  %v8380_v46 = vmul.f32 %v728_v54, %v14326_v49  ;;  %v727_v5 = vsel %vm344_vm0, %v724_v13, %v726_v26  ;;  %v14327_v6 = vld [vmem:[#allocation65_spill] sm:$0xff]  ;;  %v14331_v54 = vld [vmem:[#allocation66_spill] sm:$0xff]  ;;  %v14332_v49 = vld [vmem:[#allocation11_spill] sm:$0xff]  ;;  %v707_v26 = vsel %vm302_vm1, %v704_v0, %v706_v40 }
 0x232   :  { %852 = vmatpush1.msra.mxu0 %v14324_v41  ;;  %921 = vmatpush1.msra.mxu1 %v14325_v57  ;;  %v14330_v57 = vld [vmem:[#allocation69_spill] sm:$0xff]  ;;  %v8396_v41 = vmul.f32 %v708_v30, %v14332_v49  ;;  %14334 = vst [vmem:[#allocation3_spill] sm:$0xff] %v8399_v32  ;;  %v14336_v13 = vld [vmem:[#allocation18_spill] sm:$0xff]  ;;  %v14337_v29 = vld [vmem:[#allocation12_spill] sm:$0xff] }
 0x233   :  { %853 = vmatprep.subr.mxu0 %v14327_v6  ;;  %922 = vmatprep.subr.mxu1 %v14328_v23  ;;  %v8406_v18 = vmul.f32 %v709_v45, %v14336_v13  ;;  %v14339_v30 = vld [vmem:[#allocation70_spill] sm:$0xff]  ;;  %v14342_v0 = vld [vmem:[#allocation21_spill] sm:$0xff] }
 0x234   :  { %854 = vmatpush1.msra.mxu0 %v14330_v57  ;;  %923 = vmatpush1.msra.mxu1 %v14331_v54  ;;  %v8409_v57 = vmul.f32 %v727_v5, %v14337_v29  ;;  %v14340_v49 = vld [vmem:[#allocation22_spill] sm:$0xff]  ;;  %v8422_v45 = vmul.f32 %v707_v26, %v14342_v0  ;;  %v14344_v5 = vld [vmem:[#allocation76_spill] sm:$0xff]  ;;  %v14346_v26 = vld [vmem:[#allocation39_spill] sm:$0xff] }
 0x235   :  { %883 = vmatprep.subr.mxu0 %v8380_v46  ;;  %924 = vmatprep.subr.mxu1 %v14335_v7  ;;  %v8417_v40 = vmul.f32 %v710_v50, %v14340_v49  ;;  %v8473_v50 = vld [vmem:[%s13424_s0 + $0x8] sm:$0xff] }
 0x236   :  { %14338 = vst [vmem:[#allocation4_spill] sm:$0xff] %v8409_v57  ;;  %884 = vmatpush2.msra.mxu0 %v8389_v27  ;;  %925 = vmatpush1.msra.mxu1 %v14339_v30  ;;  %14343 = vst [vmem:[#allocation97_spill] sm:$0xff] %v8422_v45 }
 0x237   :  { %14341 = vst [vmem:[#allocation5_spill] sm:$0xff] %v8417_v40  ;;  %885 = vmatprep.subr.mxu0 %v8396_v41  ;;  %954 = vmatprep.subr.mxu1 %v8399_v32  ;;  %14345 = vst [vmem:[#allocation76_spill] sm:$0xff] %v8473_v50 }
 0x238   :  { %886 = vmatpush2.msra.mxu0 %v8406_v18  ;;  %955 = vmatpush2.msra.mxu1 %v8409_v57 }
 0x239   :  { %888 = vmatmul.mubr.f32.vlgmr.msra.gmra.mxu0 %v739_v63  ;;  %956 = vmatprep.subr.mxu1 %v8417_v40 }
 0x23a   :  { %1257 = vmatprep.subr.mxu0 %v14344_v5  ;;  %957 = vmatpush2.msra.mxu1 %v8422_v45 }
 0x23b   :  { %1258 = vmatpush1.msra.mxu0 %v8196_v48  ;;  %959 = vmatmul.mubr.f32.vlgmr.msra.gmra.mxu1 %v739_v63  ;;  %v8480_v63 = vld [vmem:[%s13424_s0] sm:$0xff] }
 0x23c   :  { %1259 = vmatprep.subr.mxu0 %v8211_v3  ;;  %1328 = vmatprep.subr.mxu1 %v8223_v19  ;;  %14347 = vst [vmem:[#allocation98_spill] sm:$0xff] %v8480_v63 }
 0x23d   :  { %1260 = vmatpush1.msra.mxu0 %v8208_v58  ;;  %1329 = vmatpush1.msra.mxu1 %v8220_v39 }
 0x23e   :  { %1261 = vmatprep.subr.mxu0 %v8135_v25  ;;  %1330 = vmatprep.subr.mxu1 %v8237_v38 }
 0x23f   :  { %1262 = vmatpush1.msra.mxu0 %v8109_v37  ;;  %1331 = vmatpush1.msra.mxu1 %v8234_v43 }
 0x240   :  { %1263 = vmatprep.subr.mxu0 %v8263_v10  ;;  %1332 = vmatprep.subr.mxu1 %v8129_v16 }
 0x241   :  { %1264 = vmatpush1.msra.mxu0 %v8270_v15  ;;  %1333 = vmatpush1.msra.mxu1 %v8111_v8 }
 0x242   :  { %1265 = vmatprep.subr.mxu0 %v8273_v55  ;;  %1334 = vmatprep.subr.mxu1 %v8260_v22 }
 0x243   :  { %1266 = vmatpush1.msra.mxu0 %v8279_v44  ;;  %1335 = vmatpush1.msra.mxu1 %v8266_v2 }
 0x244   :  { %1267 = vmatprep.subr.mxu0 %v8286_v12  ;;  %1336 = vmatprep.subr.mxu1 %v8283_v61 }
 0x245   :  { %1268 = vmatpush1.msra.mxu0 %v8313_v1  ;;  %1337 = vmatpush1.msra.mxu1 %v8276_v17 }
 0x246   :  { %1269 = vmatprep.subr.mxu0 %v8318_v31  ;;  %1338 = vmatprep.subr.mxu1 %v8308_v47  ;;  %v14360_v47 = vld [vmem:[#allocation56_spill] sm:$0xff] }
 0x247   :  { %1270 = vmatpush1.msra.mxu0 %v8323_v4  ;;  %1339 = vmatpush1.msra.mxu1 %v8305_v11  ;;  %v14359_v11 = vld [vmem:[#allocation59_spill] sm:$0xff] }
 0x248   :  { %1271 = vmatprep.subr.mxu0 %v7799_v24  ;;  %1340 = vmatprep.subr.mxu1 %v8335_v56  ;;  %v14357_v56 = vld [vmem:[#allocation55_spill] sm:$0xff] }
 0x249   :  { %1272 = vmatpush1.msra.mxu0 %v7811_v28  ;;  %1341 = vmatpush1.msra.mxu1 %v8332_v60  ;;  %v14355_v60 = vld [vmem:[#allocation51_spill] sm:$0xff] }
 0x24a   :  { %1273 = vmatprep.subr.mxu0 %v7822_v34  ;;  %1342 = vmatprep.subr.mxu1 %v7828_v36  ;;  %v14354_v36 = vld [vmem:[#allocation49_spill] sm:$0xff] }
 0x24b   :  { %1274 = vmatpush1.msra.mxu0 %v7843_v42  ;;  %1343 = vmatpush1.msra.mxu1 %v7825_v35  ;;  %v8490_v35 = vld [vmem:[%s13424_s0 + $0x10] sm:$0xff] }
 0x24c   :  { %1275 = vmatprep.subr.mxu0 %v7862_v51  ;;  %1344 = vmatprep.subr.mxu1 %v7868_v53  ;;  %v14351_v53 = vld [vmem:[#allocation43_spill] sm:$0xff] }
 0x24d   :  { %1276 = vmatpush1.msra.mxu0 %v7883_v59  ;;  %1345 = vmatpush1.msra.mxu1 %v7865_v52  ;;  %v14349_v52 = vld [vmem:[#allocation41_spill] sm:$0xff] }
 0x24e   :  { %1277 = vmatprep.subr.mxu0 %v7908_v14  ;;  %1346 = vmatprep.subr.mxu1 %v7914_v20  ;;  %v14348_v20 = vld [vmem:[#allocation38_spill] sm:$0xff] }
 0x24f   :  { %1278 = vmatpush1.msra.mxu0 %v7933_v33  ;;  %1347 = vmatpush1.msra.mxu1 %v14309_v62  ;;  %v14350_v62 = vld [vmem:[#allocation6_spill] sm:$0xff] }
 0x250   :  { %1279 = vmatprep.subr.mxu0 %v8473_v50  ;;  %1348 = vmatprep.subr.mxu1 %v14346_v26  ;;  %14352 = vst [vmem:[#allocation6_spill] sm:$0xff] %v8490_v35  ;;  %v14353_v26 = vld [vmem:[#allocation47_spill] sm:$0xff] }
 0x251   :  { %1280 = vmatpush1.msra.mxu0 %v8480_v63  ;;  %1349 = vmatpush1.msra.mxu1 %v14348_v20  ;;  %v14356_v20 = vld [vmem:[#allocation48_spill] sm:$0xff] }
 0x252   :  { %1281 = vmatprep.subr.mxu0 %v14349_v52  ;;  %1350 = vmatprep.subr.mxu1 %v14350_v62  ;;  %v14358_v62 = vld [vmem:[#allocation57_spill] sm:$0xff] }
 0x253   :  { %1282 = vmatpush1.msra.mxu0 %v14351_v53  ;;  %1351 = vmatpush1.msra.mxu1 %v8490_v35  ;;  %v14361_v35 = vld [vmem:[#allocation69_spill] sm:$0xff] }
 0x254   :  { %1283 = vmatprep.subr.mxu0 %v14353_v26  ;;  %1352 = vmatprep.subr.mxu1 %v14354_v36 }
 0x255   :  { %1284 = vmatpush1.msra.mxu0 %v14355_v60  ;;  %1353 = vmatpush1.msra.mxu1 %v14356_v20  ;;  %v817_v20 = vpop.permute.xlu0 %816 }
 0x256   :  { %1285 = vmatprep.subr.mxu0 %v14357_v56  ;;  %1354 = vmatprep.subr.mxu1 %v14358_v62 }
 0x257   :  { %1286 = vmatpush1.msra.mxu0 %v14359_v11  ;;  %1355 = vmatpush1.msra.mxu1 %v14360_v47 }
 0x258   :  { %1287 = vmatprep.subr.mxu0 %v14327_v6  ;;  %1356 = vmatprep.subr.mxu1 %v14328_v23 }
 0x259   :  { %1288 = vmatpush1.msra.mxu0 %v14361_v35  ;;  %1357 = vmatpush1.msra.mxu1 %v14331_v54 }
 0x25a   :  { %1358 = vmatprep.subr.mxu1 %v14335_v7 }
 0x25b   :  { %1359 = vmatpush1.msra.mxu1 %v14339_v30 }
 0x2f9   :  { %v889_v36 = vpop.f32.mrf.mxu0 }
 0x2fa   :  { %v890_v17 = vadd.f32 %v889_v36, %v817_v20 }
 0x2fb   :  { %v960_v62 = vpop.f32.mrf.mxu1  ;;  %v891_v36 = vpop.f32.mrf.mxu0 }
 0x2fc   :  { %v965_v61 = vmul.f32 0.2, %v890_v17  ;;  %v961_v2 = vadd.f32 %v960_v62, %v817_v20 }
 0x2fe   :  { %v8507_v22 = vmax.f32 %v890_v17, %v965_v61  ;;  %v967_v47 = vmul.f32 0.2, %v961_v2  ;;  %v962_v17 = vpop.f32.mrf.mxu1 }
 0x300   :  { %14362 = vst [vmem:[#allocation99_spill] sm:$0xff] %v8507_v22  ;;  %v8509_v8 = vmax.f32 %v961_v2, %v967_v47  ;;  %1117 = vrot.lane.b32.xlu1 %v8507_v22, %s7646_s19  ;;  %v892_v2 = vadd.f32 %v891_v36, %v817_v20  ;;  %v963_v47 = vadd.f32 %v962_v17, %v817_v20  ;;  %v1138_v20 = vld [vmem:[%s13427_s2 + $0x38] sm:$0xff] }
 0x301   :  { %7596 = vmatprep.mubr.msk.f32.mxu0 %vm1253_vm10, %v1138_v20  ;;  %7597 = vmatprep.mubr.msk.f32.mxu1 %vm1253_vm10, %v1138_v20 }
 0x302   :  { %14363 = vst [vmem:[#allocation100_spill] sm:$0xff] %v8509_v8  ;;  %1121 = vrot.lane.b32.xlu0 %v8509_v8, %s7646_s19  ;;  %v966_v61 = vmul.f32 0.2, %v892_v2  ;;  %v968_v30 = vmul.f32 0.2, %v963_v47 }
 0x304   :  { %1101 = vrot.lane.b32.xlu1 %v8509_v8, %s7647_s22  ;;  %v8535_v62 = vmax.f32 %v892_v2, %v966_v61  ;;  %v8541_v36 = vmax.f32 %v963_v47, %v968_v30  ;;  %v1247_v30 = vld [vmem:[%s13425_s3 + $0x10] sm:$0xff] }
 0x306   :  { %1013 = vrot.lane.b32.xlu0 %v8507_v22, %s7651_s28  ;;  %14364 = vst [vmem:[#allocation101_spill] sm:$0xff] %v8535_v62  ;;  %14365 = vst [vmem:[#allocation102_spill] sm:$0xff] %v8541_v36 }
 0x308   :  { %1097 = vrot.lane.b32.xlu1 %v8507_v22, %s7647_s22 }
 0x30a   :  { %1037 = vrot.lane.b32.xlu0 %v8509_v8, %s7650_s27 }
 0x30c   :  { %1081 = vrot.lane.b32.xlu1 %v8509_v8, %s7648_s25 }
 0x30e   :  { %993 = vrot.lane.b32.xlu0 %v8507_v22, %s7652_s29 }
 0x310   :  { %1077 = vrot.lane.b32.xlu1 %v8507_v22, %s7648_s25 }
 0x312   :  { %1017 = vrot.lane.b32.xlu0 %v8509_v8, %s7651_s28 }
 0x314   :  { %1061 = vrot.lane.b32.xlu1 %v8509_v8, %s7649_s26 }
 0x316   :  { %973 = vrot.lane.b32.xlu0 %v8507_v22, %s7654_s30 }
 0x318   :  { %1057 = vrot.lane.b32.xlu1 %v8507_v22, %s7649_s26 }
 0x31a   :  { %1099 = vrot.lane.b32.xlu0 %v8535_v62, %s7647_s22 }
 0x31c   :  { %1033 = vrot.lane.b32.xlu1 %v8507_v22, %s7650_s27 }
 0x31e   :  { %1123 = vrot.lane.b32.xlu0 %v8541_v36, %s7646_s19 }
 0x320   :  { %1119 = vrot.lane.b32.xlu1 %v8535_v62, %s7646_s19 }
 0x322   :  { %1079 = vrot.lane.b32.xlu0 %v8535_v62, %s7648_s25 }
 0x324   :  { %1039 = vrot.lane.b32.xlu1 %v8541_v36, %s7650_s27 }
 0x326   :  { %1103 = vrot.lane.b32.xlu0 %v8541_v36, %s7647_s22 }
 0x328   :  { %1015 = vrot.lane.b32.xlu1 %v8535_v62, %s7651_s28 }
 0x32a   :  { %1059 = vrot.lane.b32.xlu0 %v8535_v62, %s7649_s26 }
 0x32c   :  { %1019 = vrot.lane.b32.xlu1 %v8541_v36, %s7651_s28 }
 0x32e   :  { %1083 = vrot.lane.b32.xlu0 %v8541_v36, %s7648_s25 }
 0x330   :  { %995 = vrot.lane.b32.xlu1 %v8535_v62, %s7652_s29 }
 0x332   :  { %1063 = vrot.lane.b32.xlu0 %v8541_v36, %s7649_s26 }
 0x334   :  { %999 = vrot.lane.b32.xlu1 %v8541_v36, %s7652_s29 }
 0x336   :  { %1035 = vrot.lane.b32.xlu0 %v8535_v62, %s7650_s27 }
 0x338   :  { %975 = vrot.lane.b32.xlu1 %v8535_v62, %s7654_s30 }
 0x33a   :  { %997 = vrot.lane.b32.xlu0 %v8509_v8, %s7652_s29 }
 0x33c   :  { %979 = vrot.lane.b32.xlu1 %v8541_v36, %s7654_s30 }
 0x33e   :  { %977 = vrot.lane.b32.xlu0 %v8509_v8, %s7654_s30 }
 0x340   :  { %1250 = vperm.xlu1 %7633, %v1247_v30  }
 0x372   :  { %v1118_v2 = vpop.permute.xlu1 %1117 }
 0x374   :  { %v1122_v17 = vpop.permute.xlu0 %1121 }
 0x376   :  { %v1102_v61 = vpop.permute.xlu1 %1101 }
 0x378   :  { %v8587_v47 = vpop.permute.xlu0 %1013 }
 0x37a   :  { %v1098_v20 = vpop.permute.xlu1 %1097 }
 0x37c   :  { %v8589_v7 = vpop.permute.xlu0 %1037 }
 0x37e   :  { %v1082_v54 = vpop.permute.xlu1 %1081 }
 0x380   :  { %v8591_v23 = vpop.permute.xlu0 %993 }
 0x382   :  { %v1078_v16 = vpop.permute.xlu1 %1077 }
 0x384   :  { %v8593_v43 = vpop.permute.xlu0 %1017 }
 0x386   :  { %v1062_v38 = vpop.permute.xlu1 %1061 }
 0x388   :  { %v8595_v39 = vpop.permute.xlu0 %973 }
 0x38a   :  { %v1058_v19 = vpop.permute.xlu1 %1057 }
 0x38c   :  { %v1100_v35 = vpop.permute.xlu0 %1099 }
 0x38d   :  { %v1106_v52 = vsel %vm302_vm1, %v1100_v35, %v1102_v61  ;;  %v1107_v33 = vsel %vm302_vm1, %v1098_v20, %v1100_v35 }
 0x38e   :  { %v8597_v30 = vpop.permute.xlu1 %1033 }
 0x390   :  { %v1124_v6 = vpop.permute.xlu0 %1123 }
 0x391   :  { %v1125_v11 = vsel %vm344_vm0, %v1122_v17, %v1124_v6  ;;  %v1128_v56 = vsel %vm344_vm0, %v1124_v6, %v1118_v2  ;;  %v14368_v6 = vld [vmem:[#allocation9_spill] sm:$0xff] }
 0x392   :  { %v8604_v60 = vmul.f32 %v1125_v11, %v14337_v29  ;;  %v1120_v26 = vpop.permute.xlu1 %1119  ;;  %v8607_v53 = vmul.f32 %v1128_v56, %v14333_v21  ;;  %v14370_v56 = vld [vmem:[#allocation8_spill] sm:$0xff] }
 0x393   :  { %v1126_v63 = vsel %vm344_vm0, %v1120_v26, %v1122_v17  ;;  %v1127_v50 = vsel %vm344_vm0, %v1118_v2, %v1120_v26  ;;  %v14371_v2 = vld [vmem:[#allocation11_spill] sm:$0xff]  ;;  %v8634_v17 = vmul.f32 %v1107_v33, %v14336_v13 }
 0x394   :  { %14366 = vst [vmem:[#allocation103_spill] sm:$0xff] %v8604_v60  ;;  %14367 = vst [vmem:[#allocation104_spill] sm:$0xff] %v8607_v53  ;;  %v8618_v14 = vmul.f32 %v1127_v50, %v14368_v6  ;;  %v1080_v11 = vpop.permute.xlu0 %1079  ;;  %1370 = vmatprep.subr.mxu1 %v8607_v53  ;;  %v8622_v29 = vmul.f32 %v1126_v63, %v14370_v56  ;;  %v8631_v50 = vmul.f32 %v1106_v52, %v14371_v2  ;;  %v14374_v53 = vld [vmem:[#allocation20_spill] sm:$0xff] }
 0x395   :  { %v1086_v21 = vsel %vm260_vm2, %v1080_v11, %v1082_v54  ;;  %1371 = vmatpush2.msra.mxu1 %v8604_v60  ;;  %v1087_v26 = vsel %vm260_vm2, %v1078_v16, %v1080_v11  ;;  %14373 = vst [vmem:[#allocation107_spill] sm:$0xff] %v8634_v17  ;;  %v14376_v60 = vld [vmem:[#allocation26_spill] sm:$0xff] }
 0x396   :  { %14369 = vst [vmem:[#allocation105_spill] sm:$0xff] %v8618_v14  ;;  %1299 = vmatprep.subr.mxu0 %v8622_v29  ;;  %v1040_v35 = vpop.permute.xlu1 %1039  ;;  %14372 = vst [vmem:[#allocation106_spill] sm:$0xff] %v8631_v50  ;;  %v8639_v56 = vmul.f32 %v1086_v21, %v14374_v53  ;;  %v8642_v6 = vmul.f32 %v1087_v26, %v14376_v60 }
 0x397   :  { %1300 = vmatpush2.msra.mxu0 %v8618_v14 }
 0x398   :  { %v1104_v63 = vpop.permute.xlu0 %1103  ;;  %1301 = vmatprep.subr.mxu0 %v8631_v50  ;;  %14375 = vst [vmem:[#allocation108_spill] sm:$0xff] %v8639_v56  ;;  %14377 = vst [vmem:[#allocation109_spill] sm:$0xff] %v8642_v6 }
 0x399   :  { %v1105_v11 = vsel %vm302_vm1, %v1102_v61, %v1104_v63  ;;  %v1108_v52 = vsel %vm302_vm1, %v1104_v63, %v1098_v20  ;;  %1302 = vmatpush2.msra.mxu0 %v8634_v17  ;;  %v14380_v63 = vld [vmem:[#allocation31_spill] sm:$0xff]  ;;  %v14386_v17 = vld [vmem:[#allocation30_spill] sm:$0xff] }
 0x39a   :  { %v8650_v33 = vmul.f32 %v1105_v11, %v14342_v0  ;;  %1303 = vmatprep.subr.mxu0 %v8639_v56  ;;  %v1016_v50 = vpop.permute.xlu1 %1015  ;;  %v8654_v21 = vmul.f32 %v1108_v52, %v14340_v49  ;;  %v14382_v56 = vld [vmem:[#allocation28_spill] sm:$0xff] }
 0x39b   :  { %1304 = vmatpush2.msra.mxu0 %v8642_v6 }
 0x39c   :  { %14378 = vst [vmem:[#allocation110_spill] sm:$0xff] %v8650_v33  ;;  %14379 = vst [vmem:[#allocation111_spill] sm:$0xff] %v8654_v21  ;;  %v1060_v26 = vpop.permute.xlu0 %1059  ;;  %1372 = vmatprep.subr.mxu1 %v8654_v21 }
 0x39d   :  { %v1066_v61 = vsel %vm218_vm3, %v1060_v26, %v1062_v38  ;;  %v1067_v20 = vsel %vm218_vm3, %v1058_v19, %v1060_v26  ;;  %1373 = vmatpush2.msra.mxu1 %v8650_v33  ;;  %v14384_v26 = vld [vmem:[#allocation29_spill] sm:$0xff] }
 0x39e   :  { %v8664_v11 = vmul.f32 %v1067_v20, %v14380_v63  ;;  %v1020_v0 = vpop.permute.xlu1 %1019  ;;  %v8667_v52 = vmul.f32 %v1066_v61, %v14382_v56 }
 0x3a0   :  { %14381 = vst [vmem:[#allocation112_spill] sm:$0xff] %v8664_v11  ;;  %14383 = vst [vmem:[#allocation113_spill] sm:$0xff] %v8667_v52  ;;  %v1084_v49 = vpop.permute.xlu0 %1083  ;;  %1305 = vmatprep.subr.mxu0 %v8667_v52 }
 0x3a1   :  { %v1085_v21 = vsel %vm260_vm2, %v1082_v54, %v1084_v49  ;;  %v1088_v6 = vsel %vm260_vm2, %v1084_v49, %v1078_v16  ;;  %1306 = vmatpush2.msra.mxu0 %v8664_v11  ;;  %v14388_v16 = vld [vmem:[#allocation32_spill] sm:$0xff]  ;;  %v14399_v11 = vld [vmem:[#allocation53_spill] sm:$0xff] }
 0x3a2   :  { %v8676_v33 = vmul.f32 %v1085_v21, %v14384_v26  ;;  %1307 = vmatprep.subr.mxu0 %v8535_v62  ;;  %v996_v20 = vpop.permute.xlu1 %995  ;;  %v8680_v61 = vmul.f32 %v1088_v6, %v14386_v17  ;;  %v14390_v62 = vld [vmem:[#allocation36_spill] sm:$0xff]  ;;  %v1041_v17 = vsel %vm172_vm4, %v8589_v7, %v1040_v35 }
 0x3a3   :  { %1308 = vmatpush2.msra.mxu0 %v8507_v22  ;;  %v14398_v22 = vld [vmem:[#allocation42_spill] sm:$0xff] }
 0x3a4   :  { %14385 = vst [vmem:[#allocation114_spill] sm:$0xff] %v8676_v33  ;;  %14387 = vst [vmem:[#allocation115_spill] sm:$0xff] %v8680_v61  ;;  %v1064_v52 = vpop.permute.xlu0 %1063  ;;  %1374 = vmatprep.subr.mxu1 %v8680_v61 }
 0x3a5   :  { %v1065_v54 = vsel %vm218_vm3, %v1062_v38, %v1064_v52  ;;  %v1068_v49 = vsel %vm218_vm3, %v1064_v52, %v1058_v19  ;;  %1375 = vmatpush2.msra.mxu1 %v8676_v33  ;;  %v1044_v38 = vsel %vm172_vm4, %v1040_v35, %v8597_v30  ;;  %v1022_v19 = vsel %vm130_vm5, %v1016_v50, %v8593_v43  ;;  %v14394_v33 = vld [vmem:[#allocation40_spill] sm:$0xff] }
 0x3a6   :  { %v8690_v21 = vmul.f32 %v1065_v54, %v14388_v16  ;;  %v1000_v26 = vpop.permute.xlu1 %999  ;;  %v8693_v6 = vmul.f32 %v1068_v49, %v14390_v62  ;;  %v1023_v52 = vsel %vm130_vm5, %v8587_v47, %v1016_v50  ;;  %v1021_v49 = vsel %vm130_vm5, %v8593_v43, %v1020_v0  ;;  %v14392_v50 = vld [vmem:[#allocation45_spill] sm:$0xff] }
 0x3a7   :  { %v1024_v16 = vsel %vm130_vm5, %v1020_v0, %v8587_v47  ;;  %v14396_v0 = vld [vmem:[#allocation46_spill] sm:$0xff]  ;;  %v8735_v14 = vmul.f32 %v1022_v19, %v14399_v11 }
 0x3a8   :  { %14389 = vst [vmem:[#allocation116_spill] sm:$0xff] %v8690_v21  ;;  %14391 = vst [vmem:[#allocation117_spill] sm:$0xff] %v8693_v6  ;;  %v1036_v54 = vpop.permute.xlu0 %1035  ;;  %1376 = vmatprep.subr.mxu1 %v8693_v6  ;;  %v8729_v47 = vmul.f32 %v1041_v17, %v14396_v0  ;;  %v1004_v17 = vsel %vm88_vm6, %v1000_v26, %v8591_v23  ;;  %v14403_v19 = vld [vmem:[#allocation54_spill] sm:$0xff] }
 0x3a9   :  { %v1042_v35 = vsel %vm172_vm4, %v1036_v54, %v8589_v7  ;;  %v1043_v62 = vsel %vm172_vm4, %v8597_v30, %v1036_v54  ;;  %1377 = vmatpush2.msra.mxu1 %v8690_v21  ;;  %v8732_v7 = vmul.f32 %v1044_v38, %v14398_v22  ;;  %14400 = vst [vmem:[#allocation121_spill] sm:$0xff] %v8735_v14  ;;  %v14401_v54 = vld [vmem:[#allocation44_spill] sm:$0xff] }
 0x3aa   :  { %v8722_v6 = vmul.f32 %v1042_v35, %v14392_v50  ;;  %1378 = vmatprep.subr.mxu1 %v8541_v36  ;;  %v976_v43 = vpop.permute.xlu1 %975  ;;  %v8726_v61 = vmul.f32 %v1043_v62, %v14394_v33  ;;  %14397 = vst [vmem:[#allocation120_spill] sm:$0xff] %v8729_v47  ;;  %v1003_v30 = vsel %vm88_vm6, %v8591_v23, %v996_v20  ;;  %v14402_v62 = vld [vmem:[#allocation50_spill] sm:$0xff]  ;;  %v14405_v23 = vld [vmem:[#allocation61_spill] sm:$0xff] }
 0x3ab   :  { %1379 = vmatpush2.msra.mxu1 %v8509_v8  ;;  %v8742_v35 = vmul.f32 %v1023_v52, %v14401_v54  ;;  %v8745_v36 = vmul.f32 %v1024_v16, %v14402_v62  ;;  %v8753_v21 = vmul.f32 %v1021_v49, %v14403_v19  ;;  %v983_v52 = vsel %vm46_vm7, %v8595_v39, %v976_v43  ;;  %v14409_v19 = vld [vmem:[#allocation62_spill] sm:$0xff] }
 0x3ac   :  { %14393 = vst [vmem:[#allocation118_spill] sm:$0xff] %v8722_v6  ;;  %14395 = vst [vmem:[#allocation119_spill] sm:$0xff] %v8726_v61  ;;  %v998_v38 = vpop.permute.xlu0 %997  ;;  %1309 = vmatprep.subr.mxu0 %v8726_v61  ;;  %1380 = vmatprep.subr.mxu1 %v8729_v47  ;;  %v14407_v47 = vld [vmem:[#allocation52_spill] sm:$0xff]  ;;  %v14411_v50 = vld [vmem:[#allocation58_spill] sm:$0xff] }
 0x3ad   :  { %14404 = vst [vmem:[#allocation122_spill] sm:$0xff] %v8753_v21  ;;  %v1001_v16 = vsel %vm88_vm6, %v998_v38, %v1000_v26  ;;  %v1002_v8 = vsel %vm88_vm6, %v996_v20, %v998_v38  ;;  %1310 = vmatpush2.msra.mxu0 %v8732_v7  ;;  %1381 = vmatpush2.msra.mxu1 %v8722_v6 }
 0x3ae   :  { %v8765_v61 = vmul.f32 %v1002_v8, %v14405_v23  ;;  %1311 = vmatprep.subr.mxu0 %v8742_v35  ;;  %1382 = vmatprep.subr.mxu1 %v8753_v21  ;;  %v980_v49 = vpop.permute.xlu1 %979  ;;  %v8770_v11 = vmul.f32 %v1003_v30, %v14407_v47  ;;  %v8773_v26 = vmul.f32 %v1001_v16, %v14409_v19  ;;  %v14412_v8 = vld [vmem:[#allocation63_spill] sm:$0xff]  ;;  %v14413_v30 = vld [vmem:[#allocation60_spill] sm:$0xff] }
 0x3af   :  { %v8776_v20 = vmul.f32 %v1004_v17, %v14411_v50  ;;  %v984_v38 = vsel %vm46_vm7, %v980_v49, %v8595_v39  ;;  %1312 = vmatpush2.msra.mxu0 %v8745_v36  ;;  %1383 = vmatpush2.msra.mxu1 %v8735_v14  ;;  %v8789_v16 = vmul.f32 %v983_v52, %v14413_v30  ;;  %v14418_v52 = vld [vmem:[#allocation33_spill] sm:$0xff] }
 0x3b0   :  { %14406 = vst [vmem:[#allocation123_spill] sm:$0xff] %v8765_v61  ;;  %14408 = vst [vmem:[#allocation124_spill] sm:$0xff] %v8770_v11  ;;  %v8784_v21 = vmul.f32 %v984_v38, %v14412_v8  ;;  %v978_v6 = vpop.permute.xlu0 %977  ;;  %1313 = vmatprep.subr.mxu0 %v8770_v11  ;;  %1384 = vmatprep.subr.mxu1 %v8773_v26  ;;  %v14414_v38 = vld [vmem:[#allocation64_spill] sm:$0xff] }
 0x3b1   :  { %14410 = vst [vmem:[#allocation125_spill] sm:$0xff] %v8773_v26  ;;  %v981_v17 = vsel %vm46_vm7, %v978_v6, %v980_v49  ;;  %v982_v39 = vsel %vm46_vm7, %v976_v43, %v978_v6  ;;  %1314 = vmatpush2.msra.mxu0 %v8776_v20  ;;  %1385 = vmatpush2.msra.mxu1 %v8765_v61  ;;  %v14415_v11 = vld [vmem:[#allocation68_spill] sm:$0xff]  ;;  %v1137_v6 = vld [vmem:[%s13427_s2 + $0x30] sm:$0xff]  ;;  %v14417_v43 = vmov 0.0  }
 0x3b2   :  { %v8798_v14 = vmul.f32 %v982_v39, %v14414_v38  ;;  %1315 = vmatprep.subr.mxu0 %v8789_v16  ;;  %v8802_v26 = vmul.f32 %v981_v17, %v14415_v11  ;;  %v14419_v49 = vld [vmem:[#allocation37_spill] sm:$0xff]  ;;  %v14420_v17 = vld [vmem:[#allocation76_spill] sm:$0xff]  ;;  %v14421_v39 = vld [vmem:[#allocation98_spill] sm:$0xff] }
 0x3b3   :  { %1316 = vmatpush2.msra.mxu0 %v8784_v21 }
 0x3b4   :  { %14416 = vst [vmem:[#allocation126_spill] sm:$0xff] %v8802_v26  ;;  %1317 = vmatprep.subr.mxu0 %v8380_v46  ;;  %1386 = vmatprep.subr.mxu1 %v8802_v26 }
 0x3b5   :  { %1318 = vmatpush2.msra.mxu0 %v8389_v27  ;;  %1387 = vmatpush2.msra.mxu1 %v8798_v14 }
 0x3b6   :  { %1319 = vmatprep.subr.mxu0 %v8396_v41  ;;  %1388 = vmatprep.subr.mxu1 %v8399_v32 }
 0x3b7   :  { %1320 = vmatpush2.msra.mxu0 %v8406_v18  ;;  %1389 = vmatpush2.msra.mxu1 %v8409_v57  ;;  %v14459_v57 = vld [vmem:[#allocation16_spill] sm:$0xff] }
 0x3b8   :  { %1322 = vmatmul.mubr.f32.vlgmr.msra.gmra.mxu0 %v1137_v6  ;;  %1390 = vmatprep.subr.mxu1 %v8417_v40 }
 0x3b9   :  { %1728 = vmatprep.subr.mxu0 %v14344_v5  ;;  %1391 = vmatpush2.msra.mxu1 %v8422_v45 }
 0x3ba   :  { %1729 = vmatpush1.msra.mxu0 %v8196_v48  ;;  %1393 = vmatmul.mubr.f32.vlgmr.msra.gmra.mxu1 %v1137_v6  ;;  %v14422_v6 = vld [vmem:[#allocation41_spill] sm:$0xff] }
 0x3bb   :  { %1730 = vmatprep.subr.mxu0 %v8211_v3  ;;  %1863 = vmatprep.mubr.f32.mxu1 %v14417_v43 }
 0x3bc   :  { %1731 = vmatpush1.msra.mxu0 %v8208_v58 }
 0x3bd   :  { %1732 = vmatprep.subr.mxu0 %v8135_v25  ;;  %v14458_v25 = vld [vmem:[#allocation17_spill] sm:$0xff] }
 0x3be   :  { %1733 = vmatpush1.msra.mxu0 %v8109_v37  ;;  %v14455_v37 = vld [vmem:[#allocation90_spill] sm:$0xff] }
 0x3bf   :  { %1734 = vmatprep.subr.mxu0 %v8263_v10 }
 0x3c0   :  { %1735 = vmatpush1.msra.mxu0 %v8270_v15 }
 0x3c1   :  { %1736 = vmatprep.subr.mxu0 %v8273_v55 }
 0x3c2   :  { %1737 = vmatpush1.msra.mxu0 %v8279_v44 }
 0x3c3   :  { %1738 = vmatprep.subr.mxu0 %v8286_v12 }
 0x3c4   :  { %1739 = vmatpush1.msra.mxu0 %v8313_v1 }
 0x3c5   :  { %1740 = vmatprep.subr.mxu0 %v8318_v31 }
 0x3c6   :  { %1741 = vmatpush1.msra.mxu0 %v8323_v4 }
 0x3c7   :  { %1742 = vmatprep.subr.mxu0 %v7799_v24  ;;  %v14423_v24 = vld [vmem:[#allocation43_spill] sm:$0xff] }
 0x3c8   :  { %1743 = vmatpush1.msra.mxu0 %v7811_v28  ;;  %v14424_v28 = vld [vmem:[#allocation47_spill] sm:$0xff] }
 0x3c9   :  { %1744 = vmatprep.subr.mxu0 %v7822_v34  ;;  %v14425_v34 = vld [vmem:[#allocation51_spill] sm:$0xff] }
 0x3ca   :  { %1745 = vmatpush1.msra.mxu0 %v7843_v42  ;;  %v14426_v42 = vld [vmem:[#allocation55_spill] sm:$0xff] }
 0x3cb   :  { %1746 = vmatprep.subr.mxu0 %v7862_v51  ;;  %v14427_v51 = vld [vmem:[#allocation59_spill] sm:$0xff] }
 0x3cc   :  { %1747 = vmatpush1.msra.mxu0 %v7883_v59  ;;  %v14428_v59 = vld [vmem:[#allocation65_spill] sm:$0xff] }
 0x3cd   :  { %1748 = vmatprep.subr.mxu0 %v14418_v52  ;;  %v14429_v52 = vld [vmem:[#allocation69_spill] sm:$0xff] }
 0x3ce   :  { %1749 = vmatpush1.msra.mxu0 %v14419_v49  ;;  %v1251_v49 = vpop.permute.xlu1 %1250 }
 0x3cf   :  { %1750 = vmatprep.subr.mxu0 %v14420_v17 }
 0x3d0   :  { %1751 = vmatpush1.msra.mxu0 %v14421_v39 }
 0x3d1   :  { %1752 = vmatprep.subr.mxu0 %v14422_v6 }
 0x3d2   :  { %1753 = vmatpush1.msra.mxu0 %v14423_v24 }
 0x3d3   :  { %1754 = vmatprep.subr.mxu0 %v14424_v28 }
 0x3d4   :  { %1755 = vmatpush1.msra.mxu0 %v14425_v34 }
 0x3d5   :  { %1756 = vmatprep.subr.mxu0 %v14426_v42 }
 0x3d6   :  { %1757 = vmatpush1.msra.mxu0 %v14427_v51  ;;  %v14436_v51 = vld [vmem:[#allocation8_spill] sm:$0xff] }
 0x3d7   :  { %1758 = vmatprep.subr.mxu0 %v14428_v59 }
 0x3d8   :  { %1759 = vmatpush1.msra.mxu0 %v14429_v52 }
 0x478   :  { %v1323_v17 = vpop.f32.mrf.mxu0 }
 0x479   :  { %v1324_v4 = vadd.f32 %v1323_v17, %v1251_v49 }
 0x47a   :  { %v1325_v39 = vpop.f32.mrf.mxu0  ;;  %v1394_v31 = vpop.f32.mrf.mxu1 }
 0x47b   :  { %v1399_v6 = vmul.f32 0.2, %v1324_v4  ;;  %v1326_v1 = vadd.f32 %v1325_v39, %v1251_v49  ;;  %v1395_v24 = vadd.f32 %v1394_v31, %v1251_v49  ;;  %v1718_v31 = vld [vmem:[%s13425_s3 + $0x18] sm:$0xff] }
 0x47d   :  { %v8851_v12 = vmax.f32 %v1324_v4, %v1399_v6  ;;  %v1400_v28 = vmul.f32 0.2, %v1326_v1  ;;  %v1401_v34 = vmul.f32 0.2, %v1395_v24  ;;  %v1572_v4 = vld [vmem:[%s13427_s2 + $0x50] sm:$0xff] }
 0x47e   :  { %1792 = vmatprep.mubr.f32.mxu0 %v1572_v4 }
 0x47f   :  { %14430 = vst [vmem:[#allocation76_spill] sm:$0xff] %v8851_v12  ;;  %v8853_v44 = vmax.f32 %v1326_v1, %v1400_v28  ;;  %v8855_v42 = vmax.f32 %v1395_v24, %v1401_v34  ;;  %1551 = vrot.lane.b32.xlu0 %v8851_v12, %s7646_s19  ;;  %v1396_v24 = vpop.f32.mrf.mxu1 }
 0x480   :  { %v1397_v28 = vadd.f32 %v1396_v24, %v1251_v49 }
 0x481   :  { %14431 = vst [vmem:[#allocation98_spill] sm:$0xff] %v8853_v44  ;;  %14432 = vst [vmem:[#allocation127_spill] sm:$0xff] %v8855_v42  ;;  %1555 = vrot.lane.b32.xlu1 %v8855_v42, %s7646_s19  ;;  %1760 = vmatprep.subr.mxu0 %v8853_v44 }
 0x482   :  { %1761 = vmatpush2.msra.mxu0 %v8851_v12  ;;  %v1402_v34 = vmul.f32 0.2, %v1397_v28 }
 0x483   :  { %1535 = vrot.lane.b32.xlu0 %v8855_v42, %s7647_s22 }
 0x484   :  { %v8889_v1 = vmax.f32 %v1397_v28, %v1402_v34 }
 0x485   :  { %1531 = vrot.lane.b32.xlu1 %v8851_v12, %s7647_s22 }
 0x486   :  { %14433 = vst [vmem:[#allocation128_spill] sm:$0xff] %v8889_v1 }
 0x487   :  { %1511 = vrot.lane.b32.xlu0 %v8851_v12, %s7648_s25 }
 0x489   :  { %1515 = vrot.lane.b32.xlu1 %v8855_v42, %s7648_s25 }
 0x48b   :  { %1553 = vrot.lane.b32.xlu0 %v8853_v44, %s7646_s19 }
 0x48d   :  { %1533 = vrot.lane.b32.xlu1 %v8853_v44, %s7647_s22 }
 0x48f   :  { %1513 = vrot.lane.b32.xlu0 %v8853_v44, %s7648_s25 }
 0x491   :  { %1493 = vrot.lane.b32.xlu1 %v8853_v44, %s7649_s26 }
 0x493   :  { %1495 = vrot.lane.b32.xlu0 %v8855_v42, %s7649_s26 }
 0x495   :  { %1491 = vrot.lane.b32.xlu1 %v8851_v12, %s7649_s26 }
 0x497   :  { %1467 = vrot.lane.b32.xlu0 %v8851_v12, %s7650_s27 }
 0x499   :  { %1447 = vrot.lane.b32.xlu1 %v8851_v12, %s7651_s28 }
 0x49b   :  { %1427 = vrot.lane.b32.xlu0 %v8851_v12, %s7652_s29 }
 0x49d   :  { %1407 = vrot.lane.b32.xlu1 %v8851_v12, %s7654_s30 }
 0x49f   :  { %1473 = vrot.lane.b32.xlu0 %v8889_v1, %s7650_s27 }
 0x4a1   :  { %1471 = vrot.lane.b32.xlu1 %v8855_v42, %s7650_s27 }
 0x4a3   :  { %1449 = vrot.lane.b32.xlu0 %v8853_v44, %s7651_s28 }
 0x4a5   :  { %1469 = vrot.lane.b32.xlu1 %v8853_v44, %s7650_s27 }
 0x4a7   :  { %1433 = vrot.lane.b32.xlu0 %v8889_v1, %s7652_s29 }
 0x4a9   :  { %1453 = vrot.lane.b32.xlu1 %v8889_v1, %s7651_s28 }
 0x4ab   :  { %1409 = vrot.lane.b32.xlu0 %v8853_v44, %s7654_s30 }
 0x4ad   :  { %1429 = vrot.lane.b32.xlu1 %v8853_v44, %s7652_s29  ;;  %v14434_v44 = vld [vmem:[#allocation9_spill] sm:$0xff] }
 0x4af   :  { %1413 = vrot.lane.b32.xlu0 %v8889_v1, %s7654_s30 }
 0x4b1   :  { %1451 = vrot.lane.b32.xlu1 %v8855_v42, %s7651_s28 }
 0x4b3   :  { %1431 = vrot.lane.b32.xlu0 %v8855_v42, %s7652_s29 }
 0x4b5   :  { %1411 = vrot.lane.b32.xlu1 %v8855_v42, %s7654_s30 }
 0x4b7   :  { %1557 = vrot.lane.b32.xlu0 %v8889_v1, %s7646_s19 }
 0x4b9   :  { %1537 = vrot.lane.b32.xlu1 %v8889_v1, %s7647_s22 }
 0x4bb   :  { %1517 = vrot.lane.b32.xlu0 %v8889_v1, %s7648_s25 }
 0x4bd   :  { %1497 = vrot.lane.b32.xlu1 %v8889_v1, %s7649_s26 }
 0x4bf   :  { %1721 = vperm.xlu0 %7632, %v1718_v31  }
 0x4f1   :  { %v8931_v49 = vpop.permute.xlu0 %1551 }
 0x4f3   :  { %v8933_v6 = vpop.permute.xlu1 %1555 }
 0x4f5   :  { %v8935_v17 = vpop.permute.xlu0 %1535 }
 0x4f7   :  { %v8937_v39 = vpop.permute.xlu1 %1531 }
 0x4f9   :  { %v8939_v24 = vpop.permute.xlu0 %1511 }
 0x4fb   :  { %v8941_v28 = vpop.permute.xlu1 %1515 }
 0x4fd   :  { %v1554_v34 = vpop.permute.xlu0 %1553 }
 0x4fe   :  { %v1560_v12 = vsel %vm344_vm0, %v1554_v34, %v8933_v6  ;;  %v1561_v31 = vsel %vm344_vm0, %v8931_v49, %v1554_v34 }
 0x4ff   :  { %v8950_v52 = vmul.f32 %v1561_v31, %v14434_v44  ;;  %v1534_v59 = vpop.permute.xlu1 %1533  ;;  %v8953_v55 = vmul.f32 %v1560_v12, %v14436_v51  ;;  %v14452_v51 = vld [vmem:[#allocation88_spill] sm:$0xff] }
 0x500   :  { %v1540_v15 = vsel %vm302_vm1, %v1534_v59, %v8935_v17  ;;  %v1541_v10 = vsel %vm302_vm1, %v8937_v39, %v1534_v59 }
 0x501   :  { %14435 = vst [vmem:[#allocation129_spill] sm:$0xff] %v8950_v52  ;;  %14437 = vst [vmem:[#allocation130_spill] sm:$0xff] %v8953_v55  ;;  %v8962_v45 = vmul.f32 %v1541_v10, %v14336_v13  ;;  %1823 = vmatprep.subr.mxu1 %v8953_v55  ;;  %v1514_v34 = vpop.permute.xlu0 %1513  ;;  %v8966_v31 = vmul.f32 %v1540_v15, %v14371_v2  ;;  %v14451_v2 = vld [vmem:[#allocation83_spill] sm:$0xff] }
 0x502   :  { %v1520_v12 = vsel %vm260_vm2, %v1514_v34, %v8941_v28  ;;  %v1521_v44 = vsel %vm260_vm2, %v8939_v24, %v1514_v34  ;;  %1824 = vmatpush1.msra.mxu1 %v8950_v52 }
 0x503   :  { %14438 = vst [vmem:[#allocation131_spill] sm:$0xff] %v8962_v45  ;;  %14439 = vst [vmem:[#allocation132_spill] sm:$0xff] %v8966_v31  ;;  %v8976_v59 = vmul.f32 %v1521_v44, %v14376_v60  ;;  %v1494_v10 = vpop.permute.xlu1 %1493  ;;  %1825 = vmatprep.subr.mxu1 %v8966_v31  ;;  %v8980_v55 = vmul.f32 %v1520_v12, %v14374_v53  ;;  %v9005_v31 = vld [vmem:[%s13427_s2 + $0x58] sm:$0xff]  ;;  %v14449_v53 = vld [vmem:[#allocation73_spill] sm:$0xff] }
 0x504   :  { %1826 = vmatpush1.msra.mxu1 %v8962_v45  ;;  %v14448_v60 = vld [vmem:[#allocation74_spill] sm:$0xff] }
 0x505   :  { %14440 = vst [vmem:[#allocation133_spill] sm:$0xff] %v8976_v59  ;;  %14441 = vst [vmem:[#allocation134_spill] sm:$0xff] %v8980_v55  ;;  %1827 = vmatprep.subr.mxu1 %v8980_v55  ;;  %v8984_v15 = vpop.permute.xlu0 %1495 }
 0x506   :  { %v1500_v34 = vsel %vm218_vm3, %v1494_v10, %v8984_v15  ;;  %1828 = vmatpush1.msra.mxu1 %v8976_v59 }
 0x507   :  { %v8990_v44 = vpop.permute.xlu1 %1491  ;;  %v8993_v52 = vmul.f32 %v1500_v34, %v14382_v56  ;;  %v14444_v34 = vld [vmem:[#allocation78_spill] sm:$0xff]  ;;  %v14447_v56 = vld [vmem:[#allocation79_spill] sm:$0xff] }
 0x508   :  { %v1501_v12 = vsel %vm218_vm3, %v8990_v44, %v1494_v10  ;;  %v14445_v10 = vld [vmem:[#allocation77_spill] sm:$0xff] }
 0x509   :  { %14442 = vst [vmem:[#allocation135_spill] sm:$0xff] %v8993_v52  ;;  %v8999_v45 = vmul.f32 %v1501_v12, %v14380_v63  ;;  %1829 = vmatprep.subr.mxu1 %v8993_v52  ;;  %v1468_v55 = vpop.permute.xlu0 %1467  ;;  %v14446_v52 = vld [vmem:[#allocation80_spill] sm:$0xff] }
 0x50b   :  { %14443 = vst [vmem:[#allocation136_spill] sm:$0xff] %v8999_v45  ;;  %v1448_v59 = vpop.permute.xlu1 %1447  ;;  %1830 = vmatpush1.msra.mxu1 %v8999_v45  ;;  %v14450_v45 = vld [vmem:[#allocation81_spill] sm:$0xff] }
 0x50c   :  { %1870 = vmatprep.subr.mxu1 %v14444_v34  ;;  %7598 = vmatmul.mubr.msk.f32.vlgmr.msra.gmra.mxu1 %vm1724_vm11, %v9005_v31 }
 0x50d   :  { %1871 = vmatpush1.msra.mxu1 %v14445_v10  ;;  %v1428_v12 = vpop.permute.xlu0 %1427  ;;  %1934 = vmatprep.mubr.f32.mxu1 %v1572_v4  ;;  %v14453_v10 = vld [vmem:[#allocation86_spill] sm:$0xff] }
 0x50e   :  { %1872 = vmatprep.subr.mxu1 %v14446_v52  ;;  %v14454_v52 = vld [vmem:[#allocation91_spill] sm:$0xff] }
 0x50f   :  { %v1408_v63 = vpop.permute.xlu1 %1407  ;;  %1873 = vmatpush1.msra.mxu1 %v14447_v56 }
 0x510   :  { %1874 = vmatprep.subr.mxu1 %v14448_v60 }
 0x511   :  { %1875 = vmatpush1.msra.mxu1 %v14449_v53  ;;  %v1474_v13 = vpop.permute.xlu0 %1473 }
 0x512   :  { %1876 = vmatprep.subr.mxu1 %v14450_v45  ;;  %v1478_v56 = vsel %vm172_vm4, %v1474_v13, %v1468_v55 }
 0x513   :  { %v1472_v34 = vpop.permute.xlu1 %1471  ;;  %1877 = vmatpush1.msra.mxu1 %v14451_v2  ;;  %v9037_v40 = vmul.f32 %v1478_v56, %v14398_v22 }
 0x514   :  { %1878 = vmatprep.subr.mxu1 %v14452_v51  ;;  %v14456_v51 = vld [vmem:[#allocation96_spill] sm:$0xff] }
 0x515   :  { %1879 = vmatpush1.msra.mxu1 %v14453_v10  ;;  %v9020_v4 = vpop.permute.xlu0 %1449  ;;  %v14457_v10 = vld [vmem:[#allocation95_spill] sm:$0xff] }
 0x516   :  { %1880 = vmatprep.subr.mxu1 %v14454_v52  ;;  %v1457_v45 = vsel %vm130_vm5, %v1448_v59, %v9020_v4 }
 0x517   :  { %v1470_v60 = vpop.permute.xlu1 %1469  ;;  %1881 = vmatpush1.msra.mxu1 %v14455_v37 }
 0x518   :  { %v1477_v2 = vsel %vm172_vm4, %v1468_v55, %v1470_v60  ;;  %1882 = vmatprep.subr.mxu1 %v14456_v51  ;;  %v9043_v55 = vmul.f32 %v1457_v45, %v14401_v54  ;;  %v14462_v51 = vld [vmem:[#allocation24_spill] sm:$0xff] }
 0x519   :  { %1883 = vmatpush1.msra.mxu1 %v14457_v10  ;;  %v1434_v53 = vpop.permute.xlu0 %1433  ;;  %v9034_v52 = vmul.f32 %v1477_v2, %v14394_v33  ;;  %v14460_v2 = vld [vmem:[#allocation25_spill] sm:$0xff]  ;;  %v14463_v33 = vld [vmem:[#allocation35_spill] sm:$0xff] }
 0x51a   :  { %1884 = vmatprep.subr.mxu1 %v14458_v25  ;;  %v1438_v45 = vsel %vm88_vm6, %v1434_v53, %v1428_v12 }
 0x51b   :  { %v1454_v37 = vpop.permute.xlu1 %1453  ;;  %1762 = vmatprep.subr.mxu0 %v9034_v52  ;;  %1885 = vmatpush1.msra.mxu1 %v14459_v57  ;;  %v9069_v22 = vmul.f32 %v1438_v45, %v14411_v50 }
 0x51c   :  { %v1458_v10 = vsel %vm130_vm5, %v1454_v37, %v1448_v59  ;;  %1763 = vmatpush2.msra.mxu0 %v9037_v40  ;;  %1886 = vmatprep.subr.mxu1 %v14460_v2  ;;  %v14464_v59 = vld [vmem:[#allocation34_spill] sm:$0xff] }
 0x51d   :  { %v9050_v56 = vmul.f32 %v1458_v10, %v14402_v62  ;;  %1887 = vmatpush1.msra.mxu1 %v14462_v51  ;;  %v1410_v25 = vpop.permute.xlu0 %1409  ;;  %1764 = vmatprep.subr.mxu0 %v9043_v55  ;;  %v14465_v51 = vld [vmem:[#allocation39_spill] sm:$0xff]  ;;  %v14466_v62 = vld [vmem:[#allocation38_spill] sm:$0xff] }
 0x51e   :  { %1888 = vmatprep.subr.mxu1 %v14463_v33  ;;  %v1417_v2 = vsel %vm46_vm7, %v1408_v63, %v1410_v25 }
 0x51f   :  { %14461 = vst [vmem:[#allocation137_spill] sm:$0xff] %v9050_v56  ;;  %v1430_v57 = vpop.permute.xlu1 %1429  ;;  %1765 = vmatpush2.msra.mxu0 %v9050_v56  ;;  %1889 = vmatpush1.msra.mxu1 %v14464_v59  ;;  %v9076_v56 = vld [vmem:[%s13424_s0 + $0x18] sm:$0xff]  ;;  %v9085_v45 = vmul.f32 %v1417_v2, %v14413_v30  ;;  %v14474_v2 = vld [vmem:[#allocation67_spill] sm:$0xff] }
 0x520   :  { %v1437_v10 = vsel %vm88_vm6, %v1428_v12, %v1430_v57  ;;  %1890 = vmatprep.subr.mxu1 %v14465_v51  ;;  %14467 = vst [vmem:[#allocation138_spill] sm:$0xff] %v9076_v56  ;;  %v14475_v30 = vld [vmem:[#allocation66_spill] sm:$0xff] }
 0x521   :  { %1891 = vmatpush1.msra.mxu1 %v14466_v62  ;;  %v1414_v54 = vpop.permute.xlu0 %1413  ;;  %v9066_v33 = vmul.f32 %v1437_v10, %v14407_v47  ;;  %v14468_v10 = vld [vmem:[#allocation6_spill] sm:$0xff]  ;;  %v14470_v62 = vld [vmem:[#allocation48_spill] sm:$0xff]  ;;  %v14478_v47 = vld [vmem:[#allocation71_spill] sm:$0xff] }
 0x522   :  { %v1418_v59 = vsel %vm46_vm7, %v1414_v54, %v1408_v63  ;;  %1892 = vmatprep.subr.mxu1 %v9076_v56  ;;  %v14469_v63 = vld [vmem:[#allocation49_spill] sm:$0xff]  ;;  %v14472_v56 = vld [vmem:[#allocation56_spill] sm:$0xff] }
 0x523   :  { %v9080_v12 = vmul.f32 %v1418_v59, %v14412_v8  ;;  %1766 = vmatprep.subr.mxu0 %v9066_v33  ;;  %1893 = vmatpush1.msra.mxu1 %v14468_v10  ;;  %v1452_v51 = vpop.permute.xlu1 %1451  ;;  %v14471_v59 = vld [vmem:[#allocation57_spill] sm:$0xff]  ;;  %v1476_v8 = vsel %vm172_vm4, %v1470_v60, %v1472_v34 }
 0x524   :  { %1767 = vmatpush2.msra.mxu0 %v9069_v22  ;;  %1894 = vmatprep.subr.mxu1 %v14469_v63  ;;  %v14473_v10 = vld [vmem:[#allocation105_spill] sm:$0xff]  ;;  %v1475_v63 = vsel %vm172_vm4, %v1472_v34, %v1474_v13  ;;  %v1456_v13 = vsel %vm130_vm5, %v9020_v4, %v1452_v51  ;;  %v14486_v4 = vld [vmem:[#allocation112_spill] sm:$0xff] }
 0x525   :  { %1895 = vmatpush1.msra.mxu1 %v14470_v62  ;;  %1768 = vmatprep.subr.mxu0 %v9085_v45  ;;  %v14476_v62 = vld [vmem:[#allocation106_spill] sm:$0xff]  ;;  %v1432_v50 = vpop.permute.xlu0 %1431  ;;  %v9115_v60 = vmul.f32 %v1475_v63, %v14396_v0  ;;  %v14483_v34 = vld [vmem:[#allocation45_spill] sm:$0xff] }
 0x526   :  { %1769 = vmatpush2.msra.mxu0 %v9080_v12  ;;  %1896 = vmatprep.subr.mxu1 %v14471_v59  ;;  %v14477_v59 = vld [vmem:[#allocation107_spill] sm:$0xff]  ;;  %v14489_v0 = vld [vmem:[#allocation53_spill] sm:$0xff] }
 0x527   :  { %1770 = vmatprep.subr.mxu0 %v8622_v29  ;;  %1897 = vmatpush1.msra.mxu1 %v14472_v56  ;;  %v1455_v56 = vsel %vm130_vm5, %v1452_v51, %v1454_v37  ;;  %14482 = vst [vmem:[#allocation6_spill] sm:$0xff] %v9115_v60  ;;  %v1435_v37 = vsel %vm88_vm6, %v1432_v50, %v1434_v53 }
 0x528   :  { %1771 = vmatpush2.msra.mxu0 %v14473_v10  ;;  %1898 = vmatprep.subr.mxu1 %v14474_v2  ;;  %v14479_v10 = vld [vmem:[#allocation108_spill] sm:$0xff]  ;;  %v14480_v2 = vld [vmem:[#allocation70_spill] sm:$0xff]  ;;  %v1436_v51 = vsel %vm88_vm6, %v1430_v57, %v1432_v50  ;;  %v14492_v50 = vld [vmem:[#allocation99_spill] sm:$0xff] }
 0x529   :  { %1899 = vmatpush1.msra.mxu1 %v14475_v30  ;;  %1772 = vmatprep.subr.mxu0 %v14476_v62  ;;  %v1412_v30 = vpop.permute.xlu1 %1411  ;;  %v14481_v62 = vld [vmem:[#allocation109_spill] sm:$0xff] }
 0x52a   :  { %1773 = vmatpush2.msra.mxu0 %v14477_v59  ;;  %1900 = vmatprep.subr.mxu1 %v14478_v47  ;;  %v9118_v47 = vmul.f32 %v1476_v8, %v14483_v34  ;;  %v9132_v8 = vmul.f32 %v1456_v13, %v14489_v0  ;;  %v1415_v53 = vsel %vm46_vm7, %v1412_v30, %v1414_v54  ;;  %v14491_v34 = vld [vmem:[#allocation101_spill] sm:$0xff] }
 0x52b   :  { %1774 = vmatprep.subr.mxu0 %v14479_v10  ;;  %1901 = vmatpush1.msra.mxu1 %v14480_v2  ;;  %v14485_v2 = vld [vmem:[#allocation113_spill] sm:$0xff]  ;;  %v1416_v57 = vsel %vm46_vm7, %v1410_v25, %v1412_v30  ;;  %v9146_v13 = vmul.f32 %v1436_v51, %v14405_v23  ;;  %v9153_v25 = vmul.f32 %v1415_v53, %v14415_v11  ;;  %v1558_v30 = vpop.permute.xlu0 %1557  ;;  %v14499_v53 = vld [vmem:[#allocation104_spill] sm:$0xff] }
 0x52c   :  { %1775 = vmatpush2.msra.mxu0 %v14481_v62  ;;  %1902 = vmatprep.subr.mxu1 %v8889_v1  ;;  %14484 = vst [vmem:[#allocation107_spill] sm:$0xff] %v9118_v47  ;;  %v14487_v1 = vld [vmem:[#allocation54_spill] sm:$0xff]  ;;  %14490 = vst [vmem:[#allocation109_spill] sm:$0xff] %v9132_v8  ;;  %v9156_v54 = vmul.f32 %v1416_v57, %v14414_v38  ;;  %v14500_v57 = vld [vmem:[#allocation103_spill] sm:$0xff] }
 0x52d   :  { %1903 = vmatpush2.msra.mxu1 %v8855_v42  ;;  %1776 = vmatprep.subr.mxu0 %v14485_v2  ;;  %v9129_v63 = vmul.f32 %v1455_v56, %v14487_v1  ;;  %v9143_v56 = vmul.f32 %v1435_v37, %v14409_v19  ;;  %14494 = vst [vmem:[#allocation112_spill] sm:$0xff] %v9146_v13  ;;  %14496 = vst [vmem:[#allocation101_spill] sm:$0xff] %v9153_v25  ;;  %v14498_v37 = vld [vmem:[#allocation124_spill] sm:$0xff]  ;;  %v1538_v51 = vpop.permute.xlu1 %1537 }
 0x52e   :  { %1777 = vmatpush2.msra.mxu0 %v14486_v4  ;;  %1904 = vmatprep.subr.mxu1 %v9115_v60  ;;  %v14495_v60 = vld [vmem:[#allocation119_spill] sm:$0xff]  ;;  %14497 = vst [vmem:[#allocation99_spill] sm:$0xff] %v9156_v54 }
 0x52f   :  { %14488 = vst [vmem:[#allocation108_spill] sm:$0xff] %v9129_v63  ;;  %1778 = vmatprep.subr.mxu0 %v14491_v34  ;;  %1905 = vmatpush2.msra.mxu1 %v9118_v47  ;;  %14493 = vst [vmem:[#allocation113_spill] sm:$0xff] %v9143_v56  ;;  %v14508_v47 = vld [vmem:[#allocation12_spill] sm:$0xff] }
 0x530   :  { %1779 = vmatpush2.msra.mxu0 %v14492_v50  ;;  %1906 = vmatprep.subr.mxu1 %v9129_v63 }
 0x531   :  { %1780 = vmatprep.subr.mxu0 %v14495_v60  ;;  %1907 = vmatpush2.msra.mxu1 %v9132_v8  ;;  %v14503_v8 = vld [vmem:[#allocation115_spill] sm:$0xff] }
 0x532   :  { %1781 = vmatpush2.msra.mxu0 %v8732_v7  ;;  %1908 = vmatprep.subr.mxu1 %v9143_v56  ;;  %v1518_v56 = vpop.permute.xlu0 %1517 }
 0x533   :  { %1782 = vmatprep.subr.mxu0 %v8742_v35  ;;  %1909 = vmatpush2.msra.mxu1 %v9146_v13  ;;  %v14501_v13 = vld [vmem:[#allocation111_spill] sm:$0xff] }
 0x534   :  { %1783 = vmatpush2.msra.mxu0 %v8745_v36  ;;  %1910 = vmatprep.subr.mxu1 %v9153_v25  ;;  %v1562_v25 = vsel %vm344_vm0, %v1558_v30, %v8931_v49  ;;  %v1542_v49 = vsel %vm302_vm1, %v1538_v51, %v8937_v39  ;;  %v1522_v39 = vsel %vm260_vm2, %v1518_v56, %v8939_v24 }
 0x535   :  { %1784 = vmatprep.subr.mxu0 %v14498_v37  ;;  %1911 = vmatpush2.msra.mxu1 %v9156_v54  ;;  %v14502_v54 = vld [vmem:[#allocation110_spill] sm:$0xff] }
 0x536   :  { %1785 = vmatpush2.msra.mxu0 %v8776_v20  ;;  %1912 = vmatprep.subr.mxu1 %v14499_v53  ;;  %v1559_v53 = vsel %vm344_vm0, %v8933_v6, %v1558_v30  ;;  %v1539_v6 = vsel %vm302_vm1, %v8935_v17, %v1538_v51  ;;  %v1498_v30 = vpop.permute.xlu1 %1497  ;;  %v1519_v17 = vsel %vm260_vm2, %v8941_v28, %v1518_v56  ;;  %v14511_v51 = vld [vmem:[#allocation102_spill] sm:$0xff]  ;;  %v14516_v56 = vld [vmem:[#allocation120_spill] sm:$0xff] }
 0x537   :  { %1786 = vmatprep.subr.mxu0 %v8789_v16  ;;  %1913 = vmatpush2.msra.mxu1 %v14500_v57  ;;  %v14506_v57 = vld [vmem:[#allocation13_spill] sm:$0xff]  ;;  %v9197_v42 = vmul.f32 %v1559_v53, %v14508_v47  ;;  %v1502_v24 = vsel %vm218_vm3, %v1498_v30, %v8990_v44  ;;  %v1499_v28 = vsel %vm218_vm3, %v8984_v15, %v1498_v30  ;;  %v14519_v44 = vld [vmem:[#allocation118_spill] sm:$0xff]  ;;  %v14522_v30 = vld [vmem:[#allocation32_spill] sm:$0xff] }
 0x538   :  { %1787 = vmatpush2.msra.mxu0 %v8784_v21  ;;  %1914 = vmatprep.subr.mxu1 %v14501_v13  ;;  %v1571_v13 = vld [vmem:[%s13427_s2 + $0x48] sm:$0xff]  ;;  %v9194_v63 = vmul.f32 %v1562_v25, %v14506_v57  ;;  %v14512_v25 = vld [vmem:[#allocation22_spill] sm:$0xff]  ;;  %v14514_v53 = vld [vmem:[#allocation21_spill] sm:$0xff] }
 0x539   :  { %1788 = vmatprep.subr.mxu0 %v8380_v46  ;;  %1915 = vmatpush2.msra.mxu1 %v14502_v54  ;;  %v14504_v54 = vld [vmem:[#allocation114_spill] sm:$0xff]  ;;  %14509 = vst [vmem:[#allocation124_spill] sm:$0xff] %v9197_v42  ;;  %v9212_v38 = vmul.f32 %v1539_v6, %v14514_v53  ;;  %v14518_v6 = vld [vmem:[#allocation29_spill] sm:$0xff] }
 0x53a   :  { %1916 = vmatprep.subr.mxu1 %v14503_v8  ;;  %1789 = vmatpush2.msra.mxu0 %v8389_v27  ;;  %v14505_v8 = vld [vmem:[#allocation117_spill] sm:$0xff]  ;;  %14507 = vst [vmem:[#allocation119_spill] sm:$0xff] %v9194_v63 }
 0x53b   :  { %1790 = vmatprep.subr.mxu0 %v8396_v41  ;;  %1917 = vmatpush2.msra.mxu1 %v14504_v54  ;;  %v14510_v54 = vld [vmem:[#allocation116_spill] sm:$0xff] }
 0x53c   :  { %1791 = vmatpush2.msra.mxu0 %v8406_v18  ;;  %1918 = vmatprep.subr.mxu1 %v14505_v8  ;;  %v9209_v8 = vmul.f32 %v1542_v49, %v14512_v25  ;;  %v14517_v49 = vld [vmem:[#allocation30_spill] sm:$0xff] }
 0x53d   :  { %1793 = vmatmul.mubr.f32.vlgmr.msra.gmra.mxu0 %v1571_v13  ;;  %1919 = vmatpush2.msra.mxu1 %v14510_v54  ;;  %v14515_v54 = vld [vmem:[#allocation100_spill] sm:$0xff] }
 0x53e   :  { %1965 = vmatprep.subr.mxu0 %v9194_v63  ;;  %1920 = vmatprep.subr.mxu1 %v14511_v51  ;;  %14513 = vst [vmem:[#allocation139_spill] sm:$0xff] %v9209_v8  ;;  %v9225_v51 = vmul.f32 %v1522_v39, %v14517_v49  ;;  %v9228_v63 = vmul.f32 %v1519_v17, %v14518_v6  ;;  %v14523_v39 = vld [vmem:[#allocation121_spill] sm:$0xff] }
 0x53f   :  { %1966 = vmatpush1.msra.mxu0 %v9197_v42  ;;  %1921 = vmatpush2.msra.mxu1 %v14515_v54  ;;  %v14520_v54 = vld [vmem:[#allocation122_spill] sm:$0xff]  ;;  %v14521_v42 = vld [vmem:[#allocation36_spill] sm:$0xff]  ;;  %v14524_v17 = vld [vmem:[#allocation125_spill] sm:$0xff] }
 0x540   :  { %1967 = vmatprep.subr.mxu0 %v9209_v8  ;;  %1922 = vmatprep.subr.mxu1 %v14516_v56  ;;  %v9235_v15 = vmul.f32 %v1502_v24, %v14521_v42  ;;  %v9238_v8 = vmul.f32 %v1499_v28, %v14522_v30  ;;  %v14525_v24 = vld [vmem:[#allocation4_spill] sm:$0xff]  ;;  %v14526_v28 = vld [vmem:[#allocation75_spill] sm:$0xff] }
 0x541   :  { %1968 = vmatpush1.msra.mxu0 %v9212_v38  ;;  %1923 = vmatpush2.msra.mxu1 %v14519_v44 }
 0x542   :  { %1969 = vmatprep.subr.mxu0 %v9225_v51  ;;  %1924 = vmatprep.subr.mxu1 %v14520_v54 }
 0x543   :  { %1970 = vmatpush1.msra.mxu0 %v9228_v63  ;;  %1925 = vmatpush2.msra.mxu1 %v14523_v39 }
 0x544   :  { %1971 = vmatprep.subr.mxu0 %v9235_v15  ;;  %1926 = vmatprep.subr.mxu1 %v14524_v17 }
 0x545   :  { %1972 = vmatpush1.msra.mxu0 %v9238_v8  ;;  %1927 = vmatpush2.msra.mxu1 %v8765_v61  ;;  %v14529_v61 = vld [vmem:[#allocation97_spill] sm:$0xff] }
 0x546   :  { %2005 = vmatprep.mubr.f32.mxu0 %v14417_v43  ;;  %2377 = vmatprep.subr.mxu0 %v14344_v5  ;;  %v14527_v5 = vld [vmem:[#allocation5_spill] sm:$0xff] }
 0x547   :  { %1928 = vmatprep.subr.mxu1 %v8802_v26  ;;  %7599 = vmatmul.mubr.msk.f32.vlgmr.msra.gmra.mxu0 %vm1724_vm11, %v9005_v31  ;;  %v14528_v26 = vld [vmem:[#allocation72_spill] sm:$0xff]  ;;  %v14530_v31 = vld [vmem:[#allocation82_spill] sm:$0xff] }
 0x548   :  { %2378 = vmatpush1.msra.mxu0 %v8196_v48  ;;  %1929 = vmatpush2.msra.mxu1 %v8798_v14  ;;  %v14531_v48 = vld [vmem:[#allocation84_spill] sm:$0xff] }
 0x549   :  { %2379 = vmatprep.subr.mxu0 %v8211_v3  ;;  %1930 = vmatprep.subr.mxu1 %v8399_v32  ;;  %v14532_v3 = vld [vmem:[#allocation85_spill] sm:$0xff]  ;;  %v14542_v32 = vld [vmem:[#allocation23_spill] sm:$0xff] }
 0x54a   :  { %2380 = vmatpush1.msra.mxu0 %v8208_v58  ;;  %1931 = vmatpush2.msra.mxu1 %v14525_v24  ;;  %v14533_v58 = vld [vmem:[#allocation87_spill] sm:$0xff]  ;;  %v14534_v24 = vld [vmem:[#allocation89_spill] sm:$0xff] }
 0x54b   :  { %2381 = vmatprep.subr.mxu0 %v14526_v28  ;;  %1932 = vmatprep.subr.mxu1 %v14527_v5  ;;  %v14535_v28 = vld [vmem:[#allocation92_spill] sm:$0xff]  ;;  %v14536_v5 = vld [vmem:[#allocation93_spill] sm:$0xff] }
 0x54c   :  { %2382 = vmatpush1.msra.mxu0 %v14528_v26  ;;  %1933 = vmatpush2.msra.mxu1 %v14529_v61  ;;  %v14537_v26 = vld [vmem:[#allocation94_spill] sm:$0xff] }
 0x54d   :  { %2383 = vmatprep.subr.mxu0 %v14530_v31  ;;  %1935 = vmatmul.mubr.f32.vlgmr.msra.gmra.mxu1 %v1571_v13  ;;  %v14538_v61 = vld [vmem:[#allocation10_spill] sm:$0xff]  ;;  %v14540_v13 = vld [vmem:[#allocation15_spill] sm:$0xff] }
 0x54e   :  { %2384 = vmatpush1.msra.mxu0 %v14531_v48  ;;  %2512 = vmatprep.mubr.f32.mxu1 %v14417_v43  ;;  %v14539_v31 = vld [vmem:[#allocation14_spill] sm:$0xff]  ;;  %v14541_v48 = vld [vmem:[#allocation19_spill] sm:$0xff] }
 0x54f   :  { %2385 = vmatprep.subr.mxu0 %v14532_v3  ;;  %v14543_v3 = vld [vmem:[#allocation27_spill] sm:$0xff] }
 0x550   :  { %2386 = vmatpush1.msra.mxu0 %v14533_v58  ;;  %v14544_v58 = vld [vmem:[#allocation33_spill] sm:$0xff] }
 0x551   :  { %2387 = vmatprep.subr.mxu0 %v14534_v24  ;;  %v14545_v24 = vld [vmem:[#allocation37_spill] sm:$0xff] }
 0x552   :  { %2388 = vmatpush1.msra.mxu0 %v14535_v28  ;;  %v14548_v28 = vld [vmem:[#allocation43_spill] sm:$0xff] }
 0x553   :  { %2389 = vmatprep.subr.mxu0 %v14536_v5  ;;  %v9281_v5 = vld [vmem:[%s13424_s0 + $0x8] sm:$0xff] }
 0x554   :  { %2390 = vmatpush1.msra.mxu0 %v14537_v26  ;;  %14546 = vst [vmem:[#allocation120_spill] sm:$0xff] %v9281_v5  ;;  %v14549_v26 = vld [vmem:[#allocation47_spill] sm:$0xff] }
 0x555   :  { %2391 = vmatprep.subr.mxu0 %v14538_v61  ;;  %v9287_v61 = vld [vmem:[%s13424_s0] sm:$0xff] }
 0x556   :  { %2392 = vmatpush1.msra.mxu0 %v14539_v31  ;;  %v14550_v31 = vld [vmem:[#allocation51_spill] sm:$0xff] }
 0x557   :  { %2393 = vmatprep.subr.mxu0 %v14540_v13  ;;  %v14551_v13 = vld [vmem:[#allocation55_spill] sm:$0xff] }
 0x558   :  { %2394 = vmatpush1.msra.mxu0 %v14541_v48  ;;  %v14552_v48 = vld [vmem:[#allocation59_spill] sm:$0xff] }
 0x559   :  { %2395 = vmatprep.subr.mxu0 %v14542_v32  ;;  %v14547_v32 = vld [vmem:[#allocation41_spill] sm:$0xff] }
 0x55a   :  { %2396 = vmatpush1.msra.mxu0 %v14543_v3  ;;  %v14553_v3 = vld [vmem:[#allocation65_spill] sm:$0xff] }
 0x55b   :  { %2397 = vmatprep.subr.mxu0 %v14544_v58  ;;  %v14554_v58 = vld [vmem:[#allocation69_spill] sm:$0xff] }
 0x55c   :  { %2398 = vmatpush1.msra.mxu0 %v14545_v24  ;;  %v14555_v24 = vld [vmem:[#allocation98_spill] sm:$0xff] }
 0x55d   :  { %2399 = vmatprep.subr.mxu0 %v9281_v5  ;;  %v14556_v5 = vld [vmem:[#allocation76_spill] sm:$0xff] }
 0x55e   :  { %2400 = vmatpush1.msra.mxu0 %v9287_v61 }
 0x55f   :  { %2401 = vmatprep.subr.mxu0 %v14547_v32  ;;  %v14557_v32 = vld [vmem:[#allocation137_spill] sm:$0xff] }
 0x560   :  { %2402 = vmatpush1.msra.mxu0 %v14548_v28  ;;  %v14558_v28 = vld [vmem:[#allocation105_spill] sm:$0xff] }
 0x561   :  { %2403 = vmatprep.subr.mxu0 %v14549_v26  ;;  %v2367_v26 = vld [vmem:[%s13425_s3 + $0x20] sm:$0xff] }
 0x562   :  { %2404 = vmatpush1.msra.mxu0 %v14550_v31 }
 0x563   :  { %2405 = vmatprep.subr.mxu0 %v14551_v13 }
 0x564   :  { %2406 = vmatpush1.msra.mxu0 %v14552_v48 }
 0x565   :  { %2407 = vmatprep.subr.mxu0 %v14553_v3 }
 0x566   :  { %2408 = vmatpush1.msra.mxu0 %v14554_v58 }
 0x567   :  { %2409 = vmatprep.subr.mxu0 %v14555_v24 }
 0x568   :  { %2410 = vmatpush2.msra.mxu0 %v14556_v5  ;;  %v14559_v5 = vld [vmem:[#allocation106_spill] sm:$0xff] }
 0x569   :  { %2411 = vmatprep.subr.mxu0 %v9034_v52 }
 0x56a   :  { %2412 = vmatpush2.msra.mxu0 %v9037_v40  ;;  %v1722_v40 = vpop.permute.xlu0 %1721 }
 0x56b   :  { %2413 = vmatprep.subr.mxu0 %v9043_v55 }
 0x56c   :  { %2414 = vmatpush2.msra.mxu0 %v14557_v32 }
 0x56d   :  { %2415 = vmatprep.subr.mxu0 %v9066_v33 }
 0x56e   :  { %2416 = vmatpush2.msra.mxu0 %v9069_v22  ;;  %v9326_v22 = vld [vmem:[%s13427_s2 + $0x68] sm:$0xff] }
 0x56f   :  { %2417 = vmatprep.subr.mxu0 %v9085_v45  ;;  %2441 = vmatprep.mubr.f32.mxu0 %v9326_v22 }
 0x570   :  { %2418 = vmatpush2.msra.mxu0 %v9080_v12 }
 0x571   :  { %2419 = vmatprep.subr.mxu0 %v8622_v29  ;;  %v9337_v29 = vld [vmem:[%s13427_s2 + $0x60] sm:$0xff] }
 0x572   :  { %2420 = vmatpush2.msra.mxu0 %v14558_v28 }
 0x573   :  { %2421 = vmatprep.subr.mxu0 %v14559_v5 }
 0x574   :  { %2422 = vmatpush2.msra.mxu0 %v14477_v59 }
 0x575   :  { %2423 = vmatprep.subr.mxu0 %v14479_v10 }
 0x576   :  { %2424 = vmatpush2.msra.mxu0 %v14481_v62 }
 0x577   :  { %2425 = vmatprep.subr.mxu0 %v14485_v2 }
 0x578   :  { %2426 = vmatpush2.msra.mxu0 %v14486_v4 }
 0x579   :  { %2427 = vmatprep.subr.mxu0 %v14491_v34 }
 0x57a   :  { %2428 = vmatpush2.msra.mxu0 %v14492_v50 }
 0x57b   :  { %2429 = vmatprep.subr.mxu0 %v14495_v60 }
 0x57c   :  { %2430 = vmatpush2.msra.mxu0 %v8732_v7 }
 0x57d   :  { %2431 = vmatprep.subr.mxu0 %v8742_v35 }
 0x57e   :  { %2432 = vmatpush2.msra.mxu0 %v8745_v36 }
 0x57f   :  { %2433 = vmatprep.subr.mxu0 %v14498_v37 }
 0x580   :  { %2434 = vmatpush2.msra.mxu0 %v8776_v20 }
 0x581   :  { %2435 = vmatprep.subr.mxu0 %v8789_v16 }
 0x582   :  { %2436 = vmatpush2.msra.mxu0 %v8784_v21 }
 0x583   :  { %2437 = vmatprep.subr.mxu0 %v8380_v46 }
 0x584   :  { %2438 = vmatpush2.msra.mxu0 %v8389_v27 }
 0x585   :  { %2439 = vmatprep.subr.mxu0 %v8396_v41 }
 0x586   :  { %2440 = vmatpush2.msra.mxu0 %v8406_v18 }
 0x587   :  { %2442 = vmatmul.mubr.f32.vlgmr.msra.gmra.mxu0 %v9337_v29 }
 0x588   :  { %2654 = vmatprep.mubr.f32.mxu0 %v14417_v43 }
 0x5cc   :  { %v1865_v21 = vpop.f32.mrf.mxu1 }
 0x5ce   :  { %v1867_v18 = vpop.f32.mrf.mxu1 }
 0x5fd   :  { %v1794_v36 = vpop.f32.mrf.mxu0 }
 0x5fe   :  { %v1795_v33 = vadd.f32 %v1794_v36, %v1722_v40 }
 0x5ff   :  { %v1796_v7 = vpop.f32.mrf.mxu0 }
 0x600   :  { %v1866_v46 = vadd.f32 %v1865_v21, %v1795_v33  ;;  %v1797_v62 = vadd.f32 %v1796_v7, %v1722_v40 }
 0x602   :  { %v2012_v27 = vmul.f32 0.2, %v1866_v46  ;;  %v1868_v41 = vadd.f32 %v1867_v18, %v1797_v62  ;;  %v14560_v62 = vld [vmem:[#allocation8_spill] sm:$0xff] }
 0x604   :  { %v9343_v35 = vmax.f32 %v1866_v46, %v2012_v27  ;;  %v2013_v20 = vmul.f32 0.2, %v1868_v41 }
 0x606   :  { %2144 = vrot.lane.b32.xlu0 %v9343_v35, %s7647_s22  ;;  %2164 = vrot.lane.b32.xlu1 %v9343_v35, %s7646_s19  ;;  %v9357_v52 = vmax.f32 %v1868_v41, %v2013_v20  ;;  %v14561_v41 = vld [vmem:[#allocation9_spill] sm:$0xff] }
 0x607   :  { %v2007_v12 = vpop.f32.mrf.mxu0 }
 0x609   :  { %v2009_v34 = vpop.f32.mrf.mxu0 }
 0x60a   :  { %2104 = vrot.lane.b32.xlu0 %v9343_v35, %s7649_s26  ;;  %2124 = vrot.lane.b32.xlu1 %v9343_v35, %s7648_s25 }
 0x60d   :  { %v1936_v16 = vpop.f32.mrf.mxu1 }
 0x60e   :  { %2060 = vrot.lane.b32.xlu0 %v9343_v35, %s7651_s28  ;;  %2080 = vrot.lane.b32.xlu1 %v9343_v35, %s7650_s27  ;;  %v1937_v55 = vadd.f32 %v1936_v16, %v1722_v40 }
 0x60f   :  { %v1938_v10 = vpop.f32.mrf.mxu1 }
 0x610   :  { %v2008_v45 = vadd.f32 %v2007_v12, %v1937_v55  ;;  %v1939_v2 = vadd.f32 %v1938_v10, %v1722_v40 }
 0x612   :  { %2146 = vrot.lane.b32.xlu0 %v9357_v52, %s7647_s22  ;;  %2040 = vrot.lane.b32.xlu1 %v9343_v35, %s7652_s29  ;;  %v2014_v59 = vmul.f32 0.2, %v2008_v45  ;;  %v2010_v4 = vadd.f32 %v2009_v34, %v1939_v2  ;;  %v14562_v2 = vld [vmem:[#allocation11_spill] sm:$0xff] }
 0x614   :  { %v9371_v60 = vmax.f32 %v2008_v45, %v2014_v59  ;;  %v2015_v50 = vmul.f32 0.2, %v2010_v4 }
 0x616   :  { %2106 = vrot.lane.b32.xlu0 %v9357_v52, %s7649_s26  ;;  %2166 = vrot.lane.b32.xlu1 %v9357_v52, %s7646_s19  ;;  %v9385_v37 = vmax.f32 %v2010_v4, %v2015_v50  ;;  %v14563_v4 = vld [vmem:[#allocation18_spill] sm:$0xff] }
 0x61a   :  { %2082 = vrot.lane.b32.xlu0 %v9357_v52, %s7650_s27  ;;  %2126 = vrot.lane.b32.xlu1 %v9357_v52, %s7648_s25 }
 0x61e   :  { %2168 = vrot.lane.b32.xlu0 %v9371_v60, %s7646_s19  ;;  %2062 = vrot.lane.b32.xlu1 %v9357_v52, %s7651_s28 }
 0x622   :  { %2128 = vrot.lane.b32.xlu0 %v9371_v60, %s7648_s25  ;;  %2148 = vrot.lane.b32.xlu1 %v9371_v60, %s7647_s22 }
 0x626   :  { %2042 = vrot.lane.b32.xlu0 %v9357_v52, %s7652_s29  ;;  %2108 = vrot.lane.b32.xlu1 %v9371_v60, %s7649_s26 }
 0x62a   :  { %2020 = vrot.lane.b32.xlu0 %v9343_v35, %s7654_s30  ;;  %2086 = vrot.lane.b32.xlu1 %v9385_v37, %s7650_s27 }
 0x62e   :  { %2066 = vrot.lane.b32.xlu0 %v9385_v37, %s7651_s28  ;;  %2046 = vrot.lane.b32.xlu1 %v9385_v37, %s7652_s29 }
 0x632   :  { %2026 = vrot.lane.b32.xlu0 %v9385_v37, %s7654_s30  ;;  %2022 = vrot.lane.b32.xlu1 %v9357_v52, %s7654_s30 }
 0x636   :  { %2150 = vrot.lane.b32.xlu0 %v9385_v37, %s7647_s22  ;;  %2170 = vrot.lane.b32.xlu1 %v9385_v37, %s7646_s19 }
 0x63a   :  { %2110 = vrot.lane.b32.xlu0 %v9385_v37, %s7649_s26  ;;  %2130 = vrot.lane.b32.xlu1 %v9385_v37, %s7648_s25 }
 0x63e   :  { %2064 = vrot.lane.b32.xlu0 %v9371_v60, %s7651_s28  ;;  %2084 = vrot.lane.b32.xlu1 %v9371_v60, %s7650_s27 }
 0x642   :  { %2024 = vrot.lane.b32.xlu0 %v9371_v60, %s7654_s30  ;;  %2044 = vrot.lane.b32.xlu1 %v9371_v60, %s7652_s29 }
 0x646   :  { %2370 = vperm.xlu1 %7633, %v2367_v26  }
 0x678   :  { %v9418_v31 = vpop.permute.xlu0 %2144  ;;  %v9420_v13 = vpop.permute.xlu1 %2164 }
 0x67c   :  { %v9422_v48 = vpop.permute.xlu0 %2104  ;;  %v9424_v3 = vpop.permute.xlu1 %2124 }
 0x680   :  { %v2061_v58 = vpop.permute.xlu0 %2060  ;;  %v2081_v24 = vpop.permute.xlu1 %2080 }
 0x684   :  { %v2147_v32 = vpop.permute.xlu0 %2146  ;;  %v2041_v28 = vpop.permute.xlu1 %2040 }
 0x685   :  { %v2154_v16 = vsel %vm302_vm1, %v9418_v31, %v2147_v32 }
 0x686   :  { %v2156_v50 = vmul.f32 %v2154_v16, %v14563_v4  ;;  %v14566_v16 = vld [vmem:[#allocation28_spill] sm:$0xff]  ;;  %v14567_v4 = vld [vmem:[#allocation31_spill] sm:$0xff] }
 0x688   :  { %v2107_v5 = vpop.permute.xlu0 %2106  ;;  %v2167_v40 = vpop.permute.xlu1 %2166 }
 0x689   :  { %v2174_v21 = vsel %vm344_vm0, %v9420_v13, %v2167_v40  ;;  %v2114_v26 = vsel %vm218_vm3, %v9422_v48, %v2107_v5 }
 0x68a   :  { %v2176_v20 = vmul.f32 %v2174_v21, %v14561_v41 }
 0x68c   :  { %v9426_v36 = vpop.permute.xlu0 %2082  ;;  %v2127_v33 = vpop.permute.xlu1 %2126 }
 0x68d   :  { %v2134_v10 = vsel %vm260_vm2, %v9424_v3, %v2127_v33 }
 0x690   :  { %v9431_v46 = vpop.permute.xlu0 %2168  ;;  %v9433_v7 = vpop.permute.xlu1 %2062 }
 0x691   :  { %v2173_v27 = vsel %vm344_vm0, %v2167_v40, %v9431_v46 }
 0x692   :  { %v2177_v18 = vmul.f32 %v2173_v27, %v14560_v62  ;;  %v14564_v27 = vld [vmem:[#allocation20_spill] sm:$0xff] }
 0x694   :  { %v9443_v55 = vpop.permute.xlu0 %2128  ;;  %2454 = vmatprep.subr.mxu1 %v2177_v18  ;;  %v2149_v12 = vpop.permute.xlu1 %2148  ;;  %v14565_v18 = vld [vmem:[#allocation26_spill] sm:$0xff] }
 0x695   :  { %v2133_v45 = vsel %vm260_vm2, %v2127_v33, %v9443_v55  ;;  %v2153_v59 = vsel %vm302_vm1, %v2147_v32, %v2149_v12  ;;  %2455 = vmatpush1.msra.mxu1 %v2176_v20  ;;  %v2136_v20 = vmul.f32 %v2134_v10, %v14565_v18  ;;  %v2070_v10 = vsel %vm130_vm5, %v2061_v58, %v9433_v7 }
 0x696   :  { %v2157_v34 = vmul.f32 %v2153_v59, %v14562_v2  ;;  %v2137_v32 = vmul.f32 %v2133_v45, %v14564_v27  ;;  %v2116_v2 = vmul.f32 %v2114_v26, %v14567_v4 }
 0x698   :  { %v9458_v40 = vpop.permute.xlu0 %2042  ;;  %2456 = vmatprep.subr.mxu1 %v2157_v34  ;;  %v9460_v21 = vpop.permute.xlu1 %2108  ;;  %v2090_v34 = vsel %vm172_vm4, %v2081_v24, %v9426_v36 }
 0x699   :  { %v2113_v33 = vsel %vm218_vm3, %v2107_v5, %v9460_v21  ;;  %2457 = vmatpush1.msra.mxu1 %v2156_v50  ;;  %v14568_v50 = vld [vmem:[#allocation42_spill] sm:$0xff] }
 0x69a   :  { %2458 = vmatprep.subr.mxu1 %v2137_v32  ;;  %v2117_v59 = vmul.f32 %v2113_v33, %v14566_v16  ;;  %v14569_v32 = vld [vmem:[#allocation40_spill] sm:$0xff] }
 0x69b   :  { %2459 = vmatpush1.msra.mxu1 %v2136_v20  ;;  %v2093_v33 = vmul.f32 %v2090_v34, %v14569_v32  ;;  %v2050_v20 = vsel %vm88_vm6, %v2041_v28, %v9458_v40  ;;  %v14570_v16 = vld [vmem:[#allocation44_spill] sm:$0xff]  ;;  %v14573_v32 = vld [vmem:[#allocation58_spill] sm:$0xff] }
 0x69c   :  { %v2021_v41 = vpop.permute.xlu0 %2020  ;;  %2460 = vmatprep.subr.mxu1 %v2117_v59  ;;  %v9472_v45 = vpop.permute.xlu1 %2086 }
 0x69d   :  { %v2091_v5 = vsel %vm172_vm4, %v9472_v45, %v2081_v24  ;;  %2461 = vmatpush1.msra.mxu1 %v2116_v2  ;;  %v2073_v24 = vmul.f32 %v2070_v10, %v14570_v16 }
 0x69e   :  { %v2092_v26 = vmul.f32 %v2091_v5, %v14568_v50  ;;  %2462 = vmatprep.subr.mxu1 %v9357_v52  ;;  %v14572_v5 = vld [vmem:[#allocation52_spill] sm:$0xff] }
 0x69f   :  { %2463 = vmatpush1.msra.mxu1 %v9343_v35  ;;  %v14571_v35 = vld [vmem:[#allocation50_spill] sm:$0xff]  ;;  %v2053_v50 = vmul.f32 %v2050_v20, %v14572_v5  ;;  %v14575_v20 = vld [vmem:[#allocation60_spill] sm:$0xff] }
 0x6a0   :  { %v9487_v59 = vpop.permute.xlu0 %2066  ;;  %2464 = vmatprep.subr.mxu1 %v2093_v33  ;;  %v9489_v4 = vpop.permute.xlu1 %2046 }
 0x6a1   :  { %v2071_v2 = vsel %vm130_vm5, %v9487_v59, %v2061_v58  ;;  %v2051_v52 = vsel %vm88_vm6, %v9489_v4, %v2041_v28  ;;  %2465 = vmatpush1.msra.mxu1 %v2092_v26  ;;  %v14574_v26 = vld [vmem:[#allocation63_spill] sm:$0xff] }
 0x6a2   :  { %v2072_v34 = vmul.f32 %v2071_v2, %v14571_v35  ;;  %2466 = vmatprep.subr.mxu1 %v2073_v24  ;;  %v2052_v33 = vmul.f32 %v2051_v52, %v14573_v32 }
 0x6a4   :  { %v9501_v18 = vpop.permute.xlu0 %2026  ;;  %2467 = vmatpush1.msra.mxu1 %v2072_v34  ;;  %v9503_v10 = vpop.permute.xlu1 %2022 }
 0x6a5   :  { %v2031_v58 = vsel %vm46_vm7, %v9501_v18, %v2021_v41  ;;  %v2030_v28 = vsel %vm46_vm7, %v2021_v41, %v9503_v10  ;;  %2468 = vmatprep.subr.mxu1 %v2053_v50 }
 0x6a6   :  { %v2032_v24 = vmul.f32 %v2031_v58, %v14574_v26  ;;  %2469 = vmatpush1.msra.mxu1 %v2052_v33  ;;  %v2033_v2 = vmul.f32 %v2030_v28, %v14575_v20  ;;  %v14576_v33 = vld [vmem:[#allocation130_spill] sm:$0xff]  ;;  %v14578_v26 = vld [vmem:[#allocation132_spill] sm:$0xff] }
 0x6a8   :  { %v2151_v52 = vpop.permute.xlu0 %2150  ;;  %2470 = vmatprep.subr.mxu1 %v2033_v2  ;;  %v2171_v32 = vpop.permute.xlu1 %2170  ;;  %v14577_v2 = vld [vmem:[#allocation129_spill] sm:$0xff] }
 0x6a9   :  { %v2172_v34 = vsel %vm344_vm0, %v9431_v46, %v2171_v32  ;;  %v2175_v5 = vsel %vm344_vm0, %v2171_v32, %v9420_v13  ;;  %2471 = vmatpush1.msra.mxu1 %v2032_v24  ;;  %v2155_v41 = vsel %vm302_vm1, %v2151_v52, %v9418_v31  ;;  %v2152_v28 = vsel %vm302_vm1, %v2149_v12, %v2151_v52  ;;  %v14579_v24 = vld [vmem:[#allocation131_spill] sm:$0xff] }
 0x6aa   :  { %v2178_v50 = vmul.f32 %v2172_v34, %v14508_v47  ;;  %2472 = vmatprep.subr.mxu1 %v14576_v33  ;;  %v2179_v58 = vmul.f32 %v2175_v5, %v14506_v57  ;;  %v2159_v5 = vmul.f32 %v2155_v41, %v14512_v25  ;;  %v2158_v12 = vmul.f32 %v2152_v28, %v14514_v53  ;;  %v14581_v33 = vld [vmem:[#allocation133_spill] sm:$0xff] }
 0x6ab   :  { %2473 = vmatpush1.msra.mxu1 %v14577_v2  ;;  %v9552_v28 = vld [vmem:[%s13427_s2 + $0x70] sm:$0xff] }
 0x6ac   :  { %v2111_v46 = vpop.permute.xlu0 %2110  ;;  %2474 = vmatprep.subr.mxu1 %v14578_v26  ;;  %2596 = vmatprep.subr.mxu0 %v2179_v58  ;;  %v2131_v13 = vpop.permute.xlu1 %2130  ;;  %v14580_v26 = vld [vmem:[#allocation134_spill] sm:$0xff]  ;;  %v14582_v58 = vld [vmem:[#allocation135_spill] sm:$0xff] }
 0x6ad   :  { %v2132_v31 = vsel %vm260_vm2, %v9443_v55, %v2131_v13  ;;  %v2135_v32 = vsel %vm260_vm2, %v2131_v13, %v9424_v3  ;;  %2475 = vmatpush1.msra.mxu1 %v14579_v24  ;;  %2597 = vmatpush1.msra.mxu0 %v2178_v50  ;;  %v2115_v55 = vsel %vm218_vm3, %v2111_v46, %v9422_v48  ;;  %v14583_v48 = vld [vmem:[#allocation136_spill] sm:$0xff] }
 0x6ae   :  { %v2138_v52 = vmul.f32 %v2132_v31, %v14518_v6  ;;  %2476 = vmatprep.subr.mxu1 %v14580_v26  ;;  %v2139_v34 = vmul.f32 %v2135_v32, %v14517_v49  ;;  %2598 = vmatprep.subr.mxu0 %v2159_v5  ;;  %v2112_v3 = vsel %vm218_vm3, %v9460_v21, %v2111_v46  ;;  %v14584_v46 = vld [vmem:[#allocation78_spill] sm:$0xff]  ;;  %v14585_v32 = vld [vmem:[#allocation77_spill] sm:$0xff]  ;;  %v14587_v26 = vld [vmem:[#allocation79_spill] sm:$0xff] }
 0x6af   :  { %2477 = vmatpush1.msra.mxu1 %v14581_v33  ;;  %2599 = vmatpush1.msra.mxu0 %v2158_v12  ;;  %v2119_v2 = vmul.f32 %v2115_v55, %v14521_v42  ;;  %v2118_v13 = vmul.f32 %v2112_v3, %v14522_v30  ;;  %v14586_v12 = vld [vmem:[#allocation80_spill] sm:$0xff]  ;;  %v14589_v55 = vld [vmem:[#allocation45_spill] sm:$0xff]  ;;  %v14590_v3 = vld [vmem:[#allocation74_spill] sm:$0xff] }
 0x6b0   :  { %v2065_v41 = vpop.permute.xlu0 %2064  ;;  %2478 = vmatprep.subr.mxu1 %v14582_v58  ;;  %v2085_v50 = vpop.permute.xlu1 %2084  ;;  %2600 = vmatprep.subr.mxu0 %v2139_v34 }
 0x6b1   :  { %2479 = vmatpush1.msra.mxu1 %v14583_v48  ;;  %2601 = vmatpush1.msra.mxu0 %v2138_v52  ;;  %v2088_v21 = vsel %vm172_vm4, %v2085_v50, %v9472_v45  ;;  %v2089_v31 = vsel %vm172_vm4, %v9426_v36, %v2085_v50  ;;  %v2068_v5 = vsel %vm130_vm5, %v2065_v41, %v9487_v59  ;;  %v14588_v36 = vld [vmem:[#allocation46_spill] sm:$0xff] }
 0x6b2   :  { %7600 = vmatmul.mubr.msk.f32.vlgmr.msra.gmra.mxu1 %vm2373_vm12, %v9552_v28  ;;  %2519 = vmatprep.subr.mxu1 %v14584_v46  ;;  %v2069_v45 = vsel %vm130_vm5, %v9433_v7, %v2065_v41  ;;  %v2095_v34 = vmul.f32 %v2088_v21, %v14588_v36  ;;  %v2094_v33 = vmul.f32 %v2089_v31, %v14589_v55  ;;  %v14595_v21 = vld [vmem:[#allocation86_spill] sm:$0xff]  ;;  %v14596_v46 = vld [vmem:[#allocation64_spill] sm:$0xff] }
 0x6b3   :  { %2602 = vmatprep.subr.mxu0 %v2119_v2  ;;  %2520 = vmatpush1.msra.mxu1 %v14585_v32  ;;  %v2075_v41 = vmul.f32 %v2068_v5, %v14487_v1  ;;  %v2074_v58 = vmul.f32 %v2069_v45, %v14489_v0  ;;  %v14597_v32 = vld [vmem:[#allocation91_spill] sm:$0xff]  ;;  %v14602_v45 = vld [vmem:[#allocation124_spill] sm:$0xff] }
 0x6b4   :  { %v2045_v24 = vpop.permute.xlu1 %2044  ;;  %2603 = vmatpush1.msra.mxu0 %v2118_v13  ;;  %2521 = vmatprep.subr.mxu1 %v14586_v12  ;;  %v2025_v52 = vpop.permute.xlu0 %2024  ;;  %v14594_v13 = vld [vmem:[#allocation88_spill] sm:$0xff]  ;;  %v14600_v5 = vld [vmem:[#allocation119_spill] sm:$0xff] }
 0x6b5   :  { %2604 = vmatprep.subr.mxu0 %v9385_v37  ;;  %2522 = vmatpush1.msra.mxu1 %v14587_v26  ;;  %v2048_v59 = vsel %vm88_vm6, %v2045_v24, %v9489_v4  ;;  %v2049_v7 = vsel %vm88_vm6, %v9458_v40, %v2045_v24  ;;  %v14591_v37 = vld [vmem:[#allocation73_spill] sm:$0xff]  ;;  %v2028_v50 = vsel %vm46_vm7, %v2025_v52, %v9501_v18  ;;  %v14593_v40 = vld [vmem:[#allocation83_spill] sm:$0xff]  ;;  %v14599_v24 = vld [vmem:[#allocation96_spill] sm:$0xff] }
 0x6b6   :  { %2605 = vmatpush1.msra.mxu0 %v9371_v60  ;;  %2523 = vmatprep.subr.mxu1 %v14590_v3  ;;  %v14592_v4 = vld [vmem:[#allocation81_spill] sm:$0xff]  ;;  %v2029_v60 = vsel %vm46_vm7, %v9503_v10, %v2025_v52  ;;  %v2055_v48 = vmul.f32 %v2048_v59, %v14409_v19  ;;  %v2054_v2 = vmul.f32 %v2049_v7, %v14405_v23  ;;  %v14598_v10 = vld [vmem:[#allocation90_spill] sm:$0xff]  ;;  %v14601_v12 = vld [vmem:[#allocation95_spill] sm:$0xff] }
 0x6b7   :  { %2606 = vmatprep.subr.mxu0 %v2095_v34  ;;  %2524 = vmatpush1.msra.mxu1 %v14591_v37  ;;  %v2035_v18 = vmul.f32 %v2028_v50, %v14415_v11  ;;  %v2034_v31 = vmul.f32 %v2029_v60, %v14596_v46  ;;  %v14603_v52 = vld [vmem:[#allocation17_spill] sm:$0xff]  ;;  %v14604_v26 = vld [vmem:[#allocation139_spill] sm:$0xff]  ;;  %v14605_v34 = vld [vmem:[#allocation16_spill] sm:$0xff] }
 0x6b8   :  { %2607 = vmatpush1.msra.mxu0 %v2094_v33  ;;  %2525 = vmatprep.subr.mxu1 %v14592_v4  ;;  %v14606_v33 = vld [vmem:[#allocation25_spill] sm:$0xff]  ;;  %v14607_v59 = vld [vmem:[#allocation24_spill] sm:$0xff]  ;;  %v14608_v3 = vld [vmem:[#allocation35_spill] sm:$0xff] }
 0x6b9   :  { %2608 = vmatprep.subr.mxu0 %v2075_v41  ;;  %2526 = vmatpush1.msra.mxu1 %v14593_v40  ;;  %v14609_v7 = vld [vmem:[#allocation34_spill] sm:$0xff]  ;;  %v14610_v37 = vld [vmem:[#allocation39_spill] sm:$0xff]  ;;  %v14621_v60 = vld [vmem:[#allocation128_spill] sm:$0xff] }
 0x6ba   :  { %2609 = vmatpush1.msra.mxu0 %v2074_v58  ;;  %2527 = vmatprep.subr.mxu1 %v14594_v13  ;;  %v14611_v41 = vld [vmem:[#allocation38_spill] sm:$0xff]  ;;  %v14617_v58 = vld [vmem:[#allocation67_spill] sm:$0xff]  ;;  %v14625_v13 = vld [vmem:[#allocation108_spill] sm:$0xff] }
 0x6bb   :  { %2610 = vmatprep.subr.mxu0 %v2055_v48  ;;  %2528 = vmatpush1.msra.mxu1 %v14595_v21  ;;  %v14619_v50 = vld [vmem:[#allocation71_spill] sm:$0xff]  ;;  %v14620_v4 = vld [vmem:[#allocation70_spill] sm:$0xff]  ;;  %v14626_v21 = vld [vmem:[#allocation109_spill] sm:$0xff] }
 0x6bc   :  { %2611 = vmatpush1.msra.mxu0 %v2054_v2  ;;  %2529 = vmatprep.subr.mxu1 %v14597_v32  ;;  %v14622_v40 = vld [vmem:[#allocation127_spill] sm:$0xff]  ;;  %v14623_v48 = vld [vmem:[#allocation6_spill] sm:$0xff]  ;;  %v14629_v32 = vld [vmem:[#allocation101_spill] sm:$0xff] }
 0x6bd   :  { %2612 = vmatprep.subr.mxu0 %v2035_v18  ;;  %2530 = vmatpush1.msra.mxu1 %v14598_v10  ;;  %v14624_v2 = vld [vmem:[#allocation107_spill] sm:$0xff]  ;;  %v14627_v18 = vld [vmem:[#allocation113_spill] sm:$0xff] }
 0x6be   :  { %2613 = vmatpush1.msra.mxu0 %v2034_v31  ;;  %2531 = vmatprep.subr.mxu1 %v14599_v24  ;;  %v14628_v31 = vld [vmem:[#allocation112_spill] sm:$0xff]  ;;  %v14630_v10 = vld [vmem:[#allocation99_spill] sm:$0xff] }
 0x6bf   :  { %2614 = vmatprep.subr.mxu0 %v14600_v5  ;;  %2532 = vmatpush1.msra.mxu1 %v14601_v12  ;;  %v14631_v24 = vld [vmem:[#allocation104_spill] sm:$0xff]  ;;  %v14632_v5 = vld [vmem:[#allocation103_spill] sm:$0xff] }
 0x6c0   :  { %2615 = vmatpush1.msra.mxu0 %v14602_v45  ;;  %2533 = vmatprep.subr.mxu1 %v14603_v52  ;;  %v14633_v12 = vld [vmem:[#allocation111_spill] sm:$0xff]  ;;  %v14634_v45 = vld [vmem:[#allocation110_spill] sm:$0xff] }
 0x6c1   :  { %2616 = vmatprep.subr.mxu0 %v14604_v26  ;;  %2534 = vmatpush1.msra.mxu1 %v14605_v34  ;;  %v14635_v52 = vld [vmem:[#allocation115_spill] sm:$0xff]  ;;  %v14636_v26 = vld [vmem:[#allocation114_spill] sm:$0xff]  ;;  %v14637_v34 = vld [vmem:[#allocation117_spill] sm:$0xff] }
 0x6c2   :  { %2617 = vmatpush1.msra.mxu0 %v9212_v38  ;;  %2535 = vmatprep.subr.mxu1 %v14606_v33  ;;  %v14612_v38 = vld [vmem:[#allocation138_spill] sm:$0xff]  ;;  %v14638_v33 = vld [vmem:[#allocation116_spill] sm:$0xff] }
 0x6c3   :  { %2618 = vmatprep.subr.mxu0 %v9225_v51  ;;  %2536 = vmatpush1.msra.mxu1 %v14607_v59  ;;  %v14614_v51 = vld [vmem:[#allocation48_spill] sm:$0xff]  ;;  %v14639_v59 = vld [vmem:[#allocation102_spill] sm:$0xff] }
 0x6c4   :  { %2619 = vmatpush1.msra.mxu0 %v9228_v63  ;;  %2537 = vmatprep.subr.mxu1 %v14608_v3  ;;  %v9630_v63 = vld [vmem:[%s13424_s0 + $0x10] sm:$0xff]  ;;  %v14640_v3 = vld [vmem:[#allocation100_spill] sm:$0xff] }
 0x6c5   :  { %2620 = vmatprep.subr.mxu0 %v9235_v15  ;;  %2538 = vmatpush1.msra.mxu1 %v14609_v7  ;;  %v14615_v15 = vld [vmem:[#allocation57_spill] sm:$0xff]  ;;  %v14641_v7 = vld [vmem:[#allocation123_spill] sm:$0xff] }
 0x6c6   :  { %2621 = vmatpush1.msra.mxu0 %v9238_v8  ;;  %2539 = vmatprep.subr.mxu1 %v14610_v37  ;;  %v14613_v8 = vld [vmem:[#allocation49_spill] sm:$0xff]  ;;  %v14642_v37 = vld [vmem:[#allocation126_spill] sm:$0xff] }
 0x6c7   :  { %2540 = vmatpush1.msra.mxu1 %v14611_v41  ;;  %2583 = vmatprep.mubr.f32.mxu1 %v9326_v22  ;;  %v14616_v22 = vld [vmem:[#allocation56_spill] sm:$0xff]  ;;  %v14643_v41 = vld [vmem:[#allocation3_spill] sm:$0xff] }
 0x6c8   :  { %2541 = vmatprep.subr.mxu1 %v14612_v38  ;;  %7601 = vmatmul.mubr.msk.f32.vlgmr.msra.gmra.mxu0 %vm2373_vm12, %v9552_v28  ;;  %v14618_v28 = vld [vmem:[#allocation66_spill] sm:$0xff]  ;;  %v14644_v38 = vld [vmem:[#allocation4_spill] sm:$0xff] }
 0x6c9   :  { %2542 = vmatpush1.msra.mxu1 %v9630_v63  ;;  %2943 = vmatprep.mubr.f32.mxu0 %v14417_v43 }
 0x6ca   :  { %2543 = vmatprep.subr.mxu1 %v14613_v8  ;;  %v14645_v8 = vld [vmem:[#allocation5_spill] sm:$0xff] }
 0x6cb   :  { %2544 = vmatpush1.msra.mxu1 %v14614_v51 }
 0x6cc   :  { %2545 = vmatprep.subr.mxu1 %v14615_v15 }
 0x6cd   :  { %2546 = vmatpush1.msra.mxu1 %v14616_v22 }
 0x6ce   :  { %2547 = vmatprep.subr.mxu1 %v14617_v58 }
 0x6cf   :  { %2548 = vmatpush1.msra.mxu1 %v14618_v28 }
 0x6d0   :  { %2549 = vmatprep.subr.mxu1 %v14619_v50 }
 0x6d1   :  { %2550 = vmatpush1.msra.mxu1 %v14620_v4  ;;  %v14648_v4 = vld [vmem:[#allocation120_spill] sm:$0xff] }
 0x6d2   :  { %2551 = vmatprep.subr.mxu1 %v14621_v60 }
 0x6d3   :  { %2552 = vmatpush2.msra.mxu1 %v14622_v40 }
 0x6d4   :  { %2553 = vmatprep.subr.mxu1 %v14623_v48 }
 0x6d5   :  { %2554 = vmatpush2.msra.mxu1 %v14624_v2 }
 0x6d6   :  { %2555 = vmatprep.subr.mxu1 %v14625_v13 }
 0x6d7   :  { %2556 = vmatpush2.msra.mxu1 %v14626_v21 }
 0x6d8   :  { %2557 = vmatprep.subr.mxu1 %v14627_v18 }
 0x6d9   :  { %2558 = vmatpush2.msra.mxu1 %v14628_v31 }
 0x6da   :  { %2559 = vmatprep.subr.mxu1 %v14629_v32 }
 0x6db   :  { %2560 = vmatpush2.msra.mxu1 %v14630_v10 }
 0x6dc   :  { %2561 = vmatprep.subr.mxu1 %v14631_v24 }
 0x6dd   :  { %2562 = vmatpush2.msra.mxu1 %v14632_v5 }
 0x6de   :  { %2563 = vmatprep.subr.mxu1 %v14633_v12  ;;  %v2870_v12 = vld [vmem:[%s13425_s3 + $0x28] sm:$0xff] }
 0x6df   :  { %2564 = vmatpush2.msra.mxu1 %v14634_v45 }
 0x6e0   :  { %2565 = vmatprep.subr.mxu1 %v14635_v52 }
 0x6e1   :  { %2566 = vmatpush2.msra.mxu1 %v14636_v26 }
 0x6e2   :  { %2567 = vmatprep.subr.mxu1 %v14637_v34 }
 0x6e3   :  { %2568 = vmatpush2.msra.mxu1 %v14638_v33 }
 0x6e4   :  { %2569 = vmatprep.subr.mxu1 %v14639_v59 }
 0x6e5   :  { %2570 = vmatpush2.msra.mxu1 %v14640_v3 }
 0x6e6   :  { %2571 = vmatprep.subr.mxu1 %v14516_v56  ;;  %v14646_v56 = vld [vmem:[#allocation97_spill] sm:$0xff] }
 0x6e7   :  { %2572 = vmatpush2.msra.mxu1 %v14519_v44  ;;  %v2371_v44 = vpop.permute.xlu1 %2370 }
 0x6e8   :  { %2573 = vmatprep.subr.mxu1 %v14520_v54  ;;  %v2443_v54 = vpop.f32.mrf.mxu0 }
 0x6e9   :  { %2574 = vmatpush2.msra.mxu1 %v14523_v39  ;;  %v2444_v39 = vadd.f32 %v2443_v54, %v2371_v44 }
 0x6ea   :  { %2575 = vmatprep.subr.mxu1 %v14524_v17  ;;  %v2445_v17 = vpop.f32.mrf.mxu0 }
 0x6eb   :  { %2576 = vmatpush2.msra.mxu1 %v14641_v7  ;;  %v2446_v58 = vadd.f32 %v2445_v17, %v2371_v44 }
 0x6ec   :  { %2577 = vmatprep.subr.mxu1 %v14642_v37 }
 0x6ed   :  { %2578 = vmatpush2.msra.mxu1 %v8798_v14 }
 0x6ee   :  { %2579 = vmatprep.subr.mxu1 %v14643_v41 }
 0x6ef   :  { %2580 = vmatpush2.msra.mxu1 %v14644_v38 }
 0x6f0   :  { %2581 = vmatprep.subr.mxu1 %v14645_v8 }
 0x6f1   :  { %2582 = vmatpush2.msra.mxu1 %v14646_v56 }
 0x6f2   :  { %2584 = vmatmul.mubr.f32.vlgmr.msra.gmra.mxu1 %v9337_v29 }
 0x6f3   :  { %3014 = vmatprep.mubr.f32.mxu1 %v14417_v43 }
 0x772   :  { %v2514_v51 = vpop.f32.mrf.mxu1 }
 0x773   :  { %v2515_v15 = vadd.f32 %v2514_v51, %v2444_v39 }
 0x774   :  { %v2516_v22 = vpop.f32.mrf.mxu1 }
 0x775   :  { %v2661_v14 = vmul.f32 0.2, %v2515_v15  ;;  %v2517_v50 = vadd.f32 %v2516_v22, %v2446_v58  ;;  %v14653_v58 = vld [vmem:[#allocation9_spill] sm:$0xff] }
 0x777   :  { %v9677_v28 = vadd.f32 %v9287_v61, %v2661_v14  ;;  %v2662_v29 = vmul.f32 0.2, %v2517_v50 }
 0x779   :  { %14647 = vst [vmem:[#allocation118_spill] sm:$0xff] %v9677_v28  ;;  %2709 = vrot.lane.b32.xlu1 %v9677_v28, %s7651_s28  ;;  %2813 = vrot.lane.b32.xlu0 %v9677_v28, %s7646_s19  ;;  %v9688_v60 = vadd.f32 %v14648_v4, %v2662_v29  ;;  %v14655_v4 = vld [vmem:[#allocation11_spill] sm:$0xff] }
 0x77b   :  { %14649 = vst [vmem:[#allocation122_spill] sm:$0xff] %v9688_v60 }
 0x77d   :  { %2689 = vrot.lane.b32.xlu1 %v9677_v28, %s7652_s29  ;;  %2793 = vrot.lane.b32.xlu0 %v9677_v28, %s7647_s22 }
 0x781   :  { %2795 = vrot.lane.b32.xlu1 %v9688_v60, %s7647_s22  ;;  %2773 = vrot.lane.b32.xlu0 %v9677_v28, %s7648_s25 }
 0x785   :  { %2775 = vrot.lane.b32.xlu1 %v9688_v60, %s7648_s25  ;;  %2753 = vrot.lane.b32.xlu0 %v9677_v28, %s7649_s26 }
 0x788   :  { %v2656_v48 = vpop.f32.mrf.mxu0 }
 0x789   :  { %2755 = vrot.lane.b32.xlu1 %v9688_v60, %s7649_s26  ;;  %2729 = vrot.lane.b32.xlu0 %v9677_v28, %s7650_s27 }
 0x78a   :  { %v2658_v32 = vpop.f32.mrf.mxu0 }
 0x78d   :  { %2731 = vrot.lane.b32.xlu1 %v9688_v60, %s7650_s27  ;;  %2815 = vrot.lane.b32.xlu0 %v9688_v60, %s7646_s19 }
 0x791   :  { %2711 = vrot.lane.b32.xlu0 %v9688_v60, %s7651_s28 }
 0x795   :  { %2691 = vrot.lane.b32.xlu0 %v9688_v60, %s7652_s29 }
 0x7b2   :  { %v2585_v61 = vpop.f32.mrf.mxu1 }
 0x7b3   :  { %v2586_v40 = vadd.f32 %v2585_v61, %v2371_v44 }
 0x7b4   :  { %v2587_v13 = vpop.f32.mrf.mxu1 }
 0x7b5   :  { %v2657_v2 = vadd.f32 %v2656_v48, %v2586_v40  ;;  %v2588_v31 = vadd.f32 %v2587_v13, %v2371_v44 }
 0x7b7   :  { %v2663_v21 = vmul.f32 0.2, %v2657_v2  ;;  %v2659_v10 = vadd.f32 %v2658_v32, %v2588_v31  ;;  %v14657_v2 = vld [vmem:[#allocation18_spill] sm:$0xff] }
 0x7b8   :  { %v14660_v32 = vld [vmem:[#allocation26_spill] sm:$0xff] }
 0x7b9   :  { %v9711_v18 = vadd.f32 %v9630_v63, %v2663_v21  ;;  %v2664_v24 = vmul.f32 0.2, %v2659_v10  ;;  %v7641_v63 = vld [vmem:[%s13424_s0 + $0x18] sm:$0xff] }
 0x7bb   :  { %14650 = vst [vmem:[#allocation121_spill] sm:$0xff] %v9711_v18  ;;  %2817 = vrot.lane.b32.xlu1 %v9711_v18, %s7646_s19  ;;  %2797 = vrot.lane.b32.xlu0 %v9711_v18, %s7647_s22  ;;  %v9728_v5 = vadd.f32 %v7641_v63, %v2664_v24 }
 0x7bd   :  { %14651 = vst [vmem:[#allocation125_spill] sm:$0xff] %v9728_v5 }
 0x7bf   :  { %2733 = vrot.lane.b32.xlu1 %v9711_v18, %s7650_s27  ;;  %2777 = vrot.lane.b32.xlu0 %v9711_v18, %s7648_s25 }
 0x7c3   :  { %2713 = vrot.lane.b32.xlu1 %v9711_v18, %s7651_s28  ;;  %2757 = vrot.lane.b32.xlu0 %v9711_v18, %s7649_s26 }
 0x7c7   :  { %2819 = vrot.lane.b32.xlu1 %v9728_v5, %s7646_s19  ;;  %2671 = vrot.lane.b32.xlu0 %v9688_v60, %s7654_s30 }
 0x7cb   :  { %2799 = vrot.lane.b32.xlu1 %v9728_v5, %s7647_s22  ;;  %2735 = vrot.lane.b32.xlu0 %v9728_v5, %s7650_s27 }
 0x7cf   :  { %2779 = vrot.lane.b32.xlu1 %v9728_v5, %s7648_s25  ;;  %2715 = vrot.lane.b32.xlu0 %v9728_v5, %s7651_s28 }
 0x7d3   :  { %2759 = vrot.lane.b32.xlu1 %v9728_v5, %s7649_s26  ;;  %2695 = vrot.lane.b32.xlu0 %v9728_v5, %s7652_s29 }
 0x7d7   :  { %2669 = vrot.lane.b32.xlu1 %v9677_v28, %s7654_s30  ;;  %2675 = vrot.lane.b32.xlu0 %v9728_v5, %s7654_s30 }
 0x7db   :  { %2693 = vrot.lane.b32.xlu1 %v9711_v18, %s7652_s29  ;;  %2873 = vperm.xlu0 %7632, %v2870_v12  }
 0x7df   :  { %2673 = vrot.lane.b32.xlu1 %v9711_v18, %s7654_s30 }
 0x7eb   :  { %v2814_v45 = vpop.permute.xlu0 %2813  ;;  %v9757_v26 = vpop.permute.xlu1 %2709 }
 0x7ef   :  { %v2794_v52 = vpop.permute.xlu0 %2793  ;;  %v9761_v33 = vpop.permute.xlu1 %2689 }
 0x7f3   :  { %v9759_v34 = vpop.permute.xlu0 %2773  ;;  %v2796_v3 = vpop.permute.xlu1 %2795 }
 0x7f4   :  { %v2803_v22 = vsel %vm302_vm1, %v2794_v52, %v2796_v3 }
 0x7f5   :  { %v9795_v13 = vmul.f32 %v2803_v22, %v14657_v2 }
 0x7f7   :  { %v9763_v59 = vpop.permute.xlu0 %2753  ;;  %v2776_v37 = vpop.permute.xlu1 %2775  ;;  %14658 = vst [vmem:[#allocation84_spill] sm:$0xff] %v9795_v13 }
 0x7f8   :  { %v2783_v29 = vsel %vm260_vm2, %v9759_v34, %v2776_v37 }
 0x7f9   :  { %v9805_v10 = vmul.f32 %v2783_v29, %v14660_v32 }
 0x7fb   :  { %v2730_v7 = vpop.permute.xlu0 %2729  ;;  %v2756_v38 = vpop.permute.xlu1 %2755  ;;  %14661 = vst [vmem:[#allocation87_spill] sm:$0xff] %v9805_v10 }
 0x7fc   :  { %v2763_v24 = vsel %vm218_vm3, %v9763_v59, %v2756_v38 }
 0x7ff   :  { %v2816_v41 = vpop.permute.xlu0 %2815  ;;  %v9767_v56 = vpop.permute.xlu1 %2731 }
 0x800   :  { %v2823_v44 = vsel %vm344_vm0, %v2814_v45, %v2816_v41 }
 0x801   :  { %v9783_v50 = vmul.f32 %v2823_v44, %v14653_v58  ;;  %v14664_v44 = vld [vmem:[#allocation31_spill] sm:$0xff] }
 0x803   :  { %v9765_v8 = vpop.permute.xlu0 %2711  ;;  %14654 = vst [vmem:[#allocation72_spill] sm:$0xff] %v9783_v50 }
 0x807   :  { %v9769_v54 = vpop.permute.xlu0 %2691 }
 0x82d   :  { %v2818_v39 = vpop.permute.xlu1 %2817  ;;  %v2798_v17 = vpop.permute.xlu0 %2797 }
 0x82e   :  { %v2822_v51 = vsel %vm344_vm0, %v2816_v41, %v2818_v39  ;;  %v2802_v15 = vsel %vm302_vm1, %v2796_v3, %v2798_v17 }
 0x82f   :  { %v9780_v14 = vmul.f32 %v2822_v51, %v14560_v62  ;;  %v9789_v61 = vmul.f32 %v2802_v15, %v14655_v4  ;;  %v9821_v51 = vmul.f32 %v2763_v24, %v14664_v44  ;;  %v2739_v15 = vsel %vm172_vm4, %v2730_v7, %v9767_v56 }
 0x831   :  { %14652 = vst [vmem:[#allocation75_spill] sm:$0xff] %v9780_v14  ;;  %14656 = vst [vmem:[#allocation82_spill] sm:$0xff] %v9789_v61  ;;  %v9791_v40 = vpop.permute.xlu1 %2733  ;;  %2893 = vmatprep.subr.mxu0 %v9780_v14  ;;  %v2778_v48 = vpop.permute.xlu0 %2777 }
 0x832   :  { %v2782_v21 = vsel %vm260_vm2, %v2776_v37, %v2778_v48  ;;  %2894 = vmatpush1.msra.mxu0 %v9783_v50  ;;  %v14662_v37 = vld [vmem:[#allocation28_spill] sm:$0xff]  ;;  %14665 = vst [vmem:[#allocation92_spill] sm:$0xff] %v9821_v51 }
 0x833   :  { %v9801_v31 = vmul.f32 %v2782_v21, %v14564_v27  ;;  %2895 = vmatprep.subr.mxu0 %v9789_v61 }
 0x834   :  { %2896 = vmatpush1.msra.mxu0 %v9795_v13 }
 0x835   :  { %14659 = vst [vmem:[#allocation85_spill] sm:$0xff] %v9801_v31  ;;  %v9811_v63 = vpop.permute.xlu1 %2713  ;;  %2897 = vmatprep.subr.mxu0 %v9801_v31  ;;  %v2758_v12 = vpop.permute.xlu0 %2757 }
 0x836   :  { %v2762_v3 = vsel %vm218_vm3, %v2756_v38, %v2758_v12  ;;  %2898 = vmatpush1.msra.mxu0 %v9805_v10 }
 0x837   :  { %v9818_v41 = vmul.f32 %v2762_v3, %v14662_v37  ;;  %v14666_v3 = vld [vmem:[#allocation40_spill] sm:$0xff] }
 0x838   :  { %v9835_v24 = vmul.f32 %v2739_v15, %v14666_v3 }
 0x839   :  { %14663 = vst [vmem:[#allocation89_spill] sm:$0xff] %v9818_v41  ;;  %v2820_v22 = vpop.permute.xlu1 %2819  ;;  %2899 = vmatprep.subr.mxu0 %v9818_v41  ;;  %v9827_v29 = vpop.permute.xlu0 %2671 }
 0x83a   :  { %v2821_v38 = vsel %vm344_vm0, %v2818_v39, %v2820_v22  ;;  %v2824_v21 = vsel %vm344_vm0, %v2820_v22, %v2814_v45  ;;  %2900 = vmatpush1.msra.mxu0 %v9821_v51  ;;  %14667 = vst [vmem:[#allocation93_spill] sm:$0xff] %v9835_v24  ;;  %v2719_v45 = vsel %vm130_vm5, %v9757_v26, %v9765_v8 }
 0x83b   :  { %v9838_v43 = vmul.f32 %v2821_v38, %v14508_v47  ;;  %v9841_v2 = vmul.f32 %v2824_v21, %v14506_v57  ;;  %2901 = vmatprep.subr.mxu0 %v9688_v60  ;;  %v14672_v57 = vld [vmem:[#allocation42_spill] sm:$0xff]  ;;  %v9868_v62 = vmul.f32 %v2719_v45, %v14570_v16 }
 0x83c   :  { %2902 = vmatpush1.msra.mxu0 %v9677_v28 }
 0x83d   :  { %14668 = vst [vmem:[#allocation94_spill] sm:$0xff] %v9838_v43  ;;  %14669 = vst [vmem:[#allocation10_spill] sm:$0xff] %v9841_v2  ;;  %v2800_v39 = vpop.permute.xlu1 %2799  ;;  %2903 = vmatprep.subr.mxu0 %v9835_v24  ;;  %2964 = vmatprep.subr.mxu1 %v9841_v2  ;;  %v2736_v15 = vpop.permute.xlu0 %2735 }
 0x83e   :  { %v2801_v22 = vsel %vm302_vm1, %v2798_v17, %v2800_v39  ;;  %v2804_v38 = vsel %vm302_vm1, %v2800_v39, %v2794_v52  ;;  %v2740_v21 = vsel %vm172_vm4, %v2736_v15, %v2730_v7  ;;  %2965 = vmatpush1.msra.mxu1 %v9838_v43  ;;  %14674 = vst [vmem:[#allocation23_spill] sm:$0xff] %v9868_v62 }
 0x83f   :  { %v9859_v4 = vmul.f32 %v2801_v22, %v14514_v53  ;;  %v9862_v47 = vmul.f32 %v2804_v38, %v14512_v25  ;;  %v9865_v58 = vmul.f32 %v2740_v21, %v14672_v57  ;;  %v2699_v52 = vsel %vm88_vm6, %v9761_v33, %v9769_v54 }
 0x841   :  { %14670 = vst [vmem:[#allocation14_spill] sm:$0xff] %v9859_v4  ;;  %14671 = vst [vmem:[#allocation15_spill] sm:$0xff] %v9862_v47  ;;  %v2780_v7 = vpop.permute.xlu1 %2779  ;;  %2904 = vmatpush1.msra.mxu0 %v9865_v58  ;;  %2966 = vmatprep.subr.mxu1 %v9862_v47  ;;  %v2716_v17 = vpop.permute.xlu0 %2715 }
 0x842   :  { %14673 = vst [vmem:[#allocation19_spill] sm:$0xff] %v9865_v58  ;;  %v2781_v39 = vsel %vm260_vm2, %v2778_v48, %v2780_v7  ;;  %v2784_v22 = vsel %vm260_vm2, %v2780_v7, %v9759_v34  ;;  %v2720_v45 = vsel %vm130_vm5, %v2716_v17, %v9757_v26  ;;  %2905 = vmatprep.subr.mxu0 %v9868_v62  ;;  %v14678_v48 = vld [vmem:[#allocation52_spill] sm:$0xff] }
 0x843   :  { %v9886_v38 = vmul.f32 %v2781_v39, %v14518_v6  ;;  %v9889_v21 = vmul.f32 %v2784_v22, %v14517_v49  ;;  %v9892_v53 = vmul.f32 %v2720_v45, %v14571_v35  ;;  %2967 = vmatpush1.msra.mxu1 %v9859_v4  ;;  %v9896_v25 = vmul.f32 %v2699_v52, %v14678_v48 }
 0x845   :  { %14675 = vst [vmem:[#allocation27_spill] sm:$0xff] %v9886_v38  ;;  %14676 = vst [vmem:[#allocation33_spill] sm:$0xff] %v9889_v21  ;;  %v2760_v34 = vpop.permute.xlu1 %2759  ;;  %2906 = vmatpush1.msra.mxu0 %v9892_v53  ;;  %2968 = vmatprep.subr.mxu1 %v9889_v21  ;;  %v2696_v26 = vpop.permute.xlu0 %2695 }
 0x846   :  { %14677 = vst [vmem:[#allocation37_spill] sm:$0xff] %v9892_v53  ;;  %14679 = vst [vmem:[#allocation41_spill] sm:$0xff] %v9896_v25  ;;  %v2761_v7 = vsel %vm218_vm3, %v2758_v12, %v2760_v34  ;;  %v2764_v39 = vsel %vm218_vm3, %v2760_v34, %v9763_v59  ;;  %v2700_v22 = vsel %vm88_vm6, %v2696_v26, %v9761_v33  ;;  %2907 = vmatprep.subr.mxu0 %v9896_v25  ;;  %v14682_v53 = vld [vmem:[#allocation58_spill] sm:$0xff] }
 0x847   :  { %2969 = vmatpush1.msra.mxu1 %v9886_v38  ;;  %v9911_v52 = vmul.f32 %v2761_v7, %v14522_v30  ;;  %v9914_v45 = vmul.f32 %v2764_v39, %v14521_v42  ;;  %v9917_v12 = vmul.f32 %v2700_v22, %v14682_v53  ;;  %v2737_v59 = vsel %vm172_vm4, %v9791_v40, %v2736_v15 }
 0x848   :  { %v2738_v33 = vsel %vm172_vm4, %v9767_v56, %v9791_v40  ;;  %v2717_v39 = vsel %vm130_vm5, %v9811_v63, %v2716_v17  ;;  %v2718_v56 = vsel %vm130_vm5, %v9765_v8, %v9811_v63  ;;  %v9942_v40 = vmul.f32 %v2737_v59, %v14588_v36  ;;  %v14686_v17 = vld [vmem:[#allocation63_spill] sm:$0xff]  ;;  %v2833_v8 = vld [vmem:[%s13427_s2 + $0x78] sm:$0xff] }
 0x849   :  { %14680 = vst [vmem:[#allocation43_spill] sm:$0xff] %v9911_v52  ;;  %14681 = vst [vmem:[#allocation47_spill] sm:$0xff] %v9914_v45  ;;  %v2670_v34 = vpop.permute.xlu1 %2669  ;;  %2908 = vmatpush1.msra.mxu0 %v9917_v12  ;;  %2970 = vmatprep.subr.mxu1 %v9914_v45  ;;  %v2676_v7 = vpop.permute.xlu0 %2675  ;;  %v9959_v63 = vmul.f32 %v2717_v39, %v14487_v1 }
 0x84a   :  { %14683 = vst [vmem:[#allocation51_spill] sm:$0xff] %v9917_v12  ;;  %v2679_v22 = vsel %vm46_vm7, %v2670_v34, %v9827_v29  ;;  %v2680_v15 = vsel %vm46_vm7, %v2676_v7, %v2670_v34  ;;  %2971 = vmatpush1.msra.mxu1 %v9911_v52  ;;  %14684 = vst [vmem:[#allocation55_spill] sm:$0xff] %v9942_v40  ;;  %v9952_v34 = vmul.f32 %v2738_v33, %v14589_v55 }
 0x84b   :  { %v9945_v12 = vmul.f32 %v2679_v22, %v14575_v20  ;;  %v9948_v25 = vmul.f32 %v2680_v15, %v14686_v17  ;;  %2972 = vmatprep.subr.mxu1 %v9728_v5  ;;  %14689 = vst [vmem:[#allocation98_spill] sm:$0xff] %v9959_v63  ;;  %v9964_v22 = vmul.f32 %v2718_v56, %v14489_v0 }
 0x84c   :  { %14688 = vst [vmem:[#allocation69_spill] sm:$0xff] %v9952_v34  ;;  %2973 = vmatpush1.msra.mxu1 %v9711_v18 }
 0x84d   :  { %14685 = vst [vmem:[#allocation59_spill] sm:$0xff] %v9945_v12  ;;  %14687 = vst [vmem:[#allocation65_spill] sm:$0xff] %v9948_v25  ;;  %v2694_v59 = vpop.permute.xlu1 %2693  ;;  %2909 = vmatprep.subr.mxu0 %v9945_v12  ;;  %2974 = vmatprep.subr.mxu1 %v9942_v40 }
 0x84e   :  { %14690 = vst [vmem:[#allocation76_spill] sm:$0xff] %v9964_v22  ;;  %v2697_v33 = vsel %vm88_vm6, %v2694_v59, %v2696_v26  ;;  %v2698_v15 = vsel %vm88_vm6, %v9769_v54, %v2694_v59  ;;  %2910 = vmatpush1.msra.mxu0 %v9948_v25  ;;  %2975 = vmatpush1.msra.mxu1 %v9952_v34 }
 0x84f   :  { %v9974_v39 = vmul.f32 %v2698_v15, %v14405_v23  ;;  %v9977_v12 = vmul.f32 %v2697_v33, %v14409_v19  ;;  %7602 = vmatmul.mubr.msk.f32.vlgmr.msra.gmra.mxu0 %vm421_vm8, %v2833_v8  ;;  %2976 = vmatprep.subr.mxu1 %v9959_v63 }
 0x850   :  { %2977 = vmatpush1.msra.mxu1 %v9964_v22 }
 0x851   :  { %14691 = vst [vmem:[#allocation137_spill] sm:$0xff] %v9974_v39  ;;  %14692 = vst [vmem:[#allocation105_spill] sm:$0xff] %v9977_v12  ;;  %v2674_v26 = vpop.permute.xlu1 %2673  ;;  %2978 = vmatprep.subr.mxu1 %v9977_v12 }
 0x852   :  { %v2677_v54 = vsel %vm46_vm7, %v2674_v26, %v2676_v7  ;;  %v2678_v56 = vsel %vm46_vm7, %v9827_v29, %v2674_v26  ;;  %2979 = vmatpush1.msra.mxu1 %v9974_v39 }
 0x853   :  { %v9990_v59 = vmul.f32 %v2678_v56, %v14596_v46  ;;  %v9993_v33 = vmul.f32 %v2677_v54, %v14415_v11 }
 0x855   :  { %14693 = vst [vmem:[#allocation106_spill] sm:$0xff] %v9990_v59  ;;  %14694 = vst [vmem:[#allocation130_spill] sm:$0xff] %v9993_v33  ;;  %2980 = vmatprep.subr.mxu1 %v9993_v33 }
 0x856   :  { %2981 = vmatpush1.msra.mxu1 %v9990_v59  ;;  %v2874_v15 = vpop.permute.xlu0 %2873 }
 0x857   :  { %7603 = vmatmul.mubr.msk.f32.vlgmr.msra.gmra.mxu1 %vm421_vm8, %v2833_v8 }
 0x90f   :  { %v2945_v7 = vpop.f32.mrf.mxu0 }
 0x910   :  { %v2946_v25 = vadd.f32 %v2945_v7, %v2874_v15 }
 0x911   :  { %v2947_v29 = vpop.f32.mrf.mxu0 }
 0x912   :  { %v3021_v12 = vmul.f32 0.2, %v2946_v25  ;;  %v2948_v54 = vadd.f32 %v2947_v29, %v2874_v15 }
 0x914   :  { %v9998_v22 = vmax.f32 %v2946_v25, %v3021_v12  ;;  %v3022_v8 = vmul.f32 0.2, %v2948_v54 }
 0x916   :  { %14695 = vst [vmem:[#allocation129_spill] sm:$0xff] %v9998_v22  ;;  %3069 = vrot.lane.b32.xlu0 %v9998_v22, %s7651_s28  ;;  %3133 = vrot.lane.b32.xlu1 %v9998_v22, %s7648_s25  ;;  %v10014_v12 = vmax.f32 %v2948_v54, %v3022_v8  ;;  %v3267_v54 = vld [vmem:[%s13425_s3 + $0x30] sm:$0xff] }
 0x917   :  { %v3016_v26 = vpop.f32.mrf.mxu1 }
 0x918   :  { %v3017_v56 = vadd.f32 %v3016_v26, %v2874_v15  ;;  %14697 = vst [vmem:[#allocation131_spill] sm:$0xff] %v10014_v12 }
 0x919   :  { %v3018_v7 = vpop.f32.mrf.mxu1 }
 0x91a   :  { %v3023_v33 = vmul.f32 0.2, %v3017_v56  ;;  %3049 = vrot.lane.b32.xlu0 %v9998_v22, %s7652_s29  ;;  %3113 = vrot.lane.b32.xlu1 %v9998_v22, %s7649_s26 }
 0x91c   :  { %v10008_v25 = vmax.f32 %v3017_v56, %v3023_v33  ;;  %v3019_v33 = vadd.f32 %v3018_v7, %v2874_v15  ;;  %v3194_v15 = vld [vmem:[%s13427_s2 + $0x98] sm:$0xff] }
 0x91d   :  { %7604 = vmatprep.mubr.msk.f32.mxu0 %vm819_vm9, %v3194_v15  ;;  %7605 = vmatprep.mubr.msk.f32.mxu1 %vm819_vm9, %v3194_v15 }
 0x91e   :  { %14696 = vst [vmem:[#allocation132_spill] sm:$0xff] %v10008_v25  ;;  %3137 = vrot.lane.b32.xlu0 %v10008_v25, %s7648_s25  ;;  %3089 = vrot.lane.b32.xlu1 %v9998_v22, %s7650_s27  ;;  %v3024_v29 = vmul.f32 0.2, %v3019_v33 }
 0x920   :  { %v10032_v26 = vmax.f32 %v3019_v33, %v3024_v29 }
 0x922   :  { %3115 = vrot.lane.b32.xlu0 %v10014_v12, %s7649_s26  ;;  %3135 = vrot.lane.b32.xlu1 %v10014_v12, %s7648_s25  ;;  %14698 = vst [vmem:[#allocation134_spill] sm:$0xff] %v10032_v26 }
 0x926   :  { %3091 = vrot.lane.b32.xlu0 %v10014_v12, %s7650_s27  ;;  %3117 = vrot.lane.b32.xlu1 %v10008_v25, %s7649_s26 }
 0x92a   :  { %3093 = vrot.lane.b32.xlu0 %v10008_v25, %s7650_s27  ;;  %3071 = vrot.lane.b32.xlu1 %v10014_v12, %s7651_s28 }
 0x92e   :  { %3073 = vrot.lane.b32.xlu0 %v10008_v25, %s7651_s28  ;;  %3051 = vrot.lane.b32.xlu1 %v10014_v12, %s7652_s29 }
 0x932   :  { %3139 = vrot.lane.b32.xlu0 %v10032_v26, %s7648_s25  ;;  %3031 = vrot.lane.b32.xlu1 %v10014_v12, %s7654_s30 }
 0x936   :  { %3119 = vrot.lane.b32.xlu0 %v10032_v26, %s7649_s26  ;;  %3095 = vrot.lane.b32.xlu1 %v10032_v26, %s7650_s27 }
 0x93a   :  { %3029 = vrot.lane.b32.xlu0 %v9998_v22, %s7654_s30  ;;  %3075 = vrot.lane.b32.xlu1 %v10032_v26, %s7651_s28 }
 0x93e   :  { %3053 = vrot.lane.b32.xlu0 %v10008_v25, %s7652_s29  ;;  %3055 = vrot.lane.b32.xlu1 %v10032_v26, %s7652_s29 }
 0x942   :  { %3033 = vrot.lane.b32.xlu0 %v10008_v25, %s7654_s30  ;;  %3035 = vrot.lane.b32.xlu1 %v10032_v26, %s7654_s30 }
 0x946   :  { %3177 = vrot.lane.b32.xlu0 %v10008_v25, %s7646_s19  ;;  %3175 = vrot.lane.b32.xlu1 %v10014_v12, %s7646_s19 }
 0x94a   :  { %3155 = vrot.lane.b32.xlu0 %v10014_v12, %s7647_s22  ;;  %3173 = vrot.lane.b32.xlu1 %v9998_v22, %s7646_s19 }
 0x94e   :  { %3179 = vrot.lane.b32.xlu0 %v10032_v26, %s7646_s19  ;;  %3157 = vrot.lane.b32.xlu1 %v10008_v25, %s7647_s22 }
 0x952   :  { %3159 = vrot.lane.b32.xlu0 %v10032_v26, %s7647_s22  ;;  %3153 = vrot.lane.b32.xlu1 %v9998_v22, %s7647_s22 }
 0x956   :  { %3270 = vperm.xlu1 %7633, %v3267_v54  }
 0x988   :  { %v3070_v56 = vpop.permute.xlu0 %3069  ;;  %v3134_v8 = vpop.permute.xlu1 %3133 }
 0x98c   :  { %v10078_v7 = vpop.permute.xlu0 %3049  ;;  %v3114_v33 = vpop.permute.xlu1 %3113 }
 0x990   :  { %v3138_v29 = vpop.permute.xlu0 %3137  ;;  %v3090_v59 = vpop.permute.xlu1 %3089 }
 0x994   :  { %v3116_v39 = vpop.permute.xlu0 %3115  ;;  %v3136_v15 = vpop.permute.xlu1 %3135 }
 0x995   :  { %v3142_v63 = vsel %vm260_vm2, %v3136_v15, %v3138_v29  ;;  %v3143_v34 = vsel %vm260_vm2, %v3134_v8, %v3136_v15  ;;  %v3123_v40 = vsel %vm218_vm3, %v3114_v33, %v3116_v39 }
 0x996   :  { %v10085_v62 = vmul.f32 %v3143_v34, %v14660_v32  ;;  %v10088_v54 = vmul.f32 %v3142_v63, %v14564_v27  ;;  %v10100_v34 = vmul.f32 %v3123_v40, %v14664_v44 }
 0x998   :  { %14699 = vst [vmem:[#allocation133_spill] sm:$0xff] %v10088_v54  ;;  %v3092_v58 = vpop.permute.xlu0 %3091  ;;  %3276 = vmatprep.subr.mxu0 %v10088_v54  ;;  %v3118_v18 = vpop.permute.xlu1 %3117  ;;  %14701 = vst [vmem:[#allocation136_spill] sm:$0xff] %v10100_v34 }
 0x999   :  { %v3122_v24 = vsel %vm218_vm3, %v3116_v39, %v3118_v18  ;;  %3277 = vmatpush1.msra.mxu0 %v10085_v62  ;;  %v3099_v63 = vsel %vm172_vm4, %v3090_v59, %v3092_v58 }
 0x99a   :  { %v10097_v15 = vmul.f32 %v3122_v24, %v14662_v37  ;;  %v10107_v54 = vmul.f32 %v3099_v63, %v14666_v3 }
 0x99c   :  { %14700 = vst [vmem:[#allocation135_spill] sm:$0xff] %v10097_v15  ;;  %v3094_v32 = vpop.permute.xlu0 %3093  ;;  %3278 = vmatprep.subr.mxu0 %v10097_v15  ;;  %v3072_v27 = vpop.permute.xlu1 %3071  ;;  %14702 = vst [vmem:[#allocation78_spill] sm:$0xff] %v10107_v54 }
 0x99d   :  { %3279 = vmatpush1.msra.mxu0 %v10100_v34  ;;  %v3079_v3 = vsel %vm130_vm5, %v3070_v56, %v3072_v27 }
 0x99e   :  { %3280 = vmatprep.subr.mxu0 %v10014_v12 }
 0x99f   :  { %3281 = vmatpush1.msra.mxu0 %v9998_v22 }
 0x9a0   :  { %v3074_v24 = vpop.permute.xlu0 %3073  ;;  %3282 = vmatprep.subr.mxu0 %v10107_v54  ;;  %v3052_v40 = vpop.permute.xlu1 %3051 }
 0x9a4   :  { %v3140_v39 = vpop.permute.xlu0 %3139  ;;  %v3032_v44 = vpop.permute.xlu1 %3031 }
 0x9a5   :  { %v3141_v37 = vsel %vm260_vm2, %v3138_v29, %v3140_v39  ;;  %v3144_v15 = vsel %vm260_vm2, %v3140_v39, %v3134_v8 }
 0x9a6   :  { %v10117_v34 = vmul.f32 %v3141_v37, %v14518_v6  ;;  %v10120_v63 = vmul.f32 %v3144_v15, %v14517_v49  ;;  %v10142_v49 = vmul.f32 %v3079_v3, %v14570_v16  ;;  %v3078_v3 = vsel %vm130_vm5, %v3072_v27, %v3074_v24 }
 0x9a8   :  { %14703 = vst [vmem:[#allocation77_spill] sm:$0xff] %v10117_v34  ;;  %14704 = vst [vmem:[#allocation80_spill] sm:$0xff] %v10120_v63  ;;  %v3120_v22 = vpop.permute.xlu0 %3119  ;;  %3347 = vmatprep.subr.mxu1 %v10120_v63  ;;  %v3096_v54 = vpop.permute.xlu1 %3095 }
 0x9a9   :  { %v3121_v12 = vsel %vm218_vm3, %v3118_v18, %v3120_v22  ;;  %v3124_v29 = vsel %vm218_vm3, %v3120_v22, %v3114_v33  ;;  %v3100_v37 = vsel %vm172_vm4, %v3096_v54, %v3090_v59  ;;  %3348 = vmatpush1.msra.mxu1 %v10117_v34  ;;  %14708 = vst [vmem:[#allocation81_spill] sm:$0xff] %v10142_v49 }
 0x9aa   :  { %v10133_v8 = vmul.f32 %v3121_v12, %v14522_v30  ;;  %v10136_v15 = vmul.f32 %v3124_v29, %v14521_v42  ;;  %v10139_v39 = vmul.f32 %v3100_v37, %v14672_v57  ;;  %v3097_v18 = vsel %vm172_vm4, %v3094_v32, %v3096_v54  ;;  %v14730_v57 = vld [vmem:[#allocation41_spill] sm:$0xff]  ;;  %v14731_v30 = vld [vmem:[#allocation76_spill] sm:$0xff] }
 0x9ab   :  { %v3098_v22 = vsel %vm172_vm4, %v3092_v58, %v3094_v32  ;;  %v3059_v59 = vsel %vm88_vm6, %v10078_v7, %v3052_v40  ;;  %v10162_v58 = vmul.f32 %v3097_v18, %v14588_v36  ;;  %v14728_v36 = vld [vmem:[#allocation37_spill] sm:$0xff] }
 0x9ac   :  { %14705 = vst [vmem:[#allocation79_spill] sm:$0xff] %v10133_v8  ;;  %14706 = vst [vmem:[#allocation74_spill] sm:$0xff] %v10136_v15  ;;  %v3030_v12 = vpop.permute.xlu0 %3029  ;;  %3283 = vmatpush1.msra.mxu0 %v10139_v39  ;;  %3349 = vmatprep.subr.mxu1 %v10136_v15  ;;  %v3076_v33 = vpop.permute.xlu1 %3075  ;;  %v10169_v27 = vmul.f32 %v3098_v22, %v14589_v55 }
 0x9ad   :  { %14707 = vst [vmem:[#allocation73_spill] sm:$0xff] %v10139_v39  ;;  %v3077_v29 = vsel %vm130_vm5, %v3074_v24, %v3076_v33  ;;  %v3080_v54 = vsel %vm130_vm5, %v3076_v33, %v3070_v56  ;;  %3284 = vmatprep.subr.mxu0 %v10142_v49  ;;  %3350 = vmatpush1.msra.mxu1 %v10133_v8  ;;  %14709 = vst [vmem:[#allocation83_spill] sm:$0xff] %v10162_v58 }
 0x9ae   :  { %v10165_v32 = vmul.f32 %v3080_v54, %v14571_v35  ;;  %3351 = vmatprep.subr.mxu1 %v10032_v26  ;;  %14711 = vst [vmem:[#allocation86_spill] sm:$0xff] %v10169_v27  ;;  %v10172_v24 = vmul.f32 %v3059_v59, %v14678_v48  ;;  %v10176_v56 = vmul.f32 %v3078_v3, %v14489_v0  ;;  %v14729_v35 = vld [vmem:[#allocation98_spill] sm:$0xff] }
 0x9af   :  { %3352 = vmatpush1.msra.mxu1 %v10008_v25  ;;  %v3039_v37 = vsel %vm46_vm7, %v3030_v12, %v3032_v44  ;;  %v10181_v18 = vmul.f32 %v3077_v29, %v14487_v1 }
 0x9b0   :  { %14710 = vst [vmem:[#allocation88_spill] sm:$0xff] %v10165_v32  ;;  %14712 = vst [vmem:[#allocation91_spill] sm:$0xff] %v10172_v24  ;;  %v3054_v33 = vpop.permute.xlu0 %3053  ;;  %3285 = vmatpush1.msra.mxu0 %v10165_v32  ;;  %3353 = vmatprep.subr.mxu1 %v10162_v58  ;;  %v3056_v22 = vpop.permute.xlu1 %3055 }
 0x9b1   :  { %14713 = vst [vmem:[#allocation90_spill] sm:$0xff] %v10176_v56  ;;  %14714 = vst [vmem:[#allocation96_spill] sm:$0xff] %v10181_v18  ;;  %v3058_v59 = vsel %vm88_vm6, %v3052_v40, %v3054_v33  ;;  %v3057_v54 = vsel %vm88_vm6, %v3054_v33, %v3056_v22  ;;  %v3060_v3 = vsel %vm88_vm6, %v3056_v22, %v10078_v7  ;;  %3286 = vmatprep.subr.mxu0 %v10172_v24 }
 0x9b2   :  { %3354 = vmatpush1.msra.mxu1 %v10169_v27  ;;  %v10195_v29 = vmul.f32 %v3058_v59, %v14405_v23  ;;  %v10198_v1 = vmul.f32 %v3060_v3, %v14682_v53  ;;  %v10201_v0 = vmul.f32 %v3057_v54, %v14409_v19  ;;  %v10205_v40 = vmul.f32 %v3039_v37, %v14575_v20  ;;  %v14726_v19 = vld [vmem:[#allocation23_spill] sm:$0xff]  ;;  %v14727_v53 = vld [vmem:[#allocation69_spill] sm:$0xff] }
 0x9b3   :  { %3355 = vmatprep.subr.mxu1 %v10181_v18 }
 0x9b4   :  { %14715 = vst [vmem:[#allocation119_spill] sm:$0xff] %v10195_v29  ;;  %14716 = vst [vmem:[#allocation95_spill] sm:$0xff] %v10198_v1  ;;  %3356 = vmatpush1.msra.mxu1 %v10176_v56  ;;  %v3034_v7 = vpop.permute.xlu0 %3033  ;;  %3287 = vmatpush1.msra.mxu0 %v10198_v1  ;;  %v3036_v33 = vpop.permute.xlu1 %3035 }
 0x9b5   :  { %14717 = vst [vmem:[#allocation124_spill] sm:$0xff] %v10201_v0  ;;  %14718 = vst [vmem:[#allocation17_spill] sm:$0xff] %v10205_v40  ;;  %3357 = vmatprep.subr.mxu1 %v10201_v0  ;;  %v3038_v22 = vsel %vm46_vm7, %v3032_v44, %v3034_v7  ;;  %v3037_v59 = vsel %vm46_vm7, %v3034_v7, %v3036_v33  ;;  %v3040_v54 = vsel %vm46_vm7, %v3036_v33, %v3030_v12 }
 0x9b6   :  { %3288 = vmatprep.subr.mxu0 %v10205_v40  ;;  %3358 = vmatpush1.msra.mxu1 %v10195_v29  ;;  %v10219_v37 = vmul.f32 %v3038_v22, %v14596_v46  ;;  %v10222_v3 = vmul.f32 %v3040_v54, %v14686_v17  ;;  %v10225_v20 = vmul.f32 %v3037_v59, %v14415_v11  ;;  %v14722_v54 = vld [vmem:[#allocation93_spill] sm:$0xff]  ;;  %v14724_v17 = vld [vmem:[#allocation19_spill] sm:$0xff] }
 0x9b7   :  { %v14723_v11 = vld [vmem:[#allocation121_spill] sm:$0xff]  ;;  %v14725_v46 = vld [vmem:[#allocation55_spill] sm:$0xff] }
 0x9b8   :  { %14719 = vst [vmem:[#allocation139_spill] sm:$0xff] %v10219_v37  ;;  %14720 = vst [vmem:[#allocation16_spill] sm:$0xff] %v10222_v3  ;;  %v3178_v44 = vpop.permute.xlu0 %3177  ;;  %3289 = vmatpush1.msra.mxu0 %v10222_v3  ;;  %3359 = vmatprep.subr.mxu1 %v10225_v20  ;;  %v3176_v7 = vpop.permute.xlu1 %3175 }
 0x9b9   :  { %14721 = vst [vmem:[#allocation25_spill] sm:$0xff] %v10225_v20  ;;  %3290 = vmatprep.subr.mxu0 %v9780_v14  ;;  %3360 = vmatpush1.msra.mxu1 %v10219_v37  ;;  %v3182_v23 = vsel %vm344_vm0, %v3176_v7, %v3178_v44 }
 0x9ba   :  { %3291 = vmatpush1.msra.mxu0 %v9783_v50  ;;  %3361 = vmatprep.subr.mxu1 %v9841_v2 }
 0x9bb   :  { %3292 = vmatprep.subr.mxu0 %v9789_v61  ;;  %3362 = vmatpush1.msra.mxu1 %v9838_v43 }
 0x9bc   :  { %v3156_v12 = vpop.permute.xlu0 %3155  ;;  %3293 = vmatpush1.msra.mxu0 %v9795_v13  ;;  %3363 = vmatprep.subr.mxu1 %v9862_v47  ;;  %v3174_v33 = vpop.permute.xlu1 %3173 }
 0x9bd   :  { %3294 = vmatprep.subr.mxu0 %v9801_v31  ;;  %3364 = vmatpush1.msra.mxu1 %v9859_v4  ;;  %v3183_v16 = vsel %vm344_vm0, %v3174_v33, %v3176_v7 }
 0x9be   :  { %3295 = vmatpush1.msra.mxu0 %v9805_v10  ;;  %3365 = vmatprep.subr.mxu1 %v9889_v21 }
 0x9bf   :  { %3296 = vmatprep.subr.mxu0 %v9818_v41  ;;  %3366 = vmatpush1.msra.mxu1 %v9886_v38 }
 0x9c0   :  { %v3180_v22 = vpop.permute.xlu0 %3179  ;;  %3297 = vmatpush1.msra.mxu0 %v9821_v51  ;;  %3367 = vmatprep.subr.mxu1 %v9914_v45  ;;  %v3158_v59 = vpop.permute.xlu1 %3157 }
 0x9c1   :  { %3298 = vmatprep.subr.mxu0 %v9688_v60  ;;  %3368 = vmatpush1.msra.mxu1 %v9911_v52  ;;  %v3184_v42 = vsel %vm344_vm0, %v3180_v22, %v3174_v33  ;;  %v3181_v6 = vsel %vm344_vm0, %v3178_v44, %v3180_v22  ;;  %v14737_v44 = vld [vmem:[#allocation9_spill] sm:$0xff] }
 0x9c2   :  { %3299 = vmatpush1.msra.mxu0 %v9677_v28  ;;  %3369 = vmatprep.subr.mxu1 %v9728_v5  ;;  %v10281_v22 = vmul.f32 %v3183_v16, %v14737_v44  ;;  %v14745_v16 = vld [vmem:[#allocation106_spill] sm:$0xff] }
 0x9c3   :  { %3300 = vmatprep.subr.mxu0 %v14722_v54  ;;  %3370 = vmatpush1.msra.mxu1 %v14723_v11  ;;  %v14746_v44 = vld [vmem:[#allocation18_spill] sm:$0xff] }
 0x9c4   :  { %3301 = vmatpush1.msra.mxu0 %v14724_v17  ;;  %3371 = vmatprep.subr.mxu1 %v14725_v46  ;;  %v3160_v48 = vpop.permute.xlu0 %3159  ;;  %v3154_v55 = vpop.permute.xlu1 %3153  ;;  %v14738_v17 = vld [vmem:[#allocation13_spill] sm:$0xff] }
 0x9c5   :  { %3302 = vmatprep.subr.mxu0 %v14726_v19  ;;  %3372 = vmatpush1.msra.mxu1 %v14727_v53  ;;  %v3162_v53 = vsel %vm302_vm1, %v3156_v12, %v3158_v59  ;;  %v14732_v19 = vld [vmem:[#allocation51_spill] sm:$0xff]  ;;  %v3163_v7 = vsel %vm302_vm1, %v3154_v55, %v3156_v12  ;;  %v3164_v33 = vsel %vm302_vm1, %v3160_v48, %v3154_v55  ;;  %v14742_v12 = vld [vmem:[#allocation12_spill] sm:$0xff] }
 0x9c6   :  { %3303 = vmatpush1.msra.mxu0 %v14728_v36  ;;  %3373 = vmatprep.subr.mxu1 %v14729_v35  ;;  %v14733_v36 = vld [vmem:[#allocation105_spill] sm:$0xff]  ;;  %v14734_v35 = vld [vmem:[#allocation8_spill] sm:$0xff]  ;;  %v10291_v11 = vmul.f32 %v3181_v6, %v14742_v12  ;;  %v14744_v55 = vld [vmem:[#allocation11_spill] sm:$0xff] }
 0x9c7   :  { %3304 = vmatprep.subr.mxu0 %v14730_v57  ;;  %3374 = vmatpush1.msra.mxu1 %v14731_v30  ;;  %v10272_v46 = vmul.f32 %v3182_v23, %v14734_v35  ;;  %v14735_v30 = vld [vmem:[#allocation59_spill] sm:$0xff]  ;;  %v14736_v57 = vld [vmem:[#allocation137_spill] sm:$0xff]  ;;  %v3161_v23 = vsel %vm302_vm1, %v3158_v59, %v3160_v48 }
 0x9c8   :  { %3305 = vmatpush1.msra.mxu0 %v14732_v19  ;;  %3375 = vmatprep.subr.mxu1 %v14733_v36  ;;  %v10284_v19 = vmul.f32 %v3184_v42, %v14738_v17  ;;  %v14740_v35 = vld [vmem:[#allocation65_spill] sm:$0xff]  ;;  %v14741_v36 = vld [vmem:[#allocation130_spill] sm:$0xff]  ;;  %14743 = vst [vmem:[#allocation35_spill] sm:$0xff] %v10291_v11  ;;  %v10299_v42 = vmul.f32 %v3163_v7, %v14746_v44  ;;  %v14752_v7 = vld [vmem:[#allocation135_spill] sm:$0xff] }
 0x9c9   :  { %3306 = vmatprep.subr.mxu0 %v14735_v30  ;;  %3376 = vmatpush1.msra.mxu1 %v14736_v57  ;;  %v10294_v30 = vmul.f32 %v3162_v53, %v14744_v55  ;;  %v14747_v17 = vld [vmem:[#allocation22_spill] sm:$0xff]  ;;  %v3193_v6 = vld [vmem:[%s13427_s2 + $0x90] sm:$0xff] }
 0x9ca   :  { %14739 = vst [vmem:[#allocation24_spill] sm:$0xff] %v10284_v19  ;;  %3307 = vmatpush1.msra.mxu0 %v14740_v35  ;;  %3377 = vmatprep.subr.mxu1 %v14741_v36  ;;  %v10302_v9 = vmul.f32 %v3164_v33, %v14747_v17  ;;  %v14749_v53 = vld [vmem:[#allocation21_spill] sm:$0xff]  ;;  %v14753_v33 = vld [vmem:[#allocation136_spill] sm:$0xff] }
 0x9cb   :  { %3336 = vmatprep.subr.mxu0 %v10272_v46  ;;  %3378 = vmatpush1.msra.mxu1 %v14745_v16  ;;  %v10310_v48 = vmul.f32 %v3161_v23, %v14749_v53  ;;  %v14751_v59 = vld [vmem:[#allocation133_spill] sm:$0xff]  ;;  %v14754_v23 = vld [vmem:[#allocation131_spill] sm:$0xff] }
 0x9cc   :  { %14748 = vst [vmem:[#allocation34_spill] sm:$0xff] %v10302_v9  ;;  %3337 = vmatpush2.msra.mxu0 %v10281_v22  ;;  %3407 = vmatprep.subr.mxu1 %v10284_v19 }
 0x9cd   :  { %14750 = vst [vmem:[#allocation39_spill] sm:$0xff] %v10310_v48  ;;  %3338 = vmatprep.subr.mxu0 %v10294_v30  ;;  %3408 = vmatpush2.msra.mxu1 %v10291_v11 }
 0x9ce   :  { %3339 = vmatpush2.msra.mxu0 %v10299_v42  ;;  %3409 = vmatprep.subr.mxu1 %v10302_v9 }
 0x9cf   :  { %3341 = vmatmul.mubr.f32.vlgmr.msra.gmra.mxu0 %v3193_v6  ;;  %3410 = vmatpush2.msra.mxu1 %v10310_v48  ;;  %v14755_v48 = vld [vmem:[#allocation129_spill] sm:$0xff] }
 0x9d0   :  { %3709 = vmatprep.subr.mxu0 %v14751_v59  ;;  %3412 = vmatmul.mubr.f32.vlgmr.msra.gmra.mxu1 %v3193_v6  ;;  %v14756_v6 = vld [vmem:[#allocation78_spill] sm:$0xff] }
 0x9d1   :  { %3710 = vmatpush1.msra.mxu0 %v10085_v62  ;;  %3780 = vmatprep.subr.mxu1 %v10120_v63  ;;  %v14772_v63 = vld [vmem:[#allocation9_spill] sm:$0xff] }
 0x9d2   :  { %3711 = vmatprep.subr.mxu0 %v14752_v7  ;;  %3781 = vmatpush1.msra.mxu1 %v10117_v34 }
 0x9d3   :  { %3712 = vmatpush1.msra.mxu0 %v14753_v33  ;;  %3782 = vmatprep.subr.mxu1 %v10136_v15 }
 0x9d4   :  { %3713 = vmatprep.subr.mxu0 %v14754_v23  ;;  %3783 = vmatpush1.msra.mxu1 %v10133_v8 }
 0x9d5   :  { %3714 = vmatpush1.msra.mxu0 %v14755_v48  ;;  %3784 = vmatprep.subr.mxu1 %v10032_v26 }
 0x9d6   :  { %3715 = vmatprep.subr.mxu0 %v14756_v6  ;;  %3785 = vmatpush1.msra.mxu1 %v10008_v25 }
 0x9d7   :  { %3716 = vmatpush1.msra.mxu0 %v10139_v39  ;;  %3786 = vmatprep.subr.mxu1 %v10162_v58 }
 0x9d8   :  { %3717 = vmatprep.subr.mxu0 %v10142_v49  ;;  %3787 = vmatpush1.msra.mxu1 %v10169_v27 }
 0x9d9   :  { %3718 = vmatpush1.msra.mxu0 %v10165_v32  ;;  %3788 = vmatprep.subr.mxu1 %v10181_v18 }
 0x9da   :  { %3719 = vmatprep.subr.mxu0 %v10172_v24  ;;  %3789 = vmatpush1.msra.mxu1 %v10176_v56 }
 0x9db   :  { %3720 = vmatpush1.msra.mxu0 %v10198_v1  ;;  %3790 = vmatprep.subr.mxu1 %v10201_v0 }
 0x9dc   :  { %3721 = vmatprep.subr.mxu0 %v10205_v40  ;;  %3791 = vmatpush1.msra.mxu1 %v10195_v29 }
 0x9dd   :  { %3722 = vmatpush1.msra.mxu0 %v10222_v3  ;;  %3792 = vmatprep.subr.mxu1 %v10225_v20  ;;  %v14767_v20 = vld [vmem:[#allocation105_spill] sm:$0xff] }
 0x9de   :  { %3723 = vmatprep.subr.mxu0 %v9780_v14  ;;  %3793 = vmatpush1.msra.mxu1 %v10219_v37  ;;  %v14765_v37 = vld [vmem:[#allocation76_spill] sm:$0xff] }
 0x9df   :  { %3724 = vmatpush1.msra.mxu0 %v9783_v50  ;;  %3794 = vmatprep.subr.mxu1 %v9841_v2  ;;  %v14763_v2 = vld [vmem:[#allocation98_spill] sm:$0xff] }
 0x9e0   :  { %3725 = vmatprep.subr.mxu0 %v9789_v61  ;;  %3795 = vmatpush1.msra.mxu1 %v9838_v43  ;;  %v14761_v43 = vld [vmem:[#allocation69_spill] sm:$0xff] }
 0x9e1   :  { %3726 = vmatpush1.msra.mxu0 %v9795_v13  ;;  %3796 = vmatprep.subr.mxu1 %v9862_v47  ;;  %v14759_v47 = vld [vmem:[#allocation55_spill] sm:$0xff] }
 0x9e2   :  { %3727 = vmatprep.subr.mxu0 %v9801_v31  ;;  %3797 = vmatpush1.msra.mxu1 %v9859_v4  ;;  %v14757_v4 = vld [vmem:[#allocation121_spill] sm:$0xff] }
 0x9e3   :  { %3728 = vmatpush1.msra.mxu0 %v9805_v10  ;;  %3798 = vmatprep.subr.mxu1 %v9889_v21  ;;  %v14758_v21 = vld [vmem:[#allocation19_spill] sm:$0xff] }
 0x9e4   :  { %3729 = vmatprep.subr.mxu0 %v9818_v41  ;;  %3799 = vmatpush1.msra.mxu1 %v9886_v38  ;;  %v14760_v38 = vld [vmem:[#allocation23_spill] sm:$0xff] }
 0x9e5   :  { %3730 = vmatpush1.msra.mxu0 %v9821_v51  ;;  %3800 = vmatprep.subr.mxu1 %v9914_v45  ;;  %v14762_v45 = vld [vmem:[#allocation37_spill] sm:$0xff] }
 0x9e6   :  { %3731 = vmatprep.subr.mxu0 %v9688_v60  ;;  %3801 = vmatpush1.msra.mxu1 %v9911_v52  ;;  %v14764_v52 = vld [vmem:[#allocation41_spill] sm:$0xff] }
 0x9e7   :  { %3732 = vmatpush1.msra.mxu0 %v9677_v28  ;;  %3802 = vmatprep.subr.mxu1 %v9728_v5  ;;  %v14766_v5 = vld [vmem:[#allocation51_spill] sm:$0xff] }
 0x9e8   :  { %3733 = vmatprep.subr.mxu0 %v14722_v54  ;;  %3803 = vmatpush1.msra.mxu1 %v14757_v4  ;;  %v14768_v4 = vld [vmem:[#allocation59_spill] sm:$0xff] }
 0x9e9   :  { %3734 = vmatpush1.msra.mxu0 %v14758_v21  ;;  %3804 = vmatprep.subr.mxu1 %v14759_v47 }
 0x9ea   :  { %3735 = vmatprep.subr.mxu0 %v14760_v38  ;;  %3805 = vmatpush1.msra.mxu1 %v14761_v43  ;;  %v3271_v43 = vpop.permute.xlu1 %3270 }
 0x9eb   :  { %3736 = vmatpush1.msra.mxu0 %v14762_v45  ;;  %3806 = vmatprep.subr.mxu1 %v14763_v2 }
 0x9ec   :  { %3737 = vmatprep.subr.mxu0 %v14764_v52  ;;  %3807 = vmatpush1.msra.mxu1 %v14765_v37 }
 0x9ed   :  { %3738 = vmatpush1.msra.mxu0 %v14766_v5  ;;  %3808 = vmatprep.subr.mxu1 %v14767_v20 }
 0x9ee   :  { %3739 = vmatprep.subr.mxu0 %v14768_v4  ;;  %3809 = vmatpush1.msra.mxu1 %v14736_v57  ;;  %v14774_v4 = vld [vmem:[#allocation8_spill] sm:$0xff] }
 0x9ef   :  { %3740 = vmatpush1.msra.mxu0 %v14740_v35  ;;  %3810 = vmatprep.subr.mxu1 %v14741_v36 }
 0x9f0   :  { %3811 = vmatpush1.msra.mxu1 %v14745_v16 }
 0xa8f   :  { %v3342_v2 = vpop.f32.mrf.mxu0 }
 0xa90   :  { %v3343_v47 = vadd.f32 %v3342_v2, %v3271_v43  ;;  %v3413_v29 = vpop.f32.mrf.mxu1 }
 0xa91   :  { %v3414_v56 = vadd.f32 %v3413_v29, %v3271_v43  ;;  %v3344_v18 = vpop.f32.mrf.mxu0  ;;  %v3700_v29 = vld [vmem:[%s13425_s3 + $0x38] sm:$0xff] }
 0xa92   :  { %v3418_v0 = vmul.f32 0.2, %v3343_v47  ;;  %v3345_v20 = vadd.f32 %v3344_v18, %v3271_v43 }
 0xa93   :  { %v3420_v57 = vmul.f32 0.2, %v3414_v56 }
 0xa94   :  { %v10381_v37 = vmax.f32 %v3343_v47, %v3418_v0  ;;  %v3419_v0 = vmul.f32 0.2, %v3345_v20 }
 0xa95   :  { %v10391_v2 = vmax.f32 %v3414_v56, %v3420_v57  ;;  %v3415_v57 = vpop.f32.mrf.mxu1 }
 0xa96   :  { %3466 = vrot.lane.b32.xlu1 %v10381_v37, %s7651_s28  ;;  %3570 = vrot.lane.b32.xlu0 %v10381_v37, %s7646_s19  ;;  %v10397_v47 = vmax.f32 %v3345_v20, %v3419_v0  ;;  %v3416_v20 = vadd.f32 %v3415_v57, %v3271_v43  ;;  %v3591_v43 = vld [vmem:[%s13427_s2 + $0xb0] sm:$0xff] }
 0xa97   :  { %14769 = vst [vmem:[#allocation38_spill] sm:$0xff] %v10391_v2  ;;  %7606 = vmatprep.mubr.msk.f32.mxu0 %vm1253_vm10, %v3591_v43  ;;  %7607 = vmatprep.mubr.msk.f32.mxu1 %vm1253_vm10, %v3591_v43 }
 0xa98   :  { %v3421_v56 = vmul.f32 0.2, %v3416_v20 }
 0xa9a   :  { %3446 = vrot.lane.b32.xlu1 %v10381_v37, %s7652_s29  ;;  %3550 = vrot.lane.b32.xlu0 %v10381_v37, %s7647_s22  ;;  %v10423_v18 = vmax.f32 %v3416_v20, %v3421_v56 }
 0xa9c   :  { %14770 = vst [vmem:[#allocation138_spill] sm:$0xff] %v10423_v18 }
 0xa9e   :  { %3574 = vrot.lane.b32.xlu1 %v10391_v2, %s7646_s19  ;;  %3530 = vrot.lane.b32.xlu0 %v10381_v37, %s7648_s25 }
 0xaa2   :  { %3552 = vrot.lane.b32.xlu1 %v10397_v47, %s7647_s22  ;;  %3510 = vrot.lane.b32.xlu0 %v10381_v37, %s7649_s26 }
 0xaa6   :  { %3532 = vrot.lane.b32.xlu1 %v10397_v47, %s7648_s25  ;;  %3486 = vrot.lane.b32.xlu0 %v10381_v37, %s7650_s27 }
 0xaaa   :  { %3512 = vrot.lane.b32.xlu1 %v10397_v47, %s7649_s26  ;;  %3572 = vrot.lane.b32.xlu0 %v10397_v47, %s7646_s19 }
 0xaae   :  { %3488 = vrot.lane.b32.xlu1 %v10397_v47, %s7650_s27  ;;  %3554 = vrot.lane.b32.xlu0 %v10391_v2, %s7647_s22 }
 0xab2   :  { %3490 = vrot.lane.b32.xlu1 %v10391_v2, %s7650_s27  ;;  %3534 = vrot.lane.b32.xlu0 %v10391_v2, %s7648_s25 }
 0xab6   :  { %3470 = vrot.lane.b32.xlu1 %v10391_v2, %s7651_s28  ;;  %3514 = vrot.lane.b32.xlu0 %v10391_v2, %s7649_s26 }
 0xaba   :  { %3576 = vrot.lane.b32.xlu1 %v10423_v18, %s7646_s19  ;;  %3468 = vrot.lane.b32.xlu0 %v10397_v47, %s7651_s28 }
 0xabe   :  { %3556 = vrot.lane.b32.xlu1 %v10423_v18, %s7647_s22  ;;  %3448 = vrot.lane.b32.xlu0 %v10397_v47, %s7652_s29 }
 0xac2   :  { %3536 = vrot.lane.b32.xlu1 %v10423_v18, %s7648_s25  ;;  %3428 = vrot.lane.b32.xlu0 %v10397_v47, %s7654_s30 }
 0xac6   :  { %3516 = vrot.lane.b32.xlu1 %v10423_v18, %s7649_s26  ;;  %3492 = vrot.lane.b32.xlu0 %v10423_v18, %s7650_s27 }
 0xaca   :  { %3426 = vrot.lane.b32.xlu1 %v10381_v37, %s7654_s30  ;;  %3472 = vrot.lane.b32.xlu0 %v10423_v18, %s7651_s28 }
 0xace   :  { %3450 = vrot.lane.b32.xlu1 %v10391_v2, %s7652_s29  ;;  %3452 = vrot.lane.b32.xlu0 %v10423_v18, %s7652_s29 }
 0xad2   :  { %3430 = vrot.lane.b32.xlu1 %v10391_v2, %s7654_s30  ;;  %3432 = vrot.lane.b32.xlu0 %v10423_v18, %s7654_s30 }
 0xad6   :  { %3703 = vperm.xlu0 %7632, %v3700_v29  }
 0xb08   :  { %v10461_v0 = vpop.permute.xlu1 %3466  ;;  %v3571_v57 = vpop.permute.xlu0 %3570 }
 0xb0c   :  { %v10463_v20 = vpop.permute.xlu1 %3446  ;;  %v3551_v56 = vpop.permute.xlu0 %3550 }
 0xb10   :  { %v3575_v43 = vpop.permute.xlu1 %3574  ;;  %v3531_v16 = vpop.permute.xlu0 %3530 }
 0xb14   :  { %v3553_v36 = vpop.permute.xlu1 %3552  ;;  %v10465_v27 = vpop.permute.xlu0 %3510 }
 0xb15   :  { %v3560_v52 = vsel %vm302_vm1, %v3551_v56, %v3553_v36 }
 0xb18   :  { %v3533_v58 = vpop.permute.xlu1 %3532  ;;  %v10467_v25 = vpop.permute.xlu0 %3486 }
 0xb1c   :  { %v3513_v26 = vpop.permute.xlu1 %3512  ;;  %v3573_v8 = vpop.permute.xlu0 %3572 }
 0xb1d   :  { %v3579_v34 = vsel %vm344_vm0, %v3573_v8, %v3575_v43  ;;  %v3580_v29 = vsel %vm344_vm0, %v3571_v57, %v3573_v8 }
 0xb1e   :  { %v10474_v35 = vmul.f32 %v3580_v29, %v14772_v63  ;;  %v10477_v5 = vmul.f32 %v3579_v34, %v14774_v4  ;;  %v10491_v29 = vmul.f32 %v3560_v52, %v14746_v44  ;;  %v3540_v34 = vsel %vm260_vm2, %v3531_v16, %v3533_v58 }
 0xb1f   :  { %v3520_v52 = vsel %vm218_vm3, %v10465_v27, %v3513_v26 }
 0xb20   :  { %14773 = vst [vmem:[#allocation49_spill] sm:$0xff] %v10474_v35  ;;  %14775 = vst [vmem:[#allocation48_spill] sm:$0xff] %v10477_v5  ;;  %v10481_v45 = vpop.permute.xlu1 %3488  ;;  %3751 = vmatprep.subr.mxu0 %v10477_v5  ;;  %v3555_v38 = vpop.permute.xlu0 %3554 }
 0xb21   :  { %v3559_v21 = vsel %vm302_vm1, %v3553_v36, %v3555_v38  ;;  %3752 = vmatpush2.msra.mxu0 %v10474_v35  ;;  %14777 = vst [vmem:[#allocation56_spill] sm:$0xff] %v10491_v29  ;;  %v14778_v36 = vld [vmem:[#allocation20_spill] sm:$0xff] }
 0xb22   :  { %v10488_v8 = vmul.f32 %v3559_v21, %v14744_v55  ;;  %v14780_v21 = vld [vmem:[#allocation26_spill] sm:$0xff] }
 0xb23   :  { %v10503_v55 = vmul.f32 %v3540_v34, %v14780_v21  ;;  %v3496_v34 = vsel %vm172_vm4, %v10467_v25, %v10481_v45 }
 0xb24   :  { %14776 = vst [vmem:[#allocation57_spill] sm:$0xff] %v10488_v8  ;;  %v3491_v4 = vpop.permute.xlu1 %3490  ;;  %3753 = vmatprep.subr.mxu0 %v10488_v8  ;;  %v3535_v63 = vpop.permute.xlu0 %3534 }
 0xb25   :  { %v3539_v5 = vsel %vm260_vm2, %v3533_v58, %v3535_v63  ;;  %3754 = vmatpush2.msra.mxu0 %v10491_v29  ;;  %14781 = vst [vmem:[#allocation66_spill] sm:$0xff] %v10503_v55  ;;  %v14782_v58 = vld [vmem:[#allocation28_spill] sm:$0xff] }
 0xb26   :  { %v10500_v35 = vmul.f32 %v3539_v5, %v14778_v36  ;;  %v14784_v5 = vld [vmem:[#allocation31_spill] sm:$0xff] }
 0xb27   :  { %v10516_v36 = vmul.f32 %v3520_v52, %v14784_v5  ;;  %v14786_v52 = vld [vmem:[#allocation40_spill] sm:$0xff]  ;;  %v14787_v5 = vld [vmem:[#allocation13_spill] sm:$0xff] }
 0xb28   :  { %14779 = vst [vmem:[#allocation67_spill] sm:$0xff] %v10500_v35  ;;  %v3471_v44 = vpop.permute.xlu1 %3470  ;;  %3755 = vmatprep.subr.mxu0 %v10500_v35  ;;  %v3515_v8 = vpop.permute.xlu0 %3514 }
 0xb29   :  { %v3519_v54 = vsel %vm218_vm3, %v3513_v26, %v3515_v8  ;;  %3756 = vmatpush2.msra.mxu0 %v10503_v55 }
 0xb2a   :  { %v10513_v29 = vmul.f32 %v3519_v54, %v14782_v58  ;;  %v10533_v58 = vmul.f32 %v3496_v34, %v14786_v52 }
 0xb2c   :  { %14783 = vst [vmem:[#allocation71_spill] sm:$0xff] %v10513_v29  ;;  %v3577_v21 = vpop.permute.xlu1 %3576  ;;  %3757 = vmatprep.subr.mxu0 %v10513_v29  ;;  %v3469_v35 = vpop.permute.xlu0 %3468 }
 0xb2d   :  { %v3578_v26 = vsel %vm344_vm0, %v3575_v43, %v3577_v21  ;;  %v3581_v55 = vsel %vm344_vm0, %v3577_v21, %v3571_v57  ;;  %3758 = vmatpush2.msra.mxu0 %v10516_v36 }
 0xb2e   :  { %v10529_v54 = vmul.f32 %v3578_v26, %v14742_v12  ;;  %3759 = vmatprep.subr.mxu0 %v10397_v47  ;;  %v10536_v28 = vmul.f32 %v3581_v55, %v14787_v5 }
 0xb2f   :  { %3760 = vmatpush2.msra.mxu0 %v10381_v37 }
 0xb30   :  { %14785 = vst [vmem:[#allocation70_spill] sm:$0xff] %v10529_v54  ;;  %14788 = vst [vmem:[#allocation128_spill] sm:$0xff] %v10536_v28  ;;  %v3557_v29 = vpop.permute.xlu1 %3556  ;;  %3761 = vmatprep.subr.mxu0 %v10533_v58  ;;  %3822 = vmatprep.subr.mxu1 %v10536_v28  ;;  %v3449_v57 = vpop.permute.xlu0 %3448  ;;  %v14814_v28 = vld [vmem:[#allocation61_spill] sm:$0xff] }
 0xb31   :  { %v3558_v43 = vsel %vm302_vm1, %v3555_v38, %v3557_v29  ;;  %v3561_v21 = vsel %vm302_vm1, %v3557_v29, %v3551_v56  ;;  %3823 = vmatpush2.msra.mxu1 %v10529_v54  ;;  %v14791_v56 = vld [vmem:[#allocation29_spill] sm:$0xff]  ;;  %v14801_v54 = vld [vmem:[#allocation44_spill] sm:$0xff] }
 0xb32   :  { %v10547_v34 = vmul.f32 %v3558_v43, %v14749_v53  ;;  %v10550_v55 = vmul.f32 %v3561_v21, %v14747_v17  ;;  %v14793_v43 = vld [vmem:[#allocation30_spill] sm:$0xff]  ;;  %v3476_v21 = vsel %vm130_vm5, %v10461_v0, %v3469_v35 }
 0xb34   :  { %14789 = vst [vmem:[#allocation127_spill] sm:$0xff] %v10547_v34  ;;  %14790 = vst [vmem:[#allocation6_spill] sm:$0xff] %v10550_v55  ;;  %v3537_v26 = vpop.permute.xlu1 %3536  ;;  %3824 = vmatprep.subr.mxu1 %v10550_v55  ;;  %v3429_v12 = vpop.permute.xlu0 %3428 }
 0xb35   :  { %v3538_v5 = vsel %vm260_vm2, %v3535_v63, %v3537_v26  ;;  %v3541_v38 = vsel %vm260_vm2, %v3537_v26, %v3531_v16  ;;  %3825 = vmatpush2.msra.mxu1 %v10547_v34  ;;  %v14795_v26 = vld [vmem:[#allocation32_spill] sm:$0xff] }
 0xb36   :  { %v10559_v29 = vmul.f32 %v3538_v5, %v14791_v56  ;;  %v10562_v53 = vmul.f32 %v3541_v38, %v14793_v43  ;;  %v14797_v56 = vld [vmem:[#allocation42_spill] sm:$0xff] }
 0xb38   :  { %14792 = vst [vmem:[#allocation107_spill] sm:$0xff] %v10559_v29  ;;  %14794 = vst [vmem:[#allocation108_spill] sm:$0xff] %v10562_v53  ;;  %v3517_v17 = vpop.permute.xlu1 %3516  ;;  %3826 = vmatprep.subr.mxu1 %v10562_v53  ;;  %v3493_v55 = vpop.permute.xlu0 %3492  ;;  %v14799_v53 = vld [vmem:[#allocation36_spill] sm:$0xff] }
 0xb39   :  { %v3518_v63 = vsel %vm218_vm3, %v3515_v8, %v3517_v17  ;;  %v3521_v16 = vsel %vm218_vm3, %v3517_v17, %v10465_v27  ;;  %v3497_v5 = vsel %vm172_vm4, %v3493_v55, %v10467_v25  ;;  %3827 = vmatpush2.msra.mxu1 %v10559_v29  ;;  %v3494_v8 = vsel %vm172_vm4, %v3491_v4, %v3493_v55 }
 0xb3a   :  { %v10578_v38 = vmul.f32 %v3518_v63, %v14795_v26  ;;  %v10581_v43 = vmul.f32 %v3497_v5, %v14797_v56  ;;  %v10584_v34 = vmul.f32 %v3521_v16, %v14799_v53  ;;  %v10589_v17 = vmul.f32 %v3476_v21, %v14801_v54  ;;  %v14805_v26 = vld [vmem:[#allocation46_spill] sm:$0xff] }
 0xb3b   :  { %v3495_v25 = vsel %vm172_vm4, %v10481_v45, %v3491_v4  ;;  %v3456_v27 = vsel %vm88_vm6, %v10463_v20, %v3449_v57  ;;  %v3475_v55 = vsel %vm130_vm5, %v3469_v35, %v3471_v44  ;;  %v14803_v45 = vld [vmem:[#allocation50_spill] sm:$0xff]  ;;  %v10613_v53 = vmul.f32 %v3494_v8, %v14805_v26  ;;  %v14807_v35 = vld [vmem:[#allocation45_spill] sm:$0xff] }
 0xb3c   :  { %14796 = vst [vmem:[#allocation109_spill] sm:$0xff] %v10578_v38  ;;  %14798 = vst [vmem:[#allocation113_spill] sm:$0xff] %v10581_v43  ;;  %v3427_v63 = vpop.permute.xlu1 %3426  ;;  %3762 = vmatpush2.msra.mxu0 %v10581_v43  ;;  %3828 = vmatprep.subr.mxu1 %v10584_v34  ;;  %v3473_v16 = vpop.permute.xlu0 %3472 }
 0xb3d   :  { %14800 = vst [vmem:[#allocation112_spill] sm:$0xff] %v10584_v34  ;;  %14802 = vst [vmem:[#allocation101_spill] sm:$0xff] %v10589_v17  ;;  %v3474_v21 = vsel %vm130_vm5, %v3471_v44, %v3473_v16  ;;  %v3477_v4 = vsel %vm130_vm5, %v3473_v16, %v10461_v0  ;;  %3763 = vmatprep.subr.mxu0 %v10589_v17  ;;  %3829 = vmatpush2.msra.mxu1 %v10578_v38  ;;  %v14809_v44 = vld [vmem:[#allocation52_spill] sm:$0xff]  ;;  %v14810_v0 = vld [vmem:[#allocation53_spill] sm:$0xff] }
 0xb3e   :  { %v10609_v5 = vmul.f32 %v3477_v4, %v14803_v45  ;;  %3830 = vmatprep.subr.mxu1 %v10423_v18  ;;  %14806 = vst [vmem:[#allocation104_spill] sm:$0xff] %v10613_v53  ;;  %v10616_v34 = vmul.f32 %v3495_v25, %v14807_v35  ;;  %v10620_v29 = vmul.f32 %v3456_v27, %v14809_v44  ;;  %v14812_v18 = vld [vmem:[#allocation54_spill] sm:$0xff] }
 0xb3f   :  { %3831 = vmatpush2.msra.mxu1 %v10391_v2  ;;  %v10623_v16 = vmul.f32 %v3475_v55, %v14810_v0  ;;  %v3436_v4 = vsel %vm46_vm7, %v3427_v63, %v3429_v12  ;;  %v10630_v25 = vmul.f32 %v3474_v21, %v14812_v18 }
 0xb40   :  { %14804 = vst [vmem:[#allocation99_spill] sm:$0xff] %v10609_v5  ;;  %14808 = vst [vmem:[#allocation103_spill] sm:$0xff] %v10616_v34  ;;  %v3451_v38 = vpop.permute.xlu1 %3450  ;;  %3764 = vmatpush2.msra.mxu0 %v10609_v5  ;;  %3832 = vmatprep.subr.mxu1 %v10613_v53  ;;  %v3453_v8 = vpop.permute.xlu0 %3452  ;;  %v14816_v5 = vld [vmem:[#allocation58_spill] sm:$0xff] }
 0xb41   :  { %14811 = vst [vmem:[#allocation111_spill] sm:$0xff] %v10623_v16  ;;  %14813 = vst [vmem:[#allocation110_spill] sm:$0xff] %v10630_v25  ;;  %v3455_v2 = vsel %vm88_vm6, %v3449_v57, %v3451_v38  ;;  %v3454_v27 = vsel %vm88_vm6, %v3451_v38, %v3453_v8  ;;  %v3457_v55 = vsel %vm88_vm6, %v3453_v8, %v10463_v20  ;;  %3765 = vmatprep.subr.mxu0 %v10620_v29  ;;  %v14818_v57 = vld [vmem:[#allocation62_spill] sm:$0xff]  ;;  %v14820_v38 = vld [vmem:[#allocation60_spill] sm:$0xff] }
 0xb42   :  { %3833 = vmatpush2.msra.mxu1 %v10616_v34  ;;  %v10642_v53 = vmul.f32 %v3455_v2, %v14814_v28  ;;  %v10645_v21 = vmul.f32 %v3457_v55, %v14816_v5  ;;  %v10649_v17 = vmul.f32 %v3454_v27, %v14818_v57  ;;  %v10653_v43 = vmul.f32 %v3436_v4, %v14820_v38  ;;  %v14821_v4 = vld [vmem:[#allocation64_spill] sm:$0xff] }
 0xb43   :  { %3834 = vmatprep.subr.mxu1 %v10630_v25  ;;  %v14822_v25 = vld [vmem:[#allocation63_spill] sm:$0xff] }
 0xb44   :  { %14815 = vst [vmem:[#allocation115_spill] sm:$0xff] %v10642_v53  ;;  %14817 = vst [vmem:[#allocation114_spill] sm:$0xff] %v10645_v21  ;;  %3835 = vmatpush2.msra.mxu1 %v10623_v16  ;;  %v3431_v20 = vpop.permute.xlu1 %3430  ;;  %3766 = vmatpush2.msra.mxu0 %v10645_v21  ;;  %v3433_v2 = vpop.permute.xlu0 %3432 }
 0xb45   :  { %14819 = vst [vmem:[#allocation117_spill] sm:$0xff] %v10649_v17  ;;  %3836 = vmatprep.subr.mxu1 %v10649_v17  ;;  %v3435_v8 = vsel %vm46_vm7, %v3429_v12, %v3431_v20  ;;  %v3434_v55 = vsel %vm46_vm7, %v3431_v20, %v3433_v2  ;;  %v3437_v27 = vsel %vm46_vm7, %v3433_v2, %v3427_v63  ;;  %v14823_v17 = vld [vmem:[#allocation68_spill] sm:$0xff]  ;;  %v14825_v63 = vld [vmem:[#allocation39_spill] sm:$0xff]  ;;  %v14826_v20 = vmov 0.0   ;;  %v14827_v2 = vld [vmem:[#allocation118_spill] sm:$0xff] }
 0xb46   :  { %3767 = vmatprep.subr.mxu0 %v10653_v43  ;;  %3837 = vmatpush2.msra.mxu1 %v10642_v53  ;;  %v10666_v16 = vmul.f32 %v3435_v8, %v14821_v4  ;;  %v10669_v34 = vmul.f32 %v3437_v27, %v14822_v25  ;;  %v10672_v21 = vmul.f32 %v3434_v55, %v14823_v17  ;;  %v3590_v12 = vld [vmem:[%s13427_s2 + $0xa8] sm:$0xff]  ;;  %v14828_v8 = vld [vmem:[#allocation93_spill] sm:$0xff]  ;;  %v14829_v55 = vld [vmem:[#allocation19_spill] sm:$0xff] }
 0xb47   :  { %v14830_v27 = vld [vmem:[#allocation23_spill] sm:$0xff] }
 0xb48   :  { %14824 = vst [vmem:[#allocation116_spill] sm:$0xff] %v10672_v21  ;;  %3768 = vmatpush2.msra.mxu0 %v10669_v34  ;;  %3838 = vmatprep.subr.mxu1 %v10672_v21 }
 0xb49   :  { %3769 = vmatprep.subr.mxu0 %v10272_v46  ;;  %3839 = vmatpush2.msra.mxu1 %v10666_v16 }
 0xb4a   :  { %3770 = vmatpush2.msra.mxu0 %v10281_v22  ;;  %3840 = vmatprep.subr.mxu1 %v10284_v19 }
 0xb4b   :  { %3771 = vmatprep.subr.mxu0 %v10294_v30  ;;  %3841 = vmatpush2.msra.mxu1 %v10291_v11  ;;  %v14872_v11 = vld [vmem:[#allocation94_spill] sm:$0xff] }
 0xb4c   :  { %3772 = vmatpush2.msra.mxu0 %v10299_v42  ;;  %3842 = vmatprep.subr.mxu1 %v10302_v9  ;;  %v14868_v9 = vld [vmem:[#allocation119_spill] sm:$0xff] }
 0xb4d   :  { %3774 = vmatmul.mubr.f32.vlgmr.msra.gmra.mxu0 %v3590_v12  ;;  %3843 = vmatpush2.msra.mxu1 %v14825_v63 }
 0xb4e   :  { %4179 = vmatprep.subr.mxu0 %v14751_v59  ;;  %3845 = vmatmul.mubr.f32.vlgmr.msra.gmra.mxu1 %v3590_v12  ;;  %v14831_v12 = vld [vmem:[#allocation37_spill] sm:$0xff] }
 0xb4f   :  { %4180 = vmatpush1.msra.mxu0 %v10085_v62  ;;  %4314 = vmatprep.mubr.f32.mxu1 %v14826_v20 }
 0xb50   :  { %4181 = vmatprep.subr.mxu0 %v14752_v7  ;;  %v14874_v7 = vld [vmem:[#allocation14_spill] sm:$0xff] }
 0xb51   :  { %4182 = vmatpush1.msra.mxu0 %v14753_v33  ;;  %v14869_v33 = vld [vmem:[#allocation25_spill] sm:$0xff] }
 0xb52   :  { %4183 = vmatprep.subr.mxu0 %v14754_v23  ;;  %v14867_v23 = vld [vmem:[#allocation124_spill] sm:$0xff] }
 0xb53   :  { %4184 = vmatpush1.msra.mxu0 %v14755_v48  ;;  %v14860_v48 = vld [vmem:[#allocation134_spill] sm:$0xff] }
 0xb54   :  { %4185 = vmatprep.subr.mxu0 %v14756_v6 }
 0xb55   :  { %4186 = vmatpush1.msra.mxu0 %v10139_v39 }
 0xb56   :  { %4187 = vmatprep.subr.mxu0 %v10142_v49 }
 0xb57   :  { %4188 = vmatpush1.msra.mxu0 %v10165_v32 }
 0xb58   :  { %4189 = vmatprep.subr.mxu0 %v10172_v24 }
 0xb59   :  { %4190 = vmatpush1.msra.mxu0 %v10198_v1 }
 0xb5a   :  { %4191 = vmatprep.subr.mxu0 %v10205_v40 }
 0xb5b   :  { %4192 = vmatpush1.msra.mxu0 %v10222_v3 }
 0xb5c   :  { %4193 = vmatprep.subr.mxu0 %v9780_v14 }
 0xb5d   :  { %4194 = vmatpush1.msra.mxu0 %v9783_v50 }
 0xb5e   :  { %4195 = vmatprep.subr.mxu0 %v9789_v61 }
 0xb5f   :  { %4196 = vmatpush1.msra.mxu0 %v9795_v13  ;;  %v14832_v13 = vld [vmem:[#allocation41_spill] sm:$0xff] }
 0xb60   :  { %4197 = vmatprep.subr.mxu0 %v9801_v31  ;;  %v14833_v31 = vld [vmem:[#allocation51_spill] sm:$0xff] }
 0xb61   :  { %4198 = vmatpush1.msra.mxu0 %v9805_v10  ;;  %v14834_v10 = vld [vmem:[#allocation59_spill] sm:$0xff] }
 0xb62   :  { %4199 = vmatprep.subr.mxu0 %v9818_v41  ;;  %v14835_v41 = vld [vmem:[#allocation65_spill] sm:$0xff] }
 0xb63   :  { %4200 = vmatpush1.msra.mxu0 %v9821_v51  ;;  %v3704_v51 = vpop.permute.xlu0 %3703 }
 0xb64   :  { %4201 = vmatprep.subr.mxu0 %v9688_v60 }
 0xb65   :  { %4202 = vmatpush1.msra.mxu0 %v14827_v2 }
 0xb66   :  { %4203 = vmatprep.subr.mxu0 %v14828_v8 }
 0xb67   :  { %4204 = vmatpush1.msra.mxu0 %v14829_v55 }
 0xb68   :  { %4205 = vmatprep.subr.mxu0 %v14830_v27 }
 0xb69   :  { %4206 = vmatpush1.msra.mxu0 %v14831_v12 }
 0xb6a   :  { %4207 = vmatprep.subr.mxu0 %v14832_v13 }
 0xb6b   :  { %4208 = vmatpush1.msra.mxu0 %v14833_v31 }
 0xb6c   :  { %4209 = vmatprep.subr.mxu0 %v14834_v10  ;;  %v14842_v10 = vld [vmem:[#allocation8_spill] sm:$0xff] }
 0xb6d   :  { %4210 = vmatpush1.msra.mxu0 %v14835_v41 }
 0xc0d   :  { %v3775_v60 = vpop.f32.mrf.mxu0 }
 0xc0e   :  { %v3776_v61 = vadd.f32 %v3775_v60, %v3704_v51  ;;  %v3846_v2 = vpop.f32.mrf.mxu1 }
 0xc0f   :  { %v3847_v50 = vadd.f32 %v3846_v2, %v3704_v51  ;;  %v3777_v8 = vpop.f32.mrf.mxu0  ;;  %v4024_v2 = vld [vmem:[%s13427_s2 + $0xc8] sm:$0xff] }
 0xc10   :  { %v3851_v14 = vmul.f32 0.2, %v3776_v61  ;;  %v3778_v55 = vadd.f32 %v3777_v8, %v3704_v51  ;;  %v3848_v60 = vpop.f32.mrf.mxu1  ;;  %4243 = vmatprep.mubr.f32.mxu0 %v4024_v2 }
 0xc11   :  { %v3853_v27 = vmul.f32 0.2, %v3847_v50 }
 0xc12   :  { %v10721_v3 = vmax.f32 %v3776_v61, %v3851_v14  ;;  %v3852_v12 = vmul.f32 0.2, %v3778_v55  ;;  %v3849_v14 = vadd.f32 %v3848_v60, %v3704_v51  ;;  %v4170_v51 = vld [vmem:[%s13425_s3 + $0x40] sm:$0xff] }
 0xc13   :  { %v10729_v41 = vmax.f32 %v3847_v50, %v3853_v27 }
 0xc14   :  { %14836 = vst [vmem:[#allocation102_spill] sm:$0xff] %v10721_v3  ;;  %v10723_v40 = vmax.f32 %v3778_v55, %v3852_v12  ;;  %3983 = vrot.lane.b32.xlu0 %v10721_v3, %s7647_s22  ;;  %4003 = vrot.lane.b32.xlu1 %v10721_v3, %s7646_s19  ;;  %v3854_v50 = vmul.f32 0.2, %v3849_v14 }
 0xc15   :  { %14838 = vst [vmem:[#allocation123_spill] sm:$0xff] %v10729_v41 }
 0xc16   :  { %14837 = vst [vmem:[#allocation100_spill] sm:$0xff] %v10723_v40  ;;  %4211 = vmatprep.subr.mxu0 %v10723_v40  ;;  %v10769_v61 = vmax.f32 %v3849_v14, %v3854_v50 }
 0xc17   :  { %4212 = vmatpush2.msra.mxu0 %v10721_v3 }
 0xc18   :  { %4007 = vrot.lane.b32.xlu0 %v10729_v41, %s7646_s19  ;;  %3963 = vrot.lane.b32.xlu1 %v10721_v3, %s7648_s25  ;;  %14839 = vst [vmem:[#allocation126_spill] sm:$0xff] %v10769_v61 }
 0xc1c   :  { %3985 = vrot.lane.b32.xlu0 %v10723_v40, %s7647_s22  ;;  %4005 = vrot.lane.b32.xlu1 %v10723_v40, %s7646_s19 }
 0xc20   :  { %3967 = vrot.lane.b32.xlu0 %v10729_v41, %s7648_s25  ;;  %3987 = vrot.lane.b32.xlu1 %v10729_v41, %s7647_s22 }
 0xc24   :  { %3945 = vrot.lane.b32.xlu0 %v10723_v40, %s7649_s26  ;;  %3965 = vrot.lane.b32.xlu1 %v10723_v40, %s7648_s25 }
 0xc28   :  { %3943 = vrot.lane.b32.xlu0 %v10721_v3, %s7649_s26  ;;  %3947 = vrot.lane.b32.xlu1 %v10729_v41, %s7649_s26 }
 0xc2c   :  { %3899 = vrot.lane.b32.xlu0 %v10721_v3, %s7651_s28  ;;  %3919 = vrot.lane.b32.xlu1 %v10721_v3, %s7650_s27 }
 0xc30   :  { %3859 = vrot.lane.b32.xlu0 %v10721_v3, %s7654_s30  ;;  %3879 = vrot.lane.b32.xlu1 %v10721_v3, %s7652_s29 }
 0xc34   :  { %3921 = vrot.lane.b32.xlu0 %v10723_v40, %s7650_s27  ;;  %3901 = vrot.lane.b32.xlu1 %v10723_v40, %s7651_s28 }
 0xc38   :  { %3881 = vrot.lane.b32.xlu0 %v10723_v40, %s7652_s29  ;;  %3861 = vrot.lane.b32.xlu1 %v10723_v40, %s7654_s30  ;;  %v14840_v40 = vld [vmem:[#allocation9_spill] sm:$0xff] }
 0xc3c   :  { %3905 = vrot.lane.b32.xlu0 %v10769_v61, %s7651_s28  ;;  %3925 = vrot.lane.b32.xlu1 %v10769_v61, %s7650_s27 }
 0xc40   :  { %3923 = vrot.lane.b32.xlu0 %v10729_v41, %s7650_s27  ;;  %3885 = vrot.lane.b32.xlu1 %v10769_v61, %s7652_s29 }
 0xc44   :  { %3903 = vrot.lane.b32.xlu0 %v10729_v41, %s7651_s28  ;;  %3865 = vrot.lane.b32.xlu1 %v10769_v61, %s7654_s30 }
 0xc48   :  { %3863 = vrot.lane.b32.xlu0 %v10729_v41, %s7654_s30  ;;  %3883 = vrot.lane.b32.xlu1 %v10729_v41, %s7652_s29 }
 0xc4c   :  { %3989 = vrot.lane.b32.xlu0 %v10769_v61, %s7647_s22  ;;  %4009 = vrot.lane.b32.xlu1 %v10769_v61, %s7646_s19 }
 0xc50   :  { %3949 = vrot.lane.b32.xlu0 %v10769_v61, %s7649_s26  ;;  %3969 = vrot.lane.b32.xlu1 %v10769_v61, %s7648_s25 }
 0xc54   :  { %4173 = vperm.xlu1 %7633, %v4170_v51  }
 0xc86   :  { %v10801_v8 = vpop.permute.xlu0 %3983  ;;  %v10803_v55 = vpop.permute.xlu1 %4003 }
 0xc8a   :  { %v10805_v27 = vpop.permute.xlu0 %4007  ;;  %v10807_v12 = vpop.permute.xlu1 %3963 }
 0xc8e   :  { %v3986_v60 = vpop.permute.xlu0 %3985  ;;  %v4006_v14 = vpop.permute.xlu1 %4005 }
 0xc8f   :  { %v4012_v50 = vsel %vm344_vm0, %v4006_v14, %v10805_v27  ;;  %v4013_v3 = vsel %vm344_vm0, %v10803_v55, %v4006_v14  ;;  %v3993_v13 = vsel %vm302_vm1, %v10801_v8, %v3986_v60 }
 0xc90   :  { %v10816_v51 = vmul.f32 %v4013_v3, %v14840_v40  ;;  %v10819_v31 = vmul.f32 %v4012_v50, %v14842_v10  ;;  %v14844_v3 = vld [vmem:[#allocation11_spill] sm:$0xff]  ;;  %v14846_v50 = vld [vmem:[#allocation18_spill] sm:$0xff] }
 0xc91   :  { %v10837_v10 = vmul.f32 %v3993_v13, %v14846_v50 }
 0xc92   :  { %14841 = vst [vmem:[#allocation3_spill] sm:$0xff] %v10816_v51  ;;  %14843 = vst [vmem:[#allocation4_spill] sm:$0xff] %v10819_v31  ;;  %v10824_v1 = vpop.permute.xlu0 %3967  ;;  %4274 = vmatprep.subr.mxu1 %v10819_v31  ;;  %v10827_v24 = vpop.permute.xlu1 %3987 }
 0xc93   :  { %v3992_v14 = vsel %vm302_vm1, %v3986_v60, %v10827_v24  ;;  %4275 = vmatpush1.msra.mxu1 %v10816_v51  ;;  %14847 = vst [vmem:[#allocation97_spill] sm:$0xff] %v10837_v10  ;;  %v14848_v51 = vld [vmem:[#allocation26_spill] sm:$0xff] }
 0xc94   :  { %v10834_v40 = vmul.f32 %v3992_v14, %v14844_v3  ;;  %v14850_v3 = vld [vmem:[#allocation20_spill] sm:$0xff] }
 0xc96   :  { %14845 = vst [vmem:[#allocation5_spill] sm:$0xff] %v10834_v40  ;;  %v3946_v32 = vpop.permute.xlu0 %3945  ;;  %4276 = vmatprep.subr.mxu1 %v10834_v40  ;;  %v3966_v49 = vpop.permute.xlu1 %3965 }
 0xc97   :  { %v3972_v31 = vsel %vm260_vm2, %v3966_v49, %v10824_v1  ;;  %v3973_v60 = vsel %vm260_vm2, %v10807_v12, %v3966_v49  ;;  %4277 = vmatpush1.msra.mxu1 %v10837_v10 }
 0xc98   :  { %v10848_v14 = vmul.f32 %v3973_v60, %v14848_v51  ;;  %v10851_v13 = vmul.f32 %v3972_v31, %v14850_v3  ;;  %v14852_v60 = vld [vmem:[#allocation31_spill] sm:$0xff]  ;;  %v14854_v31 = vld [vmem:[#allocation28_spill] sm:$0xff] }
 0xc9a   :  { %14849 = vst [vmem:[#allocation120_spill] sm:$0xff] %v10848_v14  ;;  %14851 = vst [vmem:[#allocation133_spill] sm:$0xff] %v10851_v13  ;;  %v10853_v50 = vpop.permute.xlu0 %3943  ;;  %4278 = vmatprep.subr.mxu1 %v10851_v13  ;;  %v10856_v40 = vpop.permute.xlu1 %3947  ;;  %v10874_v13 = vld [vmem:[%s13427_s2 + $0xd0] sm:$0xff] }
 0xc9b   :  { %v3953_v39 = vsel %vm218_vm3, %v10853_v50, %v3946_v32  ;;  %v3952_v49 = vsel %vm218_vm3, %v3946_v32, %v10856_v40  ;;  %4279 = vmatpush1.msra.mxu1 %v10848_v14  ;;  %v14856_v32 = vld [vmem:[#allocation80_spill] sm:$0xff]  ;;  %v14858_v14 = vld [vmem:[#allocation74_spill] sm:$0xff] }
 0xc9c   :  { %v10866_v10 = vmul.f32 %v3953_v39, %v14852_v60  ;;  %v10869_v51 = vmul.f32 %v3952_v49, %v14854_v31  ;;  %v14857_v39 = vld [vmem:[#allocation77_spill] sm:$0xff]  ;;  %v14859_v31 = vld [vmem:[#allocation79_spill] sm:$0xff] }
 0xc9e   :  { %14853 = vst [vmem:[#allocation140_spill] sm:$0xff] %v10866_v10  ;;  %14855 = vst [vmem:[#allocation141_spill] sm:$0xff] %v10869_v51  ;;  %v3900_v3 = vpop.permute.xlu0 %3899  ;;  %4280 = vmatprep.subr.mxu1 %v10869_v51  ;;  %v3920_v6 = vpop.permute.xlu1 %3919  ;;  %v14861_v51 = vld [vmem:[#allocation132_spill] sm:$0xff] }
 0xc9f   :  { %4281 = vmatpush1.msra.mxu1 %v10866_v10  ;;  %v14862_v10 = vld [vmem:[#allocation83_spill] sm:$0xff] }
 0xca0   :  { %4321 = vmatprep.subr.mxu1 %v14856_v32  ;;  %7608 = vmatmul.mubr.msk.f32.vlgmr.msra.gmra.mxu1 %vm1724_vm11, %v10874_v13 }
 0xca1   :  { %4322 = vmatpush1.msra.mxu1 %v14857_v39  ;;  %4385 = vmatprep.mubr.f32.mxu1 %v4024_v2  ;;  %v14863_v39 = vld [vmem:[#allocation86_spill] sm:$0xff] }
 0xca2   :  { %v3860_v49 = vpop.permute.xlu0 %3859  ;;  %4323 = vmatprep.subr.mxu1 %v14858_v14  ;;  %v3880_v60 = vpop.permute.xlu1 %3879  ;;  %v14864_v14 = vld [vmem:[#allocation96_spill] sm:$0xff] }
 0xca3   :  { %4324 = vmatpush1.msra.mxu1 %v14859_v31 }
 0xca4   :  { %4325 = vmatprep.subr.mxu1 %v14860_v48  ;;  %v14866_v48 = vld [vmem:[#allocation90_spill] sm:$0xff] }
 0xca5   :  { %4326 = vmatpush1.msra.mxu1 %v14861_v51 }
 0xca6   :  { %v10886_v63 = vpop.permute.xlu0 %3921  ;;  %4327 = vmatprep.subr.mxu1 %v14862_v10  ;;  %v10889_v32 = vpop.permute.xlu1 %3901 }
 0xca7   :  { %v3929_v2 = vsel %vm172_vm4, %v3920_v6, %v10886_v63  ;;  %4328 = vmatpush1.msra.mxu1 %v14863_v39  ;;  %v14870_v39 = vld [vmem:[#allocation139_spill] sm:$0xff] }
 0xca8   :  { %4329 = vmatprep.subr.mxu1 %v14864_v14  ;;  %v10897_v31 = vmul.f32 %v3929_v2, %v14786_v52  ;;  %v3909_v2 = vsel %vm130_vm5, %v3900_v3, %v10889_v32 }
 0xca9   :  { %4330 = vmatpush1.msra.mxu1 %v14866_v48  ;;  %v14871_v48 = vld [vmem:[#allocation10_spill] sm:$0xff] }
 0xcaa   :  { %14865 = vst [vmem:[#allocation142_spill] sm:$0xff] %v10897_v31  ;;  %v10900_v51 = vpop.permute.xlu0 %3881  ;;  %4331 = vmatprep.subr.mxu1 %v14867_v23  ;;  %v10903_v10 = vpop.permute.xlu1 %3861  ;;  %4213 = vmatprep.subr.mxu0 %v10897_v31 }
 0xcab   :  { %4332 = vmatpush1.msra.mxu1 %v14868_v9  ;;  %v14873_v9 = vld [vmem:[#allocation15_spill] sm:$0xff] }
 0xcac   :  { %4333 = vmatprep.subr.mxu1 %v14869_v33 }
 0xcad   :  { %4334 = vmatpush1.msra.mxu1 %v14870_v39  ;;  %v3889_v39 = vsel %vm88_vm6, %v3880_v60, %v10900_v51 }
 0xcae   :  { %v3906_v14 = vpop.permute.xlu0 %3905  ;;  %4335 = vmatprep.subr.mxu1 %v14871_v48  ;;  %v3926_v52 = vpop.permute.xlu1 %3925  ;;  %v10927_v48 = vmul.f32 %v3909_v2, %v14801_v54  ;;  %v10942_v2 = vmul.f32 %v3889_v39, %v14809_v44  ;;  %v14879_v54 = vld [vmem:[#allocation125_spill] sm:$0xff]  ;;  %v14885_v44 = vld [vmem:[#allocation76_spill] sm:$0xff] }
 0xcaf   :  { %v3910_v23 = vsel %vm130_vm5, %v3906_v14, %v3900_v3  ;;  %v3930_v31 = vsel %vm172_vm4, %v3926_v52, %v3920_v6  ;;  %4336 = vmatpush1.msra.mxu1 %v14872_v11  ;;  %v3869_v6 = vsel %vm46_vm7, %v3860_v49, %v10903_v10  ;;  %v14875_v11 = vld [vmem:[#allocation33_spill] sm:$0xff] }
 0xcb0   :  { %v10922_v33 = vmul.f32 %v3930_v31, %v14797_v56  ;;  %4337 = vmatprep.subr.mxu1 %v14873_v9  ;;  %v10933_v3 = vmul.f32 %v3910_v23, %v14803_v45  ;;  %v14877_v23 = vld [vmem:[#allocation47_spill] sm:$0xff]  ;;  %v14887_v56 = vld [vmem:[#allocation105_spill] sm:$0xff] }
 0xcb1   :  { %4338 = vmatpush1.msra.mxu1 %v14874_v7  ;;  %v14876_v7 = vld [vmem:[#allocation27_spill] sm:$0xff] }
 0xcb2   :  { %4339 = vmatprep.subr.mxu1 %v14875_v11  ;;  %v3886_v19 = vpop.permute.xlu1 %3885  ;;  %4214 = vmatpush2.msra.mxu0 %v10922_v33  ;;  %v3924_v11 = vpop.permute.xlu0 %3923  ;;  %v14878_v45 = vld [vmem:[#allocation43_spill] sm:$0xff] }
 0xcb3   :  { %v3890_v31 = vsel %vm88_vm6, %v3886_v19, %v3880_v60  ;;  %4215 = vmatprep.subr.mxu0 %v10927_v48  ;;  %4340 = vmatpush1.msra.mxu1 %v14876_v7  ;;  %v10952_v60 = vmul.f32 %v3869_v6, %v14820_v38  ;;  %v14883_v6 = vld [vmem:[#allocation98_spill] sm:$0xff]  ;;  %v14884_v38 = vld [vmem:[#allocation48_spill] sm:$0xff] }
 0xcb4   :  { %v10945_v9 = vmul.f32 %v3890_v31, %v14816_v5  ;;  %4216 = vmatpush2.msra.mxu0 %v10933_v3  ;;  %4341 = vmatprep.subr.mxu1 %v14877_v23  ;;  %v14880_v31 = vld [vmem:[#allocation121_spill] sm:$0xff]  ;;  %v14881_v5 = vld [vmem:[#allocation55_spill] sm:$0xff] }
 0xcb5   :  { %4217 = vmatprep.subr.mxu0 %v10942_v2  ;;  %4342 = vmatpush1.msra.mxu1 %v14878_v45  ;;  %v14882_v45 = vld [vmem:[#allocation69_spill] sm:$0xff] }
 0xcb6   :  { %4343 = vmatprep.subr.mxu1 %v14879_v54  ;;  %v3866_v7 = vpop.permute.xlu1 %3865  ;;  %4218 = vmatpush2.msra.mxu0 %v10945_v9  ;;  %v3904_v54 = vpop.permute.xlu0 %3903 }
 0xcb7   :  { %v3870_v39 = vsel %vm46_vm7, %v3866_v7, %v3860_v49  ;;  %4219 = vmatprep.subr.mxu0 %v10952_v60  ;;  %4344 = vmatpush1.msra.mxu1 %v14880_v31  ;;  %v14886_v49 = vld [vmem:[#allocation49_spill] sm:$0xff] }
 0xcb8   :  { %v10961_v23 = vmul.f32 %v3870_v39, %v14822_v25  ;;  %4345 = vmatprep.subr.mxu1 %v14881_v5  ;;  %v14888_v31 = vld [vmem:[#allocation57_spill] sm:$0xff]  ;;  %v3927_v39 = vsel %vm172_vm4, %v3924_v11, %v3926_v52  ;;  %v3908_v52 = vsel %vm130_vm5, %v10889_v32, %v3904_v54 }
 0xcb9   :  { %4346 = vmatpush1.msra.mxu1 %v14882_v45  ;;  %v14889_v5 = vld [vmem:[#allocation137_spill] sm:$0xff]  ;;  %v14890_v45 = vld [vmem:[#allocation56_spill] sm:$0xff] }
 0xcba   :  { %4347 = vmatprep.subr.mxu1 %v14883_v6  ;;  %4220 = vmatpush2.msra.mxu0 %v10961_v23  ;;  %v3928_v6 = vsel %vm172_vm4, %v10886_v63, %v3924_v11  ;;  %v3884_v25 = vpop.permute.xlu1 %3883  ;;  %v10990_v11 = vmul.f32 %v3927_v39, %v14805_v26  ;;  %v11007_v39 = vmul.f32 %v3908_v52, %v14810_v0  ;;  %v14905_v52 = vld [vmem:[#allocation101_spill] sm:$0xff] }
 0xcbb   :  { %4221 = vmatprep.subr.mxu0 %v14884_v38  ;;  %4348 = vmatpush1.msra.mxu1 %v14885_v44  ;;  %v14891_v38 = vld [vmem:[#allocation130_spill] sm:$0xff]  ;;  %v3907_v44 = vsel %vm130_vm5, %v3904_v54, %v3906_v14  ;;  %v10993_v63 = vmul.f32 %v3928_v6, %v14807_v35  ;;  %v3887_v14 = vsel %vm88_vm6, %v3884_v25, %v3886_v19 }
 0xcbc   :  { %4222 = vmatpush2.msra.mxu0 %v14886_v49  ;;  %4349 = vmatprep.subr.mxu1 %v14887_v56  ;;  %v14892_v56 = vld [vmem:[#allocation67_spill] sm:$0xff]  ;;  %14895 = vst [vmem:[#allocation49_spill] sm:$0xff] %v10990_v11  ;;  %v3888_v54 = vsel %vm88_vm6, %v10900_v51, %v3884_v25  ;;  %v11004_v32 = vmul.f32 %v3907_v44, %v14812_v18 }
 0xcbd   :  { %4223 = vmatprep.subr.mxu0 %v14888_v31  ;;  %4350 = vmatpush1.msra.mxu1 %v14889_v5  ;;  %v14893_v31 = vld [vmem:[#allocation106_spill] sm:$0xff]  ;;  %v3864_v5 = vpop.permute.xlu0 %3863  ;;  %14896 = vst [vmem:[#allocation67_spill] sm:$0xff] %v10993_v63  ;;  %v11019_v44 = vmul.f32 %v3887_v14, %v14818_v57  ;;  %v11022_v25 = vmul.f32 %v3888_v54, %v14814_v28  ;;  %v14906_v14 = vld [vmem:[#allocation99_spill] sm:$0xff] }
 0xcbe   :  { %4224 = vmatpush2.msra.mxu0 %v14890_v45  ;;  %4351 = vmatprep.subr.mxu1 %v14891_v38  ;;  %v14894_v45 = vld [vmem:[#allocation66_spill] sm:$0xff]  ;;  %v14897_v38 = vld [vmem:[#allocation71_spill] sm:$0xff]  ;;  %v3867_v6 = vsel %vm46_vm7, %v3864_v5, %v3866_v7  ;;  %v3868_v19 = vsel %vm46_vm7, %v10903_v10, %v3864_v5  ;;  %v14904_v5 = vld [vmem:[#allocation113_spill] sm:$0xff]  ;;  %v4010_v51 = vpop.permute.xlu1 %4009 }
 0xcbf   :  { %4225 = vmatprep.subr.mxu0 %v14892_v56  ;;  %4352 = vmatpush1.msra.mxu1 %v14893_v31  ;;  %14898 = vst [vmem:[#allocation66_spill] sm:$0xff] %v11004_v32  ;;  %14899 = vst [vmem:[#allocation71_spill] sm:$0xff] %v11007_v39  ;;  %v11029_v10 = vmul.f32 %v3867_v6, %v14823_v17  ;;  %v11032_v7 = vmul.f32 %v3868_v19, %v14821_v4  ;;  %v14907_v6 = vld [vmem:[#allocation128_spill] sm:$0xff]  ;;  %v14908_v19 = vld [vmem:[#allocation114_spill] sm:$0xff] }
 0xcc0   :  { %4226 = vmatpush2.msra.mxu0 %v14894_v45  ;;  %4353 = vmatprep.subr.mxu1 %v10769_v61  ;;  %14900 = vst [vmem:[#allocation143_spill] sm:$0xff] %v11019_v44  ;;  %14901 = vst [vmem:[#allocation144_spill] sm:$0xff] %v11022_v25  ;;  %v14922_v61 = vld [vmem:[#allocation138_spill] sm:$0xff] }
 0xcc1   :  { %4227 = vmatprep.subr.mxu0 %v14897_v38  ;;  %4354 = vmatpush2.msra.mxu1 %v10729_v41  ;;  %14902 = vst [vmem:[#allocation145_spill] sm:$0xff] %v11029_v10  ;;  %14903 = vst [vmem:[#allocation146_spill] sm:$0xff] %v11032_v7  ;;  %v3990_v54 = vpop.permute.xlu0 %3989  ;;  %v14918_v41 = vld [vmem:[#allocation109_spill] sm:$0xff] }
 0xcc2   :  { %4355 = vmatprep.subr.mxu1 %v10990_v11  ;;  %4228 = vmatpush2.msra.mxu0 %v10516_v36 }
 0xcc3   :  { %4356 = vmatpush2.msra.mxu1 %v10993_v63  ;;  %4229 = vmatprep.subr.mxu0 %v10397_v47 }
 0xcc4   :  { %4357 = vmatprep.subr.mxu1 %v11004_v32  ;;  %4230 = vmatpush2.msra.mxu0 %v10381_v37  ;;  %v14915_v32 = vld [vmem:[#allocation13_spill] sm:$0xff] }
 0xcc5   :  { %4358 = vmatpush2.msra.mxu1 %v11007_v39  ;;  %4231 = vmatprep.subr.mxu0 %v10533_v58  ;;  %v3970_v39 = vpop.permute.xlu1 %3969 }
 0xcc6   :  { %4359 = vmatprep.subr.mxu1 %v11019_v44  ;;  %4232 = vmatpush2.msra.mxu0 %v14904_v5  ;;  %v14909_v44 = vld [vmem:[#allocation70_spill] sm:$0xff] }
 0xcc7   :  { %4360 = vmatpush2.msra.mxu1 %v11022_v25  ;;  %4233 = vmatprep.subr.mxu0 %v14905_v52  ;;  %v14910_v25 = vld [vmem:[#allocation6_spill] sm:$0xff] }
 0xcc8   :  { %4361 = vmatprep.subr.mxu1 %v11029_v10  ;;  %4234 = vmatpush2.msra.mxu0 %v14906_v14  ;;  %v4014_v10 = vsel %vm344_vm0, %v4010_v51, %v10803_v55  ;;  %v14913_v55 = vld [vmem:[#allocation107_spill] sm:$0xff] }
 0xcc9   :  { %4362 = vmatpush2.msra.mxu1 %v11032_v7  ;;  %4235 = vmatprep.subr.mxu0 %v10620_v29  ;;  %v14911_v7 = vld [vmem:[#allocation127_spill] sm:$0xff]  ;;  %v11070_v63 = vmul.f32 %v4014_v10, %v14915_v32  ;;  %v14919_v10 = vld [vmem:[#allocation22_spill] sm:$0xff] }
 0xcca   :  { %4363 = vmatprep.subr.mxu1 %v14907_v6  ;;  %4236 = vmatpush2.msra.mxu0 %v14908_v19  ;;  %v4011_v6 = vsel %vm344_vm0, %v10805_v27, %v4010_v51  ;;  %v3991_v27 = vsel %vm302_vm1, %v10827_v24, %v3990_v54  ;;  %v3950_v51 = vpop.permute.xlu0 %3949  ;;  %v3971_v24 = vsel %vm260_vm2, %v10824_v1, %v3970_v39 }
 0xccb   :  { %4364 = vmatpush2.msra.mxu1 %v14909_v44  ;;  %4237 = vmatprep.subr.mxu0 %v10653_v43  ;;  %v14912_v44 = vld [vmem:[#allocation108_spill] sm:$0xff]  ;;  %14916 = vst [vmem:[#allocation113_spill] sm:$0xff] %v11070_v63  ;;  %v3951_v1 = vsel %vm218_vm3, %v10856_v40, %v3950_v51 }
 0xccc   :  { %4365 = vmatprep.subr.mxu1 %v14910_v25  ;;  %4238 = vmatpush2.msra.mxu0 %v10669_v34  ;;  %v3994_v25 = vsel %vm302_vm1, %v3990_v54, %v10801_v8  ;;  %v14917_v8 = vld [vmem:[#allocation12_spill] sm:$0xff] }
 0xccd   :  { %4366 = vmatpush2.msra.mxu1 %v14911_v7  ;;  %4239 = vmatprep.subr.mxu0 %v10272_v46  ;;  %v4023_v7 = vld [vmem:[%s13427_s2 + $0xc0] sm:$0xff]  ;;  %v11073_v11 = vmul.f32 %v4011_v6, %v14917_v8  ;;  %v11085_v54 = vmul.f32 %v3994_v25, %v14919_v10  ;;  %v14921_v6 = vld [vmem:[#allocation21_spill] sm:$0xff]  ;;  %v14924_v25 = vld [vmem:[#allocation30_spill] sm:$0xff] }
 0xcce   :  { %4367 = vmatprep.subr.mxu1 %v14912_v44  ;;  %4240 = vmatpush2.msra.mxu0 %v10281_v22  ;;  %v14914_v44 = vld [vmem:[#allocation112_spill] sm:$0xff] }
 0xccf   :  { %4368 = vmatpush2.msra.mxu1 %v14913_v55  ;;  %4241 = vmatprep.subr.mxu0 %v10294_v30  ;;  %v3974_v55 = vsel %vm260_vm2, %v3970_v39, %v10807_v12  ;;  %14920 = vst [vmem:[#allocation101_spill] sm:$0xff] %v11085_v54  ;;  %v3954_v12 = vsel %vm218_vm3, %v3950_v51, %v10853_v50  ;;  %v14923_v39 = vld [vmem:[#allocation38_spill] sm:$0xff]  ;;  %v14927_v50 = vld [vmem:[#allocation103_spill] sm:$0xff]  ;;  %v14929_v51 = vld [vmem:[#allocation32_spill] sm:$0xff] }
 0xcd0   :  { %4369 = vmatprep.subr.mxu1 %v14914_v44  ;;  %4242 = vmatpush2.msra.mxu0 %v10299_v42  ;;  %v11088_v44 = vmul.f32 %v3991_v27, %v14921_v6  ;;  %v14925_v27 = vld [vmem:[#allocation29_spill] sm:$0xff] }
 0xcd1   :  { %4370 = vmatpush2.msra.mxu1 %v14918_v41  ;;  %4244 = vmatmul.mubr.f32.vlgmr.msra.gmra.mxu0 %v4023_v7  ;;  %v11101_v41 = vmul.f32 %v3974_v55, %v14924_v25  ;;  %v11104_v31 = vmul.f32 %v3971_v24, %v14925_v27  ;;  %v14931_v55 = vld [vmem:[#allocation111_spill] sm:$0xff]  ;;  %v14932_v24 = vld [vmem:[#allocation117_spill] sm:$0xff] }
 0xcd2   :  { %4416 = vmatprep.subr.mxu0 %v11070_v63  ;;  %4371 = vmatprep.subr.mxu1 %v14922_v61  ;;  %v14926_v63 = vld [vmem:[#allocation104_spill] sm:$0xff] }
 0xcd3   :  { %4417 = vmatpush1.msra.mxu0 %v11073_v11  ;;  %4372 = vmatpush2.msra.mxu1 %v14923_v39  ;;  %v14928_v61 = vld [vmem:[#allocation36_spill] sm:$0xff]  ;;  %v11114_v39 = vmul.f32 %v3951_v1, %v14929_v51  ;;  %v14934_v1 = vld [vmem:[#allocation135_spill] sm:$0xff] }
 0xcd4   :  { %4418 = vmatprep.subr.mxu0 %v11085_v54  ;;  %4373 = vmatprep.subr.mxu1 %v14926_v63  ;;  %v11111_v40 = vmul.f32 %v3954_v12, %v14928_v61  ;;  %v14930_v54 = vld [vmem:[#allocation110_spill] sm:$0xff]  ;;  %v14933_v12 = vld [vmem:[#allocation24_spill] sm:$0xff] }
 0xcd5   :  { %4419 = vmatpush1.msra.mxu0 %v11088_v44  ;;  %4374 = vmatpush2.msra.mxu1 %v14927_v50 }
 0xcd6   :  { %4420 = vmatprep.subr.mxu0 %v11101_v41  ;;  %4375 = vmatprep.subr.mxu1 %v14930_v54  ;;  %v14940_v54 = vld [vmem:[#allocation129_spill] sm:$0xff] }
 0xcd7   :  { %4421 = vmatpush1.msra.mxu0 %v11104_v31  ;;  %4376 = vmatpush2.msra.mxu1 %v14931_v55  ;;  %v14937_v55 = vld [vmem:[#allocation34_spill] sm:$0xff] }
 0xcd8   :  { %4422 = vmatprep.subr.mxu0 %v11111_v40  ;;  %4377 = vmatprep.subr.mxu1 %v14932_v24  ;;  %v14935_v24 = vld [vmem:[#allocation35_spill] sm:$0xff] }
 0xcd9   :  { %4423 = vmatpush1.msra.mxu0 %v11114_v39  ;;  %4378 = vmatpush2.msra.mxu1 %v10642_v53  ;;  %v14936_v53 = vld [vmem:[#allocation136_spill] sm:$0xff] }
 0xcda   :  { %4456 = vmatprep.mubr.f32.mxu0 %v14826_v20  ;;  %4827 = vmatprep.subr.mxu0 %v14751_v59  ;;  %v14938_v59 = vld [vmem:[#allocation131_spill] sm:$0xff] }
 0xcdb   :  { %4379 = vmatprep.subr.mxu1 %v10672_v21  ;;  %7609 = vmatmul.mubr.msk.f32.vlgmr.msra.gmra.mxu0 %vm1724_vm11, %v10874_v13  ;;  %v14939_v21 = vld [vmem:[#allocation39_spill] sm:$0xff]  ;;  %v14941_v13 = vld [vmem:[#allocation78_spill] sm:$0xff] }
 0xcdc   :  { %4380 = vmatpush2.msra.mxu1 %v10666_v16  ;;  %4828 = vmatpush1.msra.mxu0 %v10085_v62  ;;  %v14942_v62 = vld [vmem:[#allocation73_spill] sm:$0xff] }
 0xcdd   :  { %4381 = vmatprep.subr.mxu1 %v14933_v12  ;;  %4829 = vmatprep.subr.mxu0 %v14934_v1  ;;  %v14943_v1 = vld [vmem:[#allocation81_spill] sm:$0xff]  ;;  %v14952_v12 = vld [vmem:[#allocation84_spill] sm:$0xff] }
 0xcde   :  { %4382 = vmatpush2.msra.mxu1 %v14935_v24  ;;  %4830 = vmatpush1.msra.mxu0 %v14936_v53  ;;  %v14944_v24 = vld [vmem:[#allocation88_spill] sm:$0xff]  ;;  %v14945_v53 = vld [vmem:[#allocation91_spill] sm:$0xff] }
 0xcdf   :  { %4383 = vmatprep.subr.mxu1 %v14937_v55  ;;  %4831 = vmatprep.subr.mxu0 %v14938_v59  ;;  %v14946_v55 = vld [vmem:[#allocation95_spill] sm:$0xff]  ;;  %v14947_v59 = vld [vmem:[#allocation17_spill] sm:$0xff] }
 0xce0   :  { %4384 = vmatpush2.msra.mxu1 %v14939_v21  ;;  %4832 = vmatpush1.msra.mxu0 %v14940_v54  ;;  %v14948_v21 = vld [vmem:[#allocation16_spill] sm:$0xff]  ;;  %v14949_v54 = vld [vmem:[#allocation75_spill] sm:$0xff] }
 0xce1   :  { %4386 = vmatmul.mubr.f32.vlgmr.msra.gmra.mxu1 %v4023_v7  ;;  %4833 = vmatprep.subr.mxu0 %v14941_v13  ;;  %v14950_v7 = vld [vmem:[#allocation72_spill] sm:$0xff]  ;;  %v14951_v13 = vld [vmem:[#allocation82_spill] sm:$0xff] }
 0xce2   :  { %4962 = vmatprep.mubr.f32.mxu1 %v14826_v20  ;;  %4834 = vmatpush1.msra.mxu0 %v14942_v62  ;;  %v14953_v62 = vld [vmem:[#allocation85_spill] sm:$0xff] }
 0xce3   :  { %4835 = vmatprep.subr.mxu0 %v14943_v1  ;;  %v14954_v1 = vld [vmem:[#allocation87_spill] sm:$0xff] }
 0xce4   :  { %4836 = vmatpush1.msra.mxu0 %v14944_v24  ;;  %v14955_v24 = vld [vmem:[#allocation89_spill] sm:$0xff] }
 0xce5   :  { %4837 = vmatprep.subr.mxu0 %v14945_v53  ;;  %v14956_v53 = vld [vmem:[#allocation92_spill] sm:$0xff] }
 0xce6   :  { %4838 = vmatpush1.msra.mxu0 %v14946_v55  ;;  %v14957_v55 = vld [vmem:[#allocation122_spill] sm:$0xff] }
 0xce7   :  { %4839 = vmatprep.subr.mxu0 %v14947_v59  ;;  %v14958_v59 = vld [vmem:[#allocation118_spill] sm:$0xff] }
 0xce8   :  { %4840 = vmatpush1.msra.mxu0 %v14948_v21  ;;  %v14959_v21 = vld [vmem:[#allocation93_spill] sm:$0xff] }
 0xce9   :  { %4841 = vmatprep.subr.mxu0 %v14949_v54  ;;  %v14960_v54 = vld [vmem:[#allocation19_spill] sm:$0xff] }
 0xcea   :  { %4842 = vmatpush1.msra.mxu0 %v14950_v7  ;;  %v14961_v7 = vld [vmem:[#allocation23_spill] sm:$0xff] }
 0xceb   :  { %4843 = vmatprep.subr.mxu0 %v14951_v13  ;;  %v14962_v13 = vld [vmem:[#allocation37_spill] sm:$0xff] }
 0xcec   :  { %4844 = vmatpush1.msra.mxu0 %v14952_v12  ;;  %v14963_v12 = vld [vmem:[#allocation41_spill] sm:$0xff] }
 0xced   :  { %4845 = vmatprep.subr.mxu0 %v14953_v62  ;;  %v14964_v62 = vld [vmem:[#allocation51_spill] sm:$0xff] }
 0xcee   :  { %4846 = vmatpush1.msra.mxu0 %v14954_v1  ;;  %v14965_v1 = vld [vmem:[#allocation59_spill] sm:$0xff] }
 0xcef   :  { %4847 = vmatprep.subr.mxu0 %v14955_v24  ;;  %v14966_v24 = vld [vmem:[#allocation65_spill] sm:$0xff] }
 0xcf0   :  { %4848 = vmatpush1.msra.mxu0 %v14956_v53  ;;  %v14967_v53 = vld [vmem:[#allocation100_spill] sm:$0xff] }
 0xcf1   :  { %4849 = vmatprep.subr.mxu0 %v14957_v55  ;;  %v14968_v55 = vld [vmem:[#allocation102_spill] sm:$0xff] }
 0xcf2   :  { %4850 = vmatpush1.msra.mxu0 %v14958_v59  ;;  %v14969_v59 = vld [vmem:[#allocation142_spill] sm:$0xff] }
 0xcf3   :  { %4851 = vmatprep.subr.mxu0 %v14959_v21  ;;  %v14970_v21 = vld [vmem:[#allocation48_spill] sm:$0xff] }
 0xcf4   :  { %4852 = vmatpush1.msra.mxu0 %v14960_v54 }
 0xcf5   :  { %4853 = vmatprep.subr.mxu0 %v14961_v7  ;;  %v4818_v7 = vld [vmem:[%s13425_s3 + $0x48] sm:$0xff] }
 0xcf6   :  { %4854 = vmatpush1.msra.mxu0 %v14962_v13 }
 0xcf7   :  { %4855 = vmatprep.subr.mxu0 %v14963_v12 }
 0xcf8   :  { %4856 = vmatpush1.msra.mxu0 %v14964_v62 }
 0xcf9   :  { %4857 = vmatprep.subr.mxu0 %v14965_v1 }
 0xcfa   :  { %4858 = vmatpush1.msra.mxu0 %v14966_v24 }
 0xcfb   :  { %4859 = vmatprep.subr.mxu0 %v14967_v53 }
 0xcfc   :  { %4860 = vmatpush2.msra.mxu0 %v14968_v55  ;;  %v14971_v55 = vld [vmem:[#allocation57_spill] sm:$0xff] }
 0xcfd   :  { %4861 = vmatprep.subr.mxu0 %v14969_v59  ;;  %v14972_v59 = vld [vmem:[#allocation56_spill] sm:$0xff] }
 0xcfe   :  { %4862 = vmatpush2.msra.mxu0 %v10922_v33 }
 0xcff   :  { %4863 = vmatprep.subr.mxu0 %v10927_v48  ;;  %v4174_v48 = vpop.permute.xlu1 %4173 }
 0xd00   :  { %4864 = vmatpush2.msra.mxu0 %v10933_v3 }
 0xd01   :  { %4865 = vmatprep.subr.mxu0 %v10942_v2 }
 0xd02   :  { %4866 = vmatpush2.msra.mxu0 %v10945_v9  ;;  %v11193_v9 = vld [vmem:[%s13427_s2 + $0xe0] sm:$0xff] }
 0xd03   :  { %4867 = vmatprep.subr.mxu0 %v10952_v60  ;;  %4891 = vmatprep.mubr.f32.mxu0 %v11193_v9 }
 0xd04   :  { %4868 = vmatpush2.msra.mxu0 %v10961_v23 }
 0xd05   :  { %4869 = vmatprep.subr.mxu0 %v14970_v21 }
 0xd06   :  { %4870 = vmatpush2.msra.mxu0 %v14886_v49 }
 0xd07   :  { %4871 = vmatprep.subr.mxu0 %v14971_v55 }
 0xd08   :  { %4872 = vmatpush2.msra.mxu0 %v14972_v59 }
 0xd09   :  { %4873 = vmatprep.subr.mxu0 %v14892_v56 }
 0xd0a   :  { %4874 = vmatpush2.msra.mxu0 %v14894_v45 }
 0xd0b   :  { %4875 = vmatprep.subr.mxu0 %v14897_v38 }
 0xd0c   :  { %4876 = vmatpush2.msra.mxu0 %v10516_v36 }
 0xd0d   :  { %4877 = vmatprep.subr.mxu0 %v10397_v47 }
 0xd0e   :  { %4878 = vmatpush2.msra.mxu0 %v10381_v37  ;;  %v11204_v37 = vld [vmem:[%s13427_s2 + $0xd8] sm:$0xff] }
 0xd0f   :  { %4879 = vmatprep.subr.mxu0 %v10533_v58 }
 0xd10   :  { %4880 = vmatpush2.msra.mxu0 %v14904_v5 }
 0xd11   :  { %4881 = vmatprep.subr.mxu0 %v14905_v52 }
 0xd12   :  { %4882 = vmatpush2.msra.mxu0 %v14906_v14 }
 0xd13   :  { %4883 = vmatprep.subr.mxu0 %v10620_v29 }
 0xd14   :  { %4884 = vmatpush2.msra.mxu0 %v14908_v19 }
 0xd15   :  { %4885 = vmatprep.subr.mxu0 %v10653_v43 }
 0xd16   :  { %4886 = vmatpush2.msra.mxu0 %v10669_v34 }
 0xd17   :  { %4887 = vmatprep.subr.mxu0 %v10272_v46 }
 0xd18   :  { %4888 = vmatpush2.msra.mxu0 %v10281_v22 }
 0xd19   :  { %4889 = vmatprep.subr.mxu0 %v10294_v30 }
 0xd1a   :  { %4890 = vmatpush2.msra.mxu0 %v10299_v42 }
 0xd1b   :  { %4892 = vmatmul.mubr.f32.vlgmr.msra.gmra.mxu0 %v11204_v37 }
 0xd1c   :  { %5104 = vmatprep.mubr.f32.mxu0 %v14826_v20 }
 0xd60   :  { %v4316_v36 = vpop.f32.mrf.mxu1 }
 0xd62   :  { %v4318_v30 = vpop.f32.mrf.mxu1 }
 0xd91   :  { %v4245_v33 = vpop.f32.mrf.mxu0 }
 0xd92   :  { %v4246_v47 = vadd.f32 %v4245_v33, %v4174_v48 }
 0xd93   :  { %v4247_v58 = vpop.f32.mrf.mxu0 }
 0xd94   :  { %v4317_v46 = vadd.f32 %v4316_v36, %v4246_v47  ;;  %v4248_v56 = vadd.f32 %v4247_v58, %v4174_v48 }
 0xd96   :  { %v4463_v22 = vmul.f32 0.2, %v4317_v46  ;;  %v4319_v42 = vadd.f32 %v4318_v30, %v4248_v56  ;;  %v14973_v56 = vld [vmem:[#allocation8_spill] sm:$0xff] }
 0xd98   :  { %v11210_v34 = vmax.f32 %v4317_v46, %v4463_v22  ;;  %v4464_v29 = vmul.f32 0.2, %v4319_v42 }
 0xd9a   :  { %4595 = vrot.lane.b32.xlu1 %v11210_v34, %s7647_s22  ;;  %4615 = vrot.lane.b32.xlu0 %v11210_v34, %s7646_s19  ;;  %v11224_v45 = vmax.f32 %v4319_v42, %v4464_v29  ;;  %v14974_v42 = vld [vmem:[#allocation9_spill] sm:$0xff] }
 0xd9b   :  { %v4458_v3 = vpop.f32.mrf.mxu0 }
 0xd9d   :  { %v4460_v52 = vpop.f32.mrf.mxu0 }
 0xd9e   :  { %4555 = vrot.lane.b32.xlu1 %v11210_v34, %s7649_s26  ;;  %4575 = vrot.lane.b32.xlu0 %v11210_v34, %s7648_s25 }
 0xda1   :  { %v4387_v43 = vpop.f32.mrf.mxu1 }
 0xda2   :  { %4511 = vrot.lane.b32.xlu1 %v11210_v34, %s7651_s28  ;;  %4531 = vrot.lane.b32.xlu0 %v11210_v34, %s7650_s27  ;;  %v4388_v38 = vadd.f32 %v4387_v43, %v4174_v48 }
 0xda3   :  { %v4389_v60 = vpop.f32.mrf.mxu1 }
 0xda4   :  { %v4459_v2 = vadd.f32 %v4458_v3, %v4388_v38  ;;  %v4390_v49 = vadd.f32 %v4389_v60, %v4174_v48 }
 0xda6   :  { %4597 = vrot.lane.b32.xlu1 %v11224_v45, %s7647_s22  ;;  %4491 = vrot.lane.b32.xlu0 %v11210_v34, %s7652_s29  ;;  %v4465_v23 = vmul.f32 0.2, %v4459_v2  ;;  %v4461_v14 = vadd.f32 %v4460_v52, %v4390_v49  ;;  %v14975_v49 = vld [vmem:[#allocation11_spill] sm:$0xff] }
 0xda8   :  { %v11238_v5 = vmax.f32 %v4459_v2, %v4465_v23  ;;  %v4466_v19 = vmul.f32 0.2, %v4461_v14 }
 0xdaa   :  { %4557 = vrot.lane.b32.xlu1 %v11224_v45, %s7649_s26  ;;  %4617 = vrot.lane.b32.xlu0 %v11224_v45, %s7646_s19  ;;  %v11252_v54 = vmax.f32 %v4461_v14, %v4466_v19  ;;  %v14976_v14 = vld [vmem:[#allocation18_spill] sm:$0xff] }
 0xdae   :  { %4533 = vrot.lane.b32.xlu1 %v11224_v45, %s7650_s27  ;;  %4577 = vrot.lane.b32.xlu0 %v11224_v45, %s7648_s25 }
 0xdb2   :  { %4619 = vrot.lane.b32.xlu1 %v11238_v5, %s7646_s19  ;;  %4513 = vrot.lane.b32.xlu0 %v11224_v45, %s7651_s28 }
 0xdb6   :  { %4579 = vrot.lane.b32.xlu1 %v11238_v5, %s7648_s25  ;;  %4599 = vrot.lane.b32.xlu0 %v11238_v5, %s7647_s22 }
 0xdba   :  { %4493 = vrot.lane.b32.xlu1 %v11224_v45, %s7652_s29  ;;  %4559 = vrot.lane.b32.xlu0 %v11238_v5, %s7649_s26 }
 0xdbe   :  { %4471 = vrot.lane.b32.xlu1 %v11210_v34, %s7654_s30  ;;  %4537 = vrot.lane.b32.xlu0 %v11252_v54, %s7650_s27 }
 0xdc2   :  { %4517 = vrot.lane.b32.xlu1 %v11252_v54, %s7651_s28  ;;  %4497 = vrot.lane.b32.xlu0 %v11252_v54, %s7652_s29 }
 0xdc6   :  { %4477 = vrot.lane.b32.xlu1 %v11252_v54, %s7654_s30  ;;  %4473 = vrot.lane.b32.xlu0 %v11224_v45, %s7654_s30 }
 0xdca   :  { %4601 = vrot.lane.b32.xlu1 %v11252_v54, %s7647_s22  ;;  %4621 = vrot.lane.b32.xlu0 %v11252_v54, %s7646_s19 }
 0xdce   :  { %4561 = vrot.lane.b32.xlu1 %v11252_v54, %s7649_s26  ;;  %4581 = vrot.lane.b32.xlu0 %v11252_v54, %s7648_s25 }
 0xdd2   :  { %4515 = vrot.lane.b32.xlu1 %v11238_v5, %s7651_s28  ;;  %4535 = vrot.lane.b32.xlu0 %v11238_v5, %s7650_s27 }
 0xdd6   :  { %4475 = vrot.lane.b32.xlu1 %v11238_v5, %s7654_s30  ;;  %4495 = vrot.lane.b32.xlu0 %v11238_v5, %s7652_s29 }
 0xdda   :  { %4821 = vperm.xlu0 %7632, %v4818_v7  }
 0xe0c   :  { %v11285_v13 = vpop.permute.xlu1 %4595  ;;  %v11287_v12 = vpop.permute.xlu0 %4615 }
 0xe10   :  { %v11289_v62 = vpop.permute.xlu1 %4555  ;;  %v11291_v1 = vpop.permute.xlu0 %4575 }
 0xe14   :  { %v4512_v24 = vpop.permute.xlu1 %4511  ;;  %v4532_v53 = vpop.permute.xlu0 %4531 }
 0xe18   :  { %v4598_v21 = vpop.permute.xlu1 %4597  ;;  %v4492_v55 = vpop.permute.xlu0 %4491 }
 0xe19   :  { %v4605_v43 = vsel %vm302_vm1, %v11285_v13, %v4598_v21 }
 0xe1a   :  { %v4607_v19 = vmul.f32 %v4605_v43, %v14976_v14  ;;  %v14979_v43 = vld [vmem:[#allocation28_spill] sm:$0xff]  ;;  %v14980_v14 = vld [vmem:[#allocation31_spill] sm:$0xff] }
 0xe1c   :  { %v4558_v59 = vpop.permute.xlu1 %4557  ;;  %v4618_v48 = vpop.permute.xlu0 %4617 }
 0xe1d   :  { %v4625_v36 = vsel %vm344_vm0, %v11287_v12, %v4618_v48  ;;  %v4565_v7 = vsel %vm218_vm3, %v11289_v62, %v4558_v59 }
 0xe1e   :  { %v4627_v29 = vmul.f32 %v4625_v36, %v14974_v42 }
 0xe20   :  { %v11293_v33 = vpop.permute.xlu1 %4533  ;;  %v4578_v47 = vpop.permute.xlu0 %4577 }
 0xe21   :  { %v4585_v60 = vsel %vm260_vm2, %v11291_v1, %v4578_v47 }
 0xe24   :  { %v11298_v46 = vpop.permute.xlu1 %4619  ;;  %v11300_v58 = vpop.permute.xlu0 %4513 }
 0xe25   :  { %v4624_v22 = vsel %vm344_vm0, %v4618_v48, %v11298_v46 }
 0xe26   :  { %v4628_v30 = vmul.f32 %v4624_v22, %v14973_v56  ;;  %v14977_v22 = vld [vmem:[#allocation20_spill] sm:$0xff] }
 0xe28   :  { %v11310_v38 = vpop.permute.xlu1 %4579  ;;  %4904 = vmatprep.subr.mxu1 %v4628_v30  ;;  %v4600_v3 = vpop.permute.xlu0 %4599  ;;  %v14978_v30 = vld [vmem:[#allocation26_spill] sm:$0xff] }
 0xe29   :  { %v4584_v2 = vsel %vm260_vm2, %v4578_v47, %v11310_v38  ;;  %v4604_v23 = vsel %vm302_vm1, %v4598_v21, %v4600_v3  ;;  %4905 = vmatpush1.msra.mxu1 %v4627_v29  ;;  %v4587_v29 = vmul.f32 %v4585_v60, %v14978_v30  ;;  %v4521_v60 = vsel %vm130_vm5, %v4512_v24, %v11300_v58 }
 0xe2a   :  { %v4608_v52 = vmul.f32 %v4604_v23, %v14975_v49  ;;  %v4588_v21 = vmul.f32 %v4584_v2, %v14977_v22  ;;  %v4567_v49 = vmul.f32 %v4565_v7, %v14980_v14 }
 0xe2c   :  { %v11325_v48 = vpop.permute.xlu1 %4493  ;;  %4906 = vmatprep.subr.mxu1 %v4608_v52  ;;  %v11327_v36 = vpop.permute.xlu0 %4559  ;;  %v4541_v52 = vsel %vm172_vm4, %v4532_v53, %v11293_v33 }
 0xe2d   :  { %v4564_v47 = vsel %vm218_vm3, %v4558_v59, %v11327_v36  ;;  %4907 = vmatpush1.msra.mxu1 %v4607_v19  ;;  %v14981_v19 = vld [vmem:[#allocation42_spill] sm:$0xff] }
 0xe2e   :  { %4908 = vmatprep.subr.mxu1 %v4588_v21  ;;  %v4568_v23 = vmul.f32 %v4564_v47, %v14979_v43  ;;  %v14982_v21 = vld [vmem:[#allocation40_spill] sm:$0xff] }
 0xe2f   :  { %4909 = vmatpush1.msra.mxu1 %v4587_v29  ;;  %v4544_v47 = vmul.f32 %v4541_v52, %v14982_v21  ;;  %v4501_v29 = vsel %vm88_vm6, %v4492_v55, %v11325_v48  ;;  %v14983_v43 = vld [vmem:[#allocation44_spill] sm:$0xff]  ;;  %v14986_v21 = vld [vmem:[#allocation58_spill] sm:$0xff] }
 0xe30   :  { %v4472_v42 = vpop.permute.xlu1 %4471  ;;  %4910 = vmatprep.subr.mxu1 %v4568_v23  ;;  %v11339_v2 = vpop.permute.xlu0 %4537 }
 0xe31   :  { %v4542_v59 = vsel %vm172_vm4, %v11339_v2, %v4532_v53  ;;  %4911 = vmatpush1.msra.mxu1 %v4567_v49  ;;  %v4524_v53 = vmul.f32 %v4521_v60, %v14983_v43 }
 0xe32   :  { %v4543_v7 = vmul.f32 %v4542_v59, %v14981_v19  ;;  %4912 = vmatprep.subr.mxu1 %v11224_v45  ;;  %v14985_v59 = vld [vmem:[#allocation52_spill] sm:$0xff] }
 0xe33   :  { %4913 = vmatpush1.msra.mxu1 %v11210_v34  ;;  %v14984_v34 = vld [vmem:[#allocation50_spill] sm:$0xff]  ;;  %v4504_v19 = vmul.f32 %v4501_v29, %v14985_v59  ;;  %v14988_v29 = vld [vmem:[#allocation60_spill] sm:$0xff] }
 0xe34   :  { %v11354_v23 = vpop.permute.xlu1 %4517  ;;  %4914 = vmatprep.subr.mxu1 %v4544_v47  ;;  %v11356_v14 = vpop.permute.xlu0 %4497 }
 0xe35   :  { %v4522_v49 = vsel %vm130_vm5, %v11354_v23, %v4512_v24  ;;  %v4502_v45 = vsel %vm88_vm6, %v11356_v14, %v4492_v55  ;;  %4915 = vmatpush1.msra.mxu1 %v4543_v7  ;;  %v14987_v7 = vld [vmem:[#allocation63_spill] sm:$0xff] }
 0xe36   :  { %v4523_v52 = vmul.f32 %v4522_v49, %v14984_v34  ;;  %4916 = vmatprep.subr.mxu1 %v4524_v53  ;;  %v4503_v47 = vmul.f32 %v4502_v45, %v14986_v21 }
 0xe38   :  { %v11368_v30 = vpop.permute.xlu1 %4477  ;;  %4917 = vmatpush1.msra.mxu1 %v4523_v52  ;;  %v11370_v60 = vpop.permute.xlu0 %4473 }
 0xe39   :  { %v4482_v24 = vsel %vm46_vm7, %v11368_v30, %v4472_v42  ;;  %v4481_v55 = vsel %vm46_vm7, %v4472_v42, %v11370_v60  ;;  %4918 = vmatprep.subr.mxu1 %v4504_v19 }
 0xe3a   :  { %v4483_v53 = vmul.f32 %v4482_v24, %v14987_v7  ;;  %4919 = vmatpush1.msra.mxu1 %v4503_v47  ;;  %v4484_v49 = vmul.f32 %v4481_v55, %v14988_v29  ;;  %v14989_v47 = vld [vmem:[#allocation4_spill] sm:$0xff]  ;;  %v14991_v7 = vld [vmem:[#allocation5_spill] sm:$0xff] }
 0xe3c   :  { %v4602_v45 = vpop.permute.xlu1 %4601  ;;  %4920 = vmatprep.subr.mxu1 %v4484_v49  ;;  %v4622_v21 = vpop.permute.xlu0 %4621  ;;  %v14990_v49 = vld [vmem:[#allocation3_spill] sm:$0xff] }
 0xe3d   :  { %v4623_v52 = vsel %vm344_vm0, %v11298_v46, %v4622_v21  ;;  %v4626_v59 = vsel %vm344_vm0, %v4622_v21, %v11287_v12  ;;  %4921 = vmatpush1.msra.mxu1 %v4483_v53  ;;  %v4606_v42 = vsel %vm302_vm1, %v4602_v45, %v11285_v13  ;;  %v4603_v55 = vsel %vm302_vm1, %v4600_v3, %v4602_v45  ;;  %v14992_v53 = vld [vmem:[#allocation97_spill] sm:$0xff] }
 0xe3e   :  { %v4629_v19 = vmul.f32 %v4623_v52, %v14917_v8  ;;  %4922 = vmatprep.subr.mxu1 %v14989_v47  ;;  %v4630_v24 = vmul.f32 %v4626_v59, %v14915_v32  ;;  %v4610_v59 = vmul.f32 %v4606_v42, %v14919_v10  ;;  %v4609_v3 = vmul.f32 %v4603_v55, %v14921_v6  ;;  %v14994_v47 = vld [vmem:[#allocation120_spill] sm:$0xff] }
 0xe3f   :  { %4923 = vmatpush1.msra.mxu1 %v14990_v49  ;;  %v11419_v55 = vld [vmem:[%s13427_s2 + $0xe8] sm:$0xff] }
 0xe40   :  { %v4562_v46 = vpop.permute.xlu1 %4561  ;;  %4924 = vmatprep.subr.mxu1 %v14991_v7  ;;  %5046 = vmatprep.subr.mxu0 %v4630_v24  ;;  %v4582_v12 = vpop.permute.xlu0 %4581  ;;  %v14993_v7 = vld [vmem:[#allocation133_spill] sm:$0xff]  ;;  %v14996_v49 = vld [vmem:[#allocation140_spill] sm:$0xff] }
 0xe41   :  { %v4583_v13 = vsel %vm260_vm2, %v11310_v38, %v4582_v12  ;;  %v4586_v21 = vsel %vm260_vm2, %v4582_v12, %v11291_v1  ;;  %4925 = vmatpush1.msra.mxu1 %v14992_v53  ;;  %5047 = vmatpush1.msra.mxu0 %v4629_v19  ;;  %v4566_v38 = vsel %vm218_vm3, %v4562_v46, %v11289_v62  ;;  %v14995_v24 = vld [vmem:[#allocation141_spill] sm:$0xff] }
 0xe42   :  { %v4589_v45 = vmul.f32 %v4583_v13, %v14925_v27  ;;  %4926 = vmatprep.subr.mxu1 %v14993_v7  ;;  %v4590_v52 = vmul.f32 %v4586_v21, %v14924_v25  ;;  %5048 = vmatprep.subr.mxu0 %v4610_v59  ;;  %v4563_v1 = vsel %vm218_vm3, %v11327_v36, %v4562_v46  ;;  %v14997_v46 = vld [vmem:[#allocation80_spill] sm:$0xff]  ;;  %v14998_v21 = vld [vmem:[#allocation77_spill] sm:$0xff]  ;;  %v15000_v7 = vld [vmem:[#allocation79_spill] sm:$0xff] }
 0xe43   :  { %4927 = vmatpush1.msra.mxu1 %v14994_v47  ;;  %5049 = vmatpush1.msra.mxu0 %v4609_v3  ;;  %v4570_v62 = vmul.f32 %v4566_v38, %v14928_v61  ;;  %v4569_v12 = vmul.f32 %v4563_v1, %v14929_v51  ;;  %v14999_v3 = vld [vmem:[#allocation74_spill] sm:$0xff] }
 0xe44   :  { %v4516_v42 = vpop.permute.xlu1 %4515  ;;  %4928 = vmatprep.subr.mxu1 %v14995_v24  ;;  %v4536_v19 = vpop.permute.xlu0 %4535  ;;  %5050 = vmatprep.subr.mxu0 %v4590_v52  ;;  %v15001_v38 = vld [vmem:[#allocation134_spill] sm:$0xff] }
 0xe45   :  { %4929 = vmatpush1.msra.mxu1 %v14996_v49  ;;  %5051 = vmatpush1.msra.mxu0 %v4589_v45  ;;  %v4539_v36 = vsel %vm172_vm4, %v4536_v19, %v11339_v2  ;;  %v4540_v13 = vsel %vm172_vm4, %v11293_v33, %v4536_v19  ;;  %v4519_v59 = vsel %vm130_vm5, %v4516_v42, %v11354_v23  ;;  %v15005_v49 = vld [vmem:[#allocation96_spill] sm:$0xff] }
 0xe46   :  { %7610 = vmatmul.mubr.msk.f32.vlgmr.msra.gmra.mxu1 %vm2373_vm12, %v11419_v55  ;;  %4969 = vmatprep.subr.mxu1 %v14997_v46  ;;  %v4520_v2 = vsel %vm130_vm5, %v11300_v58, %v4516_v42  ;;  %v4546_v33 = vmul.f32 %v4539_v36, %v14805_v26  ;;  %v4545_v52 = vmul.f32 %v4540_v13, %v14807_v35  ;;  %v15007_v36 = vld [vmem:[#allocation124_spill] sm:$0xff]  ;;  %v15009_v46 = vld [vmem:[#allocation25_spill] sm:$0xff] }
 0xe47   :  { %5052 = vmatprep.subr.mxu0 %v4570_v62  ;;  %4970 = vmatpush1.msra.mxu1 %v14998_v21  ;;  %v4526_v47 = vmul.f32 %v4519_v59, %v14812_v18  ;;  %v4525_v1 = vmul.f32 %v4520_v2, %v14810_v0  ;;  %v15006_v62 = vld [vmem:[#allocation90_spill] sm:$0xff]  ;;  %v15010_v13 = vld [vmem:[#allocation113_spill] sm:$0xff]  ;;  %v15011_v21 = vld [vmem:[#allocation139_spill] sm:$0xff] }
 0xe48   :  { %v4496_v53 = vpop.permute.xlu0 %4495  ;;  %5053 = vmatpush1.msra.mxu0 %v4569_v12  ;;  %4971 = vmatprep.subr.mxu1 %v14999_v3  ;;  %v4476_v45 = vpop.permute.xlu1 %4475  ;;  %v15013_v59 = vld [vmem:[#allocation101_spill] sm:$0xff]  ;;  %v15014_v3 = vld [vmem:[#allocation94_spill] sm:$0xff]  ;;  %v15015_v2 = vld [vmem:[#allocation15_spill] sm:$0xff] }
 0xe49   :  { %5054 = vmatprep.subr.mxu0 %v11252_v54  ;;  %4972 = vmatpush1.msra.mxu1 %v15000_v7  ;;  %v4499_v23 = vsel %vm88_vm6, %v4496_v53, %v11356_v14  ;;  %v4500_v58 = vsel %vm88_vm6, %v11325_v48, %v4496_v53  ;;  %v15002_v54 = vld [vmem:[#allocation132_spill] sm:$0xff]  ;;  %v4479_v42 = vsel %vm46_vm7, %v4476_v45, %v11368_v30  ;;  %v15003_v14 = vld [vmem:[#allocation83_spill] sm:$0xff]  ;;  %v15004_v48 = vld [vmem:[#allocation86_spill] sm:$0xff] }
 0xe4a   :  { %5055 = vmatpush1.msra.mxu0 %v11238_v5  ;;  %4973 = vmatprep.subr.mxu1 %v15001_v38  ;;  %v4480_v5 = vsel %vm46_vm7, %v11370_v60, %v4476_v45  ;;  %v4506_v24 = vmul.f32 %v4499_v23, %v14818_v57  ;;  %v4505_v19 = vmul.f32 %v4500_v58, %v14814_v28  ;;  %v15008_v60 = vld [vmem:[#allocation119_spill] sm:$0xff]  ;;  %v15012_v53 = vld [vmem:[#allocation10_spill] sm:$0xff]  ;;  %v15017_v7 = vld [vmem:[#allocation33_spill] sm:$0xff] }
 0xe4b   :  { %5056 = vmatprep.subr.mxu0 %v4546_v33  ;;  %4974 = vmatpush1.msra.mxu1 %v15002_v54  ;;  %v4486_v30 = vmul.f32 %v4479_v42, %v14823_v17  ;;  %v4485_v12 = vmul.f32 %v4480_v5, %v14821_v4  ;;  %v15016_v45 = vld [vmem:[#allocation14_spill] sm:$0xff]  ;;  %v15019_v33 = vld [vmem:[#allocation47_spill] sm:$0xff]  ;;  %v15026_v23 = vld [vmem:[#allocation76_spill] sm:$0xff] }
 0xe4c   :  { %5057 = vmatpush1.msra.mxu0 %v4545_v52  ;;  %4975 = vmatprep.subr.mxu1 %v15003_v14  ;;  %v15020_v52 = vld [vmem:[#allocation43_spill] sm:$0xff]  ;;  %v15027_v38 = vld [vmem:[#allocation105_spill] sm:$0xff]  ;;  %v15029_v58 = vld [vmem:[#allocation130_spill] sm:$0xff] }
 0xe4d   :  { %5058 = vmatprep.subr.mxu0 %v4526_v47  ;;  %4976 = vmatpush1.msra.mxu1 %v15004_v48  ;;  %v15030_v54 = vld [vmem:[#allocation106_spill] sm:$0xff]  ;;  %v15032_v47 = vld [vmem:[#allocation123_spill] sm:$0xff] }
 0xe4e   :  { %5059 = vmatpush1.msra.mxu0 %v4525_v1  ;;  %4977 = vmatprep.subr.mxu1 %v15005_v49  ;;  %v15033_v1 = vld [vmem:[#allocation49_spill] sm:$0xff]  ;;  %v15034_v42 = vld [vmem:[#allocation67_spill] sm:$0xff]  ;;  %v15035_v14 = vld [vmem:[#allocation66_spill] sm:$0xff] }
 0xe4f   :  { %5060 = vmatprep.subr.mxu0 %v4506_v24  ;;  %4978 = vmatpush1.msra.mxu1 %v15006_v62  ;;  %v15036_v5 = vld [vmem:[#allocation71_spill] sm:$0xff]  ;;  %v15038_v24 = vld [vmem:[#allocation144_spill] sm:$0xff]  ;;  %v15040_v49 = vld [vmem:[#allocation146_spill] sm:$0xff] }
 0xe50   :  { %5061 = vmatpush1.msra.mxu0 %v4505_v19  ;;  %4979 = vmatprep.subr.mxu1 %v15007_v36  ;;  %v15037_v48 = vld [vmem:[#allocation143_spill] sm:$0xff]  ;;  %v15039_v19 = vld [vmem:[#allocation145_spill] sm:$0xff]  ;;  %v15041_v62 = vld [vmem:[#allocation128_spill] sm:$0xff] }
 0xe51   :  { %5062 = vmatprep.subr.mxu0 %v4486_v30  ;;  %4980 = vmatpush1.msra.mxu1 %v15008_v60  ;;  %v15042_v30 = vld [vmem:[#allocation70_spill] sm:$0xff]  ;;  %v15044_v36 = vld [vmem:[#allocation127_spill] sm:$0xff]  ;;  %v15045_v60 = vld [vmem:[#allocation108_spill] sm:$0xff] }
 0xe52   :  { %5063 = vmatpush1.msra.mxu0 %v4485_v12  ;;  %4981 = vmatprep.subr.mxu1 %v15009_v46  ;;  %v15043_v12 = vld [vmem:[#allocation6_spill] sm:$0xff]  ;;  %v15046_v46 = vld [vmem:[#allocation107_spill] sm:$0xff] }
 0xe53   :  { %5064 = vmatprep.subr.mxu0 %v15010_v13  ;;  %4982 = vmatpush1.msra.mxu1 %v15011_v21  ;;  %v15047_v13 = vld [vmem:[#allocation112_spill] sm:$0xff]  ;;  %v15048_v21 = vld [vmem:[#allocation109_spill] sm:$0xff] }
 0xe54   :  { %5065 = vmatpush1.msra.mxu0 %v11073_v11  ;;  %4983 = vmatprep.subr.mxu1 %v15012_v53  ;;  %v15018_v11 = vld [vmem:[#allocation27_spill] sm:$0xff]  ;;  %v15049_v53 = vld [vmem:[#allocation138_spill] sm:$0xff] }
 0xe55   :  { %5066 = vmatprep.subr.mxu0 %v15013_v59  ;;  %4984 = vmatpush1.msra.mxu1 %v15014_v3  ;;  %v15050_v59 = vld [vmem:[#allocation38_spill] sm:$0xff] }
 0xe56   :  { %5067 = vmatpush1.msra.mxu0 %v11088_v44  ;;  %4985 = vmatprep.subr.mxu1 %v15015_v2  ;;  %v15021_v44 = vld [vmem:[#allocation125_spill] sm:$0xff]  ;;  %v15051_v3 = vld [vmem:[#allocation110_spill] sm:$0xff]  ;;  %v15052_v2 = vld [vmem:[#allocation111_spill] sm:$0xff] }
 0xe57   :  { %5068 = vmatprep.subr.mxu0 %v11101_v41  ;;  %4986 = vmatpush1.msra.mxu1 %v15016_v45  ;;  %v15022_v41 = vld [vmem:[#allocation121_spill] sm:$0xff] }
 0xe58   :  { %5069 = vmatpush1.msra.mxu0 %v11104_v31  ;;  %4987 = vmatprep.subr.mxu1 %v15017_v7  ;;  %v15023_v31 = vld [vmem:[#allocation55_spill] sm:$0xff]  ;;  %v15053_v45 = vld [vmem:[#allocation117_spill] sm:$0xff] }
 0xe59   :  { %5070 = vmatprep.subr.mxu0 %v11111_v40  ;;  %4988 = vmatpush1.msra.mxu1 %v15018_v11  ;;  %v15024_v40 = vld [vmem:[#allocation69_spill] sm:$0xff]  ;;  %v15054_v7 = vld [vmem:[#allocation115_spill] sm:$0xff]  ;;  %v15055_v11 = vld [vmem:[#allocation116_spill] sm:$0xff] }
 0xe5a   :  { %5071 = vmatpush1.msra.mxu0 %v11114_v39  ;;  %4989 = vmatprep.subr.mxu1 %v15019_v33  ;;  %v15025_v39 = vld [vmem:[#allocation98_spill] sm:$0xff]  ;;  %v15056_v33 = vld [vmem:[#allocation24_spill] sm:$0xff] }
 0xe5b   :  { %4990 = vmatpush1.msra.mxu1 %v15020_v52  ;;  %5033 = vmatprep.mubr.f32.mxu1 %v11193_v9  ;;  %v15028_v9 = vld [vmem:[#allocation137_spill] sm:$0xff]  ;;  %v15057_v52 = vld [vmem:[#allocation35_spill] sm:$0xff] }
 0xe5c   :  { %4991 = vmatprep.subr.mxu1 %v15021_v44  ;;  %7611 = vmatmul.mubr.msk.f32.vlgmr.msra.gmra.mxu0 %vm2373_vm12, %v11419_v55  ;;  %v15031_v55 = vld [vmem:[#allocation126_spill] sm:$0xff] }
 0xe5d   :  { %4992 = vmatpush1.msra.mxu1 %v15022_v41  ;;  %5393 = vmatprep.mubr.f32.mxu0 %v14826_v20 }
 0xe5e   :  { %4993 = vmatprep.subr.mxu1 %v15023_v31  ;;  %v15058_v31 = vld [vmem:[#allocation34_spill] sm:$0xff] }
 0xe5f   :  { %4994 = vmatpush1.msra.mxu1 %v15024_v40  ;;  %v4822_v40 = vpop.permute.xlu0 %4821 }
 0xe60   :  { %4995 = vmatprep.subr.mxu1 %v15025_v39 }
 0xe61   :  { %4996 = vmatpush1.msra.mxu1 %v15026_v23 }
 0xe62   :  { %4997 = vmatprep.subr.mxu1 %v15027_v38 }
 0xe63   :  { %4998 = vmatpush1.msra.mxu1 %v15028_v9 }
 0xe64   :  { %4999 = vmatprep.subr.mxu1 %v15029_v58 }
 0xe65   :  { %5000 = vmatpush1.msra.mxu1 %v15030_v54 }
 0xe66   :  { %5001 = vmatprep.subr.mxu1 %v15031_v55  ;;  %v15060_v55 = vld [vmem:[#allocation118_spill] sm:$0xff] }
 0xe67   :  { %5002 = vmatpush2.msra.mxu1 %v15032_v47 }
 0xe68   :  { %5003 = vmatprep.subr.mxu1 %v15033_v1 }
 0xe69   :  { %5004 = vmatpush2.msra.mxu1 %v15034_v42  ;;  %v15062_v42 = vld [vmem:[#allocation122_spill] sm:$0xff] }
 0xe6a   :  { %5005 = vmatprep.subr.mxu1 %v15035_v14 }
 0xe6b   :  { %5006 = vmatpush2.msra.mxu1 %v15036_v5 }
 0xe6c   :  { %5007 = vmatprep.subr.mxu1 %v15037_v48 }
 0xe6d   :  { %5008 = vmatpush2.msra.mxu1 %v15038_v24 }
 0xe6e   :  { %5009 = vmatprep.subr.mxu1 %v15039_v19 }
 0xe6f   :  { %5010 = vmatpush2.msra.mxu1 %v15040_v49 }
 0xe70   :  { %5011 = vmatprep.subr.mxu1 %v15041_v62 }
 0xe71   :  { %5012 = vmatpush2.msra.mxu1 %v15042_v30 }
 0xe72   :  { %5013 = vmatprep.subr.mxu1 %v15043_v12 }
 0xe73   :  { %5014 = vmatpush2.msra.mxu1 %v15044_v36 }
 0xe74   :  { %5015 = vmatprep.subr.mxu1 %v15045_v60 }
 0xe75   :  { %5016 = vmatpush2.msra.mxu1 %v15046_v46 }
 0xe76   :  { %5017 = vmatprep.subr.mxu1 %v15047_v13 }
 0xe77   :  { %5018 = vmatpush2.msra.mxu1 %v15048_v21 }
 0xe78   :  { %5019 = vmatprep.subr.mxu1 %v15049_v53 }
 0xe79   :  { %5020 = vmatpush2.msra.mxu1 %v15050_v59 }
 0xe7a   :  { %5021 = vmatprep.subr.mxu1 %v14926_v63  ;;  %v15059_v63 = vld [vmem:[#allocation39_spill] sm:$0xff] }
 0xe7b   :  { %5022 = vmatpush2.msra.mxu1 %v14927_v50  ;;  %v4893_v50 = vpop.f32.mrf.mxu0 }
 0xe7c   :  { %5023 = vmatprep.subr.mxu1 %v15051_v3  ;;  %v4894_v39 = vadd.f32 %v4893_v50, %v4822_v40 }
 0xe7d   :  { %5024 = vmatpush2.msra.mxu1 %v15052_v2  ;;  %v4895_v23 = vpop.f32.mrf.mxu0 }
 0xe7e   :  { %5025 = vmatprep.subr.mxu1 %v15053_v45  ;;  %v4896_v54 = vadd.f32 %v4895_v23, %v4822_v40 }
 0xe7f   :  { %5026 = vmatpush2.msra.mxu1 %v15054_v7 }
 0xe80   :  { %5027 = vmatprep.subr.mxu1 %v15055_v11 }
 0xe81   :  { %5028 = vmatpush2.msra.mxu1 %v10666_v16 }
 0xe82   :  { %5029 = vmatprep.subr.mxu1 %v15056_v33 }
 0xe83   :  { %5030 = vmatpush2.msra.mxu1 %v15057_v52 }
 0xe84   :  { %5031 = vmatprep.subr.mxu1 %v15058_v31 }
 0xe85   :  { %5032 = vmatpush2.msra.mxu1 %v15059_v63 }
 0xe86   :  { %5034 = vmatmul.mubr.f32.vlgmr.msra.gmra.mxu1 %v11204_v37 }
 0xe87   :  { %5464 = vmatprep.mubr.f32.mxu1 %v14826_v20 }
 0xf06   :  { %v4964_v38 = vpop.f32.mrf.mxu1 }
 0xf07   :  { %v4965_v9 = vadd.f32 %v4964_v38, %v4894_v39 }
 0xf08   :  { %v4966_v58 = vpop.f32.mrf.mxu1 }
 0xf09   :  { %v5111_v16 = vmul.f32 0.2, %v4965_v9  ;;  %v4967_v1 = vadd.f32 %v4966_v58, %v4896_v54  ;;  %v15067_v54 = vld [vmem:[#allocation9_spill] sm:$0xff] }
 0xf0b   :  { %v11539_v47 = vadd.f32 %v5111_v16, %v15060_v55  ;;  %v5112_v37 = vmul.f32 0.2, %v4967_v1 }
 0xf0d   :  { %15061 = vst [vmem:[#allocation99_spill] sm:$0xff] %v11539_v47  ;;  %5159 = vrot.lane.b32.xlu0 %v11539_v47, %s7651_s28  ;;  %5263 = vrot.lane.b32.xlu1 %v11539_v47, %s7646_s19  ;;  %v11550_v14 = vadd.f32 %v5112_v37, %v15062_v42  ;;  %v15069_v37 = vld [vmem:[#allocation11_spill] sm:$0xff] }
 0xf0f   :  { %15063 = vst [vmem:[#allocation114_spill] sm:$0xff] %v11550_v14 }
 0xf11   :  { %5139 = vrot.lane.b32.xlu0 %v11539_v47, %s7652_s29  ;;  %5243 = vrot.lane.b32.xlu1 %v11539_v47, %s7647_s22 }
 0xf15   :  { %5245 = vrot.lane.b32.xlu0 %v11550_v14, %s7647_s22  ;;  %5223 = vrot.lane.b32.xlu1 %v11539_v47, %s7648_s25 }
 0xf19   :  { %5225 = vrot.lane.b32.xlu0 %v11550_v14, %s7648_s25  ;;  %5203 = vrot.lane.b32.xlu1 %v11539_v47, %s7649_s26 }
 0xf1c   :  { %v5106_v24 = vpop.f32.mrf.mxu0 }
 0xf1d   :  { %5205 = vrot.lane.b32.xlu0 %v11550_v14, %s7649_s26  ;;  %5179 = vrot.lane.b32.xlu1 %v11539_v47, %s7650_s27 }
 0xf1e   :  { %v5108_v36 = vpop.f32.mrf.mxu0 }
 0xf21   :  { %5181 = vrot.lane.b32.xlu0 %v11550_v14, %s7650_s27  ;;  %5265 = vrot.lane.b32.xlu1 %v11550_v14, %s7646_s19 }
 0xf25   :  { %5161 = vrot.lane.b32.xlu1 %v11550_v14, %s7651_s28 }
 0xf29   :  { %5141 = vrot.lane.b32.xlu1 %v11550_v14, %s7652_s29 }
 0xf46   :  { %v5035_v5 = vpop.f32.mrf.mxu1 }
 0xf47   :  { %v5036_v48 = vadd.f32 %v5035_v5, %v4822_v40 }
 0xf48   :  { %v5037_v49 = vpop.f32.mrf.mxu1 }
 0xf49   :  { %v5107_v19 = vadd.f32 %v5106_v24, %v5036_v48  ;;  %v5038_v12 = vadd.f32 %v5037_v49, %v4822_v40  ;;  %v15071_v24 = vld [vmem:[#allocation18_spill] sm:$0xff] }
 0xf4b   :  { %v5113_v62 = vmul.f32 0.2, %v5107_v19  ;;  %v5109_v60 = vadd.f32 %v5108_v36, %v5038_v12  ;;  %v15074_v12 = vld [vmem:[#allocation26_spill] sm:$0xff] }
 0xf4d   :  { %v11573_v30 = vadd.f32 %v5113_v62, %v15022_v41  ;;  %v5114_v46 = vmul.f32 0.2, %v5109_v60 }
 0xf4f   :  { %15064 = vst [vmem:[#allocation104_spill] sm:$0xff] %v11573_v30  ;;  %5267 = vrot.lane.b32.xlu0 %v11573_v30, %s7646_s19  ;;  %5247 = vrot.lane.b32.xlu1 %v11573_v30, %s7647_s22  ;;  %v11588_v41 = vadd.f32 %v5114_v46, %v15021_v44  ;;  %v5320_v44 = vld [vmem:[%s13425_s3 + $0x50] sm:$0xff] }
 0xf51   :  { %15065 = vst [vmem:[#allocation103_spill] sm:$0xff] %v11588_v41 }
 0xf53   :  { %5183 = vrot.lane.b32.xlu0 %v11573_v30, %s7650_s27  ;;  %5227 = vrot.lane.b32.xlu1 %v11573_v30, %s7648_s25 }
 0xf57   :  { %5163 = vrot.lane.b32.xlu0 %v11573_v30, %s7651_s28  ;;  %5207 = vrot.lane.b32.xlu1 %v11573_v30, %s7649_s26 }
 0xf5b   :  { %5269 = vrot.lane.b32.xlu0 %v11588_v41, %s7646_s19  ;;  %5121 = vrot.lane.b32.xlu1 %v11550_v14, %s7654_s30 }
 0xf5f   :  { %5249 = vrot.lane.b32.xlu0 %v11588_v41, %s7647_s22  ;;  %5185 = vrot.lane.b32.xlu1 %v11588_v41, %s7650_s27 }
 0xf63   :  { %5229 = vrot.lane.b32.xlu0 %v11588_v41, %s7648_s25  ;;  %5165 = vrot.lane.b32.xlu1 %v11588_v41, %s7651_s28 }
 0xf67   :  { %5209 = vrot.lane.b32.xlu0 %v11588_v41, %s7649_s26  ;;  %5145 = vrot.lane.b32.xlu1 %v11588_v41, %s7652_s29 }
 0xf6b   :  { %5119 = vrot.lane.b32.xlu0 %v11539_v47, %s7654_s30  ;;  %5125 = vrot.lane.b32.xlu1 %v11588_v41, %s7654_s30 }
 0xf6f   :  { %5143 = vrot.lane.b32.xlu0 %v11573_v30, %s7652_s29  ;;  %5323 = vperm.xlu1 %7633, %v5320_v44  }
 0xf73   :  { %5123 = vrot.lane.b32.xlu0 %v11573_v30, %s7654_s30 }
 0xf7f   :  { %v5264_v13 = vpop.permute.xlu1 %5263  ;;  %v11617_v53 = vpop.permute.xlu0 %5159 }
 0xf83   :  { %v5244_v21 = vpop.permute.xlu1 %5243  ;;  %v11621_v3 = vpop.permute.xlu0 %5139 }
 0xf87   :  { %v11619_v59 = vpop.permute.xlu1 %5223  ;;  %v5246_v45 = vpop.permute.xlu0 %5245 }
 0xf88   :  { %v5253_v58 = vsel %vm302_vm1, %v5244_v21, %v5246_v45 }
 0xf89   :  { %v11655_v19 = vmul.f32 %v5253_v58, %v15071_v24 }
 0xf8b   :  { %v11623_v2 = vpop.permute.xlu1 %5203  ;;  %v5226_v11 = vpop.permute.xlu0 %5225  ;;  %15072 = vst [vmem:[#allocation129_spill] sm:$0xff] %v11655_v19 }
 0xf8c   :  { %v5233_v1 = vsel %vm260_vm2, %v11619_v59, %v5226_v11 }
 0xf8d   :  { %v11665_v36 = vmul.f32 %v5233_v1, %v15074_v12 }
 0xf8f   :  { %v5180_v7 = vpop.permute.xlu1 %5179  ;;  %v5206_v52 = vpop.permute.xlu0 %5205  ;;  %15075 = vst [vmem:[#allocation73_spill] sm:$0xff] %v11665_v36 }
 0xf90   :  { %v5213_v60 = vsel %vm218_vm3, %v11623_v2, %v5206_v52 }
 0xf93   :  { %v5266_v33 = vpop.permute.xlu1 %5265  ;;  %v11627_v63 = vpop.permute.xlu0 %5181 }
 0xf94   :  { %v5273_v40 = vsel %vm344_vm0, %v5264_v13, %v5266_v33 }
 0xf95   :  { %v11643_v55 = vmul.f32 %v5273_v40, %v15067_v54  ;;  %v15078_v40 = vld [vmem:[#allocation31_spill] sm:$0xff] }
 0xf97   :  { %v11625_v31 = vpop.permute.xlu1 %5161  ;;  %15068 = vst [vmem:[#allocation136_spill] sm:$0xff] %v11643_v55 }
 0xf9b   :  { %v11629_v50 = vpop.permute.xlu1 %5141 }
 0xfc1   :  { %v5268_v39 = vpop.permute.xlu0 %5267  ;;  %v5248_v23 = vpop.permute.xlu1 %5247 }
 0xfc2   :  { %v5272_v38 = vsel %vm344_vm0, %v5266_v33, %v5268_v39  ;;  %v5252_v9 = vsel %vm302_vm1, %v5246_v45, %v5248_v23 }
 0xfc3   :  { %v11640_v16 = vmul.f32 %v5272_v38, %v14973_v56  ;;  %v11649_v42 = vmul.f32 %v5252_v9, %v15069_v37  ;;  %v11681_v38 = vmul.f32 %v5213_v60, %v15078_v40  ;;  %v5189_v9 = vsel %vm172_vm4, %v5180_v7, %v11627_v63 }
 0xfc5   :  { %15066 = vst [vmem:[#allocation135_spill] sm:$0xff] %v11640_v16  ;;  %15070 = vst [vmem:[#allocation131_spill] sm:$0xff] %v11649_v42  ;;  %v11651_v5 = vpop.permute.xlu0 %5183  ;;  %5343 = vmatprep.subr.mxu0 %v11640_v16  ;;  %v5228_v48 = vpop.permute.xlu1 %5227 }
 0xfc6   :  { %v5232_v49 = vsel %vm260_vm2, %v5226_v11, %v5228_v48  ;;  %5344 = vmatpush1.msra.mxu0 %v11643_v55  ;;  %v15076_v11 = vld [vmem:[#allocation28_spill] sm:$0xff]  ;;  %15079 = vst [vmem:[#allocation88_spill] sm:$0xff] %v11681_v38 }
 0xfc7   :  { %v11661_v62 = vmul.f32 %v5232_v49, %v14977_v22  ;;  %5345 = vmatprep.subr.mxu0 %v11649_v42 }
 0xfc8   :  { %5346 = vmatpush1.msra.mxu0 %v11655_v19 }
 0xfc9   :  { %15073 = vst [vmem:[#allocation78_spill] sm:$0xff] %v11661_v62  ;;  %v11671_v46 = vpop.permute.xlu0 %5163  ;;  %5347 = vmatprep.subr.mxu0 %v11661_v62  ;;  %v5208_v44 = vpop.permute.xlu1 %5207 }
 0xfca   :  { %v5212_v45 = vsel %vm218_vm3, %v5206_v52, %v5208_v44  ;;  %5348 = vmatpush1.msra.mxu0 %v11665_v36 }
 0xfcb   :  { %v11678_v33 = vmul.f32 %v5212_v45, %v15076_v11  ;;  %v15080_v45 = vld [vmem:[#allocation40_spill] sm:$0xff] }
 0xfcc   :  { %v11695_v60 = vmul.f32 %v5189_v9, %v15080_v45 }
 0xfcd   :  { %15077 = vst [vmem:[#allocation81_spill] sm:$0xff] %v11678_v33  ;;  %v5270_v58 = vpop.permute.xlu0 %5269  ;;  %5349 = vmatprep.subr.mxu0 %v11678_v33  ;;  %v11687_v1 = vpop.permute.xlu1 %5121 }
 0xfce   :  { %v5271_v52 = vsel %vm344_vm0, %v5268_v39, %v5270_v58  ;;  %v5274_v49 = vsel %vm344_vm0, %v5270_v58, %v5264_v13  ;;  %5350 = vmatpush1.msra.mxu0 %v11681_v38  ;;  %15081 = vst [vmem:[#allocation91_spill] sm:$0xff] %v11695_v60  ;;  %v5169_v13 = vsel %vm130_vm5, %v11617_v53, %v11625_v31 }
 0xfcf   :  { %v11698_v20 = vmul.f32 %v5271_v52, %v14917_v8  ;;  %v11701_v24 = vmul.f32 %v5274_v49, %v14915_v32  ;;  %5351 = vmatprep.subr.mxu0 %v11550_v14  ;;  %v15086_v32 = vld [vmem:[#allocation42_spill] sm:$0xff]  ;;  %v11728_v56 = vmul.f32 %v5169_v13, %v14983_v43 }
 0xfd0   :  { %5352 = vmatpush1.msra.mxu0 %v11539_v47 }
 0xfd1   :  { %15082 = vst [vmem:[#allocation95_spill] sm:$0xff] %v11698_v20  ;;  %15083 = vst [vmem:[#allocation17_spill] sm:$0xff] %v11701_v24  ;;  %v5250_v39 = vpop.permute.xlu0 %5249  ;;  %5353 = vmatprep.subr.mxu0 %v11695_v60  ;;  %5414 = vmatprep.subr.mxu1 %v11701_v24  ;;  %v5186_v9 = vpop.permute.xlu1 %5185 }
 0xfd2   :  { %v5251_v58 = vsel %vm302_vm1, %v5248_v23, %v5250_v39  ;;  %v5254_v52 = vsel %vm302_vm1, %v5250_v39, %v5244_v21  ;;  %v5190_v49 = vsel %vm172_vm4, %v5186_v9, %v5180_v7  ;;  %5415 = vmatpush1.msra.mxu1 %v11698_v20  ;;  %15088 = vst [vmem:[#allocation82_spill] sm:$0xff] %v11728_v56 }
 0xfd3   :  { %v11719_v37 = vmul.f32 %v5251_v58, %v14921_v6  ;;  %v11722_v8 = vmul.f32 %v5254_v52, %v14919_v10  ;;  %v11725_v54 = vmul.f32 %v5190_v49, %v15086_v32  ;;  %v5149_v21 = vsel %vm88_vm6, %v11621_v3, %v11629_v50 }
 0xfd5   :  { %15084 = vst [vmem:[#allocation16_spill] sm:$0xff] %v11719_v37  ;;  %15085 = vst [vmem:[#allocation75_spill] sm:$0xff] %v11722_v8  ;;  %v5230_v7 = vpop.permute.xlu0 %5229  ;;  %5354 = vmatpush1.msra.mxu0 %v11725_v54  ;;  %5416 = vmatprep.subr.mxu1 %v11722_v8  ;;  %v5166_v23 = vpop.permute.xlu1 %5165 }
 0xfd6   :  { %15087 = vst [vmem:[#allocation72_spill] sm:$0xff] %v11725_v54  ;;  %v5231_v39 = vsel %vm260_vm2, %v5228_v48, %v5230_v7  ;;  %v5234_v58 = vsel %vm260_vm2, %v5230_v7, %v11619_v59  ;;  %v5170_v13 = vsel %vm130_vm5, %v5166_v23, %v11617_v53  ;;  %5355 = vmatprep.subr.mxu0 %v11728_v56  ;;  %v15092_v48 = vld [vmem:[#allocation52_spill] sm:$0xff] }
 0xfd7   :  { %v11746_v52 = vmul.f32 %v5231_v39, %v14925_v27  ;;  %v11749_v49 = vmul.f32 %v5234_v58, %v14924_v25  ;;  %v11752_v6 = vmul.f32 %v5170_v13, %v14984_v34  ;;  %5417 = vmatpush1.msra.mxu1 %v11719_v37  ;;  %v11756_v10 = vmul.f32 %v5149_v21, %v15092_v48 }
 0xfd9   :  { %15089 = vst [vmem:[#allocation84_spill] sm:$0xff] %v11746_v52  ;;  %15090 = vst [vmem:[#allocation85_spill] sm:$0xff] %v11749_v49  ;;  %v5210_v59 = vpop.permute.xlu0 %5209  ;;  %5356 = vmatpush1.msra.mxu0 %v11752_v6  ;;  %5418 = vmatprep.subr.mxu1 %v11749_v49  ;;  %v5146_v53 = vpop.permute.xlu1 %5145 }
 0xfda   :  { %15091 = vst [vmem:[#allocation87_spill] sm:$0xff] %v11752_v6  ;;  %15093 = vst [vmem:[#allocation89_spill] sm:$0xff] %v11756_v10  ;;  %v5211_v7 = vsel %vm218_vm3, %v5208_v44, %v5210_v59  ;;  %v5214_v39 = vsel %vm218_vm3, %v5210_v59, %v11623_v2  ;;  %v5150_v58 = vsel %vm88_vm6, %v5146_v53, %v11621_v3  ;;  %5357 = vmatprep.subr.mxu0 %v11756_v10  ;;  %v15096_v6 = vld [vmem:[#allocation58_spill] sm:$0xff] }
 0xfdb   :  { %5419 = vmatpush1.msra.mxu1 %v11746_v52  ;;  %v11771_v21 = vmul.f32 %v5211_v7, %v14929_v51  ;;  %v11774_v13 = vmul.f32 %v5214_v39, %v14928_v61  ;;  %v11777_v44 = vmul.f32 %v5150_v58, %v15096_v6  ;;  %v5187_v2 = vsel %vm172_vm4, %v11651_v5, %v5186_v9 }
 0xfdc   :  { %v5188_v3 = vsel %vm172_vm4, %v11627_v63, %v11651_v5  ;;  %v5167_v39 = vsel %vm130_vm5, %v11671_v46, %v5166_v23  ;;  %v5168_v63 = vsel %vm130_vm5, %v11625_v31, %v11671_v46  ;;  %v11802_v5 = vmul.f32 %v5187_v2, %v14805_v26  ;;  %v15100_v23 = vld [vmem:[#allocation63_spill] sm:$0xff]  ;;  %v5283_v31 = vld [vmem:[%s13427_s2 + $0xf0] sm:$0xff] }
 0xfdd   :  { %15094 = vst [vmem:[#allocation92_spill] sm:$0xff] %v11771_v21  ;;  %15095 = vst [vmem:[#allocation93_spill] sm:$0xff] %v11774_v13  ;;  %v5120_v59 = vpop.permute.xlu0 %5119  ;;  %5358 = vmatpush1.msra.mxu0 %v11777_v44  ;;  %5420 = vmatprep.subr.mxu1 %v11774_v13  ;;  %v5126_v7 = vpop.permute.xlu1 %5125  ;;  %v11819_v46 = vmul.f32 %v5167_v39, %v14812_v18 }
 0xfde   :  { %15097 = vst [vmem:[#allocation19_spill] sm:$0xff] %v11777_v44  ;;  %v5129_v58 = vsel %vm46_vm7, %v5120_v59, %v11687_v1  ;;  %v5130_v9 = vsel %vm46_vm7, %v5126_v7, %v5120_v59  ;;  %5421 = vmatpush1.msra.mxu1 %v11771_v21  ;;  %15098 = vst [vmem:[#allocation23_spill] sm:$0xff] %v11802_v5  ;;  %v11812_v59 = vmul.f32 %v5188_v3, %v14807_v35 }
 0xfdf   :  { %v11805_v44 = vmul.f32 %v5129_v58, %v14988_v29  ;;  %v11808_v10 = vmul.f32 %v5130_v9, %v15100_v23  ;;  %5422 = vmatprep.subr.mxu1 %v11588_v41  ;;  %15103 = vst [vmem:[#allocation59_spill] sm:$0xff] %v11819_v46  ;;  %v11824_v58 = vmul.f32 %v5168_v63, %v14810_v0 }
 0xfe0   :  { %15102 = vst [vmem:[#allocation51_spill] sm:$0xff] %v11812_v59  ;;  %5423 = vmatpush1.msra.mxu1 %v11573_v30 }
 0xfe1   :  { %15099 = vst [vmem:[#allocation37_spill] sm:$0xff] %v11805_v44  ;;  %15101 = vst [vmem:[#allocation41_spill] sm:$0xff] %v11808_v10  ;;  %v5144_v2 = vpop.permute.xlu0 %5143  ;;  %5359 = vmatprep.subr.mxu0 %v11805_v44  ;;  %5424 = vmatprep.subr.mxu1 %v11802_v5 }
 0xfe2   :  { %15104 = vst [vmem:[#allocation65_spill] sm:$0xff] %v11824_v58  ;;  %v5147_v3 = vsel %vm88_vm6, %v5144_v2, %v5146_v53  ;;  %v5148_v9 = vsel %vm88_vm6, %v11629_v50, %v5144_v2  ;;  %5360 = vmatpush1.msra.mxu0 %v11808_v10  ;;  %5425 = vmatpush1.msra.mxu1 %v11812_v59 }
 0xfe3   :  { %v11834_v39 = vmul.f32 %v5148_v9, %v14814_v28  ;;  %v11837_v44 = vmul.f32 %v5147_v3, %v14818_v57  ;;  %7612 = vmatmul.mubr.msk.f32.vlgmr.msra.gmra.mxu0 %vm421_vm8, %v5283_v31  ;;  %5426 = vmatprep.subr.mxu1 %v11819_v46 }
 0xfe4   :  { %5427 = vmatpush1.msra.mxu1 %v11824_v58 }
 0xfe5   :  { %15105 = vst [vmem:[#allocation100_spill] sm:$0xff] %v11834_v39  ;;  %15106 = vst [vmem:[#allocation102_spill] sm:$0xff] %v11837_v44  ;;  %v5124_v53 = vpop.permute.xlu0 %5123  ;;  %5428 = vmatprep.subr.mxu1 %v11837_v44 }
 0xfe6   :  { %v5127_v50 = vsel %vm46_vm7, %v5124_v53, %v5126_v7  ;;  %v5128_v63 = vsel %vm46_vm7, %v11687_v1, %v5124_v53  ;;  %5429 = vmatpush1.msra.mxu1 %v11834_v39 }
 0xfe7   :  { %v11850_v2 = vmul.f32 %v5128_v63, %v14821_v4  ;;  %v11853_v3 = vmul.f32 %v5127_v50, %v14823_v17 }
 0xfe9   :  { %15107 = vst [vmem:[#allocation142_spill] sm:$0xff] %v11850_v2  ;;  %15108 = vst [vmem:[#allocation48_spill] sm:$0xff] %v11853_v3  ;;  %5430 = vmatprep.subr.mxu1 %v11853_v3 }
 0xfea   :  { %5431 = vmatpush1.msra.mxu1 %v11850_v2  ;;  %v5324_v9 = vpop.permute.xlu1 %5323 }
 0xfeb   :  { %7613 = vmatmul.mubr.msk.f32.vlgmr.msra.gmra.mxu1 %vm421_vm8, %v5283_v31 }
0x10a3   :  { %v5395_v7 = vpop.f32.mrf.mxu0 }
0x10a4   :  { %v5396_v10 = vadd.f32 %v5395_v7, %v5324_v9 }
0x10a5   :  { %v5397_v1 = vpop.f32.mrf.mxu0 }
0x10a6   :  { %v5471_v44 = vmul.f32 0.2, %v5396_v10  ;;  %v5398_v50 = vadd.f32 %v5397_v1, %v5324_v9 }
0x10a8   :  { %v11858_v58 = vmax.f32 %v5396_v10, %v5471_v44  ;;  %v5472_v31 = vmul.f32 0.2, %v5398_v50 }
0x10aa   :  { %15109 = vst [vmem:[#allocation57_spill] sm:$0xff] %v11858_v58  ;;  %5519 = vrot.lane.b32.xlu1 %v11858_v58, %s7651_s28  ;;  %5583 = vrot.lane.b32.xlu0 %v11858_v58, %s7648_s25  ;;  %v11874_v44 = vmax.f32 %v5398_v50, %v5472_v31  ;;  %v5717_v50 = vld [vmem:[%s13425_s3 + $0x58] sm:$0xff] }
0x10ab   :  { %v5466_v53 = vpop.f32.mrf.mxu1 }
0x10ac   :  { %v5467_v63 = vadd.f32 %v5466_v53, %v5324_v9  ;;  %15111 = vst [vmem:[#allocation4_spill] sm:$0xff] %v11874_v44 }
0x10ad   :  { %v5468_v7 = vpop.f32.mrf.mxu1 }
0x10ae   :  { %v5473_v3 = vmul.f32 0.2, %v5467_v63  ;;  %5499 = vrot.lane.b32.xlu1 %v11858_v58, %s7652_s29  ;;  %5563 = vrot.lane.b32.xlu0 %v11858_v58, %s7649_s26 }
0x10b0   :  { %v11868_v10 = vmax.f32 %v5467_v63, %v5473_v3  ;;  %v5469_v3 = vadd.f32 %v5468_v7, %v5324_v9  ;;  %v5644_v9 = vld [vmem:[%s13427_s2 + $0x110] sm:$0xff] }
0x10b1   :  { %7614 = vmatprep.mubr.msk.f32.mxu0 %vm819_vm9, %v5644_v9  ;;  %7615 = vmatprep.mubr.msk.f32.mxu1 %vm819_vm9, %v5644_v9 }
0x10b2   :  { %15110 = vst [vmem:[#allocation56_spill] sm:$0xff] %v11868_v10  ;;  %5587 = vrot.lane.b32.xlu1 %v11868_v10, %s7648_s25  ;;  %5539 = vrot.lane.b32.xlu0 %v11858_v58, %s7650_s27  ;;  %v5474_v1 = vmul.f32 0.2, %v5469_v3 }
0x10b4   :  { %v11892_v53 = vmax.f32 %v5469_v3, %v5474_v1 }
0x10b6   :  { %5565 = vrot.lane.b32.xlu1 %v11874_v44, %s7649_s26  ;;  %5585 = vrot.lane.b32.xlu0 %v11874_v44, %s7648_s25  ;;  %15112 = vst [vmem:[#allocation3_spill] sm:$0xff] %v11892_v53 }
0x10ba   :  { %5541 = vrot.lane.b32.xlu1 %v11874_v44, %s7650_s27  ;;  %5567 = vrot.lane.b32.xlu0 %v11868_v10, %s7649_s26 }
0x10be   :  { %5543 = vrot.lane.b32.xlu1 %v11868_v10, %s7650_s27  ;;  %5521 = vrot.lane.b32.xlu0 %v11874_v44, %s7651_s28 }
0x10c2   :  { %5523 = vrot.lane.b32.xlu1 %v11868_v10, %s7651_s28  ;;  %5501 = vrot.lane.b32.xlu0 %v11874_v44, %s7652_s29 }
0x10c6   :  { %5589 = vrot.lane.b32.xlu1 %v11892_v53, %s7648_s25  ;;  %5481 = vrot.lane.b32.xlu0 %v11874_v44, %s7654_s30 }
0x10ca   :  { %5569 = vrot.lane.b32.xlu1 %v11892_v53, %s7649_s26  ;;  %5545 = vrot.lane.b32.xlu0 %v11892_v53, %s7650_s27 }
0x10ce   :  { %5479 = vrot.lane.b32.xlu1 %v11858_v58, %s7654_s30  ;;  %5525 = vrot.lane.b32.xlu0 %v11892_v53, %s7651_s28 }
0x10d2   :  { %5503 = vrot.lane.b32.xlu1 %v11868_v10, %s7652_s29  ;;  %5505 = vrot.lane.b32.xlu0 %v11892_v53, %s7652_s29 }
0x10d6   :  { %5483 = vrot.lane.b32.xlu1 %v11868_v10, %s7654_s30  ;;  %5485 = vrot.lane.b32.xlu0 %v11892_v53, %s7654_s30 }
0x10da   :  { %5627 = vrot.lane.b32.xlu1 %v11868_v10, %s7646_s19  ;;  %5625 = vrot.lane.b32.xlu0 %v11874_v44, %s7646_s19 }
0x10de   :  { %5605 = vrot.lane.b32.xlu1 %v11874_v44, %s7647_s22  ;;  %5623 = vrot.lane.b32.xlu0 %v11858_v58, %s7646_s19 }
0x10e2   :  { %5629 = vrot.lane.b32.xlu1 %v11892_v53, %s7646_s19  ;;  %5607 = vrot.lane.b32.xlu0 %v11868_v10, %s7647_s22 }
0x10e6   :  { %5609 = vrot.lane.b32.xlu1 %v11892_v53, %s7647_s22  ;;  %5603 = vrot.lane.b32.xlu0 %v11858_v58, %s7647_s22 }
0x10ea   :  { %5720 = vperm.xlu0 %7632, %v5717_v50  }
0x111c   :  { %v5520_v63 = vpop.permute.xlu1 %5519  ;;  %v5584_v31 = vpop.permute.xlu0 %5583 }
0x1120   :  { %v11938_v7 = vpop.permute.xlu1 %5499  ;;  %v5564_v3 = vpop.permute.xlu0 %5563 }
0x1124   :  { %v5588_v1 = vpop.permute.xlu1 %5587  ;;  %v5540_v2 = vpop.permute.xlu0 %5539 }
0x1128   :  { %v5566_v39 = vpop.permute.xlu1 %5565  ;;  %v5586_v9 = vpop.permute.xlu0 %5585 }
0x1129   :  { %v5592_v46 = vsel %vm260_vm2, %v5586_v9, %v5588_v1  ;;  %v5593_v59 = vsel %vm260_vm2, %v5584_v31, %v5586_v9  ;;  %v5573_v5 = vsel %vm218_vm3, %v5564_v3, %v5566_v39 }
0x112a   :  { %v11945_v56 = vmul.f32 %v5593_v59, %v15074_v12  ;;  %v11948_v50 = vmul.f32 %v5592_v46, %v14977_v22  ;;  %v11960_v59 = vmul.f32 %v5573_v5, %v15078_v40 }
0x112c   :  { %15113 = vst [vmem:[#allocation5_spill] sm:$0xff] %v11948_v50  ;;  %v5542_v54 = vpop.permute.xlu1 %5541  ;;  %5726 = vmatprep.subr.mxu0 %v11948_v50  ;;  %v5568_v30 = vpop.permute.xlu0 %5567  ;;  %15115 = vst [vmem:[#allocation133_spill] sm:$0xff] %v11960_v59 }
0x112d   :  { %v5572_v60 = vsel %vm218_vm3, %v5566_v39, %v5568_v30  ;;  %5727 = vmatpush1.msra.mxu0 %v11945_v56  ;;  %v5549_v46 = vsel %vm172_vm4, %v5540_v2, %v5542_v54 }
0x112e   :  { %v11957_v9 = vmul.f32 %v5572_v60, %v15076_v11  ;;  %v11967_v50 = vmul.f32 %v5549_v46, %v15080_v45 }
0x1130   :  { %15114 = vst [vmem:[#allocation97_spill] sm:$0xff] %v11957_v9  ;;  %v5544_v12 = vpop.permute.xlu1 %5543  ;;  %5728 = vmatprep.subr.mxu0 %v11957_v9  ;;  %v5522_v22 = vpop.permute.xlu0 %5521  ;;  %15116 = vst [vmem:[#allocation120_spill] sm:$0xff] %v11967_v50 }
0x1131   :  { %5729 = vmatpush1.msra.mxu0 %v11960_v59  ;;  %v5529_v45 = vsel %vm130_vm5, %v5520_v63, %v5522_v22 }
0x1132   :  { %5730 = vmatprep.subr.mxu0 %v11874_v44 }
0x1133   :  { %5731 = vmatpush1.msra.mxu0 %v11858_v58 }
0x1134   :  { %v5524_v60 = vpop.permute.xlu1 %5523  ;;  %5732 = vmatprep.subr.mxu0 %v11967_v50  ;;  %v5502_v5 = vpop.permute.xlu0 %5501 }
0x1138   :  { %v5590_v39 = vpop.permute.xlu1 %5589  ;;  %v5482_v40 = vpop.permute.xlu0 %5481 }
0x1139   :  { %v5591_v11 = vsel %vm260_vm2, %v5588_v1, %v5590_v39  ;;  %v5594_v9 = vsel %vm260_vm2, %v5590_v39, %v5584_v31 }
0x113a   :  { %v11977_v59 = vmul.f32 %v5591_v11, %v14925_v27  ;;  %v11980_v46 = vmul.f32 %v5594_v9, %v14924_v25  ;;  %v12002_v25 = vmul.f32 %v5529_v45, %v14983_v43  ;;  %v5528_v45 = vsel %vm130_vm5, %v5522_v22, %v5524_v60 }
0x113c   :  { %15117 = vst [vmem:[#allocation141_spill] sm:$0xff] %v11977_v59  ;;  %15118 = vst [vmem:[#allocation140_spill] sm:$0xff] %v11980_v46  ;;  %v5570_v58 = vpop.permute.xlu1 %5569  ;;  %5797 = vmatprep.subr.mxu1 %v11980_v46  ;;  %v5546_v50 = vpop.permute.xlu0 %5545 }
0x113d   :  { %v5571_v44 = vsel %vm218_vm3, %v5568_v30, %v5570_v58  ;;  %v5574_v1 = vsel %vm218_vm3, %v5570_v58, %v5564_v3  ;;  %v5550_v11 = vsel %vm172_vm4, %v5546_v50, %v5540_v2  ;;  %5798 = vmatpush1.msra.mxu1 %v11977_v59  ;;  %15122 = vst [vmem:[#allocation79_spill] sm:$0xff] %v12002_v25 }
0x113e   :  { %v11993_v31 = vmul.f32 %v5571_v44, %v14929_v51  ;;  %v11996_v9 = vmul.f32 %v5574_v1, %v14928_v61  ;;  %v11999_v39 = vmul.f32 %v5550_v11, %v15086_v32  ;;  %v5547_v30 = vsel %vm172_vm4, %v5544_v12, %v5546_v50  ;;  %v15144_v61 = vld [vmem:[#allocation89_spill] sm:$0xff] }
0x113f   :  { %v5548_v58 = vsel %vm172_vm4, %v5542_v54, %v5544_v12  ;;  %v5509_v2 = vsel %vm88_vm6, %v11938_v7, %v5502_v5  ;;  %v12022_v54 = vmul.f32 %v5547_v30, %v14805_v26  ;;  %v15143_v26 = vld [vmem:[#allocation59_spill] sm:$0xff]  ;;  %v15145_v51 = vld [vmem:[#allocation65_spill] sm:$0xff] }
0x1140   :  { %15119 = vst [vmem:[#allocation80_spill] sm:$0xff] %v11993_v31  ;;  %15120 = vst [vmem:[#allocation77_spill] sm:$0xff] %v11996_v9  ;;  %v5480_v44 = vpop.permute.xlu1 %5479  ;;  %5733 = vmatpush1.msra.mxu0 %v11999_v39  ;;  %5799 = vmatprep.subr.mxu1 %v11996_v9  ;;  %v5526_v3 = vpop.permute.xlu0 %5525  ;;  %v12029_v22 = vmul.f32 %v5548_v58, %v14807_v35 }
0x1141   :  { %15121 = vst [vmem:[#allocation74_spill] sm:$0xff] %v11999_v39  ;;  %v5527_v1 = vsel %vm130_vm5, %v5524_v60, %v5526_v3  ;;  %v5530_v50 = vsel %vm130_vm5, %v5526_v3, %v5520_v63  ;;  %5734 = vmatprep.subr.mxu0 %v12002_v25  ;;  %5800 = vmatpush1.msra.mxu1 %v11993_v31  ;;  %15123 = vst [vmem:[#allocation134_spill] sm:$0xff] %v12022_v54 }
0x1142   :  { %v12025_v12 = vmul.f32 %v5530_v50, %v14984_v34  ;;  %5801 = vmatprep.subr.mxu1 %v11892_v53  ;;  %15125 = vst [vmem:[#allocation83_spill] sm:$0xff] %v12029_v22  ;;  %v12032_v60 = vmul.f32 %v5509_v2, %v15092_v48  ;;  %v12036_v63 = vmul.f32 %v5528_v45, %v14810_v0  ;;  %v15142_v34 = vld [vmem:[#allocation87_spill] sm:$0xff] }
0x1143   :  { %5802 = vmatpush1.msra.mxu1 %v11868_v10  ;;  %v5489_v11 = vsel %vm46_vm7, %v5480_v44, %v5482_v40  ;;  %v12041_v30 = vmul.f32 %v5527_v1, %v14812_v18 }
0x1144   :  { %15124 = vst [vmem:[#allocation132_spill] sm:$0xff] %v12025_v12  ;;  %15126 = vst [vmem:[#allocation86_spill] sm:$0xff] %v12032_v60  ;;  %v5504_v3 = vpop.permute.xlu1 %5503  ;;  %5735 = vmatpush1.msra.mxu0 %v12025_v12  ;;  %5803 = vmatprep.subr.mxu1 %v12022_v54  ;;  %v5506_v58 = vpop.permute.xlu0 %5505 }
0x1145   :  { %15127 = vst [vmem:[#allocation96_spill] sm:$0xff] %v12036_v63  ;;  %15128 = vst [vmem:[#allocation90_spill] sm:$0xff] %v12041_v30  ;;  %v5508_v2 = vsel %vm88_vm6, %v5502_v5, %v5504_v3  ;;  %v5507_v50 = vsel %vm88_vm6, %v5504_v3, %v5506_v58  ;;  %v5510_v45 = vsel %vm88_vm6, %v5506_v58, %v11938_v7  ;;  %5736 = vmatprep.subr.mxu0 %v12032_v60 }
0x1146   :  { %5804 = vmatpush1.msra.mxu1 %v12029_v22  ;;  %v12055_v1 = vmul.f32 %v5508_v2, %v14814_v28  ;;  %v12058_v18 = vmul.f32 %v5510_v45, %v15096_v6  ;;  %v12061_v0 = vmul.f32 %v5507_v50, %v14818_v57  ;;  %v12065_v5 = vmul.f32 %v5489_v11, %v14988_v29  ;;  %v15140_v57 = vld [vmem:[#allocation82_spill] sm:$0xff]  ;;  %v15141_v6 = vld [vmem:[#allocation51_spill] sm:$0xff] }
0x1147   :  { %5805 = vmatprep.subr.mxu1 %v12041_v30 }
0x1148   :  { %15129 = vst [vmem:[#allocation124_spill] sm:$0xff] %v12055_v1  ;;  %15130 = vst [vmem:[#allocation119_spill] sm:$0xff] %v12058_v18  ;;  %5806 = vmatpush1.msra.mxu1 %v12036_v63  ;;  %v5484_v7 = vpop.permute.xlu1 %5483  ;;  %5737 = vmatpush1.msra.mxu0 %v12058_v18  ;;  %v5486_v3 = vpop.permute.xlu0 %5485 }
0x1149   :  { %15131 = vst [vmem:[#allocation25_spill] sm:$0xff] %v12061_v0  ;;  %15132 = vst [vmem:[#allocation113_spill] sm:$0xff] %v12065_v5  ;;  %5807 = vmatprep.subr.mxu1 %v12061_v0  ;;  %v5488_v58 = vsel %vm46_vm7, %v5482_v40, %v5484_v7  ;;  %v5487_v2 = vsel %vm46_vm7, %v5484_v7, %v5486_v3  ;;  %v5490_v50 = vsel %vm46_vm7, %v5486_v3, %v5480_v44 }
0x114a   :  { %5738 = vmatprep.subr.mxu0 %v12065_v5  ;;  %5808 = vmatpush1.msra.mxu1 %v12055_v1  ;;  %v12079_v11 = vmul.f32 %v5488_v58, %v14821_v4  ;;  %v12082_v45 = vmul.f32 %v5490_v50, %v15100_v23  ;;  %v12085_v29 = vmul.f32 %v5487_v2, %v14823_v17  ;;  %v15136_v50 = vld [vmem:[#allocation91_spill] sm:$0xff]  ;;  %v15137_v17 = vld [vmem:[#allocation104_spill] sm:$0xff] }
0x114b   :  { %v15138_v23 = vld [vmem:[#allocation72_spill] sm:$0xff]  ;;  %v15139_v4 = vld [vmem:[#allocation23_spill] sm:$0xff] }
0x114c   :  { %15133 = vst [vmem:[#allocation139_spill] sm:$0xff] %v12079_v11  ;;  %15134 = vst [vmem:[#allocation10_spill] sm:$0xff] %v12082_v45  ;;  %v5628_v40 = vpop.permute.xlu1 %5627  ;;  %5739 = vmatpush1.msra.mxu0 %v12082_v45  ;;  %5809 = vmatprep.subr.mxu1 %v12085_v29  ;;  %v5626_v7 = vpop.permute.xlu0 %5625 }
0x114d   :  { %15135 = vst [vmem:[#allocation101_spill] sm:$0xff] %v12085_v29  ;;  %5740 = vmatprep.subr.mxu0 %v11640_v16  ;;  %5810 = vmatpush1.msra.mxu1 %v12079_v11  ;;  %v5632_v28 = vsel %vm344_vm0, %v5626_v7, %v5628_v40 }
0x114e   :  { %5741 = vmatpush1.msra.mxu0 %v11643_v55  ;;  %5811 = vmatprep.subr.mxu1 %v11701_v24 }
0x114f   :  { %5742 = vmatprep.subr.mxu0 %v11649_v42  ;;  %5812 = vmatpush1.msra.mxu1 %v11698_v20 }
0x1150   :  { %v5606_v44 = vpop.permute.xlu1 %5605  ;;  %5743 = vmatpush1.msra.mxu0 %v11655_v19  ;;  %5813 = vmatprep.subr.mxu1 %v11722_v8  ;;  %v5624_v3 = vpop.permute.xlu0 %5623 }
0x1151   :  { %5744 = vmatprep.subr.mxu0 %v11661_v62  ;;  %5814 = vmatpush1.msra.mxu1 %v11719_v37  ;;  %v5633_v43 = vsel %vm344_vm0, %v5624_v3, %v5626_v7 }
0x1152   :  { %5745 = vmatpush1.msra.mxu0 %v11665_v36  ;;  %5815 = vmatprep.subr.mxu1 %v11749_v49 }
0x1153   :  { %5746 = vmatprep.subr.mxu0 %v11678_v33  ;;  %5816 = vmatpush1.msra.mxu1 %v11746_v52 }
0x1154   :  { %v5630_v58 = vpop.permute.xlu1 %5629  ;;  %5747 = vmatpush1.msra.mxu0 %v11681_v38  ;;  %5817 = vmatprep.subr.mxu1 %v11774_v13  ;;  %v5608_v2 = vpop.permute.xlu0 %5607 }
0x1155   :  { %5748 = vmatprep.subr.mxu0 %v11550_v14  ;;  %5818 = vmatpush1.msra.mxu1 %v11771_v21  ;;  %v5634_v32 = vsel %vm344_vm0, %v5630_v58, %v5624_v3  ;;  %v5631_v27 = vsel %vm344_vm0, %v5628_v40, %v5630_v58  ;;  %v15151_v40 = vld [vmem:[#allocation9_spill] sm:$0xff] }
0x1156   :  { %5749 = vmatpush1.msra.mxu0 %v11539_v47  ;;  %5819 = vmatprep.subr.mxu1 %v11588_v41  ;;  %v12141_v58 = vmul.f32 %v5633_v43, %v15151_v40  ;;  %v15159_v43 = vld [vmem:[#allocation142_spill] sm:$0xff] }
0x1157   :  { %5750 = vmatprep.subr.mxu0 %v15136_v50  ;;  %5820 = vmatpush1.msra.mxu1 %v15137_v17  ;;  %v15160_v40 = vld [vmem:[#allocation18_spill] sm:$0xff] }
0x1158   :  { %5751 = vmatpush1.msra.mxu0 %v15138_v23  ;;  %5821 = vmatprep.subr.mxu1 %v15139_v4  ;;  %v5610_v48 = vpop.permute.xlu1 %5609  ;;  %v5604_v35 = vpop.permute.xlu0 %5603  ;;  %v15152_v23 = vld [vmem:[#allocation13_spill] sm:$0xff] }
0x1159   :  { %5752 = vmatprep.subr.mxu0 %v15140_v57  ;;  %5822 = vmatpush1.msra.mxu1 %v15141_v6  ;;  %v5612_v6 = vsel %vm302_vm1, %v5606_v44, %v5608_v2  ;;  %v15146_v57 = vld [vmem:[#allocation19_spill] sm:$0xff]  ;;  %v5613_v7 = vsel %vm302_vm1, %v5604_v35, %v5606_v44  ;;  %v5614_v3 = vsel %vm302_vm1, %v5610_v48, %v5604_v35  ;;  %v15156_v44 = vld [vmem:[#allocation12_spill] sm:$0xff] }
0x115a   :  { %5753 = vmatpush1.msra.mxu0 %v15142_v34  ;;  %5823 = vmatprep.subr.mxu1 %v15143_v26  ;;  %v15147_v34 = vld [vmem:[#allocation102_spill] sm:$0xff]  ;;  %v15148_v26 = vld [vmem:[#allocation8_spill] sm:$0xff]  ;;  %v12151_v17 = vmul.f32 %v5631_v27, %v15156_v44  ;;  %v15158_v35 = vld [vmem:[#allocation11_spill] sm:$0xff] }
0x115b   :  { %5754 = vmatprep.subr.mxu0 %v15144_v61  ;;  %5824 = vmatpush1.msra.mxu1 %v15145_v51  ;;  %v12132_v4 = vmul.f32 %v5632_v28, %v15148_v26  ;;  %v15149_v51 = vld [vmem:[#allocation37_spill] sm:$0xff]  ;;  %v15150_v61 = vld [vmem:[#allocation100_spill] sm:$0xff]  ;;  %v5611_v28 = vsel %vm302_vm1, %v5608_v2, %v5610_v48 }
0x115c   :  { %5755 = vmatpush1.msra.mxu0 %v15146_v57  ;;  %5825 = vmatprep.subr.mxu1 %v15147_v34  ;;  %v12144_v57 = vmul.f32 %v5634_v32, %v15152_v23  ;;  %v15154_v26 = vld [vmem:[#allocation41_spill] sm:$0xff]  ;;  %v15155_v34 = vld [vmem:[#allocation48_spill] sm:$0xff]  ;;  %15157 = vst [vmem:[#allocation15_spill] sm:$0xff] %v12151_v17  ;;  %v12159_v32 = vmul.f32 %v5613_v7, %v15160_v40  ;;  %v15161_v23 = vld [vmem:[#allocation22_spill] sm:$0xff] }
0x115d   :  { %5756 = vmatprep.subr.mxu0 %v15149_v51  ;;  %5826 = vmatpush1.msra.mxu1 %v15150_v61  ;;  %v12154_v51 = vmul.f32 %v5612_v6, %v15158_v35  ;;  %v12162_v15 = vmul.f32 %v5614_v3, %v15161_v23  ;;  %v5643_v27 = vld [vmem:[%s13427_s2 + $0x108] sm:$0xff]  ;;  %v15163_v6 = vld [vmem:[#allocation21_spill] sm:$0xff] }
0x115e   :  { %15153 = vst [vmem:[#allocation94_spill] sm:$0xff] %v12144_v57  ;;  %5757 = vmatpush1.msra.mxu0 %v15154_v26  ;;  %5827 = vmatprep.subr.mxu1 %v15155_v34  ;;  %v12170_v48 = vmul.f32 %v5611_v28, %v15163_v6  ;;  %v15165_v2 = vld [vmem:[#allocation5_spill] sm:$0xff]  ;;  %v15168_v28 = vld [vmem:[#allocation4_spill] sm:$0xff] }
0x115f   :  { %5786 = vmatprep.subr.mxu0 %v12132_v4  ;;  %5828 = vmatpush1.msra.mxu1 %v15159_v43  ;;  %15162 = vst [vmem:[#allocation14_spill] sm:$0xff] %v12162_v15  ;;  %v15166_v7 = vld [vmem:[#allocation97_spill] sm:$0xff] }
0x1160   :  { %5787 = vmatpush2.msra.mxu0 %v12141_v58  ;;  %5857 = vmatprep.subr.mxu1 %v12144_v57  ;;  %15164 = vst [vmem:[#allocation33_spill] sm:$0xff] %v12170_v48  ;;  %v15167_v3 = vld [vmem:[#allocation133_spill] sm:$0xff] }
0x1161   :  { %5788 = vmatprep.subr.mxu0 %v12154_v51  ;;  %5858 = vmatpush2.msra.mxu1 %v12151_v17 }
0x1162   :  { %5789 = vmatpush2.msra.mxu0 %v12159_v32  ;;  %5859 = vmatprep.subr.mxu1 %v12162_v15 }
0x1163   :  { %5791 = vmatmul.mubr.f32.vlgmr.msra.gmra.mxu0 %v5643_v27  ;;  %5860 = vmatpush2.msra.mxu1 %v12170_v48  ;;  %v15169_v48 = vld [vmem:[#allocation57_spill] sm:$0xff] }
0x1164   :  { %6159 = vmatprep.subr.mxu0 %v15165_v2  ;;  %5862 = vmatmul.mubr.f32.vlgmr.msra.gmra.mxu1 %v5643_v27  ;;  %v15170_v27 = vld [vmem:[#allocation120_spill] sm:$0xff] }
0x1165   :  { %6160 = vmatpush1.msra.mxu0 %v11945_v56  ;;  %6230 = vmatprep.subr.mxu1 %v11980_v46  ;;  %v15186_v46 = vld [vmem:[#allocation9_spill] sm:$0xff] }
0x1166   :  { %6161 = vmatprep.subr.mxu0 %v15166_v7  ;;  %6231 = vmatpush1.msra.mxu1 %v11977_v59 }
0x1167   :  { %6162 = vmatpush1.msra.mxu0 %v15167_v3  ;;  %6232 = vmatprep.subr.mxu1 %v11996_v9  ;;  %v15421_v9 = vld [vmem:[#allocation25_spill] sm:$0xff] }
0x1168   :  { %6163 = vmatprep.subr.mxu0 %v15168_v28  ;;  %6233 = vmatpush1.msra.mxu1 %v11993_v31 }
0x1169   :  { %6164 = vmatpush1.msra.mxu0 %v15169_v48  ;;  %6234 = vmatprep.subr.mxu1 %v11892_v53 }
0x116a   :  { %6165 = vmatprep.subr.mxu0 %v15170_v27  ;;  %6235 = vmatpush1.msra.mxu1 %v11868_v10 }
0x116b   :  { %6166 = vmatpush1.msra.mxu0 %v11999_v39  ;;  %6236 = vmatprep.subr.mxu1 %v12022_v54 }
0x116c   :  { %6167 = vmatprep.subr.mxu0 %v12002_v25  ;;  %6237 = vmatpush1.msra.mxu1 %v12029_v22 }
0x116d   :  { %6168 = vmatpush1.msra.mxu0 %v12025_v12  ;;  %6238 = vmatprep.subr.mxu1 %v12041_v30 }
0x116e   :  { %6169 = vmatprep.subr.mxu0 %v12032_v60  ;;  %6239 = vmatpush1.msra.mxu1 %v12036_v63 }
0x116f   :  { %6170 = vmatpush1.msra.mxu0 %v12058_v18  ;;  %6240 = vmatprep.subr.mxu1 %v12061_v0 }
0x1170   :  { %6171 = vmatprep.subr.mxu0 %v12065_v5  ;;  %6241 = vmatpush1.msra.mxu1 %v12055_v1 }
0x1171   :  { %6172 = vmatpush1.msra.mxu0 %v12082_v45  ;;  %6242 = vmatprep.subr.mxu1 %v12085_v29  ;;  %v15181_v29 = vld [vmem:[#allocation102_spill] sm:$0xff] }
0x1172   :  { %6173 = vmatprep.subr.mxu0 %v11640_v16  ;;  %6243 = vmatpush1.msra.mxu1 %v12079_v11  ;;  %v15179_v11 = vld [vmem:[#allocation65_spill] sm:$0xff] }
0x1173   :  { %6174 = vmatpush1.msra.mxu0 %v11643_v55  ;;  %6244 = vmatprep.subr.mxu1 %v11701_v24  ;;  %v15177_v24 = vld [vmem:[#allocation59_spill] sm:$0xff] }
0x1174   :  { %6175 = vmatprep.subr.mxu0 %v11649_v42  ;;  %6245 = vmatpush1.msra.mxu1 %v11698_v20  ;;  %v15175_v20 = vld [vmem:[#allocation51_spill] sm:$0xff] }
0x1175   :  { %6176 = vmatpush1.msra.mxu0 %v11655_v19  ;;  %6246 = vmatprep.subr.mxu1 %v11722_v8  ;;  %v15173_v8 = vld [vmem:[#allocation23_spill] sm:$0xff] }
0x1176   :  { %6177 = vmatprep.subr.mxu0 %v11661_v62  ;;  %6247 = vmatpush1.msra.mxu1 %v11719_v37  ;;  %v15171_v37 = vld [vmem:[#allocation104_spill] sm:$0xff] }
0x1177   :  { %6178 = vmatpush1.msra.mxu0 %v11665_v36  ;;  %6248 = vmatprep.subr.mxu1 %v11749_v49  ;;  %v15172_v49 = vld [vmem:[#allocation72_spill] sm:$0xff] }
0x1178   :  { %6179 = vmatprep.subr.mxu0 %v11678_v33  ;;  %6249 = vmatpush1.msra.mxu1 %v11746_v52  ;;  %v15174_v52 = vld [vmem:[#allocation82_spill] sm:$0xff] }
0x1179   :  { %6180 = vmatpush1.msra.mxu0 %v11681_v38  ;;  %6250 = vmatprep.subr.mxu1 %v11774_v13  ;;  %v15176_v13 = vld [vmem:[#allocation87_spill] sm:$0xff] }
0x117a   :  { %6181 = vmatprep.subr.mxu0 %v11550_v14  ;;  %6251 = vmatpush1.msra.mxu1 %v11771_v21  ;;  %v15178_v21 = vld [vmem:[#allocation89_spill] sm:$0xff] }
0x117b   :  { %6182 = vmatpush1.msra.mxu0 %v11539_v47  ;;  %6252 = vmatprep.subr.mxu1 %v11588_v41  ;;  %v15180_v41 = vld [vmem:[#allocation19_spill] sm:$0xff] }
0x117c   :  { %6183 = vmatprep.subr.mxu0 %v15136_v50  ;;  %6253 = vmatpush1.msra.mxu1 %v15171_v37  ;;  %v15182_v37 = vld [vmem:[#allocation37_spill] sm:$0xff] }
0x117d   :  { %6184 = vmatpush1.msra.mxu0 %v15172_v49  ;;  %6254 = vmatprep.subr.mxu1 %v15173_v8 }
0x117e   :  { %6185 = vmatprep.subr.mxu0 %v15174_v52  ;;  %6255 = vmatpush1.msra.mxu1 %v15175_v20  ;;  %v5721_v20 = vpop.permute.xlu0 %5720 }
0x117f   :  { %6186 = vmatpush1.msra.mxu0 %v15176_v13  ;;  %6256 = vmatprep.subr.mxu1 %v15177_v24 }
0x1180   :  { %6187 = vmatprep.subr.mxu0 %v15178_v21  ;;  %6257 = vmatpush1.msra.mxu1 %v15179_v11 }
0x1181   :  { %6188 = vmatpush1.msra.mxu0 %v15180_v41  ;;  %6258 = vmatprep.subr.mxu1 %v15181_v29 }
0x1182   :  { %6189 = vmatprep.subr.mxu0 %v15182_v37  ;;  %6259 = vmatpush1.msra.mxu1 %v15150_v61  ;;  %v15188_v37 = vld [vmem:[#allocation8_spill] sm:$0xff] }
0x1183   :  { %6190 = vmatpush1.msra.mxu0 %v15154_v26  ;;  %6260 = vmatprep.subr.mxu1 %v15155_v34 }
0x1184   :  { %6261 = vmatpush1.msra.mxu1 %v15159_v43 }
0x1223   :  { %v5792_v24 = vpop.f32.mrf.mxu0 }
0x1224   :  { %v5793_v8 = vadd.f32 %v5792_v24, %v5721_v20  ;;  %v5863_v1 = vpop.f32.mrf.mxu1 }
0x1225   :  { %v5864_v63 = vadd.f32 %v5863_v1, %v5721_v20  ;;  %v5794_v30 = vpop.f32.mrf.mxu0  ;;  %v6150_v1 = vld [vmem:[%s13425_s3 + $0x60] sm:$0xff] }
0x1226   :  { %v5868_v0 = vmul.f32 0.2, %v5793_v8  ;;  %v5795_v29 = vadd.f32 %v5794_v30, %v5721_v20 }
0x1227   :  { %v5870_v61 = vmul.f32 0.2, %v5864_v63 }
0x1228   :  { %v12241_v11 = vmax.f32 %v5793_v8, %v5868_v0  ;;  %v5869_v0 = vmul.f32 0.2, %v5795_v29 }
0x1229   :  { %v12251_v24 = vmax.f32 %v5864_v63, %v5870_v61  ;;  %v5865_v61 = vpop.f32.mrf.mxu1 }
0x122a   :  { %5916 = vrot.lane.b32.xlu0 %v12241_v11, %s7651_s28  ;;  %6020 = vrot.lane.b32.xlu1 %v12241_v11, %s7646_s19  ;;  %v12257_v8 = vmax.f32 %v5795_v29, %v5869_v0  ;;  %v5866_v29 = vadd.f32 %v5865_v61, %v5721_v20  ;;  %v6041_v20 = vld [vmem:[%s13427_s2 + $0x128] sm:$0xff] }
0x122b   :  { %15183 = vst [vmem:[#allocation27_spill] sm:$0xff] %v12251_v24  ;;  %7616 = vmatprep.mubr.msk.f32.mxu0 %vm1253_vm10, %v6041_v20  ;;  %7617 = vmatprep.mubr.msk.f32.mxu1 %vm1253_vm10, %v6041_v20 }
0x122c   :  { %v5871_v63 = vmul.f32 0.2, %v5866_v29 }
0x122e   :  { %5896 = vrot.lane.b32.xlu0 %v12241_v11, %s7652_s29  ;;  %6000 = vrot.lane.b32.xlu1 %v12241_v11, %s7647_s22  ;;  %v12283_v30 = vmax.f32 %v5866_v29, %v5871_v63 }
0x1230   :  { %15184 = vst [vmem:[#allocation47_spill] sm:$0xff] %v12283_v30 }
0x1232   :  { %6024 = vrot.lane.b32.xlu0 %v12251_v24, %s7646_s19  ;;  %5980 = vrot.lane.b32.xlu1 %v12241_v11, %s7648_s25 }
0x1236   :  { %6002 = vrot.lane.b32.xlu0 %v12257_v8, %s7647_s22  ;;  %5960 = vrot.lane.b32.xlu1 %v12241_v11, %s7649_s26 }
0x123a   :  { %5982 = vrot.lane.b32.xlu0 %v12257_v8, %s7648_s25  ;;  %5936 = vrot.lane.b32.xlu1 %v12241_v11, %s7650_s27 }
0x123e   :  { %5962 = vrot.lane.b32.xlu0 %v12257_v8, %s7649_s26  ;;  %6022 = vrot.lane.b32.xlu1 %v12257_v8, %s7646_s19 }
0x1242   :  { %5938 = vrot.lane.b32.xlu0 %v12257_v8, %s7650_s27  ;;  %6004 = vrot.lane.b32.xlu1 %v12251_v24, %s7647_s22 }
0x1246   :  { %5940 = vrot.lane.b32.xlu0 %v12251_v24, %s7650_s27  ;;  %5984 = vrot.lane.b32.xlu1 %v12251_v24, %s7648_s25 }
0x124a   :  { %5920 = vrot.lane.b32.xlu0 %v12251_v24, %s7651_s28  ;;  %5964 = vrot.lane.b32.xlu1 %v12251_v24, %s7649_s26 }
0x124e   :  { %6026 = vrot.lane.b32.xlu0 %v12283_v30, %s7646_s19  ;;  %5918 = vrot.lane.b32.xlu1 %v12257_v8, %s7651_s28 }
0x1252   :  { %6006 = vrot.lane.b32.xlu0 %v12283_v30, %s7647_s22  ;;  %5898 = vrot.lane.b32.xlu1 %v12257_v8, %s7652_s29 }
0x1256   :  { %5986 = vrot.lane.b32.xlu0 %v12283_v30, %s7648_s25  ;;  %5878 = vrot.lane.b32.xlu1 %v12257_v8, %s7654_s30 }
0x125a   :  { %5966 = vrot.lane.b32.xlu0 %v12283_v30, %s7649_s26  ;;  %5942 = vrot.lane.b32.xlu1 %v12283_v30, %s7650_s27 }
0x125e   :  { %5876 = vrot.lane.b32.xlu0 %v12241_v11, %s7654_s30  ;;  %5922 = vrot.lane.b32.xlu1 %v12283_v30, %s7651_s28 }
0x1262   :  { %5900 = vrot.lane.b32.xlu0 %v12251_v24, %s7652_s29  ;;  %5902 = vrot.lane.b32.xlu1 %v12283_v30, %s7652_s29 }
0x1266   :  { %5880 = vrot.lane.b32.xlu0 %v12251_v24, %s7654_s30  ;;  %5882 = vrot.lane.b32.xlu1 %v12283_v30, %s7654_s30 }
0x126a   :  { %6153 = vperm.xlu1 %7633, %v6150_v1  }
0x129c   :  { %v12321_v0 = vpop.permute.xlu0 %5916  ;;  %v6021_v61 = vpop.permute.xlu1 %6020 }
0x12a0   :  { %v12323_v29 = vpop.permute.xlu0 %5896  ;;  %v6001_v63 = vpop.permute.xlu1 %6000 }
0x12a4   :  { %v6025_v20 = vpop.permute.xlu0 %6024  ;;  %v5981_v43 = vpop.permute.xlu1 %5980 }
0x12a8   :  { %v6003_v34 = vpop.permute.xlu0 %6002  ;;  %v12325_v22 = vpop.permute.xlu1 %5960 }
0x12a9   :  { %v6010_v21 = vsel %vm302_vm1, %v6001_v63, %v6003_v34 }
0x12ac   :  { %v5983_v54 = vpop.permute.xlu0 %5982  ;;  %v12327_v10 = vpop.permute.xlu1 %5936 }
0x12b0   :  { %v5963_v53 = vpop.permute.xlu0 %5962  ;;  %v6023_v31 = vpop.permute.xlu1 %6022 }
0x12b1   :  { %v6029_v59 = vsel %vm344_vm0, %v6023_v31, %v6025_v20  ;;  %v6030_v1 = vsel %vm344_vm0, %v6021_v61, %v6023_v31 }
0x12b2   :  { %v12334_v26 = vmul.f32 %v6030_v1, %v15186_v46  ;;  %v12337_v41 = vmul.f32 %v6029_v59, %v15188_v37  ;;  %v12351_v1 = vmul.f32 %v6010_v21, %v15160_v40  ;;  %v5990_v59 = vsel %vm260_vm2, %v5981_v43, %v5983_v54 }
0x12b3   :  { %v5970_v21 = vsel %vm218_vm3, %v12325_v22, %v5963_v53 }
0x12b4   :  { %15187 = vst [vmem:[#allocation43_spill] sm:$0xff] %v12334_v26  ;;  %15189 = vst [vmem:[#allocation125_spill] sm:$0xff] %v12337_v41  ;;  %v12341_v13 = vpop.permute.xlu0 %5938  ;;  %6201 = vmatprep.subr.mxu0 %v12337_v41  ;;  %v6005_v52 = vpop.permute.xlu1 %6004 }
0x12b5   :  { %v6009_v49 = vsel %vm302_vm1, %v6003_v34, %v6005_v52  ;;  %6202 = vmatpush2.msra.mxu0 %v12334_v26  ;;  %15191 = vst [vmem:[#allocation55_spill] sm:$0xff] %v12351_v1  ;;  %v15192_v34 = vld [vmem:[#allocation20_spill] sm:$0xff] }
0x12b6   :  { %v12348_v31 = vmul.f32 %v6009_v49, %v15158_v35  ;;  %v15194_v49 = vld [vmem:[#allocation26_spill] sm:$0xff] }
0x12b7   :  { %v12363_v35 = vmul.f32 %v5990_v59, %v15194_v49  ;;  %v5946_v59 = vsel %vm172_vm4, %v12327_v10, %v12341_v13 }
0x12b8   :  { %15190 = vst [vmem:[#allocation121_spill] sm:$0xff] %v12348_v31  ;;  %v5941_v37 = vpop.permute.xlu0 %5940  ;;  %6203 = vmatprep.subr.mxu0 %v12348_v31  ;;  %v5985_v46 = vpop.permute.xlu1 %5984 }
0x12b9   :  { %v5989_v41 = vsel %vm260_vm2, %v5983_v54, %v5985_v46  ;;  %6204 = vmatpush2.msra.mxu0 %v12351_v1  ;;  %15195 = vst [vmem:[#allocation98_spill] sm:$0xff] %v12363_v35  ;;  %v15196_v54 = vld [vmem:[#allocation28_spill] sm:$0xff] }
0x12ba   :  { %v12360_v26 = vmul.f32 %v5989_v41, %v15192_v34  ;;  %v15198_v41 = vld [vmem:[#allocation31_spill] sm:$0xff] }
0x12bb   :  { %v12376_v34 = vmul.f32 %v5970_v21, %v15198_v41  ;;  %v15201_v41 = vld [vmem:[#allocation13_spill] sm:$0xff] }
0x12bc   :  { %15193 = vst [vmem:[#allocation69_spill] sm:$0xff] %v12360_v26  ;;  %v5921_v40 = vpop.permute.xlu0 %5920  ;;  %6205 = vmatprep.subr.mxu0 %v12360_v26  ;;  %v5965_v31 = vpop.permute.xlu1 %5964 }
0x12bd   :  { %v5969_v50 = vsel %vm218_vm3, %v5963_v53, %v5965_v31  ;;  %6206 = vmatpush2.msra.mxu0 %v12363_v35 }
0x12be   :  { %v12373_v1 = vmul.f32 %v5969_v50, %v15196_v54  ;;  %v15199_v50 = vld [vmem:[#allocation40_spill] sm:$0xff] }
0x12bf   :  { %v12389_v21 = vmul.f32 %v5946_v59, %v15199_v50 }
0x12c0   :  { %15197 = vst [vmem:[#allocation76_spill] sm:$0xff] %v12373_v1  ;;  %v6027_v49 = vpop.permute.xlu0 %6026  ;;  %6207 = vmatprep.subr.mxu0 %v12373_v1  ;;  %v5919_v26 = vpop.permute.xlu1 %5918 }
0x12c1   :  { %v6028_v53 = vsel %vm344_vm0, %v6025_v20, %v6027_v49  ;;  %v6031_v35 = vsel %vm344_vm0, %v6027_v49, %v6021_v61  ;;  %6208 = vmatpush2.msra.mxu0 %v12376_v34 }
0x12c2   :  { %v12392_v54 = vmul.f32 %v6028_v53, %v15156_v44  ;;  %v12395_v47 = vmul.f32 %v6031_v35, %v15201_v41  ;;  %6209 = vmatprep.subr.mxu0 %v12257_v8 }
0x12c3   :  { %6210 = vmatpush2.msra.mxu0 %v12241_v11 }
0x12c4   :  { %15200 = vst [vmem:[#allocation105_spill] sm:$0xff] %v12392_v54  ;;  %15202 = vst [vmem:[#allocation137_spill] sm:$0xff] %v12395_v47  ;;  %v6007_v1 = vpop.permute.xlu0 %6006  ;;  %6211 = vmatprep.subr.mxu0 %v12389_v21  ;;  %6272 = vmatprep.subr.mxu1 %v12395_v47  ;;  %v5899_v61 = vpop.permute.xlu1 %5898 }
0x12c5   :  { %v6008_v20 = vsel %vm302_vm1, %v6005_v52, %v6007_v1  ;;  %v6011_v49 = vsel %vm302_vm1, %v6007_v1, %v6001_v63  ;;  %6273 = vmatpush2.msra.mxu1 %v12392_v54  ;;  %v15205_v63 = vld [vmem:[#allocation29_spill] sm:$0xff] }
0x12c6   :  { %v12407_v35 = vmul.f32 %v6008_v20, %v15163_v6  ;;  %v12410_v59 = vmul.f32 %v6011_v49, %v15161_v23  ;;  %v15207_v20 = vld [vmem:[#allocation30_spill] sm:$0xff]  ;;  %v5926_v49 = vsel %vm130_vm5, %v12321_v0, %v5919_v26 }
0x12c8   :  { %15203 = vst [vmem:[#allocation130_spill] sm:$0xff] %v12407_v35  ;;  %15204 = vst [vmem:[#allocation106_spill] sm:$0xff] %v12410_v59  ;;  %v5987_v53 = vpop.permute.xlu0 %5986  ;;  %6274 = vmatprep.subr.mxu1 %v12410_v59  ;;  %v5879_v44 = vpop.permute.xlu1 %5878 }
0x12c9   :  { %v5988_v41 = vsel %vm260_vm2, %v5985_v46, %v5987_v53  ;;  %v5991_v52 = vsel %vm260_vm2, %v5987_v53, %v5981_v43  ;;  %6275 = vmatpush2.msra.mxu1 %v12407_v35  ;;  %v15209_v53 = vld [vmem:[#allocation32_spill] sm:$0xff] }
0x12ca   :  { %v12419_v1 = vmul.f32 %v5988_v41, %v15205_v63  ;;  %v12422_v6 = vmul.f32 %v5991_v52, %v15207_v20  ;;  %v15211_v63 = vld [vmem:[#allocation36_spill] sm:$0xff] }
0x12cc   :  { %15206 = vst [vmem:[#allocation126_spill] sm:$0xff] %v12419_v1  ;;  %15208 = vst [vmem:[#allocation123_spill] sm:$0xff] %v12422_v6  ;;  %v5967_v23 = vpop.permute.xlu0 %5966  ;;  %6276 = vmatprep.subr.mxu1 %v12422_v6  ;;  %v5943_v59 = vpop.permute.xlu1 %5942  ;;  %v15213_v6 = vld [vmem:[#allocation42_spill] sm:$0xff] }
0x12cd   :  { %v5968_v46 = vsel %vm218_vm3, %v5965_v31, %v5967_v23  ;;  %v5971_v43 = vsel %vm218_vm3, %v5967_v23, %v12325_v22  ;;  %v5947_v41 = vsel %vm172_vm4, %v5943_v59, %v12327_v10  ;;  %6277 = vmatpush2.msra.mxu1 %v12419_v1  ;;  %v15215_v31 = vld [vmem:[#allocation44_spill] sm:$0xff]  ;;  %v5944_v23 = vsel %vm172_vm4, %v5941_v37, %v5943_v59 }
0x12ce   :  { %v12438_v52 = vmul.f32 %v5968_v46, %v15209_v53  ;;  %v12441_v20 = vmul.f32 %v5971_v43, %v15211_v63  ;;  %v12444_v35 = vmul.f32 %v5947_v41, %v15213_v6  ;;  %v12447_v54 = vmul.f32 %v5926_v49, %v15215_v31  ;;  %v15219_v53 = vld [vmem:[#allocation50_spill] sm:$0xff] }
0x12cf   :  { %v5945_v10 = vsel %vm172_vm4, %v12341_v13, %v5941_v37  ;;  %v5906_v22 = vsel %vm88_vm6, %v12323_v29, %v5899_v61  ;;  %v5925_v49 = vsel %vm130_vm5, %v5919_v26, %v5921_v40  ;;  %v15217_v13 = vld [vmem:[#allocation46_spill] sm:$0xff]  ;;  %v15221_v26 = vld [vmem:[#allocation45_spill] sm:$0xff] }
0x12d0   :  { %15210 = vst [vmem:[#allocation49_spill] sm:$0xff] %v12438_v52  ;;  %15212 = vst [vmem:[#allocation67_spill] sm:$0xff] %v12441_v20  ;;  %v5877_v46 = vpop.permute.xlu0 %5876  ;;  %6212 = vmatpush2.msra.mxu0 %v12444_v35  ;;  %6278 = vmatprep.subr.mxu1 %v12441_v20  ;;  %v5923_v43 = vpop.permute.xlu1 %5922  ;;  %v12469_v41 = vmul.f32 %v5944_v23, %v15217_v13  ;;  %v12476_v20 = vmul.f32 %v5945_v10, %v15221_v26 }
0x12d1   :  { %15214 = vst [vmem:[#allocation66_spill] sm:$0xff] %v12444_v35  ;;  %15216 = vst [vmem:[#allocation71_spill] sm:$0xff] %v12447_v54  ;;  %v5924_v59 = vsel %vm130_vm5, %v5921_v40, %v5923_v43  ;;  %v5927_v37 = vsel %vm130_vm5, %v5923_v43, %v12321_v0  ;;  %6213 = vmatprep.subr.mxu0 %v12447_v54  ;;  %6279 = vmatpush2.msra.mxu1 %v12438_v52  ;;  %v15223_v40 = vld [vmem:[#allocation52_spill] sm:$0xff]  ;;  %v15224_v0 = vld [vmem:[#allocation53_spill] sm:$0xff] }
0x12d2   :  { %15218 = vst [vmem:[#allocation143_spill] sm:$0xff] %v12469_v41  ;;  %v12472_v63 = vmul.f32 %v5927_v37, %v15219_v53  ;;  %6280 = vmatprep.subr.mxu1 %v12283_v30  ;;  %15222 = vst [vmem:[#allocation145_spill] sm:$0xff] %v12476_v20  ;;  %v12479_v1 = vmul.f32 %v5906_v22, %v15223_v40  ;;  %v12483_v43 = vmul.f32 %v5925_v49, %v15224_v0  ;;  %v15226_v52 = vld [vmem:[#allocation54_spill] sm:$0xff] }
0x12d3   :  { %6281 = vmatpush2.msra.mxu1 %v12251_v24  ;;  %v5886_v23 = vsel %vm46_vm7, %v5877_v46, %v5879_v44  ;;  %v12488_v47 = vmul.f32 %v5924_v59, %v15226_v52  ;;  %v15228_v59 = vld [vmem:[#allocation61_spill] sm:$0xff]  ;;  %v15232_v54 = vld [vmem:[#allocation62_spill] sm:$0xff] }
0x12d4   :  { %15220 = vst [vmem:[#allocation144_spill] sm:$0xff] %v12472_v63  ;;  %15225 = vst [vmem:[#allocation146_spill] sm:$0xff] %v12483_v43  ;;  %v5901_v37 = vpop.permute.xlu0 %5900  ;;  %6214 = vmatpush2.msra.mxu0 %v12472_v63  ;;  %6282 = vmatprep.subr.mxu1 %v12469_v41  ;;  %v5903_v10 = vpop.permute.xlu1 %5902  ;;  %v15230_v63 = vld [vmem:[#allocation58_spill] sm:$0xff] }
0x12d5   :  { %15227 = vst [vmem:[#allocation128_spill] sm:$0xff] %v12488_v47  ;;  %v5905_v22 = vsel %vm88_vm6, %v5899_v61, %v5901_v37  ;;  %v5904_v24 = vsel %vm88_vm6, %v5901_v37, %v5903_v10  ;;  %v5907_v49 = vsel %vm88_vm6, %v5903_v10, %v12323_v29  ;;  %6215 = vmatprep.subr.mxu0 %v12479_v1  ;;  %v15234_v61 = vld [vmem:[#allocation60_spill] sm:$0xff] }
0x12d6   :  { %6283 = vmatpush2.msra.mxu1 %v12476_v20  ;;  %v12502_v30 = vmul.f32 %v5905_v22, %v15228_v59  ;;  %v12505_v41 = vmul.f32 %v5907_v49, %v15230_v63  ;;  %v12508_v35 = vmul.f32 %v5904_v24, %v15232_v54  ;;  %v12512_v37 = vmul.f32 %v5886_v23, %v15234_v61  ;;  %v15235_v23 = vld [vmem:[#allocation64_spill] sm:$0xff] }
0x12d7   :  { %6284 = vmatprep.subr.mxu1 %v12488_v47  ;;  %v15236_v47 = vld [vmem:[#allocation63_spill] sm:$0xff] }
0x12d8   :  { %15229 = vst [vmem:[#allocation70_spill] sm:$0xff] %v12502_v30  ;;  %15231 = vst [vmem:[#allocation6_spill] sm:$0xff] %v12505_v41  ;;  %6285 = vmatpush2.msra.mxu1 %v12483_v43  ;;  %v5881_v29 = vpop.permute.xlu0 %5880  ;;  %6216 = vmatpush2.msra.mxu0 %v12505_v41  ;;  %v5883_v10 = vpop.permute.xlu1 %5882 }
0x12d9   :  { %15233 = vst [vmem:[#allocation127_spill] sm:$0xff] %v12508_v35  ;;  %6286 = vmatprep.subr.mxu1 %v12508_v35  ;;  %v5885_v22 = vsel %vm46_vm7, %v5879_v44, %v5881_v29  ;;  %v5884_v24 = vsel %vm46_vm7, %v5881_v29, %v5883_v10  ;;  %v5887_v49 = vsel %vm46_vm7, %v5883_v10, %v5877_v46  ;;  %v15237_v35 = vld [vmem:[#allocation68_spill] sm:$0xff]  ;;  %v6040_v44 = vld [vmem:[%s13427_s2 + $0x120] sm:$0xff]  ;;  %v15239_v46 = vld [vmem:[#allocation33_spill] sm:$0xff]  ;;  %v15240_v29 = vmov 0.0  }
0x12da   :  { %6217 = vmatprep.subr.mxu0 %v12512_v37  ;;  %6287 = vmatpush2.msra.mxu1 %v12502_v30  ;;  %v12526_v43 = vmul.f32 %v5885_v22, %v15235_v23  ;;  %v12529_v20 = vmul.f32 %v5887_v49, %v15236_v47  ;;  %v12532_v41 = vmul.f32 %v5884_v24, %v15237_v35  ;;  %v15241_v10 = vld [vmem:[#allocation99_spill] sm:$0xff]  ;;  %v15243_v24 = vld [vmem:[#allocation72_spill] sm:$0xff]  ;;  %v15244_v49 = vld [vmem:[#allocation82_spill] sm:$0xff] }
0x12db   :  { %v15242_v22 = vld [vmem:[#allocation91_spill] sm:$0xff] }
0x12dc   :  { %15238 = vst [vmem:[#allocation108_spill] sm:$0xff] %v12532_v41  ;;  %6218 = vmatpush2.msra.mxu0 %v12529_v20  ;;  %6288 = vmatprep.subr.mxu1 %v12532_v41 }
0x12dd   :  { %6219 = vmatprep.subr.mxu0 %v12132_v4  ;;  %6289 = vmatpush2.msra.mxu1 %v12526_v43 }
0x12de   :  { %6220 = vmatpush2.msra.mxu0 %v12141_v58  ;;  %6290 = vmatprep.subr.mxu1 %v12144_v57 }
0x12df   :  { %6221 = vmatprep.subr.mxu0 %v12154_v51  ;;  %6291 = vmatpush2.msra.mxu1 %v12151_v17  ;;  %v15286_v17 = vld [vmem:[#allocation95_spill] sm:$0xff] }
0x12e0   :  { %6222 = vmatpush2.msra.mxu0 %v12159_v32  ;;  %6292 = vmatprep.subr.mxu1 %v12162_v15  ;;  %v15282_v15 = vld [vmem:[#allocation124_spill] sm:$0xff] }
0x12e1   :  { %6224 = vmatmul.mubr.f32.vlgmr.msra.gmra.mxu0 %v6040_v44  ;;  %6293 = vmatpush2.msra.mxu1 %v15239_v46 }
0x12e2   :  { %6629 = vmatprep.subr.mxu0 %v15165_v2  ;;  %6295 = vmatmul.mubr.f32.vlgmr.msra.gmra.mxu1 %v6040_v44  ;;  %v15245_v44 = vld [vmem:[#allocation87_spill] sm:$0xff] }
0x12e3   :  { %6630 = vmatpush1.msra.mxu0 %v11945_v56  ;;  %6764 = vmatprep.mubr.f32.mxu1 %v15240_v29 }
0x12e4   :  { %6631 = vmatprep.subr.mxu0 %v15166_v7  ;;  %v15288_v7 = vld [vmem:[#allocation16_spill] sm:$0xff] }
0x12e5   :  { %6632 = vmatpush1.msra.mxu0 %v15167_v3  ;;  %v15283_v3 = vld [vmem:[#allocation101_spill] sm:$0xff] }
0x12e6   :  { %6633 = vmatprep.subr.mxu0 %v15168_v28  ;;  %v15281_v28 = vld [vmem:[#allocation25_spill] sm:$0xff] }
0x12e7   :  { %6634 = vmatpush1.msra.mxu0 %v15169_v48  ;;  %v15274_v48 = vld [vmem:[#allocation3_spill] sm:$0xff] }
0x12e8   :  { %6635 = vmatprep.subr.mxu0 %v15170_v27 }
0x12e9   :  { %6636 = vmatpush1.msra.mxu0 %v11999_v39 }
0x12ea   :  { %6637 = vmatprep.subr.mxu0 %v12002_v25 }
0x12eb   :  { %6638 = vmatpush1.msra.mxu0 %v12025_v12 }
0x12ec   :  { %6639 = vmatprep.subr.mxu0 %v12032_v60 }
0x12ed   :  { %6640 = vmatpush1.msra.mxu0 %v12058_v18 }
0x12ee   :  { %6641 = vmatprep.subr.mxu0 %v12065_v5 }
0x12ef   :  { %6642 = vmatpush1.msra.mxu0 %v12082_v45 }
0x12f0   :  { %6643 = vmatprep.subr.mxu0 %v11640_v16 }
0x12f1   :  { %6644 = vmatpush1.msra.mxu0 %v11643_v55 }
0x12f2   :  { %6645 = vmatprep.subr.mxu0 %v11649_v42 }
0x12f3   :  { %6646 = vmatpush1.msra.mxu0 %v11655_v19  ;;  %v15246_v19 = vld [vmem:[#allocation89_spill] sm:$0xff] }
0x12f4   :  { %6647 = vmatprep.subr.mxu0 %v11661_v62  ;;  %v15247_v62 = vld [vmem:[#allocation19_spill] sm:$0xff] }
0x12f5   :  { %6648 = vmatpush1.msra.mxu0 %v11665_v36  ;;  %v15248_v36 = vld [vmem:[#allocation37_spill] sm:$0xff] }
0x12f6   :  { %6649 = vmatprep.subr.mxu0 %v11678_v33  ;;  %v15249_v33 = vld [vmem:[#allocation41_spill] sm:$0xff] }
0x12f7   :  { %6650 = vmatpush1.msra.mxu0 %v11681_v38  ;;  %v6154_v38 = vpop.permute.xlu1 %6153 }
0x12f8   :  { %6651 = vmatprep.subr.mxu0 %v11550_v14 }
0x12f9   :  { %6652 = vmatpush1.msra.mxu0 %v15241_v10 }
0x12fa   :  { %6653 = vmatprep.subr.mxu0 %v15242_v22 }
0x12fb   :  { %6654 = vmatpush1.msra.mxu0 %v15243_v24 }
0x12fc   :  { %6655 = vmatprep.subr.mxu0 %v15244_v49 }
0x12fd   :  { %6656 = vmatpush1.msra.mxu0 %v15245_v44 }
0x12fe   :  { %6657 = vmatprep.subr.mxu0 %v15246_v19 }
0x12ff   :  { %6658 = vmatpush1.msra.mxu0 %v15247_v62 }
0x1300   :  { %6659 = vmatprep.subr.mxu0 %v15248_v36  ;;  %v15256_v36 = vld [vmem:[#allocation8_spill] sm:$0xff] }
0x1301   :  { %6660 = vmatpush1.msra.mxu0 %v15249_v33 }
0x13a1   :  { %v6225_v14 = vpop.f32.mrf.mxu0 }
0x13a2   :  { %v6226_v42 = vadd.f32 %v6225_v14, %v6154_v38  ;;  %v6296_v10 = vpop.f32.mrf.mxu1 }
0x13a3   :  { %v6297_v55 = vadd.f32 %v6296_v10, %v6154_v38  ;;  %v6227_v22 = vpop.f32.mrf.mxu0  ;;  %v6474_v10 = vld [vmem:[%s13427_s2 + $0x140] sm:$0xff] }
0x13a4   :  { %v6301_v16 = vmul.f32 0.2, %v6226_v42  ;;  %v6228_v24 = vadd.f32 %v6227_v22, %v6154_v38  ;;  %v6298_v14 = vpop.f32.mrf.mxu1  ;;  %6693 = vmatprep.mubr.f32.mxu0 %v6474_v10 }
0x13a5   :  { %v6303_v49 = vmul.f32 0.2, %v6297_v55 }
0x13a6   :  { %v12581_v45 = vmax.f32 %v6226_v42, %v6301_v16  ;;  %v6302_v44 = vmul.f32 0.2, %v6228_v24  ;;  %v6299_v16 = vadd.f32 %v6298_v14, %v6154_v38  ;;  %v6620_v38 = vld [vmem:[%s13425_s3 + $0x68] sm:$0xff] }
0x13a7   :  { %v12589_v33 = vmax.f32 %v6297_v55, %v6303_v49 }
0x13a8   :  { %15250 = vst [vmem:[#allocation107_spill] sm:$0xff] %v12581_v45  ;;  %v12583_v5 = vmax.f32 %v6228_v24, %v6302_v44  ;;  %6433 = vrot.lane.b32.xlu1 %v12581_v45, %s7647_s22  ;;  %6453 = vrot.lane.b32.xlu0 %v12581_v45, %s7646_s19  ;;  %v6304_v55 = vmul.f32 0.2, %v6299_v16 }
0x13a9   :  { %15252 = vst [vmem:[#allocation109_spill] sm:$0xff] %v12589_v33 }
0x13aa   :  { %15251 = vst [vmem:[#allocation112_spill] sm:$0xff] %v12583_v5  ;;  %6661 = vmatprep.subr.mxu0 %v12583_v5  ;;  %v12629_v42 = vmax.f32 %v6299_v16, %v6304_v55 }
0x13ab   :  { %6662 = vmatpush2.msra.mxu0 %v12581_v45 }
0x13ac   :  { %6457 = vrot.lane.b32.xlu1 %v12589_v33, %s7646_s19  ;;  %6413 = vrot.lane.b32.xlu0 %v12581_v45, %s7648_s25  ;;  %15253 = vst [vmem:[#allocation138_spill] sm:$0xff] %v12629_v42 }
0x13b0   :  { %6435 = vrot.lane.b32.xlu1 %v12583_v5, %s7647_s22  ;;  %6455 = vrot.lane.b32.xlu0 %v12583_v5, %s7646_s19 }
0x13b4   :  { %6417 = vrot.lane.b32.xlu1 %v12589_v33, %s7648_s25  ;;  %6437 = vrot.lane.b32.xlu0 %v12589_v33, %s7647_s22 }
0x13b8   :  { %6395 = vrot.lane.b32.xlu1 %v12583_v5, %s7649_s26  ;;  %6415 = vrot.lane.b32.xlu0 %v12583_v5, %s7648_s25 }
0x13bc   :  { %6393 = vrot.lane.b32.xlu1 %v12581_v45, %s7649_s26  ;;  %6397 = vrot.lane.b32.xlu0 %v12589_v33, %s7649_s26 }
0x13c0   :  { %6349 = vrot.lane.b32.xlu1 %v12581_v45, %s7651_s28  ;;  %6369 = vrot.lane.b32.xlu0 %v12581_v45, %s7650_s27 }
0x13c4   :  { %6309 = vrot.lane.b32.xlu1 %v12581_v45, %s7654_s30  ;;  %6329 = vrot.lane.b32.xlu0 %v12581_v45, %s7652_s29 }
0x13c8   :  { %6371 = vrot.lane.b32.xlu1 %v12583_v5, %s7650_s27  ;;  %6351 = vrot.lane.b32.xlu0 %v12583_v5, %s7651_s28 }
0x13cc   :  { %6331 = vrot.lane.b32.xlu1 %v12583_v5, %s7652_s29  ;;  %6311 = vrot.lane.b32.xlu0 %v12583_v5, %s7654_s30  ;;  %v15254_v5 = vld [vmem:[#allocation9_spill] sm:$0xff] }
0x13d0   :  { %6355 = vrot.lane.b32.xlu1 %v12629_v42, %s7651_s28  ;;  %6375 = vrot.lane.b32.xlu0 %v12629_v42, %s7650_s27 }
0x13d4   :  { %6373 = vrot.lane.b32.xlu1 %v12589_v33, %s7650_s27  ;;  %6335 = vrot.lane.b32.xlu0 %v12629_v42, %s7652_s29 }
0x13d8   :  { %6353 = vrot.lane.b32.xlu1 %v12589_v33, %s7651_s28  ;;  %6315 = vrot.lane.b32.xlu0 %v12629_v42, %s7654_s30 }
0x13dc   :  { %6313 = vrot.lane.b32.xlu1 %v12589_v33, %s7654_s30  ;;  %6333 = vrot.lane.b32.xlu0 %v12589_v33, %s7652_s29 }
0x13e0   :  { %6439 = vrot.lane.b32.xlu1 %v12629_v42, %s7647_s22  ;;  %6459 = vrot.lane.b32.xlu0 %v12629_v42, %s7646_s19 }
0x13e4   :  { %6399 = vrot.lane.b32.xlu1 %v12629_v42, %s7649_s26  ;;  %6419 = vrot.lane.b32.xlu0 %v12629_v42, %s7648_s25 }
0x13e8   :  { %6623 = vperm.xlu0 %7632, %v6620_v38  }
0x141a   :  { %v12661_v22 = vpop.permute.xlu1 %6433  ;;  %v12663_v24 = vpop.permute.xlu0 %6453 }
0x141e   :  { %v12665_v49 = vpop.permute.xlu1 %6457  ;;  %v12667_v44 = vpop.permute.xlu0 %6413 }
0x1422   :  { %v6436_v14 = vpop.permute.xlu1 %6435  ;;  %v6456_v16 = vpop.permute.xlu0 %6455 }
0x1423   :  { %v6462_v55 = vsel %vm344_vm0, %v6456_v16, %v12665_v49  ;;  %v6463_v45 = vsel %vm344_vm0, %v12663_v24, %v6456_v16  ;;  %v6443_v19 = vsel %vm302_vm1, %v12661_v22, %v6436_v14 }
0x1424   :  { %v12676_v38 = vmul.f32 %v6463_v45, %v15254_v5  ;;  %v12679_v62 = vmul.f32 %v6462_v55, %v15256_v36  ;;  %v15258_v45 = vld [vmem:[#allocation11_spill] sm:$0xff]  ;;  %v15260_v55 = vld [vmem:[#allocation18_spill] sm:$0xff] }
0x1425   :  { %v12697_v36 = vmul.f32 %v6443_v19, %v15260_v55 }
0x1426   :  { %15255 = vst [vmem:[#allocation38_spill] sm:$0xff] %v12676_v38  ;;  %15257 = vst [vmem:[#allocation110_spill] sm:$0xff] %v12679_v62  ;;  %v12684_v18 = vpop.permute.xlu1 %6417  ;;  %6724 = vmatprep.subr.mxu1 %v12679_v62  ;;  %v12687_v60 = vpop.permute.xlu0 %6437 }
0x1427   :  { %v6442_v16 = vsel %vm302_vm1, %v6436_v14, %v12687_v60  ;;  %6725 = vmatpush1.msra.mxu1 %v12676_v38  ;;  %15261 = vst [vmem:[#allocation117_spill] sm:$0xff] %v12697_v36  ;;  %v15262_v38 = vld [vmem:[#allocation26_spill] sm:$0xff] }
0x1428   :  { %v12694_v5 = vmul.f32 %v6442_v16, %v15258_v45  ;;  %v15264_v45 = vld [vmem:[#allocation20_spill] sm:$0xff] }
0x142a   :  { %15259 = vst [vmem:[#allocation111_spill] sm:$0xff] %v12694_v5  ;;  %v6396_v12 = vpop.permute.xlu1 %6395  ;;  %6726 = vmatprep.subr.mxu1 %v12694_v5  ;;  %v6416_v25 = vpop.permute.xlu0 %6415 }
0x142b   :  { %v6422_v62 = vsel %vm260_vm2, %v6416_v25, %v12684_v18  ;;  %v6423_v14 = vsel %vm260_vm2, %v12667_v44, %v6416_v25  ;;  %6727 = vmatpush1.msra.mxu1 %v12697_v36 }
0x142c   :  { %v12708_v16 = vmul.f32 %v6423_v14, %v15262_v38  ;;  %v12711_v19 = vmul.f32 %v6422_v62, %v15264_v45  ;;  %v15266_v14 = vld [vmem:[#allocation31_spill] sm:$0xff]  ;;  %v15268_v62 = vld [vmem:[#allocation28_spill] sm:$0xff] }
0x142e   :  { %15263 = vst [vmem:[#allocation115_spill] sm:$0xff] %v12708_v16  ;;  %15265 = vst [vmem:[#allocation116_spill] sm:$0xff] %v12711_v19  ;;  %v12713_v55 = vpop.permute.xlu1 %6393  ;;  %6728 = vmatprep.subr.mxu1 %v12711_v19  ;;  %v12716_v5 = vpop.permute.xlu0 %6397  ;;  %v12734_v19 = vld [vmem:[%s13427_s2 + $0x148] sm:$0xff] }
0x142f   :  { %v6403_v39 = vsel %vm218_vm3, %v12713_v55, %v6396_v12  ;;  %v6402_v25 = vsel %vm218_vm3, %v6396_v12, %v12716_v5  ;;  %6729 = vmatpush1.msra.mxu1 %v12708_v16  ;;  %v15270_v12 = vld [vmem:[#allocation140_spill] sm:$0xff]  ;;  %v15272_v16 = vld [vmem:[#allocation77_spill] sm:$0xff] }
0x1430   :  { %v12726_v36 = vmul.f32 %v6403_v39, %v15266_v14  ;;  %v12729_v38 = vmul.f32 %v6402_v25, %v15268_v62  ;;  %v15271_v39 = vld [vmem:[#allocation141_spill] sm:$0xff]  ;;  %v15273_v62 = vld [vmem:[#allocation80_spill] sm:$0xff] }
0x1432   :  { %15267 = vst [vmem:[#allocation24_spill] sm:$0xff] %v12726_v36  ;;  %15269 = vst [vmem:[#allocation35_spill] sm:$0xff] %v12729_v38  ;;  %v6350_v45 = vpop.permute.xlu1 %6349  ;;  %6730 = vmatprep.subr.mxu1 %v12729_v38  ;;  %v6370_v27 = vpop.permute.xlu0 %6369  ;;  %v15275_v38 = vld [vmem:[#allocation56_spill] sm:$0xff] }
0x1433   :  { %6731 = vmatpush1.msra.mxu1 %v12726_v36  ;;  %v15276_v36 = vld [vmem:[#allocation134_spill] sm:$0xff] }
0x1434   :  { %6771 = vmatprep.subr.mxu1 %v15270_v12  ;;  %7618 = vmatmul.mubr.msk.f32.vlgmr.msra.gmra.mxu1 %vm1724_vm11, %v12734_v19 }
0x1435   :  { %6772 = vmatpush1.msra.mxu1 %v15271_v39  ;;  %6835 = vmatprep.mubr.f32.mxu1 %v6474_v10  ;;  %v15277_v39 = vld [vmem:[#allocation83_spill] sm:$0xff] }
0x1436   :  { %v6310_v25 = vpop.permute.xlu1 %6309  ;;  %6773 = vmatprep.subr.mxu1 %v15272_v16  ;;  %v6330_v14 = vpop.permute.xlu0 %6329 }
0x1437   :  { %6774 = vmatpush1.msra.mxu1 %v15273_v62  ;;  %v15279_v62 = vld [vmem:[#allocation90_spill] sm:$0xff] }
0x1438   :  { %6775 = vmatprep.subr.mxu1 %v15274_v48  ;;  %v15280_v48 = vld [vmem:[#allocation96_spill] sm:$0xff] }
0x1439   :  { %6776 = vmatpush1.msra.mxu1 %v15275_v38 }
0x143a   :  { %v12746_v46 = vpop.permute.xlu1 %6371  ;;  %6777 = vmatprep.subr.mxu1 %v15276_v36  ;;  %v12749_v12 = vpop.permute.xlu0 %6351 }
0x143b   :  { %v6379_v10 = vsel %vm172_vm4, %v6370_v27, %v12746_v46  ;;  %6778 = vmatpush1.msra.mxu1 %v15277_v39  ;;  %v15284_v39 = vld [vmem:[#allocation139_spill] sm:$0xff] }
0x143c   :  { %v12756_v16 = vmul.f32 %v6379_v10, %v15199_v50  ;;  %6779 = vmatprep.subr.mxu1 %v15279_v62  ;;  %v6359_v10 = vsel %vm130_vm5, %v6350_v45, %v12749_v12 }
0x143d   :  { %6780 = vmatpush1.msra.mxu1 %v15280_v48  ;;  %v15285_v48 = vld [vmem:[#allocation17_spill] sm:$0xff] }
0x143e   :  { %15278 = vst [vmem:[#allocation34_spill] sm:$0xff] %v12756_v16  ;;  %v12760_v38 = vpop.permute.xlu1 %6331  ;;  %6781 = vmatprep.subr.mxu1 %v15281_v28  ;;  %v12763_v36 = vpop.permute.xlu0 %6311  ;;  %6663 = vmatprep.subr.mxu0 %v12756_v16 }
0x143f   :  { %6782 = vmatpush1.msra.mxu1 %v15282_v15  ;;  %v15287_v15 = vld [vmem:[#allocation75_spill] sm:$0xff] }
0x1440   :  { %6783 = vmatprep.subr.mxu1 %v15283_v3 }
0x1441   :  { %6784 = vmatpush1.msra.mxu1 %v15284_v39  ;;  %v6339_v39 = vsel %vm88_vm6, %v6330_v14, %v12760_v38 }
0x1442   :  { %v6356_v62 = vpop.permute.xlu1 %6355  ;;  %6785 = vmatprep.subr.mxu1 %v15285_v48  ;;  %v6376_v50 = vpop.permute.xlu0 %6375  ;;  %v12786_v48 = vmul.f32 %v6359_v10, %v15215_v31  ;;  %v15299_v31 = vld [vmem:[#allocation65_spill] sm:$0xff] }
0x1443   :  { %v6360_v28 = vsel %vm130_vm5, %v6356_v62, %v6350_v45  ;;  %v6380_v16 = vsel %vm172_vm4, %v6376_v50, %v6370_v27  ;;  %6786 = vmatpush1.msra.mxu1 %v15286_v17  ;;  %v6319_v27 = vsel %vm46_vm7, %v6310_v25, %v12763_v36  ;;  %v15289_v17 = vld [vmem:[#allocation85_spill] sm:$0xff] }
0x1444   :  { %v12782_v3 = vmul.f32 %v6380_v16, %v15213_v6  ;;  %6787 = vmatprep.subr.mxu1 %v15287_v15  ;;  %v12793_v45 = vmul.f32 %v6360_v28, %v15219_v53  ;;  %v12798_v16 = vmul.f32 %v6339_v39, %v15223_v40  ;;  %v15291_v28 = vld [vmem:[#allocation93_spill] sm:$0xff]  ;;  %v15292_v39 = vld [vmem:[#allocation92_spill] sm:$0xff]  ;;  %v15301_v6 = vld [vmem:[#allocation102_spill] sm:$0xff] }
0x1445   :  { %6788 = vmatpush1.msra.mxu1 %v15288_v7  ;;  %v15290_v7 = vld [vmem:[#allocation84_spill] sm:$0xff] }
0x1446   :  { %6789 = vmatprep.subr.mxu1 %v15289_v17  ;;  %v6336_v57 = vpop.permute.xlu0 %6335  ;;  %6664 = vmatpush2.msra.mxu0 %v12782_v3  ;;  %v12810_v17 = vmul.f32 %v6319_v27, %v15234_v61  ;;  %v6374_v40 = vpop.permute.xlu1 %6373  ;;  %v15296_v61 = vld [vmem:[#allocation51_spill] sm:$0xff] }
0x1447   :  { %v6340_v10 = vsel %vm88_vm6, %v6336_v57, %v6330_v14  ;;  %6665 = vmatprep.subr.mxu0 %v12786_v48  ;;  %6790 = vmatpush1.msra.mxu1 %v15290_v7  ;;  %v15293_v14 = vld [vmem:[#allocation103_spill] sm:$0xff]  ;;  %v15294_v7 = vld [vmem:[#allocation104_spill] sm:$0xff] }
0x1448   :  { %v12805_v15 = vmul.f32 %v6340_v10, %v15230_v63  ;;  %6666 = vmatpush2.msra.mxu0 %v12793_v45  ;;  %6791 = vmatprep.subr.mxu1 %v15291_v28  ;;  %v15295_v28 = vld [vmem:[#allocation23_spill] sm:$0xff] }
0x1449   :  { %6667 = vmatprep.subr.mxu0 %v12798_v16  ;;  %6792 = vmatpush1.msra.mxu1 %v15292_v39  ;;  %v15297_v39 = vld [vmem:[#allocation59_spill] sm:$0xff] }
0x144a   :  { %6793 = vmatprep.subr.mxu1 %v15293_v14  ;;  %v6316_v53 = vpop.permute.xlu0 %6315  ;;  %6668 = vmatpush2.msra.mxu0 %v12805_v15  ;;  %v15298_v14 = vld [vmem:[#allocation125_spill] sm:$0xff]  ;;  %v6354_v63 = vpop.permute.xlu1 %6353 }
0x144b   :  { %v6320_v10 = vsel %vm46_vm7, %v6316_v53, %v6310_v25  ;;  %6669 = vmatprep.subr.mxu0 %v12810_v17  ;;  %6794 = vmatpush1.msra.mxu1 %v15294_v7  ;;  %v15300_v25 = vld [vmem:[#allocation43_spill] sm:$0xff]  ;;  %v15302_v7 = vld [vmem:[#allocation121_spill] sm:$0xff] }
0x144c   :  { %v12821_v27 = vmul.f32 %v6320_v10, %v15236_v47  ;;  %6795 = vmatprep.subr.mxu1 %v15295_v28  ;;  %v15303_v10 = vld [vmem:[#allocation100_spill] sm:$0xff] }
0x144d   :  { %6796 = vmatpush1.msra.mxu1 %v15296_v61  ;;  %v6377_v61 = vsel %vm172_vm4, %v6374_v40, %v6376_v50  ;;  %v15304_v28 = vld [vmem:[#allocation48_spill] sm:$0xff]  ;;  %v6358_v50 = vsel %vm130_vm5, %v12749_v12, %v6354_v63 }
0x144e   :  { %6797 = vmatprep.subr.mxu1 %v15297_v39  ;;  %6670 = vmatpush2.msra.mxu0 %v12821_v27  ;;  %v6378_v39 = vsel %vm172_vm4, %v12746_v46, %v6374_v40  ;;  %v6334_v47 = vpop.permute.xlu0 %6333  ;;  %v12867_v12 = vmul.f32 %v6358_v50, %v15224_v0  ;;  %v15319_v50 = vld [vmem:[#allocation71_spill] sm:$0xff] }
0x144f   :  { %6671 = vmatprep.subr.mxu0 %v15298_v14  ;;  %6798 = vmatpush1.msra.mxu1 %v15299_v31  ;;  %v15305_v14 = vld [vmem:[#allocation55_spill] sm:$0xff]  ;;  %v6357_v31 = vsel %vm130_vm5, %v6354_v63, %v6356_v62  ;;  %v12853_v40 = vmul.f32 %v6378_v39, %v15221_v26  ;;  %v6337_v46 = vsel %vm88_vm6, %v6334_v47, %v6336_v57  ;;  %v15311_v62 = vld [vmem:[#allocation76_spill] sm:$0xff] }
0x1450   :  { %6672 = vmatpush2.msra.mxu0 %v15300_v25  ;;  %6799 = vmatprep.subr.mxu1 %v15301_v6  ;;  %v15306_v6 = vld [vmem:[#allocation69_spill] sm:$0xff]  ;;  %v15309_v25 = vld [vmem:[#allocation98_spill] sm:$0xff]  ;;  %v6338_v63 = vsel %vm88_vm6, %v12760_v38, %v6334_v47  ;;  %15313 = vst [vmem:[#allocation5_spill] sm:$0xff] %v12867_v12 }
0x1451   :  { %6673 = vmatprep.subr.mxu0 %v15302_v7  ;;  %6800 = vmatpush1.msra.mxu1 %v15303_v10  ;;  %v15307_v7 = vld [vmem:[#allocation142_spill] sm:$0xff]  ;;  %v12845_v10 = vmul.f32 %v6377_v61, %v15217_v13  ;;  %15310 = vst [vmem:[#allocation118_spill] sm:$0xff] %v12853_v40  ;;  %v12860_v61 = vmul.f32 %v6357_v31, %v15226_v52 }
0x1452   :  { %6801 = vmatprep.subr.mxu1 %v15304_v28  ;;  %6674 = vmatpush2.msra.mxu0 %v15305_v14  ;;  %v6314_v28 = vpop.permute.xlu1 %6313  ;;  %v12877_v31 = vmul.f32 %v6337_v46, %v15232_v54  ;;  %v12882_v47 = vmul.f32 %v6338_v63, %v15228_v59  ;;  %v15318_v38 = vld [vmem:[#allocation66_spill] sm:$0xff]  ;;  %v15320_v46 = vld [vmem:[#allocation144_spill] sm:$0xff] }
0x1453   :  { %6675 = vmatprep.subr.mxu0 %v15306_v6  ;;  %6802 = vmatpush1.msra.mxu1 %v15307_v7  ;;  %15308 = vst [vmem:[#allocation39_spill] sm:$0xff] %v12845_v10  ;;  %15312 = vst [vmem:[#allocation122_spill] sm:$0xff] %v12860_v61  ;;  %v6317_v39 = vsel %vm46_vm7, %v6314_v28, %v6316_v53  ;;  %v6318_v57 = vsel %vm46_vm7, %v12763_v36, %v6314_v28  ;;  %v6460_v28 = vpop.permute.xlu0 %6459 }
0x1454   :  { %6676 = vmatpush2.msra.mxu0 %v15309_v25  ;;  %6803 = vmatprep.subr.mxu1 %v12629_v42  ;;  %15314 = vst [vmem:[#allocation7_spill] sm:$0xff] %v12877_v31  ;;  %15315 = vst [vmem:[#allocation46_spill] sm:$0xff] %v12882_v47  ;;  %v12887_v53 = vmul.f32 %v6317_v39, %v15237_v35  ;;  %v12892_v36 = vmul.f32 %v6318_v57, %v15235_v23  ;;  %v15321_v39 = vld [vmem:[#allocation137_spill] sm:$0xff]  ;;  %v15322_v57 = vld [vmem:[#allocation6_spill] sm:$0xff] }
0x1455   :  { %6677 = vmatprep.subr.mxu0 %v15311_v62  ;;  %6804 = vmatpush2.msra.mxu1 %v12589_v33  ;;  %v15333_v33 = vld [vmem:[#allocation49_spill] sm:$0xff]  ;;  %v15336_v42 = vld [vmem:[#allocation47_spill] sm:$0xff] }
0x1456   :  { %6805 = vmatprep.subr.mxu1 %v12845_v10  ;;  %6678 = vmatpush2.msra.mxu0 %v12376_v34  ;;  %15316 = vst [vmem:[#allocation45_spill] sm:$0xff] %v12887_v53  ;;  %15317 = vst [vmem:[#allocation53_spill] sm:$0xff] %v12892_v36  ;;  %v6440_v63 = vpop.permute.xlu1 %6439 }
0x1457   :  { %6806 = vmatpush2.msra.mxu1 %v12853_v40  ;;  %6679 = vmatprep.subr.mxu0 %v12257_v8  ;;  %v15330_v40 = vld [vmem:[#allocation67_spill] sm:$0xff] }
0x1458   :  { %6807 = vmatprep.subr.mxu1 %v12860_v61  ;;  %6680 = vmatpush2.msra.mxu0 %v12241_v11 }
0x1459   :  { %6808 = vmatpush2.msra.mxu1 %v12867_v12  ;;  %6681 = vmatprep.subr.mxu0 %v12389_v21  ;;  %v6420_v12 = vpop.permute.xlu0 %6419 }
0x145a   :  { %6809 = vmatprep.subr.mxu1 %v12877_v31  ;;  %6682 = vmatpush2.msra.mxu0 %v15318_v38  ;;  %v15323_v31 = vld [vmem:[#allocation105_spill] sm:$0xff] }
0x145b   :  { %6810 = vmatpush2.msra.mxu1 %v12882_v47  ;;  %6683 = vmatprep.subr.mxu0 %v15319_v50  ;;  %v15324_v47 = vld [vmem:[#allocation106_spill] sm:$0xff] }
0x145c   :  { %6811 = vmatprep.subr.mxu1 %v12887_v53  ;;  %6684 = vmatpush2.msra.mxu0 %v15320_v46  ;;  %v6464_v53 = vsel %vm344_vm0, %v6460_v28, %v12663_v24  ;;  %v15327_v24 = vld [vmem:[#allocation126_spill] sm:$0xff] }
0x145d   :  { %6812 = vmatpush2.msra.mxu1 %v12892_v36  ;;  %6685 = vmatprep.subr.mxu0 %v12479_v1  ;;  %v15325_v36 = vld [vmem:[#allocation130_spill] sm:$0xff] }
0x145e   :  { %6813 = vmatprep.subr.mxu1 %v15321_v39  ;;  %6686 = vmatpush2.msra.mxu0 %v15322_v57  ;;  %v6461_v39 = vsel %vm344_vm0, %v12665_v49, %v6460_v28  ;;  %v6441_v49 = vsel %vm302_vm1, %v12687_v60, %v6440_v63  ;;  %v15328_v28 = vld [vmem:[#allocation13_spill] sm:$0xff]  ;;  %v15334_v60 = vld [vmem:[#allocation22_spill] sm:$0xff] }
0x145f   :  { %6814 = vmatpush2.msra.mxu1 %v15323_v31  ;;  %6687 = vmatprep.subr.mxu0 %v12512_v37  ;;  %v15326_v31 = vld [vmem:[#allocation123_spill] sm:$0xff]  ;;  %v12928_v61 = vmul.f32 %v6464_v53, %v15328_v28  ;;  %v6421_v53 = vsel %vm260_vm2, %v12684_v18, %v6420_v12 }
0x1460   :  { %6815 = vmatprep.subr.mxu1 %v15324_v47  ;;  %6688 = vmatpush2.msra.mxu0 %v12529_v20  ;;  %v6444_v47 = vsel %vm302_vm1, %v6440_v63, %v12661_v22  ;;  %v15331_v22 = vld [vmem:[#allocation12_spill] sm:$0xff] }
0x1461   :  { %6816 = vmatpush2.msra.mxu1 %v15325_v36  ;;  %6689 = vmatprep.subr.mxu0 %v12132_v4  ;;  %v6473_v36 = vld [vmem:[%s13427_s2 + $0x138] sm:$0xff]  ;;  %15329 = vst [vmem:[#allocation54_spill] sm:$0xff] %v12928_v61  ;;  %v12933_v10 = vmul.f32 %v6461_v39, %v15331_v22  ;;  %v12941_v63 = vmul.f32 %v6444_v47, %v15334_v60  ;;  %v15335_v39 = vld [vmem:[#allocation21_spill] sm:$0xff] }
0x1462   :  { %6817 = vmatprep.subr.mxu1 %v15326_v31  ;;  %6690 = vmatpush2.msra.mxu0 %v12141_v58  ;;  %v6400_v31 = vpop.permute.xlu1 %6399 }
0x1463   :  { %6818 = vmatpush2.msra.mxu1 %v15327_v24  ;;  %6691 = vmatprep.subr.mxu0 %v12154_v51  ;;  %15332 = vst [vmem:[#allocation61_spill] sm:$0xff] %v12933_v10  ;;  %v6424_v24 = vsel %vm260_vm2, %v6420_v12, %v12667_v44  ;;  %v6404_v44 = vsel %vm218_vm3, %v6400_v31, %v12713_v55  ;;  %v15338_v12 = vld [vmem:[#allocation27_spill] sm:$0xff]  ;;  %v15341_v55 = vld [vmem:[#allocation36_spill] sm:$0xff] }
0x1464   :  { %6819 = vmatprep.subr.mxu1 %v15330_v40  ;;  %6692 = vmatpush2.msra.mxu0 %v12159_v32  ;;  %v12948_v40 = vmul.f32 %v6441_v49, %v15335_v39  ;;  %v6401_v47 = vsel %vm218_vm3, %v12716_v5, %v6400_v31  ;;  %v15339_v49 = vld [vmem:[#allocation29_spill] sm:$0xff]  ;;  %v15343_v5 = vld [vmem:[#allocation32_spill] sm:$0xff] }
0x1465   :  { %6820 = vmatpush2.msra.mxu1 %v15333_v33  ;;  %6694 = vmatmul.mubr.f32.vlgmr.msra.gmra.mxu0 %v6473_v36  ;;  %v15337_v33 = vld [vmem:[#allocation30_spill] sm:$0xff]  ;;  %v12964_v7 = vmul.f32 %v6421_v53, %v15339_v49  ;;  %v12974_v31 = vmul.f32 %v6401_v47, %v15343_v5  ;;  %v15348_v47 = vld [vmem:[#allocation97_spill] sm:$0xff] }
0x1466   :  { %6866 = vmatprep.subr.mxu0 %v12928_v61  ;;  %6821 = vmatprep.subr.mxu1 %v15336_v42  ;;  %v12959_v18 = vmul.f32 %v6424_v24, %v15337_v33  ;;  %v15340_v61 = vld [vmem:[#allocation143_spill] sm:$0xff]  ;;  %v12969_v42 = vmul.f32 %v6404_v44, %v15341_v55  ;;  %v15344_v24 = vld [vmem:[#allocation128_spill] sm:$0xff]  ;;  %v15345_v53 = vld [vmem:[#allocation146_spill] sm:$0xff] }
0x1467   :  { %6867 = vmatpush1.msra.mxu0 %v12933_v10  ;;  %6822 = vmatpush2.msra.mxu1 %v15338_v12  ;;  %v15342_v10 = vld [vmem:[#allocation145_spill] sm:$0xff]  ;;  %v15347_v44 = vld [vmem:[#allocation94_spill] sm:$0xff] }
0x1468   :  { %6868 = vmatprep.subr.mxu0 %v12941_v63  ;;  %6823 = vmatprep.subr.mxu1 %v15340_v61  ;;  %v15346_v61 = vld [vmem:[#allocation127_spill] sm:$0xff] }
0x1469   :  { %6869 = vmatpush1.msra.mxu0 %v12948_v40  ;;  %6824 = vmatpush2.msra.mxu1 %v15342_v10 }
0x146a   :  { %6870 = vmatprep.subr.mxu0 %v12959_v18  ;;  %6825 = vmatprep.subr.mxu1 %v15344_v24  ;;  %v15354_v24 = vld [vmem:[#allocation57_spill] sm:$0xff] }
0x146b   :  { %6871 = vmatpush1.msra.mxu0 %v12964_v7  ;;  %6826 = vmatpush2.msra.mxu1 %v15345_v53  ;;  %v15351_v53 = vld [vmem:[#allocation14_spill] sm:$0xff] }
0x146c   :  { %6872 = vmatprep.subr.mxu0 %v12969_v42  ;;  %6827 = vmatprep.subr.mxu1 %v15346_v61  ;;  %v15349_v61 = vld [vmem:[#allocation15_spill] sm:$0xff] }
0x146d   :  { %6873 = vmatpush1.msra.mxu0 %v12974_v31  ;;  %6828 = vmatpush2.msra.mxu1 %v12502_v30  ;;  %v15350_v30 = vld [vmem:[#allocation133_spill] sm:$0xff] }
0x146e   :  { %6906 = vmatprep.mubr.f32.mxu0 %v15240_v29  ;;  %7277 = vmatprep.subr.mxu0 %v15165_v2  ;;  %v15352_v2 = vld [vmem:[#allocation4_spill] sm:$0xff] }
0x146f   :  { %6829 = vmatprep.subr.mxu1 %v12532_v41  ;;  %7619 = vmatmul.mubr.msk.f32.vlgmr.msra.gmra.mxu0 %vm1724_vm11, %v12734_v19  ;;  %v15353_v41 = vld [vmem:[#allocation33_spill] sm:$0xff]  ;;  %v15355_v19 = vld [vmem:[#allocation120_spill] sm:$0xff] }
0x1470   :  { %6830 = vmatpush2.msra.mxu1 %v12526_v43  ;;  %7278 = vmatpush1.msra.mxu0 %v11945_v56  ;;  %v15356_v56 = vld [vmem:[#allocation74_spill] sm:$0xff] }
0x1471   :  { %6831 = vmatprep.subr.mxu1 %v15347_v44  ;;  %7279 = vmatprep.subr.mxu0 %v15348_v47  ;;  %v15357_v47 = vld [vmem:[#allocation79_spill] sm:$0xff]  ;;  %v15366_v44 = vld [vmem:[#allocation129_spill] sm:$0xff] }
0x1472   :  { %6832 = vmatpush2.msra.mxu1 %v15349_v61  ;;  %7280 = vmatpush1.msra.mxu0 %v15350_v30  ;;  %v15358_v61 = vld [vmem:[#allocation132_spill] sm:$0xff]  ;;  %v15359_v30 = vld [vmem:[#allocation86_spill] sm:$0xff] }
0x1473   :  { %6833 = vmatprep.subr.mxu1 %v15351_v53  ;;  %7281 = vmatprep.subr.mxu0 %v15352_v2  ;;  %v15360_v53 = vld [vmem:[#allocation119_spill] sm:$0xff]  ;;  %v15361_v2 = vld [vmem:[#allocation113_spill] sm:$0xff] }
0x1474   :  { %6834 = vmatpush2.msra.mxu1 %v15353_v41  ;;  %7282 = vmatpush1.msra.mxu0 %v15354_v24  ;;  %v15362_v41 = vld [vmem:[#allocation10_spill] sm:$0xff]  ;;  %v15363_v24 = vld [vmem:[#allocation135_spill] sm:$0xff] }
0x1475   :  { %6836 = vmatmul.mubr.f32.vlgmr.msra.gmra.mxu1 %v6473_v36  ;;  %7283 = vmatprep.subr.mxu0 %v15355_v19  ;;  %v15364_v36 = vld [vmem:[#allocation136_spill] sm:$0xff]  ;;  %v15365_v19 = vld [vmem:[#allocation131_spill] sm:$0xff] }
0x1476   :  { %7412 = vmatprep.mubr.f32.mxu1 %v15240_v29  ;;  %7284 = vmatpush1.msra.mxu0 %v15356_v56  ;;  %v15367_v56 = vld [vmem:[#allocation78_spill] sm:$0xff] }
0x1477   :  { %7285 = vmatprep.subr.mxu0 %v15357_v47  ;;  %v15368_v47 = vld [vmem:[#allocation73_spill] sm:$0xff] }
0x1478   :  { %7286 = vmatpush1.msra.mxu0 %v15358_v61  ;;  %v15369_v61 = vld [vmem:[#allocation81_spill] sm:$0xff] }
0x1479   :  { %7287 = vmatprep.subr.mxu0 %v15359_v30  ;;  %v15370_v30 = vld [vmem:[#allocation88_spill] sm:$0xff] }
0x147a   :  { %7288 = vmatpush1.msra.mxu0 %v15360_v53  ;;  %v15371_v53 = vld [vmem:[#allocation114_spill] sm:$0xff] }
0x147b   :  { %7289 = vmatprep.subr.mxu0 %v15361_v2  ;;  %v15372_v2 = vld [vmem:[#allocation99_spill] sm:$0xff] }
0x147c   :  { %7290 = vmatpush1.msra.mxu0 %v15362_v41  ;;  %v15373_v41 = vld [vmem:[#allocation91_spill] sm:$0xff] }
0x147d   :  { %7291 = vmatprep.subr.mxu0 %v15363_v24  ;;  %v15374_v24 = vld [vmem:[#allocation72_spill] sm:$0xff] }
0x147e   :  { %7292 = vmatpush1.msra.mxu0 %v15364_v36  ;;  %v15375_v36 = vld [vmem:[#allocation82_spill] sm:$0xff] }
0x147f   :  { %7293 = vmatprep.subr.mxu0 %v15365_v19  ;;  %v15376_v19 = vld [vmem:[#allocation87_spill] sm:$0xff] }
0x1480   :  { %7294 = vmatpush1.msra.mxu0 %v15366_v44  ;;  %v15377_v44 = vld [vmem:[#allocation89_spill] sm:$0xff] }
0x1481   :  { %7295 = vmatprep.subr.mxu0 %v15367_v56  ;;  %v15378_v56 = vld [vmem:[#allocation19_spill] sm:$0xff] }
0x1482   :  { %7296 = vmatpush1.msra.mxu0 %v15368_v47  ;;  %v15379_v47 = vld [vmem:[#allocation37_spill] sm:$0xff] }
0x1483   :  { %7297 = vmatprep.subr.mxu0 %v15369_v61  ;;  %v15380_v61 = vld [vmem:[#allocation41_spill] sm:$0xff] }
0x1484   :  { %7298 = vmatpush1.msra.mxu0 %v15370_v30  ;;  %v15381_v30 = vld [vmem:[#allocation112_spill] sm:$0xff] }
0x1485   :  { %7299 = vmatprep.subr.mxu0 %v15371_v53  ;;  %v15382_v53 = vld [vmem:[#allocation107_spill] sm:$0xff] }
0x1486   :  { %7300 = vmatpush1.msra.mxu0 %v15372_v2  ;;  %v15383_v2 = vld [vmem:[#allocation34_spill] sm:$0xff] }
0x1487   :  { %7301 = vmatprep.subr.mxu0 %v15373_v41  ;;  %v15384_v41 = vld [vmem:[#allocation125_spill] sm:$0xff] }
0x1488   :  { %7302 = vmatpush1.msra.mxu0 %v15374_v24  ;;  %v15385_v24 = vld [vmem:[#allocation43_spill] sm:$0xff] }
0x1489   :  { %7303 = vmatprep.subr.mxu0 %v15375_v36 }
0x148a   :  { %7304 = vmatpush1.msra.mxu0 %v15376_v19 }
0x148b   :  { %7305 = vmatprep.subr.mxu0 %v15377_v44 }
0x148c   :  { %7306 = vmatpush1.msra.mxu0 %v15378_v56 }
0x148d   :  { %7307 = vmatprep.subr.mxu0 %v15379_v47 }
0x148e   :  { %7308 = vmatpush1.msra.mxu0 %v15380_v61 }
0x148f   :  { %7309 = vmatprep.subr.mxu0 %v15381_v30 }
0x1490   :  { %7310 = vmatpush2.msra.mxu0 %v15382_v53  ;;  %v15386_v53 = vld [vmem:[#allocation121_spill] sm:$0xff] }
0x1491   :  { %7311 = vmatprep.subr.mxu0 %v15383_v2  ;;  %v7268_v2 = vld [vmem:[%s13425_s3 + $0x70] sm:$0xff] }
0x1492   :  { %7312 = vmatpush2.msra.mxu0 %v12782_v3 }
0x1493   :  { %7313 = vmatprep.subr.mxu0 %v12786_v48 }
0x1494   :  { %7314 = vmatpush2.msra.mxu0 %v12793_v45 }
0x1495   :  { %7315 = vmatprep.subr.mxu0 %v12798_v16 }
0x1496   :  { %7316 = vmatpush2.msra.mxu0 %v12805_v15  ;;  %v13053_v15 = vld [vmem:[%s13427_s2 + $0x158] sm:$0xff] }
0x1497   :  { %7317 = vmatprep.subr.mxu0 %v12810_v17  ;;  %7341 = vmatprep.mubr.f32.mxu0 %v13053_v15  ;;  %v13064_v17 = vld [vmem:[%s13427_s2 + $0x150] sm:$0xff] }
0x1498   :  { %7318 = vmatpush2.msra.mxu0 %v12821_v27 }
0x1499   :  { %7319 = vmatprep.subr.mxu0 %v15384_v41 }
0x149a   :  { %7320 = vmatpush2.msra.mxu0 %v15385_v24 }
0x149b   :  { %7321 = vmatprep.subr.mxu0 %v15386_v53 }
0x149c   :  { %7322 = vmatpush2.msra.mxu0 %v15305_v14 }
0x149d   :  { %7323 = vmatprep.subr.mxu0 %v15306_v6 }
0x149e   :  { %7324 = vmatpush2.msra.mxu0 %v15309_v25 }
0x149f   :  { %7325 = vmatprep.subr.mxu0 %v15311_v62 }
0x14a0   :  { %7326 = vmatpush2.msra.mxu0 %v12376_v34 }
0x14a1   :  { %7327 = vmatprep.subr.mxu0 %v12257_v8 }
0x14a2   :  { %7328 = vmatpush2.msra.mxu0 %v12241_v11  ;;  %v6624_v11 = vpop.permute.xlu0 %6623 }
0x14a3   :  { %7329 = vmatprep.subr.mxu0 %v12389_v21 }
0x14a4   :  { %7330 = vmatpush2.msra.mxu0 %v15318_v38 }
0x14a5   :  { %7331 = vmatprep.subr.mxu0 %v15319_v50 }
0x14a6   :  { %7332 = vmatpush2.msra.mxu0 %v15320_v46 }
0x14a7   :  { %7333 = vmatprep.subr.mxu0 %v12479_v1 }
0x14a8   :  { %7334 = vmatpush2.msra.mxu0 %v15322_v57 }
0x14a9   :  { %7335 = vmatprep.subr.mxu0 %v12512_v37 }
0x14aa   :  { %7336 = vmatpush2.msra.mxu0 %v12529_v20 }
0x14ab   :  { %7337 = vmatprep.subr.mxu0 %v12132_v4 }
0x14ac   :  { %7338 = vmatpush2.msra.mxu0 %v12141_v58 }
0x14ad   :  { %7339 = vmatprep.subr.mxu0 %v12154_v51 }
0x14ae   :  { %7340 = vmatpush2.msra.mxu0 %v12159_v32 }
0x14af   :  { %7342 = vmatmul.mubr.f32.vlgmr.msra.gmra.mxu0 %v13064_v17 }
0x14b0   :  { %7554 = vmatprep.mubr.f32.mxu0 %v15240_v29 }
0x14f4   :  { %v6766_v3 = vpop.f32.mrf.mxu1 }
0x14f6   :  { %v6768_v51 = vpop.f32.mrf.mxu1 }
0x1525   :  { %v6695_v6 = vpop.f32.mrf.mxu0 }
0x1526   :  { %v6696_v48 = vadd.f32 %v6695_v6, %v6624_v11 }
0x1527   :  { %v6697_v8 = vpop.f32.mrf.mxu0 }
0x1528   :  { %v6767_v4 = vadd.f32 %v6766_v3, %v6696_v48  ;;  %v6698_v21 = vadd.f32 %v6697_v8, %v6624_v11 }
0x152a   :  { %v6913_v58 = vmul.f32 0.2, %v6767_v4  ;;  %v6769_v32 = vadd.f32 %v6768_v51, %v6698_v21  ;;  %v15388_v51 = vld [vmem:[#allocation9_spill] sm:$0xff] }
0x152c   :  { %v13070_v34 = vmax.f32 %v6767_v4, %v6913_v58  ;;  %v6914_v1 = vmul.f32 0.2, %v6769_v32  ;;  %v15387_v58 = vld [vmem:[#allocation8_spill] sm:$0xff] }
0x152e   :  { %7045 = vrot.lane.b32.xlu0 %v13070_v34, %s7647_s22  ;;  %7065 = vrot.lane.b32.xlu1 %v13070_v34, %s7646_s19  ;;  %v13084_v37 = vmax.f32 %v6769_v32, %v6914_v1 }
0x152f   :  { %v6908_v45 = vpop.f32.mrf.mxu0 }
0x1531   :  { %v6910_v38 = vpop.f32.mrf.mxu0 }
0x1532   :  { %7005 = vrot.lane.b32.xlu0 %v13070_v34, %s7649_s26  ;;  %7025 = vrot.lane.b32.xlu1 %v13070_v34, %s7648_s25 }
0x1535   :  { %v6837_v20 = vpop.f32.mrf.mxu1 }
0x1536   :  { %6961 = vrot.lane.b32.xlu0 %v13070_v34, %s7651_s28  ;;  %6981 = vrot.lane.b32.xlu1 %v13070_v34, %s7650_s27  ;;  %v6838_v29 = vadd.f32 %v6837_v20, %v6624_v11 }
0x1537   :  { %v6839_v27 = vpop.f32.mrf.mxu1 }
0x1538   :  { %v6909_v16 = vadd.f32 %v6908_v45, %v6838_v29  ;;  %v6840_v25 = vadd.f32 %v6839_v27, %v6624_v11  ;;  %v15389_v27 = vld [vmem:[#allocation11_spill] sm:$0xff] }
0x153a   :  { %7047 = vrot.lane.b32.xlu0 %v13084_v37, %s7647_s22  ;;  %6941 = vrot.lane.b32.xlu1 %v13070_v34, %s7652_s29  ;;  %v6915_v14 = vmul.f32 0.2, %v6909_v16  ;;  %v6911_v50 = vadd.f32 %v6910_v38, %v6840_v25  ;;  %v15390_v38 = vld [vmem:[#allocation18_spill] sm:$0xff] }
0x153c   :  { %v13098_v62 = vmax.f32 %v6909_v16, %v6915_v14  ;;  %v6916_v46 = vmul.f32 0.2, %v6911_v50 }
0x153e   :  { %7007 = vrot.lane.b32.xlu0 %v13084_v37, %s7649_s26  ;;  %7067 = vrot.lane.b32.xlu1 %v13084_v37, %s7646_s19  ;;  %v13112_v57 = vmax.f32 %v6911_v50, %v6916_v46 }
0x1542   :  { %6983 = vrot.lane.b32.xlu0 %v13084_v37, %s7650_s27  ;;  %7027 = vrot.lane.b32.xlu1 %v13084_v37, %s7648_s25 }
0x1546   :  { %7069 = vrot.lane.b32.xlu0 %v13098_v62, %s7646_s19  ;;  %6963 = vrot.lane.b32.xlu1 %v13084_v37, %s7651_s28 }
0x154a   :  { %7029 = vrot.lane.b32.xlu0 %v13098_v62, %s7648_s25  ;;  %7049 = vrot.lane.b32.xlu1 %v13098_v62, %s7647_s22 }
0x154e   :  { %6943 = vrot.lane.b32.xlu0 %v13084_v37, %s7652_s29  ;;  %7009 = vrot.lane.b32.xlu1 %v13098_v62, %s7649_s26 }
0x1552   :  { %6921 = vrot.lane.b32.xlu0 %v13070_v34, %s7654_s30  ;;  %6987 = vrot.lane.b32.xlu1 %v13112_v57, %s7650_s27 }
0x1556   :  { %6967 = vrot.lane.b32.xlu0 %v13112_v57, %s7651_s28  ;;  %6947 = vrot.lane.b32.xlu1 %v13112_v57, %s7652_s29 }
0x155a   :  { %6927 = vrot.lane.b32.xlu0 %v13112_v57, %s7654_s30  ;;  %6923 = vrot.lane.b32.xlu1 %v13084_v37, %s7654_s30 }
0x155e   :  { %7051 = vrot.lane.b32.xlu0 %v13112_v57, %s7647_s22  ;;  %7071 = vrot.lane.b32.xlu1 %v13112_v57, %s7646_s19 }
0x1562   :  { %7011 = vrot.lane.b32.xlu0 %v13112_v57, %s7649_s26  ;;  %7031 = vrot.lane.b32.xlu1 %v13112_v57, %s7648_s25 }
0x1566   :  { %6965 = vrot.lane.b32.xlu0 %v13098_v62, %s7651_s28  ;;  %6985 = vrot.lane.b32.xlu1 %v13098_v62, %s7650_s27 }
0x156a   :  { %6925 = vrot.lane.b32.xlu0 %v13098_v62, %s7654_s30  ;;  %6945 = vrot.lane.b32.xlu1 %v13098_v62, %s7652_s29 }
0x156e   :  { %7271 = vperm.xlu1 %7633, %v7268_v2   ;;  %v15391_v2 = vld [vmem:[#allocation20_spill] sm:$0xff] }
0x15a0   :  { %v13145_v36 = vpop.permute.xlu0 %7045  ;;  %v13147_v19 = vpop.permute.xlu1 %7065 }
0x15a4   :  { %v13149_v44 = vpop.permute.xlu0 %7005  ;;  %v13151_v56 = vpop.permute.xlu1 %7025 }
0x15a8   :  { %v6962_v47 = vpop.permute.xlu0 %6961  ;;  %v6982_v61 = vpop.permute.xlu1 %6981 }
0x15ac   :  { %v7048_v30 = vpop.permute.xlu0 %7047  ;;  %v6942_v41 = vpop.permute.xlu1 %6941 }
0x15ad   :  { %v7055_v1 = vsel %vm302_vm1, %v13145_v36, %v7048_v30 }
0x15ae   :  { %v7057_v50 = vmul.f32 %v7055_v1, %v15390_v38 }
0x15b0   :  { %v7008_v24 = vpop.permute.xlu0 %7007  ;;  %v7068_v53 = vpop.permute.xlu1 %7067 }
0x15b1   :  { %v7075_v48 = vsel %vm344_vm0, %v13147_v19, %v7068_v53  ;;  %v7015_v46 = vsel %vm218_vm3, %v13149_v44, %v7008_v24 }
0x15b2   :  { %v7077_v32 = vmul.f32 %v7075_v48, %v15388_v51 }
0x15b4   :  { %v13153_v11 = vpop.permute.xlu0 %6983  ;;  %v7028_v6 = vpop.permute.xlu1 %7027 }
0x15b5   :  { %v7035_v14 = vsel %vm260_vm2, %v13151_v56, %v7028_v6 }
0x15b8   :  { %v13158_v3 = vpop.permute.xlu0 %7069  ;;  %v13160_v4 = vpop.permute.xlu1 %6963 }
0x15b9   :  { %v7074_v8 = vsel %vm344_vm0, %v7068_v53, %v13158_v3 }
0x15ba   :  { %v7078_v21 = vmul.f32 %v7074_v8, %v15387_v58 }
0x15bc   :  { %v13170_v20 = vpop.permute.xlu0 %7029  ;;  %7354 = vmatprep.subr.mxu1 %v7078_v21  ;;  %v7050_v29 = vpop.permute.xlu1 %7049  ;;  %v15393_v21 = vld [vmem:[#allocation28_spill] sm:$0xff] }
0x15bd   :  { %v7034_v45 = vsel %vm260_vm2, %v7028_v6, %v13170_v20  ;;  %v7054_v16 = vsel %vm302_vm1, %v7048_v30, %v7050_v29  ;;  %7355 = vmatpush1.msra.mxu1 %v7077_v32  ;;  %v15392_v30 = vld [vmem:[#allocation26_spill] sm:$0xff]  ;;  %v15394_v32 = vld [vmem:[#allocation31_spill] sm:$0xff] }
0x15be   :  { %v7058_v25 = vmul.f32 %v7054_v16, %v15389_v27  ;;  %v7038_v53 = vmul.f32 %v7034_v45, %v15391_v2  ;;  %v7037_v58 = vmul.f32 %v7035_v14, %v15392_v30  ;;  %v7017_v1 = vmul.f32 %v7015_v46, %v15394_v32  ;;  %v15397_v2 = vld [vmem:[#allocation44_spill] sm:$0xff] }
0x15bf   :  { %v6991_v45 = vsel %vm172_vm4, %v6982_v61, %v13153_v11  ;;  %v6971_v14 = vsel %vm130_vm5, %v6962_v47, %v13160_v4 }
0x15c0   :  { %v13186_v48 = vpop.permute.xlu0 %6943  ;;  %7356 = vmatprep.subr.mxu1 %v7058_v25  ;;  %v13188_v8 = vpop.permute.xlu1 %7009  ;;  %v15395_v25 = vld [vmem:[#allocation40_spill] sm:$0xff] }
0x15c1   :  { %v7014_v6 = vsel %vm218_vm3, %v7008_v24, %v13188_v8  ;;  %7357 = vmatpush1.msra.mxu1 %v7057_v50  ;;  %v6994_v38 = vmul.f32 %v6991_v45, %v15395_v25  ;;  %v15396_v50 = vld [vmem:[#allocation42_spill] sm:$0xff]  ;;  %v6951_v30 = vsel %vm88_vm6, %v6942_v41, %v13186_v48  ;;  %v15401_v25 = vld [vmem:[#allocation63_spill] sm:$0xff] }
0x15c2   :  { %v7018_v51 = vmul.f32 %v7014_v6, %v15393_v21  ;;  %7358 = vmatprep.subr.mxu1 %v7038_v53  ;;  %v6974_v53 = vmul.f32 %v6971_v14, %v15397_v2 }
0x15c3   :  { %7359 = vmatpush1.msra.mxu1 %v7037_v58 }
0x15c4   :  { %v6922_v16 = vpop.permute.xlu0 %6921  ;;  %7360 = vmatprep.subr.mxu1 %v7018_v51  ;;  %v13199_v27 = vpop.permute.xlu1 %6987  ;;  %v15399_v51 = vld [vmem:[#allocation52_spill] sm:$0xff] }
0x15c5   :  { %v6992_v24 = vsel %vm172_vm4, %v13199_v27, %v6982_v61  ;;  %7361 = vmatpush1.msra.mxu1 %v7017_v1  ;;  %v6954_v32 = vmul.f32 %v6951_v30, %v15399_v51  ;;  %v15400_v1 = vld [vmem:[#allocation58_spill] sm:$0xff] }
0x15c6   :  { %v6993_v46 = vmul.f32 %v6992_v24, %v15396_v50  ;;  %7362 = vmatprep.subr.mxu1 %v13084_v37  ;;  %v15402_v50 = vld [vmem:[#allocation60_spill] sm:$0xff] }
0x15c7   :  { %7363 = vmatpush1.msra.mxu1 %v13070_v34  ;;  %v15398_v34 = vld [vmem:[#allocation50_spill] sm:$0xff] }
0x15c8   :  { %v13215_v58 = vpop.permute.xlu0 %6967  ;;  %7364 = vmatprep.subr.mxu1 %v6994_v38  ;;  %v13217_v6 = vpop.permute.xlu1 %6947 }
0x15c9   :  { %v6972_v61 = vsel %vm130_vm5, %v13215_v58, %v6962_v47  ;;  %v6952_v37 = vsel %vm88_vm6, %v13217_v6, %v6942_v41  ;;  %7365 = vmatpush1.msra.mxu1 %v6993_v46 }
0x15ca   :  { %v6973_v21 = vmul.f32 %v6972_v61, %v15398_v34  ;;  %7366 = vmatprep.subr.mxu1 %v6974_v53  ;;  %v6953_v45 = vmul.f32 %v6952_v37, %v15400_v1  ;;  %v15405_v1 = vld [vmem:[#allocation111_spill] sm:$0xff] }
0x15cc   :  { %v13228_v14 = vpop.permute.xlu0 %6927  ;;  %7367 = vmatpush1.msra.mxu1 %v6973_v21  ;;  %v13230_v24 = vpop.permute.xlu1 %6923  ;;  %v15403_v21 = vld [vmem:[#allocation110_spill] sm:$0xff] }
0x15cd   :  { %v6932_v47 = vsel %vm46_vm7, %v13228_v14, %v6922_v16  ;;  %v6931_v41 = vsel %vm46_vm7, %v6922_v16, %v13230_v24  ;;  %7368 = vmatprep.subr.mxu1 %v6954_v32  ;;  %v15404_v32 = vld [vmem:[#allocation38_spill] sm:$0xff] }
0x15ce   :  { %v6933_v38 = vmul.f32 %v6932_v47, %v15401_v25  ;;  %v6934_v46 = vmul.f32 %v6931_v41, %v15402_v50  ;;  %7369 = vmatpush1.msra.mxu1 %v6953_v45  ;;  %v15407_v25 = vld [vmem:[#allocation116_spill] sm:$0xff] }
0x15cf   :  { %v15410_v50 = vld [vmem:[#allocation24_spill] sm:$0xff] }
0x15d0   :  { %v7052_v2 = vpop.permute.xlu0 %7051  ;;  %7370 = vmatprep.subr.mxu1 %v6934_v46  ;;  %v7072_v53 = vpop.permute.xlu1 %7071 }
0x15d1   :  { %v7073_v30 = vsel %vm344_vm0, %v13158_v3, %v7072_v53  ;;  %v7076_v61 = vsel %vm344_vm0, %v7072_v53, %v13147_v19  ;;  %7371 = vmatpush1.msra.mxu1 %v6933_v38  ;;  %v7056_v16 = vsel %vm302_vm1, %v7052_v2, %v13145_v36  ;;  %v7053_v51 = vsel %vm302_vm1, %v7050_v29, %v7052_v2  ;;  %v15406_v36 = vld [vmem:[#allocation117_spill] sm:$0xff]  ;;  %v15411_v53 = vld [vmem:[#allocation140_spill] sm:$0xff] }
0x15d2   :  { %v7079_v37 = vmul.f32 %v7073_v30, %v15331_v22  ;;  %v7080_v34 = vmul.f32 %v7076_v61, %v15328_v28  ;;  %7372 = vmatprep.subr.mxu1 %v15403_v21  ;;  %v7060_v45 = vmul.f32 %v7056_v16, %v15334_v60  ;;  %v7059_v29 = vmul.f32 %v7053_v51, %v15335_v39  ;;  %v15412_v30 = vld [vmem:[#allocation141_spill] sm:$0xff]  ;;  %v15417_v51 = vld [vmem:[#allocation134_spill] sm:$0xff] }
0x15d3   :  { %7373 = vmatpush1.msra.mxu1 %v15404_v32  ;;  %v15418_v32 = vld [vmem:[#allocation83_spill] sm:$0xff] }
0x15d4   :  { %v7012_v3 = vpop.permute.xlu0 %7011  ;;  %7374 = vmatprep.subr.mxu1 %v15405_v1  ;;  %7496 = vmatprep.subr.mxu0 %v7080_v34  ;;  %v7032_v19 = vpop.permute.xlu1 %7031  ;;  %v15414_v34 = vld [vmem:[#allocation80_spill] sm:$0xff] }
0x15d5   :  { %v7033_v22 = vsel %vm260_vm2, %v13170_v20, %v7032_v19  ;;  %v7036_v28 = vsel %vm260_vm2, %v7032_v19, %v13151_v56  ;;  %7375 = vmatpush1.msra.mxu1 %v15406_v36  ;;  %7497 = vmatpush1.msra.mxu0 %v7079_v37  ;;  %v7016_v41 = vsel %vm218_vm3, %v7012_v3, %v13149_v44  ;;  %v15408_v20 = vld [vmem:[#allocation115_spill] sm:$0xff]  ;;  %v15413_v37 = vld [vmem:[#allocation77_spill] sm:$0xff]  ;;  %v15420_v1 = vld [vmem:[#allocation96_spill] sm:$0xff] }
0x15d6   :  { %v7040_v47 = vmul.f32 %v7036_v28, %v15337_v33  ;;  %v7039_v60 = vmul.f32 %v7033_v22, %v15339_v49  ;;  %7376 = vmatprep.subr.mxu1 %v15407_v25  ;;  %7498 = vmatprep.subr.mxu0 %v7060_v45  ;;  %v7013_v56 = vsel %vm218_vm3, %v13188_v8, %v7012_v3  ;;  %v13278_v33 = vld [vmem:[%s13427_s2 + $0x160] sm:$0xff]  ;;  %v15427_v45 = vld [vmem:[#allocation17_spill] sm:$0xff]  ;;  %v15430_v28 = vld [vmem:[#allocation16_spill] sm:$0xff] }
0x15d7   :  { %7377 = vmatpush1.msra.mxu1 %v15408_v20  ;;  %7499 = vmatpush1.msra.mxu0 %v7059_v29  ;;  %v15409_v44 = vld [vmem:[#allocation35_spill] sm:$0xff]  ;;  %v7020_v49 = vmul.f32 %v7016_v41, %v15341_v55  ;;  %v7019_v46 = vmul.f32 %v7013_v56, %v15343_v5  ;;  %v15431_v36 = vld [vmem:[#allocation85_spill] sm:$0xff]  ;;  %v15432_v29 = vld [vmem:[#allocation84_spill] sm:$0xff] }
0x15d8   :  { %v6966_v39 = vpop.permute.xlu0 %6965  ;;  %v6986_v38 = vpop.permute.xlu1 %6985  ;;  %7378 = vmatprep.subr.mxu1 %v15409_v44  ;;  %7500 = vmatprep.subr.mxu0 %v7040_v47  ;;  %v15425_v19 = vld [vmem:[#allocation139_spill] sm:$0xff]  ;;  %v15443_v25 = vld [vmem:[#allocation48_spill] sm:$0xff]  ;;  %v15444_v56 = vld [vmem:[#allocation142_spill] sm:$0xff] }
0x15d9   :  { %7379 = vmatpush1.msra.mxu1 %v15410_v50  ;;  %v6989_v8 = vsel %vm172_vm4, %v6986_v38, %v13199_v27  ;;  %7501 = vmatpush1.msra.mxu0 %v7039_v60  ;;  %v6990_v2 = vsel %vm172_vm4, %v13153_v11, %v6986_v38  ;;  %v6969_v5 = vsel %vm130_vm5, %v6966_v39, %v13215_v58  ;;  %v15429_v22 = vld [vmem:[#allocation75_spill] sm:$0xff]  ;;  %v15441_v60 = vld [vmem:[#allocation102_spill] sm:$0xff] }
0x15da   :  { %7620 = vmatmul.mubr.msk.f32.vlgmr.msra.gmra.mxu1 %vm2373_vm12, %v13278_v33  ;;  %7419 = vmatprep.subr.mxu1 %v15411_v53  ;;  %v6970_v27 = vsel %vm130_vm5, %v13160_v4, %v6966_v39  ;;  %v6996_v61 = vmul.f32 %v6989_v8, %v15217_v13  ;;  %v6995_v11 = vmul.f32 %v6990_v2, %v15221_v26  ;;  %v15415_v4 = vld [vmem:[#allocation3_spill] sm:$0xff]  ;;  %v15445_v20 = vld [vmem:[#allocation138_spill] sm:$0xff]  ;;  %v15446_v39 = vld [vmem:[#allocation109_spill] sm:$0xff] }
0x15db   :  { %7502 = vmatprep.subr.mxu0 %v7020_v49  ;;  %7420 = vmatpush1.msra.mxu1 %v15412_v30  ;;  %v6976_v21 = vmul.f32 %v6969_v5, %v15226_v52  ;;  %v15437_v47 = vld [vmem:[#allocation23_spill] sm:$0xff]  ;;  %v15449_v44 = vld [vmem:[#allocation122_spill] sm:$0xff]  ;;  %v15450_v49 = vld [vmem:[#allocation5_spill] sm:$0xff] }
0x15dc   :  { %v6946_v55 = vpop.permute.xlu1 %6945  ;;  %7503 = vmatpush1.msra.mxu0 %v7019_v46  ;;  %v6926_v16 = vpop.permute.xlu0 %6925  ;;  %7421 = vmatprep.subr.mxu1 %v15413_v37  ;;  %v15439_v41 = vld [vmem:[#allocation59_spill] sm:$0xff]  ;;  %v15452_v46 = vld [vmem:[#allocation46_spill] sm:$0xff]  ;;  %v15453_v8 = vld [vmem:[#allocation45_spill] sm:$0xff] }
0x15dd   :  { %7504 = vmatprep.subr.mxu0 %v13112_v57  ;;  %v6949_v58 = vsel %vm88_vm6, %v6946_v55, %v13217_v6  ;;  %7422 = vmatpush1.msra.mxu1 %v15414_v34  ;;  %v6950_v13 = vsel %vm88_vm6, %v13186_v48, %v6946_v55  ;;  %v6975_v57 = vmul.f32 %v6970_v27, %v15224_v0  ;;  %v15416_v6 = vld [vmem:[#allocation56_spill] sm:$0xff]  ;;  %v15447_v38 = vld [vmem:[#allocation39_spill] sm:$0xff]  ;;  %v15454_v2 = vld [vmem:[#allocation53_spill] sm:$0xff] }
0x15de   :  { %7505 = vmatpush1.msra.mxu0 %v13098_v62  ;;  %7423 = vmatprep.subr.mxu1 %v15415_v4  ;;  %v6929_v26 = vsel %vm46_vm7, %v6926_v16, %v13228_v14  ;;  %v6930_v52 = vsel %vm46_vm7, %v13230_v24, %v6926_v16  ;;  %v6956_v62 = vmul.f32 %v6949_v58, %v15232_v54  ;;  %v15419_v14 = vld [vmem:[#allocation90_spill] sm:$0xff]  ;;  %v15422_v54 = vld [vmem:[#allocation124_spill] sm:$0xff]  ;;  %v15451_v50 = vld [vmem:[#allocation7_spill] sm:$0xff] }
0x15df   :  { %7506 = vmatprep.subr.mxu0 %v6996_v61  ;;  %7424 = vmatpush1.msra.mxu1 %v15416_v6  ;;  %v6955_v48 = vmul.f32 %v6950_v13, %v15228_v59  ;;  %v6936_v0 = vmul.f32 %v6929_v26, %v15237_v35  ;;  %v6935_v3 = vmul.f32 %v6930_v52, %v15235_v23  ;;  %v15423_v59 = vld [vmem:[#allocation101_spill] sm:$0xff]  ;;  %v15424_v24 = vld [vmem:[#allocation54_spill] sm:$0xff]  ;;  %v15428_v23 = vld [vmem:[#allocation95_spill] sm:$0xff] }
0x15e0   :  { %7507 = vmatpush1.msra.mxu0 %v6995_v11  ;;  %7425 = vmatprep.subr.mxu1 %v15417_v51  ;;  %v15426_v35 = vld [vmem:[#allocation61_spill] sm:$0xff]  ;;  %v15457_v5 = vld [vmem:[#allocation106_spill] sm:$0xff]  ;;  %v15459_v27 = vld [vmem:[#allocation123_spill] sm:$0xff] }
0x15e1   :  { %7508 = vmatprep.subr.mxu0 %v6976_v21  ;;  %7426 = vmatpush1.msra.mxu1 %v15418_v32  ;;  %v15455_v53 = vld [vmem:[#allocation137_spill] sm:$0xff]  ;;  %v15458_v30 = vld [vmem:[#allocation130_spill] sm:$0xff]  ;;  %v15461_v16 = vld [vmem:[#allocation67_spill] sm:$0xff] }
0x15e2   :  { %7509 = vmatpush1.msra.mxu0 %v6975_v57  ;;  %7427 = vmatprep.subr.mxu1 %v15419_v14  ;;  %v15456_v55 = vld [vmem:[#allocation105_spill] sm:$0xff]  ;;  %v15460_v61 = vld [vmem:[#allocation126_spill] sm:$0xff]  ;;  %v15463_v11 = vld [vmem:[#allocation47_spill] sm:$0xff] }
0x15e3   :  { %7510 = vmatprep.subr.mxu0 %v6956_v62  ;;  %7428 = vmatpush1.msra.mxu1 %v15420_v1  ;;  %v15462_v37 = vld [vmem:[#allocation49_spill] sm:$0xff]  ;;  %v15464_v58 = vld [vmem:[#allocation143_spill] sm:$0xff]  ;;  %v15465_v34 = vld [vmem:[#allocation128_spill] sm:$0xff] }
0x15e4   :  { %7511 = vmatpush1.msra.mxu0 %v6955_v48  ;;  %7429 = vmatprep.subr.mxu1 %v15421_v9  ;;  %v15466_v21 = vld [vmem:[#allocation146_spill] sm:$0xff]  ;;  %v15467_v13 = vld [vmem:[#allocation127_spill] sm:$0xff]  ;;  %v15469_v57 = vld [vmem:[#allocation108_spill] sm:$0xff] }
0x15e5   :  { %7512 = vmatprep.subr.mxu0 %v6936_v0  ;;  %7430 = vmatpush1.msra.mxu1 %v15422_v54  ;;  %v15468_v4 = vld [vmem:[#allocation70_spill] sm:$0xff]  ;;  %v15471_v6 = vld [vmem:[#allocation15_spill] sm:$0xff]  ;;  %v15473_v52 = vld [vmem:[#allocation33_spill] sm:$0xff] }
0x15e6   :  { %7513 = vmatpush1.msra.mxu0 %v6935_v3  ;;  %7431 = vmatprep.subr.mxu1 %v15423_v59  ;;  %v15470_v26 = vld [vmem:[#allocation94_spill] sm:$0xff]  ;;  %v15474_v9 = vld [vmem:[#allocation99_spill] sm:$0xff] }
0x15e7   :  { %7514 = vmatprep.subr.mxu0 %v15424_v24  ;;  %7432 = vmatpush1.msra.mxu1 %v15425_v19  ;;  %v15475_v19 = vld [vmem:[#allocation114_spill] sm:$0xff] }
0x15e8   :  { %7515 = vmatpush1.msra.mxu0 %v15426_v35  ;;  %7433 = vmatprep.subr.mxu1 %v15427_v45 }
0x15e9   :  { %7516 = vmatprep.subr.mxu0 %v12941_v63  ;;  %7434 = vmatpush1.msra.mxu1 %v15428_v23  ;;  %v15433_v63 = vld [vmem:[#allocation93_spill] sm:$0xff]  ;;  %v7272_v62 = vpop.permute.xlu1 %7271 }
0x15ea   :  { %7517 = vmatpush1.msra.mxu0 %v12948_v40  ;;  %7435 = vmatprep.subr.mxu1 %v15429_v22  ;;  %v15434_v40 = vld [vmem:[#allocation92_spill] sm:$0xff] }
0x15eb   :  { %7518 = vmatprep.subr.mxu0 %v12959_v18  ;;  %7436 = vmatpush1.msra.mxu1 %v15430_v28  ;;  %v15435_v18 = vld [vmem:[#allocation103_spill] sm:$0xff]  ;;  %v7643_v22 = vld [vmem:[%s13424_s0 + $0x8] sm:$0xff] }
0x15ec   :  { %7519 = vmatpush1.msra.mxu0 %v12964_v7  ;;  %7437 = vmatprep.subr.mxu1 %v15431_v36  ;;  %v15436_v7 = vld [vmem:[#allocation104_spill] sm:$0xff] }
0x15ed   :  { %7520 = vmatprep.subr.mxu0 %v12969_v42  ;;  %7438 = vmatpush1.msra.mxu1 %v15432_v29  ;;  %v15438_v42 = vld [vmem:[#allocation51_spill] sm:$0xff] }
0x15ee   :  { %7521 = vmatpush1.msra.mxu0 %v12974_v31  ;;  %7439 = vmatprep.subr.mxu1 %v15433_v63  ;;  %v15440_v31 = vld [vmem:[#allocation65_spill] sm:$0xff] }
0x15ef   :  { %7483 = vmatprep.mubr.f32.mxu1 %v13053_v15  ;;  %7440 = vmatpush1.msra.mxu1 %v15434_v40  ;;  %v15442_v15 = vld [vmem:[#allocation100_spill] sm:$0xff] }
0x15f0   :  { %7621 = vmatmul.mubr.msk.f32.vlgmr.msra.gmra.mxu0 %vm2373_vm12, %v13278_v33  ;;  %7441 = vmatprep.subr.mxu1 %v15435_v18  ;;  %v15448_v33 = vld [vmem:[#allocation118_spill] sm:$0xff] }
0x15f1   :  { %7442 = vmatpush1.msra.mxu1 %v15436_v7 }
0x15f2   :  { %7443 = vmatprep.subr.mxu1 %v15437_v47 }
0x15f3   :  { %7444 = vmatpush1.msra.mxu1 %v15438_v42 }
0x15f4   :  { %7445 = vmatprep.subr.mxu1 %v15439_v41 }
0x15f5   :  { %7446 = vmatpush1.msra.mxu1 %v15440_v31 }
0x15f6   :  { %7447 = vmatprep.subr.mxu1 %v15441_v60 }
0x15f7   :  { %7448 = vmatpush1.msra.mxu1 %v15442_v15 }
0x15f8   :  { %7449 = vmatprep.subr.mxu1 %v15443_v25 }
0x15f9   :  { %7450 = vmatpush1.msra.mxu1 %v15444_v56 }
0x15fa   :  { %7451 = vmatprep.subr.mxu1 %v15445_v20 }
0x15fb   :  { %7452 = vmatpush2.msra.mxu1 %v15446_v39  ;;  %v7644_v39 = vld [vmem:[%s13424_s0 + $0x10] sm:$0xff] }
0x15fc   :  { %7453 = vmatprep.subr.mxu1 %v15447_v38 }
0x15fd   :  { %7454 = vmatpush2.msra.mxu1 %v15448_v33 }
0x15fe   :  { %7455 = vmatprep.subr.mxu1 %v15449_v44  ;;  %v7645_v44 = vld [vmem:[%s13424_s0 + $0x18] sm:$0xff] }
0x15ff   :  { %7456 = vmatpush2.msra.mxu1 %v15450_v49 }
0x1600   :  { %7457 = vmatprep.subr.mxu1 %v15451_v50 }
0x1601   :  { %7458 = vmatpush2.msra.mxu1 %v15452_v46 }
0x1602   :  { %7459 = vmatprep.subr.mxu1 %v15453_v8 }
0x1603   :  { %7460 = vmatpush2.msra.mxu1 %v15454_v2 }
0x1604   :  { %7461 = vmatprep.subr.mxu1 %v15455_v53 }
0x1605   :  { %7462 = vmatpush2.msra.mxu1 %v15456_v55 }
0x1606   :  { %7463 = vmatprep.subr.mxu1 %v15457_v5 }
0x1607   :  { %7464 = vmatpush2.msra.mxu1 %v15458_v30 }
0x1608   :  { %7465 = vmatprep.subr.mxu1 %v15459_v27 }
0x1609   :  { %7466 = vmatpush2.msra.mxu1 %v15460_v61 }
0x160a   :  { %7467 = vmatprep.subr.mxu1 %v15461_v16 }
0x160b   :  { %7468 = vmatpush2.msra.mxu1 %v15462_v37 }
0x160c   :  { %7469 = vmatprep.subr.mxu1 %v15463_v11 }
0x160d   :  { %7470 = vmatpush2.msra.mxu1 %v15338_v12  ;;  %v15472_v12 = vld [vmem:[#allocation14_spill] sm:$0xff] }
0x160e   :  { %7471 = vmatprep.subr.mxu1 %v15464_v58 }
0x160f   :  { %7472 = vmatpush2.msra.mxu1 %v15342_v10  ;;  %v7343_v10 = vpop.f32.mrf.mxu0 }
0x1610   :  { %7473 = vmatprep.subr.mxu1 %v15465_v34  ;;  %v7344_v48 = vadd.f32 %v7343_v10, %v7272_v62 }
0x1611   :  { %7474 = vmatpush2.msra.mxu1 %v15466_v21  ;;  %v7345_v51 = vpop.f32.mrf.mxu0 }
0x1612   :  { %7475 = vmatprep.subr.mxu1 %v15467_v13  ;;  %v7346_v14 = vadd.f32 %v7345_v51, %v7272_v62 }
0x1613   :  { %7476 = vmatpush2.msra.mxu1 %v15468_v4 }
0x1614   :  { %7477 = vmatprep.subr.mxu1 %v15469_v57 }
0x1615   :  { %7478 = vmatpush2.msra.mxu1 %v12526_v43 }
0x1616   :  { %7479 = vmatprep.subr.mxu1 %v15470_v26 }
0x1617   :  { %7480 = vmatpush2.msra.mxu1 %v15471_v6 }
0x1618   :  { %7481 = vmatprep.subr.mxu1 %v15472_v12 }
0x1619   :  { %7482 = vmatpush2.msra.mxu1 %v15473_v52 }
0x161a   :  { %7484 = vmatmul.mubr.f32.vlgmr.msra.gmra.mxu1 %v13064_v17  ;;  %v7642_v17 = vld [vmem:[%s13424_s0] sm:$0xff] }
0x169a   :  { %v7414_v32 = vpop.f32.mrf.mxu1 }
0x169b   :  { %v7415_v0 = vadd.f32 %v7414_v32, %v7344_v48 }
0x169c   :  { %v7416_v3 = vpop.f32.mrf.mxu1 }
0x169d   :  { %v7561_v1 = vmul.f32 0.2, %v7415_v0  ;;  %v7417_v43 = vadd.f32 %v7416_v3, %v7346_v14 }
0x169f   :  { %v7565_v54 = vadd.f32 %v7561_v1, %v15474_v9  ;;  %v7562_v59 = vmul.f32 0.2, %v7417_v43 }
0x16a1   :  { %v7569_v24 = vmul.f32 0.2, %v7565_v54  ;;  %v7566_v35 = vadd.f32 %v7562_v59, %v15475_v19 }
0x16a3   :  { %v7573_v45 = vadd.f32 %v7642_v17, %v7569_v24  ;;  %v7570_v23 = vmul.f32 0.2, %v7566_v35 }
0x16a5   :  { %7577 = vst [vmem:[%s13428_s4] sm:$0xff] %v7573_v45  ;;  %v7574_v28 = vadd.f32 %v7643_v22, %v7570_v23 }
0x16a7   :  { %7578 = vst [vmem:[%s13428_s4 + $0x8] sm:$0xff] %v7574_v28 }
0x16b0   :  { %v7556_v29 = vpop.f32.mrf.mxu0 }
0x16b2   :  { %v7558_v41 = vpop.f32.mrf.mxu0 }
0x16da   :  { %v7485_v36 = vpop.f32.mrf.mxu1 }
0x16db   :  { %v7486_v63 = vadd.f32 %v7485_v36, %v7272_v62 }
0x16dc   :  { %v7487_v40 = vpop.f32.mrf.mxu1 }
0x16dd   :  { %v7557_v47 = vadd.f32 %v7556_v29, %v7486_v63  ;;  %v7488_v42 = vadd.f32 %v7487_v40, %v7272_v62 }
0x16df   :  { %v7563_v31 = vmul.f32 0.2, %v7557_v47  ;;  %v7559_v60 = vadd.f32 %v7558_v41, %v7488_v42 }
0x16e1   :  { %v7567_v15 = vadd.f32 %v7563_v31, %v15436_v7  ;;  %v7564_v25 = vmul.f32 0.2, %v7559_v60 }
0x16e3   :  { %v7571_v56 = vmul.f32 0.2, %v7567_v15  ;;  %v7568_v20 = vadd.f32 %v7564_v25, %v15435_v18 }
0x16e5   :  { %v7575_v38 = vadd.f32 %v7644_v39, %v7571_v56  ;;  %v7572_v33 = vmul.f32 0.2, %v7568_v20 }
0x16e7   :  { %7579 = vst [vmem:[%s13428_s4 + $0x10] sm:$0xff] %v7575_v38  ;;  %v7576_v49 = vadd.f32 %v7645_v44, %v7572_v33 }
0x16e9   :  { %7580 = vst [vmem:[%s13428_s4 + $0x18] sm:$0xff] %v7576_v49 }

</bundles_post_ra>
